<compile_context>
chip_gen: v6e
topology: v6e:2x2x1
jax: 0.10.0
libtpu: 0.0.40
codegen_flags: <defaults>
</compile_context>

<pallas_src>
import numpy as np
import jax
import jax.numpy as jnp
from jax.experimental import pallas as pl
from jax.experimental.pallas import tpu as pltpu

_PARALLEL = pltpu.CompilerParams(dimension_semantics=("parallel",))


# ----------------------------- Pallas kernels ------------------------------

def _conv1x1_stats_kernel(x_ref, w_ref, o_ref, sum_ref, sq_ref):
    """1x1 conv (matmul) + per-channel sum / sumsq partials for one image.

    x_ref: (1, P, Cin) bf16   w_ref: (Cin, Cout) bf16
    o_ref: (1, P, Cout) bf16  sum_ref/sq_ref: (1, 1, Cout) f32
    """
    acc = jnp.dot(x_ref[0], w_ref[...], preferred_element_type=jnp.float32)
    o_ref[0] = acc.astype(o_ref.dtype)
    sum_ref[0] = jnp.sum(acc, axis=0, keepdims=True)
    sq_ref[0] = jnp.sum(acc * acc, axis=0, keepdims=True)


def _conv3x3_stats_kernel(x_ref, w_ref, o_ref, sum_ref, sq_ref):
    """Fused 3x3 conv (padding=1) + per-channel sum / sumsq partials.

    x_ref: (1, H+2, W+2, Cin) f32 (spatially pre-padded image)
    w_ref: (9, Cin, Cout) bf16    (tap-major HWIO weights)
    o_ref: (1, H*W, Cout) bf16    (raw, pre-BN conv output)
    sum_ref/sq_ref: (1, 1, Cout) f32
    """
    _, hp, wp, cin = x_ref.shape
    h, w = hp - 2, wp - 2
    cout = o_ref.shape[-1]
    acc = jnp.zeros((h * w, cout), jnp.float32)
    for di in range(3):                    # 9 taps, unrolled at trace time
        for dj in range(3):
            a = x_ref[0, di:di + h, dj:dj + w, :].reshape(h * w, cin)
            acc = acc + jnp.dot(a.astype(jnp.bfloat16), w_ref[di * 3 + dj],
                                preferred_element_type=jnp.float32)
    o_ref[0] = acc.astype(o_ref.dtype)
    sum_ref[0] = jnp.sum(acc, axis=0, keepdims=True)
    sq_ref[0] = jnp.sum(acc * acc, axis=0, keepdims=True)


def _upsample_concat_bn1_kernel(t_ref, x_ref, raw_ref, sc_ref, sh_ref, o_ref):
    """Bilinear upsample (align_corners=True) of x + BN1-apply/ReLU of conv1's
    raw output, concatenated in torch.cat((x_4, low_level_feature)) order.

    t_ref: (Pout, Pin) f32    x_ref: (1, Pin, Cx) f32
    raw_ref: (1, Pout, C1) bf16   sc_ref/sh_ref: (1, C1) f32
    o_ref: (1, Pout, Cx + C1) f32
    """
    up = jnp.dot(t_ref[...], x_ref[0], preferred_element_type=jnp.float32)
    llf = jnp.maximum(raw_ref[0].astype(jnp.float32) * sc_ref[...] + sh_ref[...],
                      0.0)
    o_ref[0] = jnp.concatenate([up, llf], axis=-1).astype(o_ref.dtype)


def _bn_relu_kernel(x_ref, sc_ref, sh_ref, o_ref):
    """Fused folded-BatchNorm (per-channel scale/shift) + ReLU."""
    y = x_ref[0].astype(jnp.float32) * sc_ref[...] + sh_ref[...]
    o_ref[0] = jnp.maximum(y, 0.0).astype(o_ref.dtype)


# ----------------------------- Pallas wrappers ------------------------------

def conv1x1_stats(x, w):
    n, p, cin = x.shape
    cout = w.shape[1]
    return pl.pallas_call(
        _conv1x1_stats_kernel,
        out_shape=(jax.ShapeDtypeStruct((n, p, cout), jnp.bfloat16),
                   jax.ShapeDtypeStruct((n, 1, cout), jnp.float32),
                   jax.ShapeDtypeStruct((n, 1, cout), jnp.float32)),
        grid=(n,),
        in_specs=[pl.BlockSpec((1, p, cin), lambda b: (b, 0, 0)),
                  pl.BlockSpec((cin, cout), lambda b: (0, 0))],
        out_specs=(pl.BlockSpec((1, p, cout), lambda b: (b, 0, 0)),
                   pl.BlockSpec((1, 1, cout), lambda b: (b, 0, 0)),
                   pl.BlockSpec((1, 1, cout), lambda b: (b, 0, 0))),
        compiler_params=_PARALLEL,
    )(x, w)


def conv3x3_stats(x_pad, w):
    n, hp, wp, cin = x_pad.shape
    h, wd = hp - 2, wp - 2
    cout = w.shape[-1]
    return pl.pallas_call(
        _conv3x3_stats_kernel,
        out_shape=(jax.ShapeDtypeStruct((n, h * wd, cout), jnp.bfloat16),
                   jax.ShapeDtypeStruct((n, 1, cout), jnp.float32),
                   jax.ShapeDtypeStruct((n, 1, cout), jnp.float32)),
        grid=(n,),
        in_specs=[pl.BlockSpec((1, hp, wp, cin), lambda b: (b, 0, 0, 0)),
                  pl.BlockSpec((9, cin, cout), lambda b: (0, 0, 0))],
        out_specs=(pl.BlockSpec((1, h * wd, cout), lambda b: (b, 0, 0)),
                   pl.BlockSpec((1, 1, cout), lambda b: (b, 0, 0)),
                   pl.BlockSpec((1, 1, cout), lambda b: (b, 0, 0))),
        compiler_params=_PARALLEL,
    )(x_pad, w)


def upsample_concat_bn1(t, x_r, raw1, scale1, shift1):
    n, p_in, cx = x_r.shape
    _, p_out, c1 = raw1.shape
    return pl.pallas_call(
        _upsample_concat_bn1_kernel,
        out_shape=jax.ShapeDtypeStruct((n, p_out, cx + c1), jnp.float32),
        grid=(n,),
        in_specs=[pl.BlockSpec((p_out, p_in), lambda b: (0, 0)),
                  pl.BlockSpec((1, p_in, cx), lambda b: (b, 0, 0)),
                  pl.BlockSpec((1, p_out, c1), lambda b: (b, 0, 0)),
                  pl.BlockSpec((1, c1), lambda b: (0, 0)),
                  pl.BlockSpec((1, c1), lambda b: (0, 0))],
        out_specs=pl.BlockSpec((1, p_out, cx + c1), lambda b: (b, 0, 0)),
        compiler_params=_PARALLEL,
    )(t, x_r, raw1, scale1, shift1)


def bn_relu(x, scale, shift, out_dtype=jnp.float32):
    n, p, c = x.shape
    return pl.pallas_call(
        _bn_relu_kernel,
        out_shape=jax.ShapeDtypeStruct((n, p, c), out_dtype),
        grid=(n,),
        in_specs=[pl.BlockSpec((1, p, c), lambda b: (b, 0, 0)),
                  pl.BlockSpec((1, c), lambda b: (0, 0)),
                  pl.BlockSpec((1, c), lambda b: (0, 0))],
        out_specs=pl.BlockSpec((1, p, c), lambda b: (b, 0, 0)),
        compiler_params=_PARALLEL,
    )(x, scale, shift)


# ------------------------------- JAX glue -----------------------------------

def _interp_matrix(out_size, in_size):
    # Row i holds the bilinear weights for output coord i (align_corners=True).
    a = np.zeros((out_size, in_size), dtype=np.float32)
    scale = 0.0 if out_size == 1 else (in_size - 1) / (out_size - 1)
    for i in range(out_size):
        src = i * scale
        i0 = min(int(np.floor(src)), in_size - 1)
        i1 = min(i0 + 1, in_size - 1)
        w1 = src - i0
        a[i, i0] += 1.0 - w1
        a[i, i1] += w1
    return a


def _upsample_matrix(h_out, w_out, h_in, w_in):
    # out[y*Wout + x] = sum_{i,j} A[y,i] * B[x,j] * in[i*Win + j]
    return jnp.asarray(np.kron(_interp_matrix(h_out, h_in),
                               _interp_matrix(w_out, w_in)))


def _bn_params(psum, psq, count, gamma, beta, eps=1e-5):
    # psum / psq: (N, 1, C) per-image partials -> folded scale / shift (1, C).
    s = jnp.sum(psum, axis=0)
    q = jnp.sum(psq, axis=0)
    mean = s / count
    var = q / count - mean * mean            # biased var (PyTorch train mode)
    scale = gamma[None, :] / jnp.sqrt(var + eps)
    shift = beta[None, :] - mean * scale
    return scale, shift


def init_params(key):
    k1, k2, k3 = jax.random.split(key, 3)

    def kaiming(k, cout, cin, kh, kw):
        std = np.sqrt(2.0 / (cin * kh * kw))     # torch kaiming_normal_, fan_in
        return jax.random.normal(k, (cout, cin, kh, kw), jnp.float32) * std

    return {
        "w1": kaiming(k1, 48, 256, 1, 1),
        "g1": jnp.ones((48,), jnp.float32), "b1": jnp.zeros((48,), jnp.float32),
        "w2": kaiming(k2, 256, 304, 3, 3),
        "g2": jnp.ones((256,), jnp.float32), "b2": jnp.zeros((256,), jnp.float32),
        "w3": kaiming(k3, 256, 256, 3, 3),
        "g3": jnp.ones((256,), jnp.float32), "b3": jnp.zeros((256,), jnp.float32),
    }


@jax.jit
def decoder_forward(params, x_nchw, low_nchw):
    n, cx, hin, win = x_nchw.shape
    _, cl, hl, wl = low_nchw.shape
    count = n * hl * wl

    # conv1 (1x1, 256->48) + fused per-channel stats on the low-level feature
    low_r = (jnp.transpose(low_nchw, (0, 2, 3, 1))
             .reshape(n, hl * wl, cl).astype(jnp.bfloat16))
    w1 = params["w1"][:, :, 0, 0].T.astype(jnp.bfloat16)           # (256, 48)
    raw1, s1, q1 = conv1x1_stats(low_r, w1)
    scale1, shift1 = _bn_params(s1, q1, count, params["g1"], params["b1"])
    c1 = raw1.shape[-1]

    # fused: bilinear upsample (align_corners=True) + BN1+ReLU + channel concat
    t = _upsample_matrix(hl, wl, hin, win)                         # (hl*wl, hin*win)
    x_r = jnp.transpose(x_nchw, (0, 2, 3, 1)).reshape(n, hin * win, cx)
    cat = upsample_concat_bn1(t, x_r, raw1, scale1, shift1)        # (n, hl*wl, 304)
    cat = cat.reshape(n, hl, wl, cx + c1)

    # conv2 (3x3, pad 1, 304->256) + fused stats, then BN2+ReLU
    w2 = (jnp.transpose(params["w2"], (2, 3, 1, 0))
          .reshape(9, cx + c1, 256).astype(jnp.bfloat16))
    cat_p = jnp.pad(cat, ((0, 0), (1, 1), (1, 1), (0, 0)))
    raw2, s2, q2 = conv3x3_stats(cat_p, w2)
    scale2, shift2 = _bn_params(s2, q2, count, params["g2"], params["b2"])
    h2 = bn_relu(raw2, scale2, shift2, out_dtype=jnp.float32)      # (n, hl*wl, 256)

    # conv3 (3x3, pad 1, 256->256) + fused stats, then BN3+ReLU
    w3 = (jnp.transpose(params["w3"], (2, 3, 1, 0))
          .reshape(9, 256, 256).astype(jnp.bfloat16))
    h2_p = jnp.pad(h2.reshape(n, hl, wl, 256), ((0, 0), (1, 1), (1, 1), (0, 0)))
    raw3, s3, q3 = conv3x3_stats(h2_p, w3)
    scale3, shift3 = _bn_params(s3, q3, count, params["g3"], params["b3"])
    out = bn_relu(raw3, scale3, shift3, out_dtype=jnp.float32)     # (n, hl*wl, 256)

    return jnp.transpose(out.reshape(n, hl, wl, 256), (0, 3, 1, 2))   # NCHW


# ------------------------- pure-JAX reference check -------------------------

def _reference_forward(params, x_nchw, low_nchw):
    dn = ("NCHW", "OIHW", "NCHW")

    def bn_relu_ref(y, g, b, eps=1e-5):
        mean = jnp.mean(y, axis=(0, 2, 3), keepdims=True)
        var = jnp.var(y, axis=(0, 2, 3), keepdims=True)
        y = (y - mean) / jnp.sqrt(var + eps) * g[None, :, None, None] \
            + b[None, :, None, None]
        return jnp.maximum(y, 0.0)

    llf = jax.lax.conv_general_dilated(low_nchw, params["w1"], (1, 1), "VALID",
                                       dimension_numbers=dn)
    llf = bn_relu_ref(llf, params["g1"], params["b1"])
    n, _, hl, wl = low_nchw.shape
    a = jnp.asarray(_interp_matrix(hl, x_nchw.shape[2]))
    b = jnp.asarray(_interp_matrix(wl, x_nchw.shape[3]))
    x4 = jnp.einsum("nchw,Hh,Ww->ncHW", x_nchw, a, b)
    cat = jnp.concatenate([x4, llf], axis=1)
    h = jax.lax.conv_general_dilated(cat, params["w2"], (1, 1), ((1, 1), (1, 1)),
                                     dimension_numbers=dn)
    h = bn_relu_ref(h, params["g2"], params["b2"])
    h = jax.lax.conv_general_dilated(h, params["w3"], (1, 1), ((1, 1), (1, 1)),
                                     dimension_numbers=dn)
    h = bn_relu_ref(h, params["g3"], params["b3"])
    return h


if __name__ == "__main__":
    key = jax.random.PRNGKey(0)
    kp, kx, kl = jax.random.split(key, 3)
    params = init_params(kp)

    # DeepLab-style shapes: x = 1/16-scale ASPP output (256 ch),
    # low_level_feature = 1/4-scale backbone feature (256 ch).
    x = jax.random.normal(kx, (2, 256, 4, 4), jnp.float32)
    low = jax.random.normal(kl, (2, 256, 8, 8), jnp.float32)

    out = decoder_forward(params, x, low)
    out = jax.block_until_ready(out)
    assert out.shape == (2, 256, 8, 8), out.shape

    ref = _reference_forward(params, x, low)
    if not np.allclose(np.asarray(out), np.asarray(ref), rtol=5e-2, atol=5e-2):
        err = float(jnp.max(jnp.abs(out - ref)))
        raise AssertionError(f"mismatch vs reference, max abs err {err}")

    # TODO(synk): BatchNorm running-stat updates (training-mode side effect) are
    # not modeled; only the forward output is reproduced.
    print("KERNEL_OK")
</pallas_src>

<mosaic_0001>
module attributes {stable_mosaic.version = 11 : i64} {
  func.func @_conv1x1_stats_kernel(%arg0: i32, %arg1: memref<1x64x256xbf16, #tpu.memory_space<vmem>>, %arg2: memref<256x48xbf16, #tpu.memory_space<vmem>>, %arg3: memref<1x64x48xbf16, #tpu.memory_space<vmem>>, %arg4: memref<1x1x48xf32, #tpu.memory_space<vmem>>, %arg5: memref<1x1x48xf32, #tpu.memory_space<vmem>>) attributes {dimension_semantics = [#tpu.dimension_semantics<parallel>], iteration_bounds = array<i64: 2>, scalar_prefetch = 0 : i64, scratch_operands = 0 : i64, tpu.core_type = #tpu.core_type<tc>, window_params = [{transform_indices = @transform_0, window_bounds = array<i64: 1, 64, 256>}, {pipeline_mode = #tpu.pipeline_mode<synchronous>, transform_indices = @transform_1, window_bounds = array<i64: 256, 48>}, {transform_indices = @transform_2, window_bounds = array<i64: 1, 64, 48>}, {transform_indices = @transform_3, window_bounds = array<i64: 1, 1, 48>}, {transform_indices = @transform_4, window_bounds = array<i64: 1, 1, 48>}]} {
    %c0 = arith.constant 0 : index
    %c0_0 = arith.constant 0 : index
    %c0_1 = arith.constant 0 : index
    %0 = vector.load %arg1[%c0, %c0_0, %c0_1] : memref<1x64x256xbf16, #tpu.memory_space<vmem>>, vector<1x64x256xbf16>
    %1 = vector.shape_cast %0 : vector<1x64x256xbf16> to vector<64x256xbf16>
    %c0_2 = arith.constant 0 : index
    %c0_3 = arith.constant 0 : index
    %2 = vector.load %arg2[%c0_2, %c0_3] : memref<256x48xbf16, #tpu.memory_space<vmem>>, vector<256x48xbf16>
    %cst = arith.constant dense<0.000000e+00> : vector<64x48xf32>
    %3 = tpu.matmul %1, %2, %cst {dimension_numbers = #tpu.dot_dimension_numbers<[1], [0], [0], [1], [0, 0, 1, 1], [], []>} : vector<64x256xbf16>, vector<256x48xbf16>, vector<64x48xf32> -> vector<64x48xf32>
    %4 = arith.truncf %3 : vector<64x48xf32> to vector<64x48xbf16>
    %c0_4 = arith.constant 0 : index
    %c0_5 = arith.constant 0 : index
    %c0_6 = arith.constant 0 : index
    %5 = vector.load %arg3[%c0_4, %c0_5, %c0_6] : memref<1x64x48xbf16, #tpu.memory_space<vmem>>, vector<1x64x48xbf16>
    %6 = vector.shape_cast %5 : vector<1x64x48xbf16> to vector<64x48xbf16>
    %7 = vector.shape_cast %4 : vector<64x48xbf16> to vector<1x64x48xbf16>
    tpu.vector_store %arg3[%c0_4, %c0_5, %c0_6], %7 {strides = array<i32>} : memref<1x64x48xbf16, #tpu.memory_space<vmem>>, vector<1x64x48xbf16>,
    %cst_7 = arith.constant dense<0.000000e+00> : vector<48xf32>
    %8 = vector.multi_reduction <add>, %3, %cst_7 [0] : vector<64x48xf32> to vector<48xf32>
    %9 = vector.shape_cast %8 : vector<48xf32> to vector<1x48xf32>
    %c0_8 = arith.constant 0 : index
    %c0_9 = arith.constant 0 : index
    %c0_10 = arith.constant 0 : index
    %10 = vector.load %arg4[%c0_8, %c0_9, %c0_10] : memref<1x1x48xf32, #tpu.memory_space<vmem>>, vector<1x1x48xf32>
    %11 = vector.shape_cast %10 : vector<1x1x48xf32> to vector<1x48xf32>
    %12 = vector.shape_cast %9 : vector<1x48xf32> to vector<1x1x48xf32>
    tpu.vector_store %arg4[%c0_8, %c0_9, %c0_10], %12 {strides = array<i32>} : memref<1x1x48xf32, #tpu.memory_space<vmem>>, vector<1x1x48xf32>,
    %13 = arith.mulf %3, %3 : vector<64x48xf32>
    %cst_11 = arith.constant dense<0.000000e+00> : vector<48xf32>
    %14 = vector.multi_reduction <add>, %13, %cst_11 [0] : vector<64x48xf32> to vector<48xf32>
    %15 = vector.shape_cast %14 : vector<48xf32> to vector<1x48xf32>
    %c0_12 = arith.constant 0 : index
    %c0_13 = arith.constant 0 : index
    %c0_14 = arith.constant 0 : index
    %16 = vector.load %arg5[%c0_12, %c0_13, %c0_14] : memref<1x1x48xf32, #tpu.memory_space<vmem>>, vector<1x1x48xf32>
    %17 = vector.shape_cast %16 : vector<1x1x48xf32> to vector<1x48xf32>
    %18 = vector.shape_cast %15 : vector<1x48xf32> to vector<1x1x48xf32>
    tpu.vector_store %arg5[%c0_12, %c0_13, %c0_14], %18 {strides = array<i32>} : memref<1x1x48xf32, #tpu.memory_space<vmem>>, vector<1x1x48xf32>,
    return
  }
  func.func @transform_0(%arg0: i32) -> (i32, i32, i32) {
    %c0_i32 = arith.constant 0 : i32
    %c0_i32_0 = arith.constant 0 : i32
    %c0_i32_1 = arith.constant 0 : i32
    return %arg0, %c0_i32, %c0_i32_0 : i32, i32, i32
  }
  func.func @transform_1(%arg0: i32) -> (i32, i32) {
    %c0_i32 = arith.constant 0 : i32
    %c0_i32_0 = arith.constant 0 : i32
    %c0_i32_1 = arith.constant 0 : i32
    return %c0_i32, %c0_i32_0 : i32, i32
  }
  func.func @transform_2(%arg0: i32) -> (i32, i32, i32) {
    %c0_i32 = arith.constant 0 : i32
    %c0_i32_0 = arith.constant 0 : i32
    %c0_i32_1 = arith.constant 0 : i32
    return %arg0, %c0_i32, %c0_i32_0 : i32, i32, i32
  }
  func.func @transform_3(%arg0: i32) -> (i32, i32, i32) {
    %c0_i32 = arith.constant 0 : i32
    %c0_i32_0 = arith.constant 0 : i32
    %c0_i32_1 = arith.constant 0 : i32
    return %arg0, %c0_i32, %c0_i32_0 : i32, i32, i32
  }
  func.func @transform_4(%arg0: i32) -> (i32, i32, i32) {
    %c0_i32 = arith.constant 0 : i32
    %c0_i32_0 = arith.constant 0 : i32
    %c0_i32_1 = arith.constant 0 : i32
    return %arg0, %c0_i32, %c0_i32_0 : i32, i32, i32
  }
}

module attributes {stable_mosaic.version = 11 : i64} {
  func.func @_upsample_concat_bn1_kernel(%arg0: i32, %arg1: memref<64x16xf32, #tpu.memory_space<vmem>>, %arg2: memref<1x16x256xf32, #tpu.memory_space<vmem>>, %arg3: memref<1x64x48xbf16, #tpu.memory_space<vmem>>, %arg4: memref<1x48xf32, #tpu.memory_space<vmem>>, %arg5: memref<1x48xf32, #tpu.memory_space<vmem>>, %arg6: memref<1x64x304xf32, #tpu.memory_space<vmem>>) attributes {dimension_semantics = [#tpu.dimension_semantics<parallel>], iteration_bounds = array<i64: 2>, scalar_prefetch = 0 : i64, scratch_operands = 0 : i64, tpu.core_type = #tpu.core_type<tc>, window_params = [{pipeline_mode = #tpu.pipeline_mode<synchronous>, transform_indices = @transform_0, window_bounds = array<i64: 64, 16>}, {transform_indices = @transform_1, window_bounds = array<i64: 1, 16, 256>}, {transform_indices = @transform_2, window_bounds = array<i64: 1, 64, 48>}, {pipeline_mode = #tpu.pipeline_mode<synchronous>, transform_indices = @transform_3, window_bounds = array<i64: 1, 48>}, {pipeline_mode = #tpu.pipeline_mode<synchronous>, transform_indices = @transform_4, window_bounds = array<i64: 1, 48>}, {transform_indices = @transform_5, window_bounds = array<i64: 1, 64, 304>}]} {
    %c0 = arith.constant 0 : index
    %c0_0 = arith.constant 0 : index
    %0 = vector.load %arg1[%c0, %c0_0] : memref<64x16xf32, #tpu.memory_space<vmem>>, vector<64x16xf32>
    %c0_1 = arith.constant 0 : index
    %c0_2 = arith.constant 0 : index
    %c0_3 = arith.constant 0 : index
    %1 = vector.load %arg2[%c0_1, %c0_2, %c0_3] : memref<1x16x256xf32, #tpu.memory_space<vmem>>, vector<1x16x256xf32>
    %2 = vector.shape_cast %1 : vector<1x16x256xf32> to vector<16x256xf32>
    %cst = arith.constant dense<0.000000e+00> : vector<64x256xf32>
    %3 = tpu.matmul %0, %2, %cst {dimension_numbers = #tpu.dot_dimension_numbers<[1], [0], [0], [1], [0, 0, 1, 1], [], []>} : vector<64x16xf32>, vector<16x256xf32>, vector<64x256xf32> -> vector<64x256xf32>
    %c0_4 = arith.constant 0 : index
    %c0_5 = arith.constant 0 : index
    %c0_6 = arith.constant 0 : index
    %4 = vector.load %arg3[%c0_4, %c0_5, %c0_6] : memref<1x64x48xbf16, #tpu.memory_space<vmem>>, vector<1x64x48xbf16>
    %5 = vector.shape_cast %4 : vector<1x64x48xbf16> to vector<64x48xbf16>
    %6 = arith.extf %5 : vector<64x48xbf16> to vector<64x48xf32>
    %c0_7 = arith.constant 0 : index
    %c0_8 = arith.constant 0 : index
    %7 = vector.load %arg4[%c0_7, %c0_8] : memref<1x48xf32, #tpu.memory_space<vmem>>, vector<1x48xf32>
    %8 = vector.broadcast %7 : vector<1x48xf32> to vector<64x48xf32>
    %9 = arith.mulf %6, %8 : vector<64x48xf32>
    %c0_9 = arith.constant 0 : index
    %c0_10 = arith.constant 0 : index
    %10 = vector.load %arg5[%c0_9, %c0_10] : memref<1x48xf32, #tpu.memory_space<vmem>>, vector<1x48xf32>
    %11 = vector.broadcast %10 : vector<1x48xf32> to vector<64x48xf32>
    %12 = arith.addf %9, %11 : vector<64x48xf32>
    %cst_11 = arith.constant 0.000000e+00 : f32
    %13 = vector.broadcast %cst_11 : f32 to vector<64x48xf32>
    %14 = arith.maximumf %12, %13 : vector<64x48xf32>
    %15 = tpu.concatenate %3, %14 in 1 : vector<64x256xf32>, vector<64x48xf32> -> vector<64x304xf32>
    %c0_12 = arith.constant 0 : index
    %c0_13 = arith.constant 0 : index
    %c0_14 = arith.constant 0 : index
    %16 = vector.load %arg6[%c0_12, %c0_13, %c0_14] : memref<1x64x304xf32, #tpu.memory_space<vmem>>, vector<1x64x304xf32>
    %17 = vector.shape_cast %16 : vector<1x64x304xf32> to vector<64x304xf32>
    %18 = vector.shape_cast %15 : vector<64x304xf32> to vector<1x64x304xf32>
    tpu.vector_store %arg6[%c0_12, %c0_13, %c0_14], %18 {strides = array<i32>} : memref<1x64x304xf32, #tpu.memory_space<vmem>>, vector<1x64x304xf32>,
    return
  }
  func.func @transform_0(%arg0: i32) -> (i32, i32) {
    %c0_i32 = arith.constant 0 : i32
    %c0_i32_0 = arith.constant 0 : i32
    %c0_i32_1 = arith.constant 0 : i32
    return %c0_i32, %c0_i32_0 : i32, i32
  }
  func.func @transform_1(%arg0: i32) -> (i32, i32, i32) {
    %c0_i32 = arith.constant 0 : i32
    %c0_i32_0 = arith.constant 0 : i32
    %c0_i32_1 = arith.constant 0 : i32
    return %arg0, %c0_i32, %c0_i32_0 : i32, i32, i32
  }
  func.func @transform_2(%arg0: i32) -> (i32, i32, i32) {
    %c0_i32 = arith.constant 0 : i32
    %c0_i32_0 = arith.constant 0 : i32
    %c0_i32_1 = arith.constant 0 : i32
    return %arg0, %c0_i32, %c0_i32_0 : i32, i32, i32
  }
  func.func @transform_3(%arg0: i32) -> (i32, i32) {
    %c0_i32 = arith.constant 0 : i32
    %c0_i32_0 = arith.constant 0 : i32
    %c0_i32_1 = arith.constant 0 : i32
    return %c0_i32, %c0_i32_0 : i32, i32
  }
  func.func @transform_4(%arg0: i32) -> (i32, i32) {
    %c0_i32 = arith.constant 0 : i32
    %c0_i32_0 = arith.constant 0 : i32
    %c0_i32_1 = arith.constant 0 : i32
    return %c0_i32, %c0_i32_0 : i32, i32
  }
  func.func @transform_5(%arg0: i32) -> (i32, i32, i32) {
    %c0_i32 = arith.constant 0 : i32
    %c0_i32_0 = arith.constant 0 : i32
    %c0_i32_1 = arith.constant 0 : i32
    return %arg0, %c0_i32, %c0_i32_0 : i32, i32, i32
  }
}

module attributes {stable_mosaic.version = 11 : i64} {
  func.func @_conv3x3_stats_kernel(%arg0: i32, %arg1: memref<1x10x10x304xf32, #tpu.memory_space<vmem>>, %arg2: memref<9x304x256xbf16, #tpu.memory_space<vmem>>, %arg3: memref<1x64x256xbf16, #tpu.memory_space<vmem>>, %arg4: memref<1x1x256xf32, #tpu.memory_space<vmem>>, %arg5: memref<1x1x256xf32, #tpu.memory_space<vmem>>) attributes {dimension_semantics = [#tpu.dimension_semantics<parallel>], iteration_bounds = array<i64: 2>, scalar_prefetch = 0 : i64, scratch_operands = 0 : i64, tpu.core_type = #tpu.core_type<tc>, window_params = [{transform_indices = @transform_0, window_bounds = array<i64: 1, 10, 10, 304>}, {pipeline_mode = #tpu.pipeline_mode<synchronous>, transform_indices = @transform_1, window_bounds = array<i64: 9, 304, 256>}, {transform_indices = @transform_2, window_bounds = array<i64: 1, 64, 256>}, {transform_indices = @transform_3, window_bounds = array<i64: 1, 1, 256>}, {transform_indices = @transform_4, window_bounds = array<i64: 1, 1, 256>}]} {
    %cst = arith.constant 0.000000e+00 : f32
    %0 = vector.broadcast %cst : f32 to vector<64x256xf32>
    %c0 = arith.constant 0 : index
    %c0_0 = arith.constant 0 : index
    %c0_1 = arith.constant 0 : index
    %c0_2 = arith.constant 0 : index
    %1 = vector.load %arg1[%c0, %c0_0, %c0_1, %c0_2] : memref<1x10x10x304xf32, #tpu.memory_space<vmem>>, vector<1x8x8x304xf32>
    %2 = vector.shape_cast %1 : vector<1x8x8x304xf32> to vector<8x8x304xf32>
    %3 = vector.shape_cast %2 : vector<8x8x304xf32> to vector<64x304xf32>
    %4 = arith.truncf %3 : vector<64x304xf32> to vector<64x304xbf16>
    %c0_3 = arith.constant 0 : index
    %c0_4 = arith.constant 0 : index
    %c0_5 = arith.constant 0 : index
    %5 = vector.load %arg2[%c0_3, %c0_4, %c0_5] : memref<9x304x256xbf16, #tpu.memory_space<vmem>>, vector<1x304x256xbf16>
    %6 = vector.shape_cast %5 : vector<1x304x256xbf16> to vector<304x256xbf16>
    %cst_6 = arith.constant dense<0.000000e+00> : vector<64x256xf32>
    %7 = tpu.matmul %4, %6, %cst_6 {dimension_numbers = #tpu.dot_dimension_numbers<[1], [0], [0], [1], [0, 0, 1, 1], [], []>} : vector<64x304xbf16>, vector<304x256xbf16>, vector<64x256xf32> -> vector<64x256xf32>
    %8 = arith.addf %0, %7 : vector<64x256xf32>
    %c0_7 = arith.constant 0 : index
    %c0_8 = arith.constant 0 : index
    %c1 = arith.constant 1 : index
    %c0_9 = arith.constant 0 : index
    %9 = vector.load %arg1[%c0_7, %c0_8, %c1, %c0_9] : memref<1x10x10x304xf32, #tpu.memory_space<vmem>>, vector<1x8x8x304xf32>
    %10 = vector.shape_cast %9 : vector<1x8x8x304xf32> to vector<8x8x304xf32>
    %11 = vector.shape_cast %10 : vector<8x8x304xf32> to vector<64x304xf32>
    %12 = arith.truncf %11 : vector<64x304xf32> to vector<64x304xbf16>
    %c1_10 = arith.constant 1 : index
    %c0_11 = arith.constant 0 : index
    %c0_12 = arith.constant 0 : index
    %13 = vector.load %arg2[%c1_10, %c0_11, %c0_12] : memref<9x304x256xbf16, #tpu.memory_space<vmem>>, vector<1x304x256xbf16>
    %14 = vector.shape_cast %13 : vector<1x304x256xbf16> to vector<304x256xbf16>
    %cst_13 = arith.constant dense<0.000000e+00> : vector<64x256xf32>
    %15 = tpu.matmul %12, %14, %cst_13 {dimension_numbers = #tpu.dot_dimension_numbers<[1], [0], [0], [1], [0, 0, 1, 1], [], []>} : vector<64x304xbf16>, vector<304x256xbf16>, vector<64x256xf32> -> vector<64x256xf32>
    %16 = arith.addf %8, %15 : vector<64x256xf32>
    %c0_14 = arith.constant 0 : index
    %c0_15 = arith.constant 0 : index
    %c2 = arith.constant 2 : index
    %c0_16 = arith.constant 0 : index
    %17 = vector.load %arg1[%c0_14, %c0_15, %c2, %c0_16] : memref<1x10x10x304xf32, #tpu.memory_space<vmem>>, vector<1x8x8x304xf32>
    %18 = vector.shape_cast %17 : vector<1x8x8x304xf32> to vector<8x8x304xf32>
    %19 = vector.shape_cast %18 : vector<8x8x304xf32> to vector<64x304xf32>
    %20 = arith.truncf %19 : vector<64x304xf32> to vector<64x304xbf16>
    %c2_17 = arith.constant 2 : index
    %c0_18 = arith.constant 0 : index
    %c0_19 = arith.constant 0 : index
    %21 = vector.load %arg2[%c2_17, %c0_18, %c0_19] : memref<9x304x256xbf16, #tpu.memory_space<vmem>>, vector<1x304x256xbf16>
    %22 = vector.shape_cast %21 : vector<1x304x256xbf16> to vector<304x256xbf16>
    %cst_20 = arith.constant dense<0.000000e+00> : vector<64x256xf32>
    %23 = tpu.matmul %20, %22, %cst_20 {dimension_numbers = #tpu.dot_dimension_numbers<[1], [0], [0], [1], [0, 0, 1, 1], [], []>} : vector<64x304xbf16>, vector<304x256xbf16>, vector<64x256xf32> -> vector<64x256xf32>
    %24 = arith.addf %16, %23 : vector<64x256xf32>
    %c0_21 = arith.constant 0 : index
    %c1_22 = arith.constant 1 : index
    %c0_23 = arith.constant 0 : index
    %c0_24 = arith.constant 0 : index
    %25 = vector.load %arg1[%c0_21, %c1_22, %c0_23, %c0_24] : memref<1x10x10x304xf32, #tpu.memory_space<vmem>>, vector<1x8x8x304xf32>
    %26 = vector.shape_cast %25 : vector<1x8x8x304xf32> to vector<8x8x304xf32>
    %27 = vector.shape_cast %26 : vector<8x8x304xf32> to vector<64x304xf32>
    %28 = arith.truncf %27 : vector<64x304xf32> to vector<64x304xbf16>
    %c3 = arith.constant 3 : index
    %c0_25 = arith.constant 0 : index
    %c0_26 = arith.constant 0 : index
    %29 = vector.load %arg2[%c3, %c0_25, %c0_26] : memref<9x304x256xbf16, #tpu.memory_space<vmem>>, vector<1x304x256xbf16>
    %30 = vector.shape_cast %29 : vector<1x304x256xbf16> to vector<304x256xbf16>
    %cst_27 = arith.constant dense<0.000000e+00> : vector<64x256xf32>
    %31 = tpu.matmul %28, %30, %cst_27 {dimension_numbers = #tpu.dot_dimension_numbers<[1], [0], [0], [1], [0, 0, 1, 1], [], []>} : vector<64x304xbf16>, vector<304x256xbf16>, vector<64x256xf32> -> vector<64x256xf32>
    %32 = arith.addf %24, %31 : vector<64x256xf32>
    %c0_28 = arith.constant 0 : index
    %c1_29 = arith.constant 1 : index
    %c1_30 = arith.constant 1 : index
    %c0_31 = arith.constant 0 : index
    %33 = vector.load %arg1[%c0_28, %c1_29, %c1_30, %c0_31] : memref<1x10x10x304xf32, #tpu.memory_space<vmem>>, vector<1x8x8x304xf32>
    %34 = vector.shape_cast %33 : vector<1x8x8x304xf32> to vector<8x8x304xf32>
    %35 = vector.shape_cast %34 : vector<8x8x304xf32> to vector<64x304xf32>
    %36 = arith.truncf %35 : vector<64x304xf32> to vector<64x304xbf16>
    %c4 = arith.constant 4 : index
    %c0_32 = arith.constant 0 : index
    %c0_33 = arith.constant 0 : index
    %37 = vector.load %arg2[%c4, %c0_32, %c0_33] : memref<9x304x256xbf16, #tpu.memory_space<vmem>>, vector<1x304x256xbf16>
    %38 = vector.shape_cast %37 : vector<1x304x256xbf16> to vector<304x256xbf16>
    %cst_34 = arith.constant dense<0.000000e+00> : vector<64x256xf32>
    %39 = tpu.matmul %36, %38, %cst_34 {dimension_numbers = #tpu.dot_dimension_numbers<[1], [0], [0], [1], [0, 0, 1, 1], [], []>} : vector<64x304xbf16>, vector<304x256xbf16>, vector<64x256xf32> -> vector<64x256xf32>
    %40 = arith.addf %32, %39 : vector<64x256xf32>
    %c0_35 = arith.constant 0 : index
    %c1_36 = arith.constant 1 : index
    %c2_37 = arith.constant 2 : index
    %c0_38 = arith.constant 0 : index
    %41 = vector.load %arg1[%c0_35, %c1_36, %c2_37, %c0_38] : memref<1x10x10x304xf32, #tpu.memory_space<vmem>>, vector<1x8x8x304xf32>
    %42 = vector.shape_cast %41 : vector<1x8x8x304xf32> to vector<8x8x304xf32>
    %43 = vector.shape_cast %42 : vector<8x8x304xf32> to vector<64x304xf32>
    %44 = arith.truncf %43 : vector<64x304xf32> to vector<64x304xbf16>
    %c5 = arith.constant 5 : index
    %c0_39 = arith.constant 0 : index
    %c0_40 = arith.constant 0 : index
    %45 = vector.load %arg2[%c5, %c0_39, %c0_40] : memref<9x304x256xbf16, #tpu.memory_space<vmem>>, vector<1x304x256xbf16>
    %46 = vector.shape_cast %45 : vector<1x304x256xbf16> to vector<304x256xbf16>
    %cst_41 = arith.constant dense<0.000000e+00> : vector<64x256xf32>
    %47 = tpu.matmul %44, %46, %cst_41 {dimension_numbers = #tpu.dot_dimension_numbers<[1], [0], [0], [1], [0, 0, 1, 1], [], []>} : vector<64x304xbf16>, vector<304x256xbf16>, vector<64x256xf32> -> vector<64x256xf32>
    %48 = arith.addf %40, %47 : vector<64x256xf32>
    %c0_42 = arith.constant 0 : index
    %c2_43 = arith.constant 2 : index
    %c0_44 = arith.constant 0 : index
    %c0_45 = arith.constant 0 : index
    %49 = vector.load %arg1[%c0_42, %c2_43, %c0_44, %c0_45] : memref<1x10x10x304xf32, #tpu.memory_space<vmem>>, vector<1x8x8x304xf32>
    %50 = vector.shape_cast %49 : vector<1x8x8x304xf32> to vector<8x8x304xf32>
    %51 = vector.shape_cast %50 : vector<8x8x304xf32> to vector<64x304xf32>
    %52 = arith.truncf %51 : vector<64x304xf32> to vector<64x304xbf16>
    %c6 = arith.constant 6 : index
    %c0_46 = arith.constant 0 : index
    %c0_47 = arith.constant 0 : index
    %53 = vector.load %arg2[%c6, %c0_46, %c0_47] : memref<9x304x256xbf16, #tpu.memory_space<vmem>>, vector<1x304x256xbf16>
    %54 = vector.shape_cast %53 : vector<1x304x256xbf16> to vector<304x256xbf16>
    %cst_48 = arith.constant dense<0.000000e+00> : vector<64x256xf32>
    %55 = tpu.matmul %52, %54, %cst_48 {dimension_numbers = #tpu.dot_dimension_numbers<[1], [0], [0], [1], [0, 0, 1, 1], [], []>} : vector<64x304xbf16>, vector<304x256xbf16>, vector<64x256xf32> -> vector<64x256xf32>
    %56 = arith.addf %48, %55 : vector<64x256xf32>
    %c0_49 = arith.constant 0 : index
    %c2_50 = arith.constant 2 : index
    %c1_51 = arith.constant 1 : index
    %c0_52 = arith.constant 0 : index
    %57 = vector.load %arg1[%c0_49, %c2_50, %c1_51, %c0_52] : memref<1x10x10x304xf32, #tpu.memory_space<vmem>>, vector<1x8x8x304xf32>
    %58 = vector.shape_cast %57 : vector<1x8x8x304xf32> to vector<8x8x304xf32>
    %59 = vector.shape_cast %58 : vector<8x8x304xf32> to vector<64x304xf32>
    %60 = arith.truncf %59 : vector<64x304xf32> to vector<64x304xbf16>
    %c7 = arith.constant 7 : index
    %c0_53 = arith.constant 0 : index
    %c0_54 = arith.constant 0 : index
    %61 = vector.load %arg2[%c7, %c0_53, %c0_54] : memref<9x304x256xbf16, #tpu.memory_space<vmem>>, vector<1x304x256xbf16>
    %62 = vector.shape_cast %61 : vector<1x304x256xbf16> to vector<304x256xbf16>
    %cst_55 = arith.constant dense<0.000000e+00> : vector<64x256xf32>
    %63 = tpu.matmul %60, %62, %cst_55 {dimension_numbers = #tpu.dot_dimension_numbers<[1], [0], [0], [1], [0, 0, 1, 1], [], []>} : vector<64x304xbf16>, vector<304x256xbf16>, vector<64x256xf32> -> vector<64x256xf32>
    %64 = arith.addf %56, %63 : vector<64x256xf32>
    %c0_56 = arith.constant 0 : index
    %c2_57 = arith.constant 2 : index
    %c2_58 = arith.constant 2 : index
    %c0_59 = arith.constant 0 : index
    %65 = vector.load %arg1[%c0_56, %c2_57, %c2_58, %c0_59] : memref<1x10x10x304xf32, #tpu.memory_space<vmem>>, vector<1x8x8x304xf32>
    %66 = vector.shape_cast %65 : vector<1x8x8x304xf32> to vector<8x8x304xf32>
    %67 = vector.shape_cast %66 : vector<8x8x304xf32> to vector<64x304xf32>
    %68 = arith.truncf %67 : vector<64x304xf32> to vector<64x304xbf16>
    %c8 = arith.constant 8 : index
    %c0_60 = arith.constant 0 : index
    %c0_61 = arith.constant 0 : index
    %69 = vector.load %arg2[%c8, %c0_60, %c0_61] : memref<9x304x256xbf16, #tpu.memory_space<vmem>>, vector<1x304x256xbf16>
    %70 = vector.shape_cast %69 : vector<1x304x256xbf16> to vector<304x256xbf16>
    %cst_62 = arith.constant dense<0.000000e+00> : vector<64x256xf32>
    %71 = tpu.matmul %68, %70, %cst_62 {dimension_numbers = #tpu.dot_dimension_numbers<[1], [0], [0], [1], [0, 0, 1, 1], [], []>} : vector<64x304xbf16>, vector<304x256xbf16>, vector<64x256xf32> -> vector<64x256xf32>
    %72 = arith.addf %64, %71 : vector<64x256xf32>
    %73 = arith.truncf %72 : vector<64x256xf32> to vector<64x256xbf16>
    %c0_63 = arith.constant 0 : index
    %c0_64 = arith.constant 0 : index
    %c0_65 = arith.constant 0 : index
    %74 = vector.load %arg3[%c0_63, %c0_64, %c0_65] : memref<1x64x256xbf16, #tpu.memory_space<vmem>>, vector<1x64x256xbf16>
    %75 = vector.shape_cast %74 : vector<1x64x256xbf16> to vector<64x256xbf16>
    %76 = vector.shape_cast %73 : vector<64x256xbf16> to vector<1x64x256xbf16>
    tpu.vector_store %arg3[%c0_63, %c0_64, %c0_65], %76 {strides = array<i32>} : memref<1x64x256xbf16, #tpu.memory_space<vmem>>, vector<1x64x256xbf16>,
    %cst_66 = arith.constant dense<0.000000e+00> : vector<256xf32>
    %77 = vector.multi_reduction <add>, %72, %cst_66 [0] : vector<64x256xf32> to vector<256xf32>
    %78 = vector.shape_cast %77 : vector<256xf32> to vector<1x256xf32>
    %c0_67 = arith.constant 0 : index
    %c0_68 = arith.constant 0 : index
    %c0_69 = arith.constant 0 : index
    %79 = vector.load %arg4[%c0_67, %c0_68, %c0_69] : memref<1x1x256xf32, #tpu.memory_space<vmem>>, vector<1x1x256xf32>
    %80 = vector.shape_cast %79 : vector<1x1x256xf32> to vector<1x256xf32>
    %81 = vector.shape_cast %78 : vector<1x256xf32> to vector<1x1x256xf32>
    tpu.vector_store %arg4[%c0_67, %c0_68, %c0_69], %81 {strides = array<i32>} : memref<1x1x256xf32, #tpu.memory_space<vmem>>, vector<1x1x256xf32>,
    %82 = arith.mulf %72, %72 : vector<64x256xf32>
    %cst_70 = arith.constant dense<0.000000e+00> : vector<256xf32>
    %83 = vector.multi_reduction <add>, %82, %cst_70 [0] : vector<64x256xf32> to vector<256xf32>
    %84 = vector.shape_cast %83 : vector<256xf32> to vector<1x256xf32>
    %c0_71 = arith.constant 0 : index
    %c0_72 = arith.constant 0 : index
    %c0_73 = arith.constant 0 : index
    %85 = vector.load %arg5[%c0_71, %c0_72, %c0_73] : memref<1x1x256xf32, #tpu.memory_space<vmem>>, vector<1x1x256xf32>
    %86 = vector.shape_cast %85 : vector<1x1x256xf32> to vector<1x256xf32>
    %87 = vector.shape_cast %84 : vector<1x256xf32> to vector<1x1x256xf32>
    tpu.vector_store %arg5[%c0_71, %c0_72, %c0_73], %87 {strides = array<i32>} : memref<1x1x256xf32, #tpu.memory_space<vmem>>, vector<1x1x256xf32>,
    return
  }
  func.func @transform_0(%arg0: i32) -> (i32, i32, i32, i32) {
    %c0_i32 = arith.constant 0 : i32
    %c0_i32_0 = arith.constant 0 : i32
    %c0_i32_1 = arith.constant 0 : i32
    %c0_i32_2 = arith.constant 0 : i32
    return %arg0, %c0_i32, %c0_i32_0, %c0_i32_1 : i32, i32, i32, i32
  }
  func.func @transform_1(%arg0: i32) -> (i32, i32, i32) {
    %c0_i32 = arith.constant 0 : i32
    %c0_i32_0 = arith.constant 0 : i32
    %c0_i32_1 = arith.constant 0 : i32
    %c0_i32_2 = arith.constant 0 : i32
    return %c0_i32, %c0_i32_0, %c0_i32_1 : i32, i32, i32
  }
  func.func @transform_2(%arg0: i32) -> (i32, i32, i32) {
    %c0_i32 = arith.constant 0 : i32
    %c0_i32_0 = arith.constant 0 : i32
    %c0_i32_1 = arith.constant 0 : i32
    return %arg0, %c0_i32, %c0_i32_0 : i32, i32, i32
  }
  func.func @transform_3(%arg0: i32) -> (i32, i32, i32) {
    %c0_i32 = arith.constant 0 : i32
    %c0_i32_0 = arith.constant 0 : i32
    %c0_i32_1 = arith.constant 0 : i32
    return %arg0, %c0_i32, %c0_i32_0 : i32, i32, i32
  }
  func.func @transform_4(%arg0: i32) -> (i32, i32, i32) {
    %c0_i32 = arith.constant 0 : i32
    %c0_i32_0 = arith.constant 0 : i32
    %c0_i32_1 = arith.constant 0 : i32
    return %arg0, %c0_i32, %c0_i32_0 : i32, i32, i32
  }
}

module attributes {stable_mosaic.version = 11 : i64} {
  func.func @_bn_relu_kernel(%arg0: i32, %arg1: memref<1x64x256xbf16, #tpu.memory_space<vmem>>, %arg2: memref<1x256xf32, #tpu.memory_space<vmem>>, %arg3: memref<1x256xf32, #tpu.memory_space<vmem>>, %arg4: memref<1x64x256xf32, #tpu.memory_space<vmem>>) attributes {dimension_semantics = [#tpu.dimension_semantics<parallel>], iteration_bounds = array<i64: 2>, scalar_prefetch = 0 : i64, scratch_operands = 0 : i64, tpu.core_type = #tpu.core_type<tc>, window_params = [{transform_indices = @transform_0, window_bounds = array<i64: 1, 64, 256>}, {pipeline_mode = #tpu.pipeline_mode<synchronous>, transform_indices = @transform_1, window_bounds = array<i64: 1, 256>}, {pipeline_mode = #tpu.pipeline_mode<synchronous>, transform_indices = @transform_2, window_bounds = array<i64: 1, 256>}, {transform_indices = @transform_3, window_bounds = array<i64: 1, 64, 256>}]} {
    %c0 = arith.constant 0 : index
    %c0_0 = arith.constant 0 : index
    %c0_1 = arith.constant 0 : index
    %0 = vector.load %arg1[%c0, %c0_0, %c0_1] : memref<1x64x256xbf16, #tpu.memory_space<vmem>>, vector<1x64x256xbf16>
    %1 = vector.shape_cast %0 : vector<1x64x256xbf16> to vector<64x256xbf16>
    %2 = arith.extf %1 : vector<64x256xbf16> to vector<64x256xf32>
    %c0_2 = arith.constant 0 : index
    %c0_3 = arith.constant 0 : index
    %3 = vector.load %arg2[%c0_2, %c0_3] : memref<1x256xf32, #tpu.memory_space<vmem>>, vector<1x256xf32>
    %4 = vector.broadcast %3 : vector<1x256xf32> to vector<64x256xf32>
    %5 = arith.mulf %2, %4 : vector<64x256xf32>
    %c0_4 = arith.constant 0 : index
    %c0_5 = arith.constant 0 : index
    %6 = vector.load %arg3[%c0_4, %c0_5] : memref<1x256xf32, #tpu.memory_space<vmem>>, vector<1x256xf32>
    %7 = vector.broadcast %6 : vector<1x256xf32> to vector<64x256xf32>
    %8 = arith.addf %5, %7 : vector<64x256xf32>
    %cst = arith.constant 0.000000e+00 : f32
    %9 = vector.broadcast %cst : f32 to vector<64x256xf32>
    %10 = arith.maximumf %8, %9 : vector<64x256xf32>
    %c0_6 = arith.constant 0 : index
    %c0_7 = arith.constant 0 : index
    %c0_8 = arith.constant 0 : index
    %11 = vector.load %arg4[%c0_6, %c0_7, %c0_8] : memref<1x64x256xf32, #tpu.memory_space<vmem>>, vector<1x64x256xf32>
    %12 = vector.shape_cast %11 : vector<1x64x256xf32> to vector<64x256xf32>
    %13 = vector.shape_cast %10 : vector<64x256xf32> to vector<1x64x256xf32>
    tpu.vector_store %arg4[%c0_6, %c0_7, %c0_8], %13 {strides = array<i32>} : memref<1x64x256xf32, #tpu.memory_space<vmem>>, vector<1x64x256xf32>,
    return
  }
  func.func @transform_0(%arg0: i32) -> (i32, i32, i32) {
    %c0_i32 = arith.constant 0 : i32
    %c0_i32_0 = arith.constant 0 : i32
    %c0_i32_1 = arith.constant 0 : i32
    return %arg0, %c0_i32, %c0_i32_0 : i32, i32, i32
  }
  func.func @transform_1(%arg0: i32) -> (i32, i32) {
    %c0_i32 = arith.constant 0 : i32
    %c0_i32_0 = arith.constant 0 : i32
    %c0_i32_1 = arith.constant 0 : i32
    return %c0_i32, %c0_i32_0 : i32, i32
  }
  func.func @transform_2(%arg0: i32) -> (i32, i32) {
    %c0_i32 = arith.constant 0 : i32
    %c0_i32_0 = arith.constant 0 : i32
    %c0_i32_1 = arith.constant 0 : i32
    return %c0_i32, %c0_i32_0 : i32, i32
  }
  func.func @transform_3(%arg0: i32) -> (i32, i32, i32) {
    %c0_i32 = arith.constant 0 : i32
    %c0_i32_0 = arith.constant 0 : i32
    %c0_i32_1 = arith.constant 0 : i32
    return %arg0, %c0_i32, %c0_i32_0 : i32, i32, i32
  }
}

module attributes {stable_mosaic.version = 11 : i64} {
  func.func @_conv3x3_stats_kernel(%arg0: i32, %arg1: memref<1x10x10x256xf32, #tpu.memory_space<vmem>>, %arg2: memref<9x256x256xbf16, #tpu.memory_space<vmem>>, %arg3: memref<1x64x256xbf16, #tpu.memory_space<vmem>>, %arg4: memref<1x1x256xf32, #tpu.memory_space<vmem>>, %arg5: memref<1x1x256xf32, #tpu.memory_space<vmem>>) attributes {dimension_semantics = [#tpu.dimension_semantics<parallel>], iteration_bounds = array<i64: 2>, scalar_prefetch = 0 : i64, scratch_operands = 0 : i64, tpu.core_type = #tpu.core_type<tc>, window_params = [{transform_indices = @transform_0, window_bounds = array<i64: 1, 10, 10, 256>}, {pipeline_mode = #tpu.pipeline_mode<synchronous>, transform_indices = @transform_1, window_bounds = array<i64: 9, 256, 256>}, {transform_indices = @transform_2, window_bounds = array<i64: 1, 64, 256>}, {transform_indices = @transform_3, window_bounds = array<i64: 1, 1, 256>}, {transform_indices = @transform_4, window_bounds = array<i64: 1, 1, 256>}]} {
    %cst = arith.constant 0.000000e+00 : f32
    %0 = vector.broadcast %cst : f32 to vector<64x256xf32>
    %c0 = arith.constant 0 : index
    %c0_0 = arith.constant 0 : index
    %c0_1 = arith.constant 0 : index
    %c0_2 = arith.constant 0 : index
    %1 = vector.load %arg1[%c0, %c0_0, %c0_1, %c0_2] : memref<1x10x10x256xf32, #tpu.memory_space<vmem>>, vector<1x8x8x256xf32>
    %2 = vector.shape_cast %1 : vector<1x8x8x256xf32> to vector<8x8x256xf32>
    %3 = vector.shape_cast %2 : vector<8x8x256xf32> to vector<64x256xf32>
    %4 = arith.truncf %3 : vector<64x256xf32> to vector<64x256xbf16>
    %c0_3 = arith.constant 0 : index
    %c0_4 = arith.constant 0 : index
    %c0_5 = arith.constant 0 : index
    %5 = vector.load %arg2[%c0_3, %c0_4, %c0_5] : memref<9x256x256xbf16, #tpu.memory_space<vmem>>, vector<1x256x256xbf16>
    %6 = vector.shape_cast %5 : vector<1x256x256xbf16> to vector<256x256xbf16>
    %cst_6 = arith.constant dense<0.000000e+00> : vector<64x256xf32>
    %7 = tpu.matmul %4, %6, %cst_6 {dimension_numbers = #tpu.dot_dimension_numbers<[1], [0], [0], [1], [0, 0, 1, 1], [], []>} : vector<64x256xbf16>, vector<256x256xbf16>, vector<64x256xf32> -> vector<64x256xf32>
    %8 = arith.addf %0, %7 : vector<64x256xf32>
    %c0_7 = arith.constant 0 : index
    %c0_8 = arith.constant 0 : index
    %c1 = arith.constant 1 : index
    %c0_9 = arith.constant 0 : index
    %9 = vector.load %arg1[%c0_7, %c0_8, %c1, %c0_9] : memref<1x10x10x256xf32, #tpu.memory_space<vmem>>, vector<1x8x8x256xf32>
    %10 = vector.shape_cast %9 : vector<1x8x8x256xf32> to vector<8x8x256xf32>
    %11 = vector.shape_cast %10 : vector<8x8x256xf32> to vector<64x256xf32>
    %12 = arith.truncf %11 : vector<64x256xf32> to vector<64x256xbf16>
    %c1_10 = arith.constant 1 : index
    %c0_11 = arith.constant 0 : index
    %c0_12 = arith.constant 0 : index
    %13 = vector.load %arg2[%c1_10, %c0_11, %c0_12] : memref<9x256x256xbf16, #tpu.memory_space<vmem>>, vector<1x256x256xbf16>
    %14 = vector.shape_cast %13 : vector<1x256x256xbf16> to vector<256x256xbf16>
    %cst_13 = arith.constant dense<0.000000e+00> : vector<64x256xf32>
    %15 = tpu.matmul %12, %14, %cst_13 {dimension_numbers = #tpu.dot_dimension_numbers<[1], [0], [0], [1], [0, 0, 1, 1], [], []>} : vector<64x256xbf16>, vector<256x256xbf16>, vector<64x256xf32> -> vector<64x256xf32>
    %16 = arith.addf %8, %15 : vector<64x256xf32>
    %c0_14 = arith.constant 0 : index
    %c0_15 = arith.constant 0 : index
    %c2 = arith.constant 2 : index
    %c0_16 = arith.constant 0 : index
    %17 = vector.load %arg1[%c0_14, %c0_15, %c2, %c0_16] : memref<1x10x10x256xf32, #tpu.memory_space<vmem>>, vector<1x8x8x256xf32>
    %18 = vector.shape_cast %17 : vector<1x8x8x256xf32> to vector<8x8x256xf32>
    %19 = vector.shape_cast %18 : vector<8x8x256xf32> to vector<64x256xf32>
    %20 = arith.truncf %19 : vector<64x256xf32> to vector<64x256xbf16>
    %c2_17 = arith.constant 2 : index
    %c0_18 = arith.constant 0 : index
    %c0_19 = arith.constant 0 : index
    %21 = vector.load %arg2[%c2_17, %c0_18, %c0_19] : memref<9x256x256xbf16, #tpu.memory_space<vmem>>, vector<1x256x256xbf16>
    %22 = vector.shape_cast %21 : vector<1x256x256xbf16> to vector<256x256xbf16>
    %cst_20 = arith.constant dense<0.000000e+00> : vector<64x256xf32>
    %23 = tpu.matmul %20, %22, %cst_20 {dimension_numbers = #tpu.dot_dimension_numbers<[1], [0], [0], [1], [0, 0, 1, 1], [], []>} : vector<64x256xbf16>, vector<256x256xbf16>, vector<64x256xf32> -> vector<64x256xf32>
    %24 = arith.addf %16, %23 : vector<64x256xf32>
    %c0_21 = arith.constant 0 : index
    %c1_22 = arith.constant 1 : index
    %c0_23 = arith.constant 0 : index
    %c0_24 = arith.constant 0 : index
    %25 = vector.load %arg1[%c0_21, %c1_22, %c0_23, %c0_24] : memref<1x10x10x256xf32, #tpu.memory_space<vmem>>, vector<1x8x8x256xf32>
    %26 = vector.shape_cast %25 : vector<1x8x8x256xf32> to vector<8x8x256xf32>
    %27 = vector.shape_cast %26 : vector<8x8x256xf32> to vector<64x256xf32>
    %28 = arith.truncf %27 : vector<64x256xf32> to vector<64x256xbf16>
    %c3 = arith.constant 3 : index
    %c0_25 = arith.constant 0 : index
    %c0_26 = arith.constant 0 : index
    %29 = vector.load %arg2[%c3, %c0_25, %c0_26] : memref<9x256x256xbf16, #tpu.memory_space<vmem>>, vector<1x256x256xbf16>
    %30 = vector.shape_cast %29 : vector<1x256x256xbf16> to vector<256x256xbf16>
    %cst_27 = arith.constant dense<0.000000e+00> : vector<64x256xf32>
    %31 = tpu.matmul %28, %30, %cst_27 {dimension_numbers = #tpu.dot_dimension_numbers<[1], [0], [0], [1], [0, 0, 1, 1], [], []>} : vector<64x256xbf16>, vector<256x256xbf16>, vector<64x256xf32> -> vector<64x256xf32>
    %32 = arith.addf %24, %31 : vector<64x256xf32>
    %c0_28 = arith.constant 0 : index
    %c1_29 = arith.constant 1 : index
    %c1_30 = arith.constant 1 : index
    %c0_31 = arith.constant 0 : index
    %33 = vector.load %arg1[%c0_28, %c1_29, %c1_30, %c0_31] : memref<1x10x10x256xf32, #tpu.memory_space<vmem>>, vector<1x8x8x256xf32>
    %34 = vector.shape_cast %33 : vector<1x8x8x256xf32> to vector<8x8x256xf32>
    %35 = vector.shape_cast %34 : vector<8x8x256xf32> to vector<64x256xf32>
    %36 = arith.truncf %35 : vector<64x256xf32> to vector<64x256xbf16>
    %c4 = arith.constant 4 : index
    %c0_32 = arith.constant 0 : index
    %c0_33 = arith.constant 0 : index
    %37 = vector.load %arg2[%c4, %c0_32, %c0_33] : memref<9x256x256xbf16, #tpu.memory_space<vmem>>, vector<1x256x256xbf16>
    %38 = vector.shape_cast %37 : vector<1x256x256xbf16> to vector<256x256xbf16>
    %cst_34 = arith.constant dense<0.000000e+00> : vector<64x256xf32>
    %39 = tpu.matmul %36, %38, %cst_34 {dimension_numbers = #tpu.dot_dimension_numbers<[1], [0], [0], [1], [0, 0, 1, 1], [], []>} : vector<64x256xbf16>, vector<256x256xbf16>, vector<64x256xf32> -> vector<64x256xf32>
    %40 = arith.addf %32, %39 : vector<64x256xf32>
    %c0_35 = arith.constant 0 : index
    %c1_36 = arith.constant 1 : index
    %c2_37 = arith.constant 2 : index
    %c0_38 = arith.constant 0 : index
    %41 = vector.load %arg1[%c0_35, %c1_36, %c2_37, %c0_38] : memref<1x10x10x256xf32, #tpu.memory_space<vmem>>, vector<1x8x8x256xf32>
    %42 = vector.shape_cast %41 : vector<1x8x8x256xf32> to vector<8x8x256xf32>
    %43 = vector.shape_cast %42 : vector<8x8x256xf32> to vector<64x256xf32>
    %44 = arith.truncf %43 : vector<64x256xf32> to vector<64x256xbf16>
    %c5 = arith.constant 5 : index
    %c0_39 = arith.constant 0 : index
    %c0_40 = arith.constant 0 : index
    %45 = vector.load %arg2[%c5, %c0_39, %c0_40] : memref<9x256x256xbf16, #tpu.memory_space<vmem>>, vector<1x256x256xbf16>
    %46 = vector.shape_cast %45 : vector<1x256x256xbf16> to vector<256x256xbf16>
    %cst_41 = arith.constant dense<0.000000e+00> : vector<64x256xf32>
    %47 = tpu.matmul %44, %46, %cst_41 {dimension_numbers = #tpu.dot_dimension_numbers<[1], [0], [0], [1], [0, 0, 1, 1], [], []>} : vector<64x256xbf16>, vector<256x256xbf16>, vector<64x256xf32> -> vector<64x256xf32>
    %48 = arith.addf %40, %47 : vector<64x256xf32>
    %c0_42 = arith.constant 0 : index
    %c2_43 = arith.constant 2 : index
    %c0_44 = arith.constant 0 : index
    %c0_45 = arith.constant 0 : index
    %49 = vector.load %arg1[%c0_42, %c2_43, %c0_44, %c0_45] : memref<1x10x10x256xf32, #tpu.memory_space<vmem>>, vector<1x8x8x256xf32>
    %50 = vector.shape_cast %49 : vector<1x8x8x256xf32> to vector<8x8x256xf32>
    %51 = vector.shape_cast %50 : vector<8x8x256xf32> to vector<64x256xf32>
    %52 = arith.truncf %51 : vector<64x256xf32> to vector<64x256xbf16>
    %c6 = arith.constant 6 : index
    %c0_46 = arith.constant 0 : index
    %c0_47 = arith.constant 0 : index
    %53 = vector.load %arg2[%c6, %c0_46, %c0_47] : memref<9x256x256xbf16, #tpu.memory_space<vmem>>, vector<1x256x256xbf16>
    %54 = vector.shape_cast %53 : vector<1x256x256xbf16> to vector<256x256xbf16>
    %cst_48 = arith.constant dense<0.000000e+00> : vector<64x256xf32>
    %55 = tpu.matmul %52, %54, %cst_48 {dimension_numbers = #tpu.dot_dimension_numbers<[1], [0], [0], [1], [0, 0, 1, 1], [], []>} : vector<64x256xbf16>, vector<256x256xbf16>, vector<64x256xf32> -> vector<64x256xf32>
    %56 = arith.addf %48, %55 : vector<64x256xf32>
    %c0_49 = arith.constant 0 : index
    %c2_50 = arith.constant 2 : index
    %c1_51 = arith.constant 1 : index
    %c0_52 = arith.constant 0 : index
    %57 = vector.load %arg1[%c0_49, %c2_50, %c1_51, %c0_52] : memref<1x10x10x256xf32, #tpu.memory_space<vmem>>, vector<1x8x8x256xf32>
    %58 = vector.shape_cast %57 : vector<1x8x8x256xf32> to vector<8x8x256xf32>
    %59 = vector.shape_cast %58 : vector<8x8x256xf32> to vector<64x256xf32>
    %60 = arith.truncf %59 : vector<64x256xf32> to vector<64x256xbf16>
    %c7 = arith.constant 7 : index
    %c0_53 = arith.constant 0 : index
    %c0_54 = arith.constant 0 : index
    %61 = vector.load %arg2[%c7, %c0_53, %c0_54] : memref<9x256x256xbf16, #tpu.memory_space<vmem>>, vector<1x256x256xbf16>
    %62 = vector.shape_cast %61 : vector<1x256x256xbf16> to vector<256x256xbf16>
    %cst_55 = arith.constant dense<0.000000e+00> : vector<64x256xf32>
    %63 = tpu.matmul %60, %62, %cst_55 {dimension_numbers = #tpu.dot_dimension_numbers<[1], [0], [0], [1], [0, 0, 1, 1], [], []>} : vector<64x256xbf16>, vector<256x256xbf16>, vector<64x256xf32> -> vector<64x256xf32>
    %64 = arith.addf %56, %63 : vector<64x256xf32>
    %c0_56 = arith.constant 0 : index
    %c2_57 = arith.constant 2 : index
    %c2_58 = arith.constant 2 : index
    %c0_59 = arith.constant 0 : index
    %65 = vector.load %arg1[%c0_56, %c2_57, %c2_58, %c0_59] : memref<1x10x10x256xf32, #tpu.memory_space<vmem>>, vector<1x8x8x256xf32>
    %66 = vector.shape_cast %65 : vector<1x8x8x256xf32> to vector<8x8x256xf32>
    %67 = vector.shape_cast %66 : vector<8x8x256xf32> to vector<64x256xf32>
    %68 = arith.truncf %67 : vector<64x256xf32> to vector<64x256xbf16>
    %c8 = arith.constant 8 : index
    %c0_60 = arith.constant 0 : index
    %c0_61 = arith.constant 0 : index
    %69 = vector.load %arg2[%c8, %c0_60, %c0_61] : memref<9x256x256xbf16, #tpu.memory_space<vmem>>, vector<1x256x256xbf16>
    %70 = vector.shape_cast %69 : vector<1x256x256xbf16> to vector<256x256xbf16>
    %cst_62 = arith.constant dense<0.000000e+00> : vector<64x256xf32>
    %71 = tpu.matmul %68, %70, %cst_62 {dimension_numbers = #tpu.dot_dimension_numbers<[1], [0], [0], [1], [0, 0, 1, 1], [], []>} : vector<64x256xbf16>, vector<256x256xbf16>, vector<64x256xf32> -> vector<64x256xf32>
    %72 = arith.addf %64, %71 : vector<64x256xf32>
    %73 = arith.truncf %72 : vector<64x256xf32> to vector<64x256xbf16>
    %c0_63 = arith.constant 0 : index
    %c0_64 = arith.constant 0 : index
    %c0_65 = arith.constant 0 : index
    %74 = vector.load %arg3[%c0_63, %c0_64, %c0_65] : memref<1x64x256xbf16, #tpu.memory_space<vmem>>, vector<1x64x256xbf16>
    %75 = vector.shape_cast %74 : vector<1x64x256xbf16> to vector<64x256xbf16>
    %76 = vector.shape_cast %73 : vector<64x256xbf16> to vector<1x64x256xbf16>
    tpu.vector_store %arg3[%c0_63, %c0_64, %c0_65], %76 {strides = array<i32>} : memref<1x64x256xbf16, #tpu.memory_space<vmem>>, vector<1x64x256xbf16>,
    %cst_66 = arith.constant dense<0.000000e+00> : vector<256xf32>
    %77 = vector.multi_reduction <add>, %72, %cst_66 [0] : vector<64x256xf32> to vector<256xf32>
    %78 = vector.shape_cast %77 : vector<256xf32> to vector<1x256xf32>
    %c0_67 = arith.constant 0 : index
    %c0_68 = arith.constant 0 : index
    %c0_69 = arith.constant 0 : index
    %79 = vector.load %arg4[%c0_67, %c0_68, %c0_69] : memref<1x1x256xf32, #tpu.memory_space<vmem>>, vector<1x1x256xf32>
    %80 = vector.shape_cast %79 : vector<1x1x256xf32> to vector<1x256xf32>
    %81 = vector.shape_cast %78 : vector<1x256xf32> to vector<1x1x256xf32>
    tpu.vector_store %arg4[%c0_67, %c0_68, %c0_69], %81 {strides = array<i32>} : memref<1x1x256xf32, #tpu.memory_space<vmem>>, vector<1x1x256xf32>,
    %82 = arith.mulf %72, %72 : vector<64x256xf32>
    %cst_70 = arith.constant dense<0.000000e+00> : vector<256xf32>
    %83 = vector.multi_reduction <add>, %82, %cst_70 [0] : vector<64x256xf32> to vector<256xf32>
    %84 = vector.shape_cast %83 : vector<256xf32> to vector<1x256xf32>
    %c0_71 = arith.constant 0 : index
    %c0_72 = arith.constant 0 : index
    %c0_73 = arith.constant 0 : index
    %85 = vector.load %arg5[%c0_71, %c0_72, %c0_73] : memref<1x1x256xf32, #tpu.memory_space<vmem>>, vector<1x1x256xf32>
    %86 = vector.shape_cast %85 : vector<1x1x256xf32> to vector<1x256xf32>
    %87 = vector.shape_cast %84 : vector<1x256xf32> to vector<1x1x256xf32>
    tpu.vector_store %arg5[%c0_71, %c0_72, %c0_73], %87 {strides = array<i32>} : memref<1x1x256xf32, #tpu.memory_space<vmem>>, vector<1x1x256xf32>,
    return
  }
  func.func @transform_0(%arg0: i32) -> (i32, i32, i32, i32) {
    %c0_i32 = arith.constant 0 : i32
    %c0_i32_0 = arith.constant 0 : i32
    %c0_i32_1 = arith.constant 0 : i32
    %c0_i32_2 = arith.constant 0 : i32
    return %arg0, %c0_i32, %c0_i32_0, %c0_i32_1 : i32, i32, i32, i32
  }
  func.func @transform_1(%arg0: i32) -> (i32, i32, i32) {
    %c0_i32 = arith.constant 0 : i32
    %c0_i32_0 = arith.constant 0 : i32
    %c0_i32_1 = arith.constant 0 : i32
    %c0_i32_2 = arith.constant 0 : i32
    return %c0_i32, %c0_i32_0, %c0_i32_1 : i32, i32, i32
  }
  func.func @transform_2(%arg0: i32) -> (i32, i32, i32) {
    %c0_i32 = arith.constant 0 : i32
    %c0_i32_0 = arith.constant 0 : i32
    %c0_i32_1 = arith.constant 0 : i32
    return %arg0, %c0_i32, %c0_i32_0 : i32, i32, i32
  }
  func.func @transform_3(%arg0: i32) -> (i32, i32, i32) {
    %c0_i32 = arith.constant 0 : i32
    %c0_i32_0 = arith.constant 0 : i32
    %c0_i32_1 = arith.constant 0 : i32
    return %arg0, %c0_i32, %c0_i32_0 : i32, i32, i32
  }
  func.func @transform_4(%arg0: i32) -> (i32, i32, i32) {
    %c0_i32 = arith.constant 0 : i32
    %c0_i32_0 = arith.constant 0 : i32
    %c0_i32_1 = arith.constant 0 : i32
    return %arg0, %c0_i32, %c0_i32_0 : i32, i32, i32
  }
}

module attributes {stable_mosaic.version = 11 : i64} {
  func.func @_bn_relu_kernel(%arg0: i32, %arg1: memref<1x64x256xbf16, #tpu.memory_space<vmem>>, %arg2: memref<1x256xf32, #tpu.memory_space<vmem>>, %arg3: memref<1x256xf32, #tpu.memory_space<vmem>>, %arg4: memref<1x64x256xf32, #tpu.memory_space<vmem>>) attributes {dimension_semantics = [#tpu.dimension_semantics<parallel>], iteration_bounds = array<i64: 2>, scalar_prefetch = 0 : i64, scratch_operands = 0 : i64, tpu.core_type = #tpu.core_type<tc>, window_params = [{transform_indices = @transform_0, window_bounds = array<i64: 1, 64, 256>}, {pipeline_mode = #tpu.pipeline_mode<synchronous>, transform_indices = @transform_1, window_bounds = array<i64: 1, 256>}, {pipeline_mode = #tpu.pipeline_mode<synchronous>, transform_indices = @transform_2, window_bounds = array<i64: 1, 256>}, {transform_indices = @transform_3, window_bounds = array<i64: 1, 64, 256>}]} {
    %c0 = arith.constant 0 : index
    %c0_0 = arith.constant 0 : index
    %c0_1 = arith.constant 0 : index
    %0 = vector.load %arg1[%c0, %c0_0, %c0_1] : memref<1x64x256xbf16, #tpu.memory_space<vmem>>, vector<1x64x256xbf16>
    %1 = vector.shape_cast %0 : vector<1x64x256xbf16> to vector<64x256xbf16>
    %2 = arith.extf %1 : vector<64x256xbf16> to vector<64x256xf32>
    %c0_2 = arith.constant 0 : index
    %c0_3 = arith.constant 0 : index
    %3 = vector.load %arg2[%c0_2, %c0_3] : memref<1x256xf32, #tpu.memory_space<vmem>>, vector<1x256xf32>
    %4 = vector.broadcast %3 : vector<1x256xf32> to vector<64x256xf32>
    %5 = arith.mulf %2, %4 : vector<64x256xf32>
    %c0_4 = arith.constant 0 : index
    %c0_5 = arith.constant 0 : index
    %6 = vector.load %arg3[%c0_4, %c0_5] : memref<1x256xf32, #tpu.memory_space<vmem>>, vector<1x256xf32>
    %7 = vector.broadcast %6 : vector<1x256xf32> to vector<64x256xf32>
    %8 = arith.addf %5, %7 : vector<64x256xf32>
    %cst = arith.constant 0.000000e+00 : f32
    %9 = vector.broadcast %cst : f32 to vector<64x256xf32>
    %10 = arith.maximumf %8, %9 : vector<64x256xf32>
    %c0_6 = arith.constant 0 : index
    %c0_7 = arith.constant 0 : index
    %c0_8 = arith.constant 0 : index
    %11 = vector.load %arg4[%c0_6, %c0_7, %c0_8] : memref<1x64x256xf32, #tpu.memory_space<vmem>>, vector<1x64x256xf32>
    %12 = vector.shape_cast %11 : vector<1x64x256xf32> to vector<64x256xf32>
    %13 = vector.shape_cast %10 : vector<64x256xf32> to vector<1x64x256xf32>
    tpu.vector_store %arg4[%c0_6, %c0_7, %c0_8], %13 {strides = array<i32>} : memref<1x64x256xf32, #tpu.memory_space<vmem>>, vector<1x64x256xf32>,
    return
  }
  func.func @transform_0(%arg0: i32) -> (i32, i32, i32) {
    %c0_i32 = arith.constant 0 : i32
    %c0_i32_0 = arith.constant 0 : i32
    %c0_i32_1 = arith.constant 0 : i32
    return %arg0, %c0_i32, %c0_i32_0 : i32, i32, i32
  }
  func.func @transform_1(%arg0: i32) -> (i32, i32) {
    %c0_i32 = arith.constant 0 : i32
    %c0_i32_0 = arith.constant 0 : i32
    %c0_i32_1 = arith.constant 0 : i32
    return %c0_i32, %c0_i32_0 : i32, i32
  }
  func.func @transform_2(%arg0: i32) -> (i32, i32) {
    %c0_i32 = arith.constant 0 : i32
    %c0_i32_0 = arith.constant 0 : i32
    %c0_i32_1 = arith.constant 0 : i32
    return %c0_i32, %c0_i32_0 : i32, i32
  }
  func.func @transform_3(%arg0: i32) -> (i32, i32, i32) {
    %c0_i32 = arith.constant 0 : i32
    %c0_i32_0 = arith.constant 0 : i32
    %c0_i32_1 = arith.constant 0 : i32
    return %arg0, %c0_i32, %c0_i32_0 : i32, i32, i32
  }
}

</mosaic_0001>

<bundles_post_ra>
// kernel: decoder_forward.7
= control target key start
LH: loop header
LB: loop body
LE: loop exit
PB: predicated region body
PF: predicated region fallthrough
CT: control target
= control target key end

     0   :  { %10 = vsyncpa [#allocation3], 0  ;;  %s712_s18 = smov 0   ;;  %s820_s0 = inlined_call_operand.hbm [shape: f32[64,16], index: 0, kind: input, shape index: {}]   ;;  %s821_s1 = inlined_call_operand.vmem [shape: f32[2,16,256], index: 1, kind: input, shape index: {}]   ;;  %s822_s2 = inlined_call_operand.vmem [shape: bf16[2,64,48], index: 2, kind: input, shape index: {}]   ;;  %s823_s3 = inlined_call_operand.vmem [shape: f32[1,48], index: 3, kind: input, shape index: {}]   ;;  %s824_s4 = inlined_call_operand.vmem [shape: f32[1,48], index: 4, kind: input, shape index: {}]   ;;  %s825_s5 = inlined_call_operand.vmem [shape: f32[2,64,304], index: 5, kind: output, shape index: {}]  }
   0x1 LB: > { %s718_s19 = sadd.s32 4294967295, %s676_s18   ;;  %p570_p0 = scmp.ge.s32.totalorder %s676_s18, 1  ;;  %s676_s18 = sphi %s712_s18, %s16_s18  }
   0x2   : > { %p162_p1 = scmp.lt.s32.totalorder %s676_s18, 3  ;;  %s678_s20 = smov [#allocation2]  }
   0x3   : > { %s174_s21 = sshll.u32 %s678_s20, 4  ;;  %p626_p3 = scmp.eq.s32.totalorder %s718_s19, 0  ;;  %s175_s21 = int_to_ptr.vmem [resolvable:$true] %s174_s21 }
   0x4   : > { %p722_p2 = pnand %p570_p0, %p162_p1  ;;  %s651_s23 = scalar_lea.vmem %s175_s21, 1024 }
   0x5   : > { %p652_p7 = scmp.ne.s32.totalorder %s175_s21, %s651_s23  ;;  %p659_p10 = scmp.lt.s32.totalorder %s175_s21, %s175_s21 }
   0x6   : > { %p622_p4 = pneg %p722_p2  ;;  %p660_p11 = scmp.lt.s32.totalorder %s651_s23, %s651_s23 }
   0x8   : > { %p623_p5 = pnand %p626_p3, %p622_p4  ;;  %p661_p12 = por %p660_p11, %p659_p10 }
   0xa   : > { %p642_p6 = pneg %p623_p5 }
   0xc   : > { %p654_p8 = pnand %p652_p7, %p642_p6 }
   0xe   : > { %p655_p9 = pneg %p654_p8 }
  0x10   : > { %p662_p13 = pnand %p661_p12, %p655_p9 }
  0x12   : > { %665 = shalt.err (!%p662_p13)
}
  0x13   : > { %s679_s24 = smov 128   ;;  %s680_s25 = smov 8  }
  0x14   : > { %625 = dma.hbm_to_vmem [thread:$0]  (!%p623_p5), %s820_s0, 1024, %s175_s21, [#allocation3], %s679_s24, %s679_s24, %s680_s25  }
  0x15   : > { %212 = sbr.rel (%p722_p2) target bundleno = 248 (0xf8), region = 40 }
  0x1a   : > { %671 = dma.done.wait (%p626_p3), [#allocation3], 1024  }
  0x1b   : > { %673 = vsyncadd (%p626_p3), [#allocation3], 4294966272  ;;  %p245_p0 = scmp.lt.s32.totalorder %s718_s19, 1  ;;  %v681_v0 = vmov 0.0   ;;  %vm466_vm0 = vcmask 392192   ;;  %vm272_vm1 = vcmask 130048  }
  0x1c   : > { %361 = vmatprep.mubr.f32.mxu0 %v681_v0  ;;  %385 = vmatprep.mubr.f32.mxu1 %v681_v0  ;;  %v588_v10 = vld [vmem:[%s823_s3] ss:$0 sm:$0xff]  ;;  %v261_v45 = vld [vmem:[#allocation2 + $0x8] sm:$0xff]  ;;  %v262_v47 = vld [vmem:[#allocation2 + $0x10] sm:$0xff] }
  0x1d   : > { %s828_s19 = smov (!%p245_p0, %s718_s19), 1  ;;  %v589_v15 = vld [vmem:[%s824_s4] ss:$0 sm:$0xff]  ;;  %v265_v46 = vld [vmem:[#allocation2 + $0x28] sm:$0xff]  ;;  %v266_v48 = vld [vmem:[#allocation2 + $0x30] sm:$0xff] }
  0x1e   : > { %s592_s28 = sshll.u32 %s828_s19, 5  ;;  %s617_s14 = smul.u32 192, %s828_s19  ;;  %v260_v31 = vld [vmem:[#allocation2] sm:$0xff]  ;;  %v263_v49 = vld [vmem:[#allocation2 + $0x18] sm:$0xff] }
  0x1f   : > { %s750_s6 = scalar_lea.vmem %s821_s1, %s592_s28  ;;  %s254_s9 = scalar_lea.vmem %s822_s2, %s592_s28  ;;  %v264_v32 = vld [vmem:[#allocation2 + $0x20] sm:$0xff]  ;;  %v267_v50 = vld [vmem:[#allocation2 + $0x38] sm:$0xff] }
  0x20   : > { %v271_v1 = vld [vmem:[%s750_s6 + $0x18] sm:$0xff]  ;;  %v595_v2 = vld [vmem:[%s254_s9] sm:$0xff]   ;;  %v610_v3 = vld [vmem:[%s254_s9 + $0x8] sm:$0xff]   ;;  %s769_s17 = scalar_lea.vmem %s825_s5, %s617_s14 }
  0x21   : > { %325 = vmatprep.subr.mxu0 %v271_v1  ;;  %v596_v4 = vunpack.c.l.bf16 %v595_v2  ;;  %v597_v5 = vunpack.c.h.bf16 %v595_v2  ;;  %v600_v6 = vunpack.c.l.bf16 %v610_v3  ;;  %v601_v7 = vunpack.c.h.bf16 %v610_v3  ;;  %v611_v8 = vld [vmem:[%s254_s9 + $0x10] sm:$0xff]   ;;  %v612_v9 = vld [vmem:[%s254_s9 + $0x18] sm:$0xff]   ;;  %613 = vmatprep.subr.mxu1 %v271_v1  ;;  %v269_v17 = vld [vmem:[%s750_s6 + $0x8] sm:$0xff] }
  0x22   : > { %v604_v11 = vunpack.c.l.bf16 %v611_v8  ;;  %v605_v12 = vunpack.c.h.bf16 %v611_v8  ;;  %v608_v13 = vunpack.c.l.bf16 %v612_v9  ;;  %v609_v14 = vunpack.c.h.bf16 %v612_v9  ;;  %v270_v16 = vld [vmem:[%s750_s6 + $0x10] sm:$0xff]  ;;  %v268_v26 = vld [vmem:[%s750_s6] sm:$0xff] }
  0x23   : > { %v433_v18 = vmul.f32 %v596_v4, %v588_v10  ;;  %v434_v19 = vmul.f32 %v597_v5, %v588_v10  ;;  %v435_v20 = vmul.f32 %v600_v6, %v588_v10  ;;  %v436_v21 = vmul.f32 %v601_v7, %v588_v10  ;;  %326 = vmatpush1.msra.mxu0 %v270_v16 }
  0x24   : > { %v437_v22 = vmul.f32 %v604_v11, %v588_v10  ;;  %v438_v23 = vmul.f32 %v605_v12, %v588_v10  ;;  %v439_v24 = vmul.f32 %v608_v13, %v588_v10  ;;  %v440_v25 = vmul.f32 %v609_v14, %v588_v10  ;;  %615 = vmatpush1.msra.mxu1 %v270_v16 }
  0x25   : > { %v448_v27 = vadd.f32 %v589_v15, %v433_v18  ;;  %v449_v28 = vadd.f32 %v589_v15, %v434_v19  ;;  %v450_v29 = vadd.f32 %v589_v15, %v435_v20  ;;  %v451_v30 = vadd.f32 %v589_v15, %v436_v21  ;;  %327 = vmatprep.subr.mxu0 %v269_v17 }
  0x26   : > { %v452_v33 = vadd.f32 %v589_v15, %v437_v22  ;;  %v453_v34 = vadd.f32 %v589_v15, %v438_v23  ;;  %v454_v35 = vadd.f32 %v589_v15, %v439_v24  ;;  %v455_v36 = vadd.f32 %v589_v15, %v440_v25  ;;  %614 = vmatprep.subr.mxu1 %v269_v17 }
  0x27   : > { %v456_v37 = vmax.f32 %v448_v27, 0.0  ;;  %v457_v38 = vmax.f32 %v449_v28, 0.0  ;;  %v458_v39 = vmax.f32 %v450_v29, 0.0  ;;  %v459_v40 = vmax.f32 %v451_v30, 0.0  ;;  %328 = vmatpush1.msra.mxu0 %v268_v26  ;;  %616 = vmatpush1.msra.mxu1 %v268_v26 }
  0x28   : > { %v460_v41 = vmax.f32 %v452_v33, 0.0  ;;  %v461_v42 = vmax.f32 %v453_v34, 0.0  ;;  %v462_v43 = vmax.f32 %v454_v35, 0.0  ;;  %v463_v44 = vmax.f32 %v455_v36, 0.0  ;;  %580 = vmatmul.mubr.msk.f32.vlgmr.msra.gmra.mxu0 %vm272_vm1, %v260_v31  ;;  %584 = vmatmul.mubr.msk.f32.vlgmr.msra.gmra.mxu1 %vm272_vm1, %v264_v32 }
  0x29   : > { %467 = vst.msk [vmem:[%s769_s17 + $0x10] sm:$0xff] %vm466_vm0, %v456_v37  ;;  %470 = vst.msk [vmem:[%s769_s17 + $0x28] sm:$0xff] %vm466_vm0, %v457_v38  ;;  %367 = vmatprep.mubr.f32.mxu0 %v681_v0  ;;  %391 = vmatprep.mubr.f32.mxu1 %v681_v0 }
  0x2a   : > { %473 = vst.msk [vmem:[%s769_s17 + $0x40] sm:$0xff] %vm466_vm0, %v458_v39  ;;  %476 = vst.msk [vmem:[%s769_s17 + $0x58] sm:$0xff] %vm466_vm0, %v459_v40 }
  0x2b   : > { %479 = vst.msk [vmem:[%s769_s17 + $0x70] sm:$0xff] %vm466_vm0, %v460_v41  ;;  %482 = vst.msk [vmem:[%s769_s17 + $0x88] sm:$0xff] %vm466_vm0, %v461_v42 }
  0x2c   : > { %485 = vst.msk [vmem:[%s769_s17 + $0xa0] sm:$0xff] %vm466_vm0, %v462_v43  ;;  %488 = vst.msk [vmem:[%s769_s17 + $0xb8] sm:$0xff] %vm466_vm0, %v463_v44  ;;  %581 = vmatmul.mubr.msk.f32.gmra.mxu0 %vm272_vm1, %v261_v45  ;;  %585 = vmatmul.mubr.msk.f32.gmra.mxu1 %vm272_vm1, %v265_v46 }
  0x2d   : > { %373 = vmatprep.mubr.f32.mxu0 %v681_v0  ;;  %397 = vmatprep.mubr.f32.mxu1 %v681_v0 }
  0x30   : > { %582 = vmatmul.mubr.msk.f32.gmra.mxu0 %vm272_vm1, %v262_v47  ;;  %586 = vmatmul.mubr.msk.f32.gmra.mxu1 %vm272_vm1, %v266_v48 }
  0x31   : > { %379 = vmatprep.mubr.f32.mxu0 %v681_v0  ;;  %403 = vmatprep.mubr.f32.mxu1 %v681_v0 }
  0x34   : > { %583 = vmatmul.mubr.msk.f32.gmra.mxu0 %vm272_vm1, %v263_v49  ;;  %587 = vmatmul.mubr.msk.f32.gmra.mxu1 %vm272_vm1, %v267_v50 }
  0xe8   : > { %v363_v51 = vpop.f32.mrf.mxu0  ;;  %v387_v52 = vpop.f32.mrf.mxu1 }
  0xe9   : > { %464 = vst [vmem:[%s769_s17] sm:$0xff] %v363_v51  ;;  %477 = vst [vmem:[%s769_s17 + $0x60] sm:$0xff] %v387_v52 }
  0xea   : > { %v365_v53 = vpop.f32.mrf.mxu0  ;;  %v389_v54 = vpop.f32.mrf.mxu1 }
  0xeb   : > { %465 = vst [vmem:[%s769_s17 + $0x8] sm:$0xff] %v365_v53  ;;  %478 = vst [vmem:[%s769_s17 + $0x68] sm:$0xff] %v389_v54 }
  0xec   : > { %v369_v55 = vpop.f32.mrf.mxu0  ;;  %v393_v56 = vpop.f32.mrf.mxu1 }
  0xed   : > { %468 = vst [vmem:[%s769_s17 + $0x18] sm:$0xff] %v369_v55  ;;  %480 = vst [vmem:[%s769_s17 + $0x78] sm:$0xff] %v393_v56 }
  0xee   : > { %v371_v57 = vpop.f32.mrf.mxu0  ;;  %v395_v58 = vpop.f32.mrf.mxu1 }
  0xef   : > { %469 = vst [vmem:[%s769_s17 + $0x20] sm:$0xff] %v371_v57  ;;  %481 = vst [vmem:[%s769_s17 + $0x80] sm:$0xff] %v395_v58 }
  0xf0   : > { %v375_v59 = vpop.f32.mrf.mxu0  ;;  %v399_v60 = vpop.f32.mrf.mxu1 }
  0xf1   : > { %471 = vst [vmem:[%s769_s17 + $0x30] sm:$0xff] %v375_v59  ;;  %483 = vst [vmem:[%s769_s17 + $0x90] sm:$0xff] %v399_v60 }
  0xf2   : > { %v377_v61 = vpop.f32.mrf.mxu0  ;;  %v401_v62 = vpop.f32.mrf.mxu1 }
  0xf3   : > { %472 = vst [vmem:[%s769_s17 + $0x38] sm:$0xff] %v377_v61  ;;  %484 = vst [vmem:[%s769_s17 + $0x98] sm:$0xff] %v401_v62 }
  0xf4   : > { %v381_v63 = vpop.f32.mrf.mxu0  ;;  %v405_v0 = vpop.f32.mrf.mxu1 }
  0xf5   : > { %474 = vst [vmem:[%s769_s17 + $0x48] sm:$0xff] %v381_v63  ;;  %486 = vst [vmem:[%s769_s17 + $0xa8] sm:$0xff] %v405_v0 }
  0xf6   : > { %v383_v1 = vpop.f32.mrf.mxu0  ;;  %v407_v2 = vpop.f32.mrf.mxu1 }
  0xf7   : > { %475 = vst [vmem:[%s769_s17 + $0x50] sm:$0xff] %v383_v1  ;;  %487 = vst [vmem:[%s769_s17 + $0xb0] sm:$0xff] %v407_v2 }
  0xf8 PF: > { %s16_s18 = sadd.s32 1, %s676_s18  }
  0xf9   : > { %p13_p1 = scmp.ge.s32.totalorder %s16_s18, 4  }
  0xfb   :  { %15 = sbr.rel (!%p13_p1) target bundleno = 1 (0x1), region = 78 }
 0x100   :  { %510 = vsyncpa [#allocation3], 1 }
 0x101   :  { %512 = vsyncpa [#allocation3 + $0x1], 1 }

// kernel: decoder_forward.6
= control target key start
LH: loop header
LB: loop body
LE: loop exit
PB: predicated region body
PF: predicated region fallthrough
CT: control target
= control target key end

     0   :  { %s835_s15 = smov 0   ;;  %s956_s0 = inlined_call_operand.vmem [shape: bf16[2,64,256], index: 0, kind: input, shape index: {}]   ;;  %s957_s1 = inlined_call_operand.vmem [shape: bf16[256,48], index: 1, kind: input, shape index: {}]   ;;  %s958_s2 = inlined_call_operand.vmem [shape: bf16[2,64,48], index: 2, kind: output, shape index: {0}]   ;;  %s959_s3 = inlined_call_operand.vmem [shape: f32[2,1,48], index: 3, kind: output, shape index: {1}]   ;;  %s960_s4 = inlined_call_operand.vmem [shape: f32[2,1,48], index: 4, kind: output, shape index: {2}]  }
   0x1 LB: > { %s657_s16 = sadd.s32 4294967295, %s808_s15   ;;  %p661_p0 = scmp.ge.s32.totalorder %s808_s15, 1  ;;  %s808_s15 = sphi %s835_s15, %s15_s15  }
   0x2   : > { %p167_p1 = scmp.lt.s32.totalorder %s808_s15, 3 }
   0x4   : > { %p168_p2 = pnand %p661_p0, %p167_p1 }
   0x5   : > { %p199_p3 = scmp.lt.s32.totalorder (!%p168_p2), %s657_s16, 1 }
   0x6   : > { %171 = sbr.rel (%p168_p2) target bundleno = 279 (0x117), region = 28 }
   0xb   : > { %v774_v0 = vld [vmem:[%s957_s1 + $0x78] sm:$0xff]   ;;  %v776_v2 = vld [vmem:[%s957_s1 + $0x70] sm:$0xff]   ;;  %v778_v4 = vld [vmem:[%s957_s1 + $0x68] sm:$0xff]   ;;  %s962_s16 = smov (!%p199_p3, %s657_s16), 1  ;;  %vm489_vm0 = vcmask 388096   ;;  %vm498_vm1 = vcmask 392192  }
   0xc   : > { %v775_v1 = vld [vmem:[%s957_s1 + $0x38] sm:$0xff]   ;;  %710 = vmatprep.subr.bf16.mxu0 %v774_v0  ;;  %750 = vmatprep.subr.bf16.mxu1 %v774_v0  ;;  %v777_v3 = vld [vmem:[%s957_s1 + $0x30] sm:$0xff]   ;;  %v779_v5 = vld [vmem:[%s957_s1 + $0x28] sm:$0xff]   ;;  %s700_s7 = sshll.u32 %s962_s16, 6  ;;  %s701_s29 = sshll.u32 %s962_s16, 5  ;;  %vm520_vm2 = vcmask 385024  }
   0xd   : > { %711 = vmatpush3.bf16.msra.mxu0 %v775_v1  ;;  %758 = vmatpush3.bf16.msra.mxu1 %v775_v1  ;;  %v780_v6 = vld [vmem:[%s957_s1 + $0x60] sm:$0xff]   ;;  %v782_v8 = vld [vmem:[%s957_s1 + $0x58] sm:$0xff]   ;;  %s876_s12 = scalar_lea.vmem %s956_s0, %s700_s7  ;;  %v784_v10 = vld [vmem:[%s957_s1 + $0x50] sm:$0xff]   ;;  %s911_s6 = scalar_lea.vmem %s958_s2, %s701_s29 }
   0xe   : > { %712 = vmatprep.subr.bf16.mxu0 %v776_v2  ;;  %751 = vmatprep.subr.bf16.mxu1 %v776_v2  ;;  %v781_v7 = vld [vmem:[%s957_s1 + $0x20] sm:$0xff]   ;;  %v783_v9 = vld [vmem:[%s957_s1 + $0x18] sm:$0xff]   ;;  %v785_v13 = vld [vmem:[%s957_s1 + $0x10] sm:$0xff]   ;;  %s211_s9 = scalar_lea.vmem %s959_s3, %s962_s16 }
   0xf   : > { %v792_v11 = vld [vmem:[%s876_s12 + $0x4] ss:$8 sps:$4 sm:$0xff]   ;;  %v790_v18 = vld [vmem:[%s876_s12] ss:$8 sps:$4 sm:$0xff]   ;;  %v796_v20 = vld [vmem:[%s876_s12 + $0x14] ss:$8 sps:$4 sm:$0xff]  }
  0x10   : > { %v795_v12 = vld [vmem:[%s876_s12 + $0x24] ss:$8 sps:$4 sm:$0xff]   ;;  %424 = vmatprep.mubr.bf16.mxu0 %v792_v11  ;;  %v793_v19 = vld [vmem:[%s876_s12 + $0x20] ss:$8 sps:$4 sm:$0xff]   ;;  %v799_v21 = vld [vmem:[%s876_s12 + $0x34] ss:$8 sps:$4 sm:$0xff]  }
  0x11   : > { %713 = vmatpush3.bf16.msra.mxu0 %v777_v3  ;;  %759 = vmatpush3.bf16.msra.mxu1 %v777_v3  ;;  %v786_v14 = vld [vmem:[%s957_s1 + $0x48] sm:$0xff]   ;;  %v788_v16 = vld [vmem:[%s957_s1 + $0x40] sm:$0xff]   ;;  %v798_v22 = vld [vmem:[%s876_s12 + $0x10] ss:$8 sps:$4 sm:$0xff]  }
  0x12   : > { %714 = vmatprep.subr.bf16.mxu0 %v778_v4  ;;  %752 = vmatprep.subr.bf16.mxu1 %v778_v4  ;;  %v787_v15 = vld [vmem:[%s957_s1 + $0x8] sm:$0xff]   ;;  %v789_v17 = vld [vmem:[%s957_s1] sm:$0xff]   ;;  %v801_v23 = vld [vmem:[%s876_s12 + $0x30] ss:$8 sps:$4 sm:$0xff]   ;;  %s214_s12 = scalar_lea.vmem %s960_s4, %s962_s16 }
  0x13   : > { %440 = vmatprep.mubr.bf16.mxu1 %v795_v12 }
  0x15   : > { %715 = vmatpush3.bf16.msra.mxu0 %v779_v5  ;;  %760 = vmatpush3.bf16.msra.mxu1 %v779_v5 }
  0x16   : > { %716 = vmatprep.subr.bf16.mxu0 %v780_v6  ;;  %753 = vmatprep.subr.bf16.mxu1 %v780_v6 }
  0x19   : > { %717 = vmatpush3.bf16.msra.mxu0 %v781_v7  ;;  %761 = vmatpush3.bf16.msra.mxu1 %v781_v7 }
  0x1a   : > { %718 = vmatprep.subr.bf16.mxu0 %v782_v8  ;;  %754 = vmatprep.subr.bf16.mxu1 %v782_v8 }
  0x1d   : > { %719 = vmatpush3.bf16.msra.mxu0 %v783_v9  ;;  %762 = vmatpush3.bf16.msra.mxu1 %v783_v9 }
  0x1e   : > { %720 = vmatprep.subr.bf16.mxu0 %v784_v10  ;;  %755 = vmatprep.subr.bf16.mxu1 %v784_v10 }
  0x21   : > { %721 = vmatpush3.bf16.msra.mxu0 %v785_v13  ;;  %763 = vmatpush3.bf16.msra.mxu1 %v785_v13 }
  0x22   : > { %722 = vmatprep.subr.bf16.mxu0 %v786_v14  ;;  %756 = vmatprep.subr.bf16.mxu1 %v786_v14 }
  0x25   : > { %723 = vmatpush3.bf16.msra.mxu0 %v787_v15  ;;  %764 = vmatpush3.bf16.msra.mxu1 %v787_v15 }
  0x26   : > { %724 = vmatprep.subr.bf16.mxu0 %v788_v16  ;;  %757 = vmatprep.subr.bf16.mxu1 %v788_v16 }
  0x29   : > { %725 = vmatpush3.bf16.msra.mxu0 %v789_v17  ;;  %765 = vmatpush3.bf16.msra.mxu1 %v789_v17 }
  0x2c   : > { %425 = vmatmul.mubr.bf16.vlgmr.msra.gmra.mxu0 %v790_v18  ;;  %441 = vmatmul.mubr.bf16.vlgmr.msra.gmra.mxu1 %v793_v19 }
  0x2d   : > { %432 = vmatprep.mubr.bf16.mxu0 %v796_v20  ;;  %448 = vmatprep.mubr.bf16.mxu1 %v799_v21 }
  0x34   : > { %433 = vmatmul.mubr.bf16.gmra.mxu0 %v798_v22  ;;  %449 = vmatmul.mubr.bf16.gmra.mxu1 %v801_v23 }
  0xec   : > { %v726_v24 = vpop.f32.mrf.mxu0  ;;  %v738_v25 = vpop.f32.mrf.mxu1 }
  0xee   : > { %v727_v26 = vpop.f32.mrf.mxu0  ;;  %v739_v27 = vpop.f32.mrf.mxu1 }
  0xef   : > { %v728_v28 = vadd.f32 %v727_v26, %v726_v24  ;;  %v740_v29 = vadd.f32 %v739_v27, %v738_v25 }
  0xf0   : > { %v729_v30 = vpop.f32.mrf.mxu0  ;;  %v741_v31 = vpop.f32.mrf.mxu1 }
  0xf1   : > { %v702_v32 = vpack.c.bf16 %v728_v28, %v728_v28  ;;  %v706_v33 = vpack.c.bf16 %v740_v29, %v740_v29  ;;  %v522_v45 = vmul.f32 %v728_v28, %v728_v28  ;;  %v499_v49 = vsel %vm498_vm1, %v728_v28, 0.0 }
  0xf2   : > { %v730_v34 = vpop.f32.mrf.mxu0  ;;  %v742_v35 = vpop.f32.mrf.mxu1  ;;  %v526_v0 = vmul.f32 %v740_v29, %v740_v29  ;;  %v506_v9 = vsel %vm498_vm1, %v740_v29, 0.0 }
  0xf3   : > { %490 = vst.msk [vmem:[%s911_s6] sm:$0xf] %vm489_vm0, %v702_v32  ;;  %494 = vst.msk [vmem:[%s911_s6 + $0x10] sm:$0xf] %vm489_vm0, %v706_v33  ;;  %v731_v36 = vadd.f32 %v730_v34, %v729_v30  ;;  %v743_v37 = vadd.f32 %v742_v35, %v741_v31  ;;  %v530_v60 = vsel %vm498_vm1, %v522_v45, 0.0 }
  0xf4   : > { %v732_v38 = vpop.f32.mrf.mxu0  ;;  %v744_v39 = vpop.f32.mrf.mxu1  ;;  %v537_v14 = vsel %vm498_vm1, %v526_v0, 0.0 }
  0xf5   : > { %v703_v40 = vpack.c.bf16 %v731_v36, %v731_v36  ;;  %v523_v41 = vmul.f32 %v731_v36, %v731_v36  ;;  %v707_v42 = vpack.c.bf16 %v743_v37, %v743_v37  ;;  %v500_v46 = vsel %vm498_vm1, %v731_v36, 0.0 }
  0xf6   : > { %v733_v43 = vpop.f32.mrf.mxu0  ;;  %v745_v44 = vpop.f32.mrf.mxu1  ;;  %v501_v57 = vadd.f32 %v500_v46, %v499_v49  ;;  %v527_v10 = vmul.f32 %v743_v37, %v743_v37  ;;  %v508_v15 = vsel %vm498_vm1, %v743_v37, 0.0 }
  0xf7   : > { %491 = vst.msk [vmem:[%s911_s6 + $0x4] sm:$0xf] %vm489_vm0, %v703_v40  ;;  %495 = vst.msk [vmem:[%s911_s6 + $0x14] sm:$0xf] %vm489_vm0, %v707_v42  ;;  %v734_v47 = vadd.f32 %v733_v43, %v732_v38  ;;  %v746_v48 = vadd.f32 %v745_v44, %v744_v39  ;;  %v531_v50 = vsel %vm498_vm1, %v523_v41, 0.0 }
  0xf8   : > { %v735_v51 = vpop.f32.mrf.mxu0  ;;  %v747_v52 = vpop.f32.mrf.mxu1  ;;  %v532_v1 = vadd.f32 %v531_v50, %v530_v60  ;;  %v539_v19 = vsel %vm498_vm1, %v527_v10, 0.0 }
  0xf9   : > { %v704_v53 = vpack.c.bf16 %v734_v47, %v734_v47  ;;  %v502_v54 = vsel %vm498_vm1, %v734_v47, 0.0  ;;  %v524_v55 = vmul.f32 %v734_v47, %v734_v47  ;;  %v708_v56 = vpack.c.bf16 %v746_v48, %v746_v48 }
  0xfa   : > { %v736_v58 = vpop.f32.mrf.mxu0  ;;  %v748_v59 = vpop.f32.mrf.mxu1  ;;  %v503_v2 = vadd.f32 %v502_v54, %v501_v57  ;;  %v528_v16 = vmul.f32 %v746_v48, %v746_v48  ;;  %v510_v20 = vsel %vm498_vm1, %v746_v48, 0.0 }
  0xfb   : > { %492 = vst.msk [vmem:[%s911_s6 + $0x8] sm:$0xf] %vm489_vm0, %v704_v53  ;;  %v533_v61 = vsel %vm498_vm1, %v524_v55, 0.0  ;;  %496 = vst.msk [vmem:[%s911_s6 + $0x18] sm:$0xf] %vm489_vm0, %v708_v56  ;;  %v737_v62 = vadd.f32 %v736_v58, %v735_v51  ;;  %v749_v63 = vadd.f32 %v748_v59, %v747_v52 }
  0xfc   : > { %v534_v7 = vadd.f32 %v533_v61, %v532_v1  ;;  %v541_v24 = vsel %vm498_vm1, %v528_v16, 0.0 }
  0xfd   : > { %v705_v3 = vpack.c.bf16 %v737_v62, %v737_v62  ;;  %v504_v4 = vsel %vm498_vm1, %v737_v62, 0.0  ;;  %v525_v5 = vmul.f32 %v737_v62, %v737_v62  ;;  %v709_v6 = vpack.c.bf16 %v749_v63, %v749_v63 }
  0xfe   : > { %v505_v8 = vadd.f32 %v504_v4, %v503_v2  ;;  %v529_v21 = vmul.f32 %v749_v63, %v749_v63  ;;  %v512_v25 = vsel %vm498_vm1, %v749_v63, 0.0 }
  0xff   : > { %493 = vst.msk [vmem:[%s911_s6 + $0xc] sm:$0xf] %vm489_vm0, %v705_v3  ;;  %v535_v11 = vsel %vm498_vm1, %v525_v5, 0.0  ;;  %497 = vst.msk [vmem:[%s911_s6 + $0x1c] sm:$0xf] %vm489_vm0, %v709_v6 }
 0x100   : > { %v507_v12 = vadd.f32 %v506_v9, %v505_v8  ;;  %v536_v13 = vadd.f32 %v535_v11, %v534_v7  ;;  %v543_v28 = vsel %vm498_vm1, %v529_v21, 0.0 }
 0x102   : > { %v538_v17 = vadd.f32 %v537_v14, %v536_v13  ;;  %v509_v18 = vadd.f32 %v508_v15, %v507_v12 }
 0x104   : > { %v511_v22 = vadd.f32 %v510_v20, %v509_v18  ;;  %v540_v23 = vadd.f32 %v539_v19, %v538_v17 }
 0x106   : > { %v513_v26 = vadd.f32 %v512_v25, %v511_v22  ;;  %v542_v27 = vadd.f32 %v541_v24, %v540_v23 }
 0x108   : > { %v514_v29 = vrot.slane %v513_v26, 4  ;;  %v544_v30 = vadd.f32 %v543_v28, %v542_v27 }
 0x10a   : > { %v515_v31 = vadd.f32 %v514_v29, %v513_v26  ;;  %v545_v32 = vrot.slane %v544_v30, 4 }
 0x10c   : > { %v516_v33 = vrot.slane %v515_v31, 2  ;;  %v546_v34 = vadd.f32 %v545_v32, %v544_v30 }
 0x10e   : > { %v517_v35 = vadd.f32 %v516_v33, %v515_v31  ;;  %v547_v36 = vrot.slane %v546_v34, 2 }
 0x110   : > { %v518_v37 = vrot.slane %v517_v35, 1  ;;  %v548_v38 = vadd.f32 %v547_v36, %v546_v34 }
 0x112   : > { %v519_v39 = vadd.f32 %v518_v37, %v517_v35  ;;  %v549_v40 = vrot.slane %v548_v38, 1 }
 0x114   : > { %521 = vst.msk [vmem:[%s211_s9] sm:$0x1] %vm520_vm2, %v519_v39  ;;  %v550_v41 = vadd.f32 %v549_v40, %v548_v38 }
 0x116   : > { %551 = vst.msk [vmem:[%s214_s12] sm:$0x1] %vm520_vm2, %v550_v41 }
 0x117 PF: > { %s15_s15 = sadd.s32 1, %s808_s15  }
 0x118   : > { %p12_p4 = scmp.ge.s32.totalorder %s15_s15, 4  }
 0x11a   :  { %14 = sbr.rel (!%p12_p4) target bundleno = 1 (0x1), region = 82 }

// kernel: decoder_forward.9
= control target key start
LH: loop header
LB: loop body
LE: loop exit
PB: predicated region body
PF: predicated region fallthrough
CT: control target
= control target key end

     0   :  { %s387_s12 = smov 0   ;;  %s482_s0 = inlined_call_operand.vmem [shape: bf16[2,64,256], index: 0, kind: input, shape index: {}]   ;;  %s483_s1 = inlined_call_operand.vmem [shape: f32[1,256], index: 1, kind: input, shape index: {}]   ;;  %s484_s2 = inlined_call_operand.vmem [shape: f32[1,256], index: 2, kind: input, shape index: {}]   ;;  %s485_s3 = inlined_call_operand.vmem [shape: f32[2,64,256], index: 3, kind: output, shape index: {}]  }
   0x1 LB: > { %s338_s13 = sadd.s32 4294967295, %s365_s12   ;;  %p342_p0 = scmp.ge.s32.totalorder %s365_s12, 1  ;;  %s365_s12 = sphi %s387_s12, %s13_s12  }
   0x2   : > { %p137_p1 = scmp.lt.s32.totalorder %s365_s12, 3 }
   0x4   : > { %p138_p2 = pnand %p342_p0, %p137_p1 }
   0x5   : > { %p161_p3 = scmp.lt.s32.totalorder (!%p138_p2), %s338_s13, 1 }
   0x6   : > { %141 = sbr.rel (%p138_p2) target bundleno = 37 (0x25), region = 32 }
   0xb   : > { %v197_v0 = vlaneseq  ;;  %s487_s13 = smov (!%p161_p3, %s338_s13), 1  ;;  %v195_v2 = vld [vmem:[%s483_s1] sm:$0x3] }
   0xc   : > { %v223_v3 = vld [vmem:[%s484_s2] sm:$0x3]  ;;  %s349_s18 = sshll.u32 %s487_s13, 6  ;;  %s350_s22 = sshll.u32 %s487_s13, 7 }
   0xd   : > { %v198_v1 = vshrl.u32 %v197_v0, 7  ;;  %s407_s21 = scalar_lea.vmem %s482_s0, %s349_s18  ;;  %s437_s25 = scalar_lea.vmem %s485_s3, %s350_s22 }
   0xe   : > { %v171_v6 = vld [vmem:[%s407_s21] sm:$0xff]  ;;  %v172_v11 = vld [vmem:[%s407_s21 + $0x8] sm:$0xff]  ;;  %v173_v12 = vld [vmem:[%s407_s21 + $0x10] sm:$0xff] }
   0xf   : > { %v199_v4 = vsub.s32 0, %v198_v1  ;;  %v203_v5 = vsub.s32 1, %v198_v1  ;;  %v179_v13 = vunpack.c.l.bf16 %v171_v6  ;;  %v180_v14 = vunpack.c.h.bf16 %v171_v6  ;;  %v174_v17 = vld [vmem:[%s407_s21 + $0x18] sm:$0xff]  ;;  %v175_v38 = vld [vmem:[%s407_s21 + $0x20] sm:$0xff]  ;;  %v176_v39 = vld [vmem:[%s407_s21 + $0x28] sm:$0xff] }
  0x10   : > { %v181_v15 = vunpack.c.l.bf16 %v172_v11  ;;  %v182_v16 = vunpack.c.h.bf16 %v172_v11  ;;  %v183_v18 = vunpack.c.l.bf16 %v173_v12  ;;  %v184_v19 = vunpack.c.h.bf16 %v173_v12  ;;  %v177_v44 = vld [vmem:[%s407_s21 + $0x30] sm:$0xff]  ;;  %v178_v45 = vld [vmem:[%s407_s21 + $0x38] sm:$0xff] }
  0x11   : > { %v410_v7 = vrot.slane %v195_v2, %v199_v4  ;;  %v412_v8 = vrot.slane %v223_v3, %v199_v4  ;;  %v414_v9 = vrot.slane %v195_v2, %v203_v5  ;;  %v416_v10 = vrot.slane %v223_v3, %v203_v5 }
  0x12   : > { %v185_v20 = vunpack.c.l.bf16 %v174_v17  ;;  %v186_v21 = vunpack.c.h.bf16 %v174_v17  ;;  %v187_v50 = vunpack.c.l.bf16 %v175_v38  ;;  %v188_v51 = vunpack.c.h.bf16 %v175_v38 }
  0x13   : > { %v207_v22 = vmul.f32 %v410_v7, %v179_v13  ;;  %v208_v23 = vmul.f32 %v414_v9, %v180_v14  ;;  %v209_v24 = vmul.f32 %v410_v7, %v181_v15  ;;  %v210_v25 = vmul.f32 %v414_v9, %v182_v16 }
  0x14   : > { %v211_v26 = vmul.f32 %v410_v7, %v183_v18  ;;  %v212_v27 = vmul.f32 %v414_v9, %v184_v19  ;;  %v213_v28 = vmul.f32 %v410_v7, %v185_v20  ;;  %v214_v29 = vmul.f32 %v414_v9, %v186_v21 }
  0x15   : > { %v235_v30 = vadd.f32 %v412_v8, %v207_v22  ;;  %v236_v31 = vadd.f32 %v416_v10, %v208_v23  ;;  %v237_v32 = vadd.f32 %v412_v8, %v209_v24  ;;  %v238_v33 = vadd.f32 %v416_v10, %v210_v25 }
  0x16   : > { %v239_v34 = vadd.f32 %v412_v8, %v211_v26  ;;  %v240_v35 = vadd.f32 %v416_v10, %v212_v27  ;;  %v241_v36 = vadd.f32 %v412_v8, %v213_v28  ;;  %v242_v37 = vadd.f32 %v416_v10, %v214_v29 }
  0x17   : > { %v251_v40 = vmax.f32 %v235_v30, 0.0  ;;  %v252_v41 = vmax.f32 %v236_v31, 0.0  ;;  %v253_v42 = vmax.f32 %v237_v32, 0.0  ;;  %v254_v43 = vmax.f32 %v238_v33, 0.0 }
  0x18   : > { %v255_v46 = vmax.f32 %v239_v34, 0.0  ;;  %v256_v47 = vmax.f32 %v240_v35, 0.0  ;;  %v257_v48 = vmax.f32 %v241_v36, 0.0  ;;  %v258_v49 = vmax.f32 %v242_v37, 0.0 }
  0x19   : > { %267 = vst [vmem:[%s437_s25] sm:$0xff] %v251_v40  ;;  %268 = vst [vmem:[%s437_s25 + $0x8] sm:$0xff] %v252_v41  ;;  %v189_v52 = vunpack.c.l.bf16 %v176_v39  ;;  %v190_v53 = vunpack.c.h.bf16 %v176_v39  ;;  %v191_v54 = vunpack.c.l.bf16 %v177_v44  ;;  %v192_v55 = vunpack.c.h.bf16 %v177_v44 }
  0x1a   : > { %269 = vst [vmem:[%s437_s25 + $0x10] sm:$0xff] %v253_v42  ;;  %270 = vst [vmem:[%s437_s25 + $0x18] sm:$0xff] %v254_v43  ;;  %v193_v56 = vunpack.c.l.bf16 %v178_v45  ;;  %v194_v57 = vunpack.c.h.bf16 %v178_v45  ;;  %v215_v58 = vmul.f32 %v410_v7, %v187_v50  ;;  %v216_v59 = vmul.f32 %v414_v9, %v188_v51 }
  0x1b   : > { %271 = vst [vmem:[%s437_s25 + $0x20] sm:$0xff] %v255_v46  ;;  %272 = vst [vmem:[%s437_s25 + $0x28] sm:$0xff] %v256_v47  ;;  %v217_v60 = vmul.f32 %v410_v7, %v189_v52  ;;  %v218_v61 = vmul.f32 %v414_v9, %v190_v53  ;;  %v219_v62 = vmul.f32 %v410_v7, %v191_v54 }
  0x1c   : > { %273 = vst [vmem:[%s437_s25 + $0x30] sm:$0xff] %v257_v48  ;;  %274 = vst [vmem:[%s437_s25 + $0x38] sm:$0xff] %v258_v49  ;;  %v220_v63 = vmul.f32 %v414_v9, %v192_v55  ;;  %v221_v0 = vmul.f32 %v410_v7, %v193_v56  ;;  %v222_v1 = vmul.f32 %v414_v9, %v194_v57 }
  0x1d   : > { %v243_v2 = vadd.f32 %v412_v8, %v215_v58  ;;  %v244_v3 = vadd.f32 %v416_v10, %v216_v59  ;;  %v245_v4 = vadd.f32 %v412_v8, %v217_v60  ;;  %v246_v5 = vadd.f32 %v416_v10, %v218_v61 }
  0x1e   : > { %v247_v6 = vadd.f32 %v412_v8, %v219_v62  ;;  %v248_v11 = vadd.f32 %v416_v10, %v220_v63  ;;  %v249_v7 = vadd.f32 %v412_v8, %v221_v0  ;;  %v250_v9 = vadd.f32 %v416_v10, %v222_v1 }
  0x1f   : > { %v259_v12 = vmax.f32 %v243_v2, 0.0  ;;  %v260_v13 = vmax.f32 %v244_v3, 0.0  ;;  %v261_v14 = vmax.f32 %v245_v4, 0.0  ;;  %v262_v15 = vmax.f32 %v246_v5, 0.0 }
  0x20   : > { %v263_v16 = vmax.f32 %v247_v6, 0.0  ;;  %v264_v17 = vmax.f32 %v248_v11, 0.0  ;;  %v265_v18 = vmax.f32 %v249_v7, 0.0  ;;  %v266_v19 = vmax.f32 %v250_v9, 0.0 }
  0x21   : > { %275 = vst [vmem:[%s437_s25 + $0x40] sm:$0xff] %v259_v12  ;;  %276 = vst [vmem:[%s437_s25 + $0x48] sm:$0xff] %v260_v13 }
  0x22   : > { %277 = vst [vmem:[%s437_s25 + $0x50] sm:$0xff] %v261_v14  ;;  %278 = vst [vmem:[%s437_s25 + $0x58] sm:$0xff] %v262_v15 }
  0x23   : > { %279 = vst [vmem:[%s437_s25 + $0x60] sm:$0xff] %v263_v16  ;;  %280 = vst [vmem:[%s437_s25 + $0x68] sm:$0xff] %v264_v17 }
  0x24   : > { %281 = vst [vmem:[%s437_s25 + $0x70] sm:$0xff] %v265_v18  ;;  %282 = vst [vmem:[%s437_s25 + $0x78] sm:$0xff] %v266_v19 }
  0x25 PF: > { %s13_s12 = sadd.s32 1, %s365_s12  }
  0x26   : > { %p10_p4 = scmp.ge.s32.totalorder %s13_s12, 4  }
  0x28   :  { %12 = sbr.rel (!%p10_p4) target bundleno = 1 (0x1), region = 62 }

// kernel: decoder_forward.11
= control target key start
LH: loop header
LB: loop body
LE: loop exit
PB: predicated region body
PF: predicated region fallthrough
CT: control target
= control target key end

     0   :  { %8 = vsyncpa [#allocation3], 0  ;;  %s678_s0 = inlined_call_operand.vmem [shape: bf16[2,64,256], index: 0, kind: input, shape index: {}]   ;;  %s679_s1 = inlined_call_operand.vmem [shape: f32[1,256], index: 1, kind: input, shape index: {}]   ;;  %s680_s2 = inlined_call_operand.vmem [shape: f32[1,256], index: 2, kind: input, shape index: {}]   ;;  %s681_s3 = inlined_call_operand.hbm [shape: f32[2,64,256], index: 3, kind: output, shape index: {}]  }
   0x1   :  { %10 = vsyncpa [#allocation3 + $0x1], 0  ;;  %s497_s12 = smov 0   ;;  %s499_s13 = smov 0  }
   0x2   :  { %s501_s14 = smov 0   ;;  %s503_s15 = smov 0  }
   0x3 LB: > { %s518_s16 = sadd.s32 4294967295, %s472_s15   ;;  %s357_s17 = sadd.s32 4294967294, %s472_s15   ;;  %s472_s15 = sphi %s503_s15, %s687_s15   ;;  %s468_s14 = sphi %s501_s14, %s686_s14   ;;  %s464_s13 = sphi %s499_s13, %s685_s13   ;;  %s460_s12 = sphi %s497_s12, %s684_s12  }
   0x4   : > { %s522_s18 = sadd.s32 1, %s472_s15   ;;  %s91_s19 = sadd.s32 1, %s468_s14 }
   0x5   : > { %s88_s20 = ssub.s32 %s472_s15, %s522_s18  ;;  %p101_p0 = scmp.ne.s32.totalorder %s468_s14, %s464_s13 }
   0x6   : > { %p89_p1 = scmp.eq.s32.totalorder %s88_s20, 0  ;;  %p102_p2 = scmp.eq.s32.totalorder %s518_s16, 1 }
   0x7   : > { %p107_p3 = scmp.ne.s32.totalorder %s464_s13, %s460_s12  ;;  %p108_p4 = scmp.eq.s32.totalorder %s357_s17, 1 }
   0x8   : > { %s533_s21 = scalar_select %p89_p1, %s468_s14, %s91_s19  }
   0x9   : > { %p535_p5 = por %p102_p2, %p101_p0  ;;  %p539_p6 = por %p108_p4, %p107_p3 }
   0xa   : > { %p360_p7 = scmp.ge.s32.totalorder %s472_s15, 1  ;;  %p140_p8 = scmp.lt.s32.totalorder %s472_s15, 3 }
   0xc   : > { %p141_p9 = pnand %p360_p7, %p140_p8 }
   0xd   : > { %p164_p10 = scmp.lt.s32.totalorder (!%p141_p9), %s518_s16, 1  ;;  %s161_s6 = sand.u32 (!%p141_p9), 1, %s464_s13  }
   0xe   : > { %144 = sbr.rel (%p141_p9) target bundleno = 58 (0x3a), region = 32  ;;  %s361_s7 = sshll.u32 (!%p141_p9), %s161_s6, 7 }
   0xf   : > { %s593_s8 = scalar_lea.vmem (!%p141_p9), [#allocation2], %s361_s7  ;;  %s370_s9 = sshll.u32 (!%p141_p9), %s518_s16, 11 }
  0x10   : > { %s295_s10 = sshll.u32 (!%p141_p9), %s593_s8, 4  ;;  %s624_s17 = scalar_lea.hbm (!%p141_p9), %s681_s3, %s370_s9  ;;  %s626_s10 = int_to_ptr.vmem [resolvable:$true] %s295_s10 }
  0x11   : > { %s638_s19 = scalar_lea.sflag (!%p141_p9), [#allocation3], %s161_s6  ;;  %s412_s20 = scalar_lea.vmem (!%p141_p9), %s626_s10, 2048 }
  0x12   : > { %p413_p11 = scmp.ne.s32.totalorder (!%p141_p9), %s626_s10, %s412_s20 }
  0x13   : > { %v195_v0 = vlaneseq  ;;  %s165_s24 = scalar_select %p164_p10, %s518_s16, 1  ;;  %v193_v2 = vld [vmem:[%s679_s1] sm:$0x3] }
  0x14   : > { %v221_v4 = vld [vmem:[%s680_s2] sm:$0x3]  ;;  %p414_p12 = pnand %p413_p11, %p535_p5 }
  0x15   : > { %v196_v1 = vshrl.u32 %v195_v0, 7  ;;  %s369_s29 = sshll.u32 %s165_s24, 6  ;;  %s474_s24 = smov [#allocation2]  }
  0x16   : > { %s556_s5 = scalar_lea.vmem %s678_s0, %s369_s29  ;;  %p415_p13 = pneg %p414_p12 }
  0x17   : > { %v197_v3 = vsub.s32 0, %v196_v1  ;;  %v201_v5 = vsub.s32 1, %v196_v1  ;;  %v169_v8 = vld [vmem:[%s556_s5] sm:$0xff]  ;;  %v170_v11 = vld [vmem:[%s556_s5 + $0x8] sm:$0xff]  ;;  %v171_v12 = vld [vmem:[%s556_s5 + $0x10] sm:$0xff]  ;;  %s416_s25 = sshll.u32 %s474_s24, 4  ;;  %s417_s25 = int_to_ptr.vmem [resolvable:$false] %s416_s25 }
  0x18   : > { %v177_v13 = vunpack.c.l.bf16 %v169_v8  ;;  %v178_v14 = vunpack.c.h.bf16 %v169_v8  ;;  %v179_v15 = vunpack.c.l.bf16 %v170_v11  ;;  %v180_v16 = vunpack.c.h.bf16 %v170_v11  ;;  %v172_v17 = vld [vmem:[%s556_s5 + $0x18] sm:$0xff]  ;;  %v173_v38 = vld [vmem:[%s556_s5 + $0x20] sm:$0xff]  ;;  %v174_v39 = vld [vmem:[%s556_s5 + $0x28] sm:$0xff]  ;;  %s418_s26 = scalar_lea.vmem %s417_s25, 4096  ;;  %p419_p0 = scmp.lt.s32.totalorder %s626_s10, %s417_s25 }
  0x19   : > { %v558_v6 = vrot.slane %v193_v2, %v197_v3  ;;  %v560_v7 = vrot.slane %v193_v2, %v201_v5  ;;  %v564_v9 = vrot.slane %v221_v4, %v197_v3  ;;  %v566_v10 = vrot.slane %v221_v4, %v201_v5  ;;  %v175_v44 = vld [vmem:[%s556_s5 + $0x30] sm:$0xff]  ;;  %v176_v45 = vld [vmem:[%s556_s5 + $0x38] sm:$0xff]  ;;  %p420_p1 = scmp.lt.s32.totalorder %s418_s26, %s412_s20 }
  0x1a   : > { %v181_v18 = vunpack.c.l.bf16 %v171_v12  ;;  %v182_v19 = vunpack.c.h.bf16 %v171_v12  ;;  %v183_v20 = vunpack.c.l.bf16 %v172_v17  ;;  %v184_v21 = vunpack.c.h.bf16 %v172_v17 }
  0x1b   : > { %v205_v22 = vmul.f32 %v558_v6, %v177_v13  ;;  %v206_v23 = vmul.f32 %v560_v7, %v178_v14  ;;  %v207_v24 = vmul.f32 %v558_v6, %v179_v15  ;;  %v208_v25 = vmul.f32 %v560_v7, %v180_v16  ;;  %p421_p2 = por %p420_p1, %p419_p0 }
  0x1c   : > { %v209_v26 = vmul.f32 %v558_v6, %v181_v18  ;;  %v210_v27 = vmul.f32 %v560_v7, %v182_v19  ;;  %v211_v28 = vmul.f32 %v558_v6, %v183_v20  ;;  %v212_v29 = vmul.f32 %v560_v7, %v184_v21 }
  0x1d   : > { %v233_v30 = vadd.f32 %v564_v9, %v205_v22  ;;  %v234_v31 = vadd.f32 %v566_v10, %v206_v23  ;;  %v235_v32 = vadd.f32 %v564_v9, %v207_v24  ;;  %v236_v33 = vadd.f32 %v566_v10, %v208_v25  ;;  %p422_p3 = pnand %p421_p2, %p415_p13 }
  0x1e   : > { %v237_v34 = vadd.f32 %v564_v9, %v209_v26  ;;  %v238_v35 = vadd.f32 %v566_v10, %v210_v27  ;;  %v239_v36 = vadd.f32 %v564_v9, %v211_v28  ;;  %v240_v37 = vadd.f32 %v566_v10, %v212_v29 }
  0x1f   : > { %v249_v40 = vmax.f32 %v233_v30, 0.0  ;;  %v250_v41 = vmax.f32 %v234_v31, 0.0  ;;  %v251_v42 = vmax.f32 %v235_v32, 0.0  ;;  %v252_v43 = vmax.f32 %v236_v33, 0.0 }
  0x20   : > { %v253_v46 = vmax.f32 %v237_v34, 0.0  ;;  %v254_v47 = vmax.f32 %v238_v35, 0.0  ;;  %v255_v48 = vmax.f32 %v239_v36, 0.0  ;;  %v256_v49 = vmax.f32 %v240_v37, 0.0 }
  0x21   : > { %265 = vst [vmem:[%s593_s8] sm:$0xff] %v249_v40  ;;  %266 = vst [vmem:[%s593_s8 + $0x8] sm:$0xff] %v250_v41  ;;  %v185_v50 = vunpack.c.l.bf16 %v173_v38  ;;  %v186_v51 = vunpack.c.h.bf16 %v173_v38  ;;  %v187_v52 = vunpack.c.l.bf16 %v174_v39  ;;  %v188_v53 = vunpack.c.h.bf16 %v174_v39 }
  0x22   : > { %267 = vst [vmem:[%s593_s8 + $0x10] sm:$0xff] %v251_v42  ;;  %268 = vst [vmem:[%s593_s8 + $0x18] sm:$0xff] %v252_v43  ;;  %v189_v54 = vunpack.c.l.bf16 %v175_v44  ;;  %v190_v55 = vunpack.c.h.bf16 %v175_v44  ;;  %v191_v56 = vunpack.c.l.bf16 %v176_v45  ;;  %v192_v57 = vunpack.c.h.bf16 %v176_v45 }
  0x23   : > { %269 = vst [vmem:[%s593_s8 + $0x20] sm:$0xff] %v253_v46  ;;  %270 = vst [vmem:[%s593_s8 + $0x28] sm:$0xff] %v254_v47  ;;  %v213_v58 = vmul.f32 %v558_v6, %v185_v50  ;;  %v214_v59 = vmul.f32 %v560_v7, %v186_v51  ;;  %v215_v60 = vmul.f32 %v558_v6, %v187_v52 }
  0x24   : > { %271 = vst [vmem:[%s593_s8 + $0x30] sm:$0xff] %v255_v48  ;;  %272 = vst [vmem:[%s593_s8 + $0x38] sm:$0xff] %v256_v49  ;;  %v216_v61 = vmul.f32 %v560_v7, %v188_v53  ;;  %v217_v62 = vmul.f32 %v558_v6, %v189_v54  ;;  %v218_v63 = vmul.f32 %v560_v7, %v190_v55 }
  0x25   : > { %v219_v0 = vmul.f32 %v558_v6, %v191_v56  ;;  %v220_v1 = vmul.f32 %v560_v7, %v192_v57  ;;  %v241_v2 = vadd.f32 %v564_v9, %v213_v58  ;;  %v242_v3 = vadd.f32 %v566_v10, %v214_v59 }
  0x26   : > { %v243_v4 = vadd.f32 %v564_v9, %v215_v60  ;;  %v244_v5 = vadd.f32 %v566_v10, %v216_v61  ;;  %v245_v8 = vadd.f32 %v564_v9, %v217_v62  ;;  %v246_v11 = vadd.f32 %v566_v10, %v218_v63 }
  0x27   : > { %v247_v6 = vadd.f32 %v564_v9, %v219_v0  ;;  %v248_v7 = vadd.f32 %v566_v10, %v220_v1  ;;  %v257_v12 = vmax.f32 %v241_v2, 0.0  ;;  %v258_v13 = vmax.f32 %v242_v3, 0.0 }
  0x28   : > { %v259_v14 = vmax.f32 %v243_v4, 0.0  ;;  %v260_v15 = vmax.f32 %v244_v5, 0.0  ;;  %v261_v9 = vmax.f32 %v245_v8, 0.0  ;;  %v262_v10 = vmax.f32 %v246_v11, 0.0 }
  0x29   : > { %v263_v16 = vmax.f32 %v247_v6, 0.0  ;;  %v264_v17 = vmax.f32 %v248_v7, 0.0  ;;  %273 = vst [vmem:[%s593_s8 + $0x40] sm:$0xff] %v257_v12  ;;  %274 = vst [vmem:[%s593_s8 + $0x48] sm:$0xff] %v258_v13 }
  0x2a   : > { %275 = vst [vmem:[%s593_s8 + $0x50] sm:$0xff] %v259_v14  ;;  %276 = vst [vmem:[%s593_s8 + $0x58] sm:$0xff] %v260_v15 }
  0x2b   : > { %277 = vst [vmem:[%s593_s8 + $0x60] sm:$0xff] %v261_v9  ;;  %278 = vst [vmem:[%s593_s8 + $0x68] sm:$0xff] %v262_v10 }
  0x2c   : > { %279 = vst [vmem:[%s593_s8 + $0x70] sm:$0xff] %v263_v16  ;;  %280 = vst [vmem:[%s593_s8 + $0x78] sm:$0xff] %v264_v17 }
  0x2d   : > { %425 = shalt.err (!%p422_p3)
}
  0x2e   : > { %s426_s27 = scalar_lea.hbm %s624_s17, 2048  ;;  %s430_s30 = scalar_lea.hbm %s681_s3, 4096 }
  0x2f   : > { %p427_p4 = scmp.ne.s32.totalorder %s624_s17, %s426_s27  ;;  %p431_p9 = scmp.lt.s32.totalorder %s624_s17, %s681_s3 }
  0x30   : > { %p432_p10 = scmp.lt.s32.totalorder %s430_s30, %s426_s27 }
  0x31   : > { %p428_p7 = pnand %p427_p4, %p535_p5 }
  0x32   : > { %p433_p11 = por %p432_p10, %p431_p9 }
  0x33   : > { %p429_p8 = pneg %p428_p7 }
  0x35   : > { %p434_p12 = pnand %p433_p11, %p429_p8 }
  0x37   : > { %437 = shalt.err (!%p434_p12)
}
  0x38   : > { %s475_s6 = smov 256   ;;  %s476_s7 = smov 16  }
  0x39   : > { %371 = dma.vmem_to_hbm [thread:$0]  (%p535_p5), %s626_s10, 2048, %s624_s17, %s638_s19, %s475_s6, %s475_s6, %s476_s7  }
  0x3a PF: > { %p377_p13 = scmp.ge.s32.totalorder %s472_s15, 2  ;;  %s310_s8 = sand.u32 1, %s460_s12  }
  0x3b   : > { %s311_s9 = scalar_lea.sflag [#allocation3], %s310_s8 }
  0x3c   : > { %p374_p0 = pnand %p377_p13, %p539_p6 }
  0x3e   : > { %p375_p1 = pneg %p374_p0 }
  0x40   : > { %455 = dma.done.wait (%p375_p1), %s311_s9, 2048  }
  0x41   : > { %457 = vsyncadd (%p375_p1), %s311_s9, 4294965248  ;;  %p13_p2 = scmp.ge.s32.totalorder %s522_s18, 4   ;;  %s684_s12 = smov %s464_s13 }
  0x42   : > { %s685_s13 = smov %s468_s14  ;;  %s686_s14 = smov %s533_s21 }
  0x43   : > { %s687_s15 = smov %s522_s18  ;;  %15 = sbr.rel (!%p13_p2) target bundleno = 3 (0x3), region = 67 }
  0x48   :  { %316 = vsyncpa [#allocation3], 1 }
  0x49   :  { %318 = vsyncpa [#allocation3 + $0x1], 1 }

// kernel: decoder_forward.8
= control target key start
LH: loop header
LB: loop body
LE: loop exit
PB: predicated region body
PF: predicated region fallthrough
CT: control target
= control target key end

     0   :  { %s6945_s15 = smov 0   ;;  %s9449_s0 = inlined_call_operand.vmem [shape: f32[2,10,10,304], index: 0, kind: input, shape index: {}]   ;;  %s9450_s1 = inlined_call_operand.vmem [shape: bf16[9,304,256], index: 1, kind: input, shape index: {}]   ;;  %s9451_s2 = inlined_call_operand.vmem [shape: bf16[2,64,256], index: 2, kind: output, shape index: {0}]   ;;  %s9452_s3 = inlined_call_operand.vmem [shape: f32[2,1,256], index: 3, kind: output, shape index: {1}]   ;;  %s9453_s4 = inlined_call_operand.vmem [shape: f32[2,1,256], index: 4, kind: output, shape index: {2}]  }
   0x1 LB: > { %s5434_s16 = sadd.s32 4294967295, %s6916_s15   ;;  %p5438_p0 = scmp.ge.s32.totalorder %s6916_s15, 1  ;;  %s6916_s15 = sphi %s6945_s15, %s15_s15  }
   0x2   : > { %p167_p1 = scmp.lt.s32.totalorder %s6916_s15, 3 }
   0x4   : > { %p168_p2 = pnand %p5438_p0, %p167_p1 }
   0x6   : > { %171 = sbr.rel (%p168_p2) target bundleno = 692 (0x2b4), region = 28 }
   0xb   : > { %v6396_v0 = vld [vmem:[%s9450_s1 + $0x1a4] ss:$8 sps:$4 sm:$0xff]   ;;  %p201_p3 = scmp.lt.s32.totalorder %s5434_s16, 1  ;;  %v6398_v1 = vld [vmem:[%s9450_s1 + $0x254] ss:$8 sps:$4 sm:$0xff]   ;;  %v9454_v2 = vmov 0  }
   0xc   : > { %846 = vmatprep.mubr.bf16.mxu1 %v9454_v2  ;;  %741 = vmatprep.subr.bf16.mxu0 %v6396_v0  ;;  %v6400_v3 = vld [vmem:[%s9450_s1 + $0x1a0] ss:$8 sps:$4 sm:$0xff]   ;;  %v6401_v4 = vld [vmem:[%s9450_s1 + $0x250] ss:$8 sps:$4 sm:$0xff]   ;;  %v6402_v5 = vld [vmem:[%s9450_s1 + $0x194] ss:$8 sps:$4 sm:$0xff]  }
   0xd   : > { %s9542_s16 = smov (!%p201_p3, %s5434_s16), 1  ;;  %824 = vmatprep.subr.bf16.mxu1 %v6398_v1  ;;  %742 = vmatpush1.bf16.msra.mxu0 %v6400_v3  ;;  %v6404_v6 = vld [vmem:[%s9450_s1 + $0x244] ss:$8 sps:$4 sm:$0xff]   ;;  %v6406_v7 = vld [vmem:[%s9450_s1 + $0x190] ss:$8 sps:$4 sm:$0xff]   ;;  %vm390_vm0 = vcmask 1046528  }
   0xe   : > { %825 = vmatpush1.bf16.msra.mxu1 %v6401_v4  ;;  %s6385_s5 = smul.u32 480, %s9542_s16  ;;  %743 = vmatprep.subr.bf16.mxu0 %v6402_v5  ;;  %v6407_v8 = vld [vmem:[%s9450_s1 + $0x240] ss:$8 sps:$4 sm:$0xff]   ;;  %v6408_v9 = vld [vmem:[%s9450_s1 + $0x184] ss:$8 sps:$4 sm:$0xff]   ;;  %vm728_vm1 = vcmask 392192  }
   0xf   : > { %826 = vmatprep.subr.bf16.mxu1 %v6404_v6  ;;  %v6410_v10 = vld [vmem:[%s9450_s1 + $0x234] ss:$8 sps:$4 sm:$0xff]   ;;  %v6412_v11 = vld [vmem:[%s9450_s1 + $0x180] ss:$8 sps:$4 sm:$0xff]   ;;  %v6413_v12 = vld [vmem:[%s9450_s1 + $0x230] ss:$8 sps:$4 sm:$0xff]  }
  0x10   : > { %s6987_s12 = scalar_lea.vmem %s9449_s0, %s6385_s5  ;;  %v6414_v13 = vld [vmem:[%s9450_s1 + $0x174] ss:$8 sps:$4 sm:$0xff]   ;;  %v6416_v22 = vld [vmem:[%s9450_s1 + $0x70] ss:$8 sps:$4 sm:$0xff]   ;;  %v6420_v27 = vld [vmem:[%s9450_s1 + $0x164] ss:$8 sps:$4 sm:$0xff]  }
  0x11   : > { %744 = vmatpush1.bf16.msra.mxu0 %v6406_v7  ;;  %v296_v14 = vld [vmem:[%s6987_s12 + $0x10] sm:$0xfe]  ;;  %v299_v15 = vld [vmem:[%s6987_s12 + $0x28] sm:$0x1]  ;;  %v302_v16 = vld [vmem:[%s6987_s12 + $0x40] sm:$0xfe] }
  0x12   : > { %827 = vmatpush1.bf16.msra.mxu1 %v6407_v8  ;;  %745 = vmatprep.subr.bf16.mxu0 %v6408_v9  ;;  %v305_v17 = vld [vmem:[%s6987_s12 + $0x58] sm:$0x1]  ;;  %v397_v18 = vrot.slane %v296_v14, 1  ;;  %v398_v19 = vrot.slane %v299_v15, 1  ;;  %v406_v20 = vrot.slane %v302_v16, 1  ;;  %vm1331_vm2 = vcmask 1045504  }
  0x13   : > { %828 = vmatprep.subr.bf16.mxu1 %v6410_v10  ;;  %v407_v21 = vrot.slane %v305_v17, 1  ;;  %v6418_v23 = vld [vmem:[%s9450_s1 + $0x74] ss:$8 sps:$4 sm:$0xff]   ;;  %v6419_v25 = vld [vmem:[%s9450_s1 + $0x170] ss:$8 sps:$4 sm:$0xff]   ;;  %s5442_s17 = sshll.u32 %s9542_s16, 1 }
  0x14   : > { %v399_v24 = vsel %vm390_vm0, %v397_v18, %v398_v19  ;;  %v6424_v29 = vld [vmem:[%s9450_s1 + $0x64] ss:$8 sps:$4 sm:$0xff]   ;;  %v6425_v30 = vld [vmem:[%s9450_s1 + $0x160] ss:$8 sps:$4 sm:$0xff]   ;;  %v6426_v32 = vld [vmem:[%s9450_s1 + $0x154] ss:$8 sps:$4 sm:$0xff]   ;;  %s214_s20 = scalar_lea.vmem %s9452_s3, %s5442_s17  ;;  %s218_s23 = scalar_lea.vmem %s9453_s4, %s5442_s17 }
  0x15   : > { %746 = vmatpush1.bf16.msra.mxu0 %v6412_v11  ;;  %v408_v26 = vsel %vm390_vm0, %v406_v20, %v407_v21  ;;  %v6422_v31 = vld [vmem:[%s9450_s1 + $0x60] ss:$8 sps:$4 sm:$0xff]   ;;  %v6430_v33 = vld [vmem:[%s9450_s1 + $0x54] ss:$8 sps:$4 sm:$0xff]   ;;  %v6428_v34 = vld [vmem:[%s9450_s1 + $0x50] ss:$8 sps:$4 sm:$0xff]  }
  0x16   : > { %829 = vmatpush1.bf16.msra.mxu1 %v6413_v12  ;;  %747 = vmatprep.subr.bf16.mxu0 %v6414_v13  ;;  %v489_v28 = vpack.c.bf16 %v408_v26, %v399_v24  ;;  %v6431_v35 = vld [vmem:[%s9450_s1 + $0x150] ss:$8 sps:$4 sm:$0xff]   ;;  %v6432_v36 = vld [vmem:[%s9450_s1 + $0x144] ss:$8 sps:$4 sm:$0xff]   ;;  %v6437_v38 = vld [vmem:[%s9450_s1 + $0x140] ss:$8 sps:$4 sm:$0xff]  }
  0x17   : > { %1089 = vmatprep.subr.bf16.mxu1 %v6418_v23  ;;  %v6436_v37 = vld [vmem:[%s9450_s1 + $0x44] ss:$8 sps:$4 sm:$0xff]   ;;  %v6434_v39 = vld [vmem:[%s9450_s1 + $0x40] ss:$8 sps:$4 sm:$0xff]   ;;  %v6438_v40 = vld [vmem:[%s9450_s1 + $0x134] ss:$8 sps:$4 sm:$0xff]  }
  0x18   : > { %v6442_v41 = vld [vmem:[%s9450_s1 + $0x34] ss:$8 sps:$4 sm:$0xff]   ;;  %v6440_v42 = vld [vmem:[%s9450_s1 + $0x30] ss:$8 sps:$4 sm:$0xff]   ;;  %v6444_v44 = vld [vmem:[%s9450_s1 + $0x224] ss:$8 sps:$4 sm:$0xff]  }
  0x19   : > { %5520 = vmatmul.mubr.msk.bf16.vlgmr.msra.gmra.mxu1 %vm728_vm1, %v489_v28  ;;  %748 = vmatpush1.bf16.msra.mxu0 %v6419_v25  ;;  %v6443_v43 = vld [vmem:[%s9450_s1 + $0x130] ss:$8 sps:$4 sm:$0xff]   ;;  %v6448_v45 = vld [vmem:[%s9450_s1 + $0x24] ss:$8 sps:$4 sm:$0xff]   ;;  %v6446_v46 = vld [vmem:[%s9450_s1 + $0x20] ss:$8 sps:$4 sm:$0xff]  }
  0x1a   : > { %1090 = vmatpush1.bf16.msra.mxu1 %v6416_v22  ;;  %749 = vmatprep.subr.bf16.mxu0 %v6420_v27  ;;  %v6449_v47 = vld [vmem:[%s9450_s1 + $0x220] ss:$8 sps:$4 sm:$0xff]   ;;  %v6450_v48 = vld [vmem:[%s9450_s1 + $0x214] ss:$8 sps:$4 sm:$0xff]   ;;  %v317_v53 = vld [vmem:[%s6987_s12 + $0xb8] sm:$0x1] }
  0x1b   : > { %1091 = vmatprep.subr.bf16.mxu1 %v6424_v29  ;;  %856 = vmatprep.mubr.bf16.mxu1 %v9454_v2  ;;  %v6454_v49 = vld [vmem:[%s9450_s1 + $0x14] ss:$8 sps:$4 sm:$0xff]   ;;  %v311_v51 = vld [vmem:[%s6987_s12 + $0x88] sm:$0x1]  ;;  %v314_v52 = vld [vmem:[%s6987_s12 + $0xa0] sm:$0xfe] }
  0x1c   : > { %v308_v50 = vld [vmem:[%s6987_s12 + $0x70] sm:$0xfe]  ;;  %v416_v55 = vrot.slane %v311_v51, 1  ;;  %v424_v56 = vrot.slane %v314_v52, 1  ;;  %v425_v57 = vrot.slane %v317_v53, 1 }
  0x1d   : > { %750 = vmatpush1.bf16.msra.mxu0 %v6425_v30  ;;  %v415_v54 = vrot.slane %v308_v50, 1  ;;  %v6455_v58 = vld [vmem:[%s9450_s1 + $0x210] ss:$8 sps:$4 sm:$0xff]   ;;  %v6456_v60 = vld [vmem:[%s9450_s1 + $0x204] ss:$8 sps:$4 sm:$0xff]  }
  0x1e   : > { %1092 = vmatpush1.bf16.msra.mxu1 %v6422_v31  ;;  %751 = vmatprep.subr.bf16.mxu0 %v6426_v32  ;;  %v6452_v59 = vld [vmem:[%s9450_s1 + $0x10] ss:$8 sps:$4 sm:$0xff]   ;;  %v426_v62 = vsel %vm390_vm0, %v424_v56, %v425_v57  ;;  %v6460_v63 = vld [vmem:[%s9450_s1 + $0x4] ss:$8 sps:$4 sm:$0xff]   ;;  %v6458_v1 = vld [vmem:[%s9450_s1] ss:$8 sps:$4 sm:$0xff]  }
  0x1f   : > { %1093 = vmatprep.subr.bf16.mxu1 %v6430_v33  ;;  %v417_v61 = vsel %vm390_vm0, %v415_v54, %v416_v55  ;;  %v6461_v3 = vld [vmem:[%s9450_s1 + $0x200] ss:$8 sps:$4 sm:$0xff]   ;;  %v6462_v4 = vld [vmem:[%s9450_s1 + $0x1f4] ss:$8 sps:$4 sm:$0xff]   ;;  %v329_v9 = vld [vmem:[%s6987_s12 + $0x118] sm:$0x1] }
  0x20   : > { %v492_v0 = vpack.c.bf16 %v426_v62, %v417_v61  ;;  %v6466_v5 = vld [vmem:[%s9450_s1 + $0xf4] ss:$8 sps:$4 sm:$0xff]   ;;  %v323_v7 = vld [vmem:[%s6987_s12 + $0xe8] sm:$0x1]  ;;  %v326_v8 = vld [vmem:[%s6987_s12 + $0x100] sm:$0xfe] }
  0x21   : > { %752 = vmatpush1.bf16.msra.mxu0 %v6431_v35  ;;  %v320_v6 = vld [vmem:[%s6987_s12 + $0xd0] sm:$0xfe]  ;;  %v434_v11 = vrot.slane %v323_v7, 1  ;;  %v442_v12 = vrot.slane %v326_v8, 1  ;;  %v443_v13 = vrot.slane %v329_v9, 1 }
  0x22   : > { %1094 = vmatpush1.bf16.msra.mxu1 %v6428_v34  ;;  %753 = vmatprep.subr.bf16.mxu0 %v6432_v36  ;;  %v433_v10 = vrot.slane %v320_v6, 1  ;;  %v6464_v14 = vld [vmem:[%s9450_s1 + $0xf0] ss:$8 sps:$4 sm:$0xff]   ;;  %v6468_v18 = vld [vmem:[%s9450_s1 + $0x1e4] ss:$8 sps:$4 sm:$0xff]  }
  0x23   : > { %1095 = vmatprep.subr.bf16.mxu1 %v6436_v37  ;;  %5521 = vmatmul.mubr.msk.bf16.gmra.mxu1 %vm728_vm1, %v492_v0  ;;  %v6467_v15 = vld [vmem:[%s9450_s1 + $0x1f0] ss:$8 sps:$4 sm:$0xff]   ;;  %v444_v17 = vsel %vm390_vm0, %v442_v12, %v443_v13  ;;  %v6472_v20 = vld [vmem:[%s9450_s1 + $0xe4] ss:$8 sps:$4 sm:$0xff]   ;;  %v6470_v21 = vld [vmem:[%s9450_s1 + $0xe0] ss:$8 sps:$4 sm:$0xff]  }
  0x24   : > { %866 = vmatprep.mubr.bf16.mxu1 %v9454_v2  ;;  %v435_v16 = vsel %vm390_vm0, %v433_v10, %v434_v11  ;;  %v6473_v22 = vld [vmem:[%s9450_s1 + $0x1e0] ss:$8 sps:$4 sm:$0xff]   ;;  %v6474_v23 = vld [vmem:[%s9450_s1 + $0x1d4] ss:$8 sps:$4 sm:$0xff]   ;;  %v304_v28 = vld [vmem:[%s6987_s12 + $0x50] sm:$0x1] }
  0x25   : > { %754 = vmatpush1.bf16.msra.mxu0 %v6437_v38  ;;  %v495_v19 = vpack.c.bf16 %v444_v17, %v435_v16  ;;  %v295_v24 = vld [vmem:[%s6987_s12 + $0x8] sm:$0xfe]  ;;  %v6478_v25 = vld [vmem:[%s9450_s1 + $0xd4] ss:$8 sps:$4 sm:$0xff]   ;;  %v298_v26 = vld [vmem:[%s6987_s12 + $0x20] sm:$0x1] }
  0x26   : > { %1096 = vmatpush1.bf16.msra.mxu1 %v6434_v39  ;;  %755 = vmatprep.subr.bf16.mxu0 %v6438_v40  ;;  %v301_v27 = vld [vmem:[%s6987_s12 + $0x38] sm:$0xfe]  ;;  %v394_v29 = vrot.slane %v295_v24, 1  ;;  %v395_v30 = vrot.slane %v298_v26, 1  ;;  %v404_v32 = vrot.slane %v304_v28, 1  ;;  %v221_v13 = vld [vmem:[%s6987_s12 + $0x8] sm:$0xff] }
  0x27   : > { %1097 = vmatprep.subr.bf16.mxu1 %v6442_v41  ;;  %v403_v31 = vrot.slane %v301_v27, 1  ;;  %v332_v33 = vld [vmem:[%s6987_s12 + $0x130] sm:$0xfe]  ;;  %v335_v35 = vld [vmem:[%s6987_s12 + $0x148] sm:$0x1]  ;;  %v224_v16 = vld [vmem:[%s6987_s12 + $0x38] sm:$0xff] }
  0x28   : > { %v6479_v34 = vld [vmem:[%s9450_s1 + $0x1d0] ss:$8 sps:$4 sm:$0xff]   ;;  %v338_v36 = vld [vmem:[%s6987_s12 + $0x160] sm:$0xfe]  ;;  %v396_v40 = vsel %vm390_vm0, %v394_v29, %v395_v30  ;;  %v303_v50 = vld [vmem:[%s6987_s12 + $0x48] sm:$0x1] }
  0x29   : > { %756 = vmatpush1.bf16.msra.mxu0 %v6443_v43  ;;  %v341_v37 = vld [vmem:[%s6987_s12 + $0x178] sm:$0x1]  ;;  %v6480_v39 = vld [vmem:[%s9450_s1 + $0x1c4] ss:$8 sps:$4 sm:$0xff]   ;;  %v405_v41 = vsel %vm390_vm0, %v403_v31, %v404_v32  ;;  %v452_v43 = vrot.slane %v335_v35, 1  ;;  %v401_v61 = vrot.slane %v303_v50, 1 }
  0x2a   : > { %1098 = vmatpush1.bf16.msra.mxu1 %v6440_v42  ;;  %757 = vmatprep.subr.bf16.mxu0 %v6444_v44  ;;  %v6476_v38 = vld [vmem:[%s9450_s1 + $0xd0] ss:$8 sps:$4 sm:$0xff]   ;;  %v451_v42 = vrot.slane %v332_v33, 1  ;;  %v294_v44 = vld [vmem:[%s6987_s12] sm:$0xfe] }
  0x2b   : > { %1099 = vmatprep.subr.bf16.mxu1 %v6448_v45  ;;  %5522 = vmatmul.mubr.msk.bf16.gmra.mxu1 %vm728_vm1, %v495_v19  ;;  %v297_v45 = vld [vmem:[%s6987_s12 + $0x18] sm:$0x1]  ;;  %v6484_v52 = vld [vmem:[%s9450_s1 + $0xc4] ss:$8 sps:$4 sm:$0xff]   ;;  %v6485_v53 = vld [vmem:[%s9450_s1 + $0x1c0] ss:$8 sps:$4 sm:$0xff]  }
  0x2c   : > { %876 = vmatprep.mubr.bf16.mxu1 %v9454_v2  ;;  %v453_v51 = vsel %vm390_vm0, %v451_v42, %v452_v43  ;;  %v391_v55 = vrot.slane %v294_v44, 1  ;;  %v6482_v56 = vld [vmem:[%s9450_s1 + $0xc0] ss:$8 sps:$4 sm:$0xff]   ;;  %v6486_v57 = vld [vmem:[%s9450_s1 + $0x1b4] ss:$8 sps:$4 sm:$0xff]  }
  0x2d   : > { %758 = vmatpush2.bf16.msra.mxu0 %v6449_v47  ;;  %v460_v47 = vrot.slane %v338_v36, 1  ;;  %v307_v62 = vld [vmem:[%s6987_s12 + $0x68] sm:$0xfe]  ;;  %v313_v0 = vld [vmem:[%s6987_s12 + $0x98] sm:$0xfe] }
  0x2e   : > { %1100 = vmatpush1.bf16.msra.mxu1 %v6446_v46  ;;  %759 = vmatprep.subr.bf16.mxu0 %v6450_v48  ;;  %v488_v46 = vpack.c.bf16 %v405_v41, %v396_v40  ;;  %v461_v48 = vrot.slane %v341_v37, 1  ;;  %v421_v6 = vrot.slane %v313_v0, 1  ;;  %v6491_v7 = vld [vmem:[%s9450_s1 + $0x1b0] ss:$8 sps:$4 sm:$0xff]   ;;  %v306_v9 = vld [vmem:[%s6987_s12 + $0x60] sm:$0xfe] }
  0x2f   : > { %1101 = vmatprep.subr.bf16.mxu1 %v6454_v49  ;;  %v300_v49 = vld [vmem:[%s6987_s12 + $0x30] sm:$0xfe]  ;;  %v309_v12 = vld [vmem:[%s6987_s12 + $0x78] sm:$0x1]  ;;  %v6492_v24 = vld [vmem:[%s9450_s1 + $0xa0] ss:$8 sps:$4 sm:$0xff]  }
  0x30   : > { %773 = vmatprep.mubr.bf16.mxu0 %v488_v46  ;;  %v462_v54 = vsel %vm390_vm0, %v460_v47, %v461_v48  ;;  %v6488_v17 = vld [vmem:[%s9450_s1 + $0xb0] ss:$8 sps:$4 sm:$0xff]   ;;  %v410_v26 = vrot.slane %v309_v12, 1  ;;  %v6501_v30 = vld [vmem:[%s9450_s1 + $0x120] ss:$8 sps:$4 sm:$0xff]  }
  0x31   : > { %760 = vmatpush2.bf16.msra.mxu0 %v6455_v58  ;;  %v498_v58 = vpack.c.bf16 %v462_v54, %v453_v51  ;;  %v319_v31 = vld [vmem:[%s6987_s12 + $0xc8] sm:$0xfe]  ;;  %v322_v32 = vld [vmem:[%s6987_s12 + $0xe0] sm:$0x1]  ;;  %v325_v33 = vld [vmem:[%s6987_s12 + $0xf8] sm:$0xfe] }
  0x32   : > { %1102 = vmatpush1.bf16.msra.mxu1 %v6452_v59  ;;  %761 = vmatprep.subr.bf16.mxu0 %v6456_v60  ;;  %v392_v59 = vrot.slane %v297_v45, 1  ;;  %v400_v60 = vrot.slane %v300_v49, 1  ;;  %v430_v35 = vrot.slane %v319_v31, 1  ;;  %v431_v36 = vrot.slane %v322_v32, 1  ;;  %v6497_v37 = vld [vmem:[%s9450_s1 + $0x94] ss:$8 sps:$4 sm:$0xff]  }
  0x33   : > { %1103 = vmatprep.subr.bf16.mxu1 %v6460_v63  ;;  %v310_v63 = vld [vmem:[%s6987_s12 + $0x80] sm:$0x1]  ;;  %5523 = vmatmul.mubr.msk.bf16.gmra.mxu1 %vm728_vm1, %v498_v58  ;;  %v318_v42 = vld [vmem:[%s6987_s12 + $0xc0] sm:$0xfe]  ;;  %v321_v43 = vld [vmem:[%s6987_s12 + $0xd8] sm:$0x1] }
  0x34   : > { %v393_v10 = vsel %vm390_vm0, %v391_v55, %v392_v59  ;;  %v402_v11 = vsel %vm390_vm0, %v400_v60, %v401_v61  ;;  %v324_v44 = vld [vmem:[%s6987_s12 + $0xf0] sm:$0xfe]  ;;  %v327_v45 = vld [vmem:[%s6987_s12 + $0x108] sm:$0x1]  ;;  %v432_v47 = vsel %vm390_vm0, %v430_v35, %v431_v36  ;;  %v6500_v50 = vld [vmem:[%s9450_s1 + $0x84] ss:$8 sps:$4 sm:$0xff]  }
  0x35   : > { %762 = vmatpush2.bf16.msra.mxu0 %v6461_v3  ;;  %v6490_v3 = vld [vmem:[%s9450_s1 + $0xb4] ss:$8 sps:$4 sm:$0xff]   ;;  %v6495_v46 = vld [vmem:[%s9450_s1 + $0x90] ss:$8 sps:$4 sm:$0xff]   ;;  %v6498_v51 = vld [vmem:[%s9450_s1 + $0x80] ss:$8 sps:$4 sm:$0xff]  }
  0x36   : > { %1104 = vmatpush1.bf16.msra.mxu1 %v6458_v1  ;;  %763 = vmatprep.subr.bf16.mxu0 %v6462_v4  ;;  %v316_v1 = vld [vmem:[%s6987_s12 + $0xb0] sm:$0x1]  ;;  %v412_v4 = vrot.slane %v307_v62, 1  ;;  %v427_v54 = vrot.slane %v318_v42, 1  ;;  %v428_v55 = vrot.slane %v321_v43, 1  ;;  %v7251_v60 = vld [vmem:[%s6987_s12 + $0x68] sm:$0xff] }
  0x37   : > { %1105 = vmatprep.subr.bf16.mxu1 %v6466_v5  ;;  %v413_v5 = vrot.slane %v310_v63, 1  ;;  %v422_v8 = vrot.slane %v316_v1, 1  ;;  %v6506_v58 = vld [vmem:[%s9450_s1 + $0x2d4] ss:$8 sps:$4 sm:$0xff]   ;;  %v331_v62 = vld [vmem:[%s6987_s12 + $0x128] sm:$0xfe] }
  0x38   : > { %v7254_v61 = vld [vmem:[%s6987_s12 + $0x98] sm:$0xff]  ;;  %v334_v63 = vld [vmem:[%s6987_s12 + $0x140] sm:$0x1]  ;;  %v340_v1 = vld [vmem:[%s6987_s12 + $0x170] sm:$0x1] }
  0x39   : > { %764 = vmatpush2.bf16.msra.mxu0 %v6467_v15  ;;  %v315_v15 = vld [vmem:[%s6987_s12 + $0xa8] sm:$0x1]  ;;  %v423_v19 = vsel %vm390_vm0, %v421_v6, %v422_v8  ;;  %v337_v0 = vld [vmem:[%s6987_s12 + $0x158] sm:$0xfe]  ;;  %v458_v6 = vrot.slane %v340_v1, 1  ;;  %v7305_v35 = vld [vmem:[%s6987_s12 + $0x60] sm:$0xff] }
  0x3a   : > { %1106 = vmatpush2.bf16.msra.mxu1 %v6464_v14  ;;  %765 = vmatprep.subr.bf16.mxu0 %v6468_v18  ;;  %v312_v14 = vld [vmem:[%s6987_s12 + $0x90] sm:$0xfe]  ;;  %v414_v18 = vsel %vm390_vm0, %v412_v4, %v413_v5  ;;  %v419_v28 = vrot.slane %v315_v15, 1  ;;  %v449_v4 = vrot.slane %v334_v63, 1  ;;  %v457_v5 = vrot.slane %v337_v0, 1  ;;  %v7321_v42 = vld [vmem:[%s6987_s12 + $0x128] sm:$0xff] }
  0x3b   : > { %1107 = vmatprep.subr.bf16.mxu1 %v6472_v20  ;;  %v245_v20 = vpack.c.bf16 %v224_v16, %v221_v13  ;;  %v418_v27 = vrot.slane %v312_v14, 1  ;;  %v491_v29 = vpack.c.bf16 %v423_v19, %v414_v18  ;;  %v6515_v8 = vld [vmem:[%s9450_s1 + $0x114] ss:$8 sps:$4 sm:$0xff]   ;;  %v330_v12 = vld [vmem:[%s6987_s12 + $0x120] sm:$0xfe] }
  0x3c   : > { %v333_v14 = vld [vmem:[%s6987_s12 + $0x138] sm:$0x1]  ;;  %v336_v15 = vld [vmem:[%s6987_s12 + $0x150] sm:$0xfe]  ;;  %v6509_v16 = vld [vmem:[%s9450_s1 + $0x2c4] ss:$8 sps:$4 sm:$0xff]   ;;  %v459_v19 = vsel %vm390_vm0, %v457_v5, %v458_v6 }
  0x3d   : > { %766 = vmatpush2.bf16.msra.mxu0 %v6473_v22  ;;  %v6494_v22 = vld [vmem:[%s9450_s1 + $0xa4] ss:$8 sps:$4 sm:$0xff]   ;;  %1121 = vmatprep.mubr.bf16.mxu1 %v245_v20  ;;  %v420_v41 = vsel %vm390_vm0, %v418_v27, %v419_v28  ;;  %v339_v20 = vld [vmem:[%s6987_s12 + $0x168] sm:$0x1]  ;;  %v454_v27 = vrot.slane %v336_v15, 1 }
  0x3e   : > { %1108 = vmatpush2.bf16.msra.mxu1 %v6470_v21  ;;  %767 = vmatprep.subr.bf16.mxu0 %v6474_v23  ;;  %v487_v21 = vpack.c.bf16 %v402_v11, %v393_v10  ;;  %v6503_v23 = vld [vmem:[%s9450_s1 + $0x124] ss:$8 sps:$4 sm:$0xff]   ;;  %v429_v10 = vsel %vm390_vm0, %v427_v54, %v428_v55  ;;  %v455_v31 = vrot.slane %v339_v20, 1  ;;  %v6519_v32 = vld [vmem:[%s9450_s1 + $0x100] ss:$8 sps:$4 sm:$0xff]   ;;  %v242_v55 = vld [vmem:[%s6987_s12 + $0x158] sm:$0xff] }
  0x3f   : > { %1109 = vmatprep.subr.bf16.mxu1 %v6478_v25  ;;  %v409_v25 = vrot.slane %v306_v9, 1  ;;  %v6504_v9 = vld [vmem:[%s9450_s1 + $0x2d0] ss:$8 sps:$4 sm:$0xff]   ;;  %v6512_v36 = vld [vmem:[%s9450_s1 + $0x2b4] ss:$8 sps:$4 sm:$0xff]   ;;  %v7324_v43 = vld [vmem:[%s6987_s12 + $0x120] sm:$0xff]  ;;  %v254_v1 = vpack.c.bf16 %v242_v55, %v7321_v42 }
  0x40   : > { %v6524_v54 = vld [vmem:[%s9450_s1 + $0x294] ss:$8 sps:$4 sm:$0xff]   ;;  %v6522_v0 = vld [vmem:[%s9450_s1 + $0x290] ss:$8 sps:$4 sm:$0xff]   ;;  %v6525_v5 = vld [vmem:[%s9450_s1 + $0x280] ss:$8 sps:$4 sm:$0xff]  }
  0x41   : > { %768 = vmatpush2.bf16.msra.mxu0 %v6479_v34  ;;  %v328_v34 = vld [vmem:[%s6987_s12 + $0x110] sm:$0x1]  ;;  %v411_v40 = vsel %vm390_vm0, %v409_v25, %v410_v26  ;;  %v7289_v25 = vld [vmem:[%s6987_s12 + $0xc0] sm:$0xff]  ;;  %v446_v26 = vrot.slane %v333_v14, 1 }
  0x42   : > { %1110 = vmatpush2.bf16.msra.mxu1 %v6476_v38  ;;  %769 = vmatprep.subr.bf16.mxu0 %v6480_v39  ;;  %v439_v38 = vrot.slane %v325_v33, 1  ;;  %v440_v39 = vrot.slane %v328_v34, 1  ;;  %v490_v49 = vpack.c.bf16 %v420_v41, %v411_v40  ;;  %v6521_v33 = vld [vmem:[%s9450_s1 + $0x104] ss:$8 sps:$4 sm:$0xff]   ;;  %v6507_v34 = vld [vmem:[%s9450_s1 + $0x2c0] ss:$8 sps:$4 sm:$0xff]   ;;  %v456_v40 = vsel %vm390_vm0, %v454_v27, %v455_v31 }
  0x43   : > { %1111 = vmatprep.subr.bf16.mxu1 %v6484_v52  ;;  %v220_v52 = vld [vmem:[%s6987_s12] sm:$0xff]  ;;  %v7318_v41 = vld [vmem:[%s6987_s12 + $0xf0] sm:$0xff] }
  0x44   : > { %v441_v48 = vsel %vm390_vm0, %v439_v38, %v440_v39  ;;  %v6537_v6 = vld [vmem:[%s9450_s1 + $0x380] ss:$8 sps:$4 sm:$0xff]   ;;  %v6546_v14 = vld [vmem:[%s9450_s1 + $0x370] ss:$8 sps:$4 sm:$0xff]   ;;  %v6542_v27 = vld [vmem:[%s9450_s1 + $0x344] ss:$8 sps:$4 sm:$0xff]  }
  0x45   : > { %770 = vmatpush2.bf16.msra.mxu0 %v6485_v53  ;;  %v223_v53 = vld [vmem:[%s6987_s12 + $0x30] sm:$0xff]  ;;  %v494_v59 = vpack.c.bf16 %v441_v48, %v432_v47  ;;  %v1874_v47 = vpack.c.bf16 %v7324_v43, %v7318_v41  ;;  %v6518_v48 = vld [vmem:[%s9450_s1 + $0x2a4] ss:$8 sps:$4 sm:$0xff]   ;;  %v6552_v20 = vld [vmem:[%s9450_s1 + $0x360] ss:$8 sps:$4 sm:$0xff]  }
  0x46   : > { %1112 = vmatpush2.bf16.msra.mxu1 %v6482_v56  ;;  %771 = vmatprep.subr.bf16.mxu0 %v6486_v57  ;;  %v436_v56 = vrot.slane %v324_v44, 1  ;;  %v437_v57 = vrot.slane %v327_v45, 1  ;;  %v244_v13 = vpack.c.bf16 %v223_v53, %v220_v52  ;;  %v6510_v44 = vld [vmem:[%s9450_s1 + $0x2b0] ss:$8 sps:$4 sm:$0xff]   ;;  %v6516_v53 = vld [vmem:[%s9450_s1 + $0x2a0] ss:$8 sps:$4 sm:$0xff]  }
  0x47   : > { %1113 = vmatprep.subr.bf16.mxu1 %v6490_v3  ;;  %v448_v3 = vrot.slane %v331_v62, 1  ;;  %v222_v62 = vld [vmem:[%s6987_s12 + $0x10] sm:$0xff]  ;;  %v1239_v31 = vld [vmem:[%s6987_s12 + $0x20] sm:$0x3] }
  0x48   : > { %v438_v11 = vsel %vm390_vm0, %v436_v56, %v437_v57  ;;  %v7354_v56 = vld [vmem:[%s6987_s12 + $0xa0] sm:$0xff]  ;;  %v6528_v15 = vld [vmem:[%s9450_s1 + $0x270] ss:$8 sps:$4 sm:$0xff]  }
  0x49   : > { %772 = vmatpush2.bf16.msra.mxu0 %v6491_v7  ;;  %v6513_v7 = vld [vmem:[%s9450_s1 + $0x110] ss:$8 sps:$4 sm:$0xff]   ;;  %v450_v18 = vsel %vm390_vm0, %v448_v3, %v449_v4  ;;  %v6539_v57 = vld [vmem:[%s9450_s1 + $0x384] ss:$8 sps:$4 sm:$0xff]  }
  0x4a   : > { %1114 = vmatpush2.bf16.msra.mxu1 %v6488_v17  ;;  %1172 = vmatprep.subr.bf16.mxu0 %v6503_v23  ;;  %v248_v17 = vpack.c.bf16 %v7254_v61, %v7251_v60  ;;  %v445_v23 = vrot.slane %v330_v12, 1  ;;  %v6527_v3 = vld [vmem:[%s9450_s1 + $0x284] ss:$8 sps:$4 sm:$0xff]   ;;  %v6530_v12 = vld [vmem:[%s9450_s1 + $0x274] ss:$8 sps:$4 sm:$0xff]  }
  0x4b   : > { %1115 = vmatprep.subr.bf16.mxu1 %v6494_v22  ;;  %v7283_v22 = vld [vmem:[%s6987_s12 + $0x90] sm:$0xff] }
  0x4c   : > { %774 = vmatmul.mubr.bf16.vlgmr.msra.gmra.mxu0 %v487_v21  ;;  %v493_v21 = vpack.c.bf16 %v438_v11, %v429_v10  ;;  %v247_v38 = vpack.c.bf16 %v7283_v22, %v7305_v35  ;;  %v447_v39 = vsel %vm390_vm0, %v445_v23, %v446_v26  ;;  %v6548_v10 = vld [vmem:[%s9450_s1 + $0x374] ss:$8 sps:$4 sm:$0xff]   ;;  %v6534_v26 = vld [vmem:[%s9450_s1 + $0x350] ss:$8 sps:$4 sm:$0xff]  }
  0x4d   : > { %783 = vmatprep.mubr.bf16.mxu0 %v491_v29  ;;  %1173 = vmatpush1.bf16.msra.mxu0 %v6501_v30  ;;  %v1871_v29 = vpack.c.bf16 %v7289_v25, %v7283_v22  ;;  %v497_v30 = vpack.c.bf16 %v459_v19, %v450_v18  ;;  %v6531_v19 = vld [vmem:[%s9450_s1 + $0x260] ss:$8 sps:$4 sm:$0xff]   ;;  %v6536_v23 = vld [vmem:[%s9450_s1 + $0x354] ss:$8 sps:$4 sm:$0xff]   ;;  %v6656_v22 = vld [vmem:[%s9450_s1 + $0x5a4] ss:$8 sps:$4 sm:$0xff]  }
  0x4e   : > { %1116 = vmatpush2.bf16.msra.mxu1 %v6492_v24  ;;  %1174 = vmatprep.subr.bf16.mxu0 %v6515_v8  ;;  %v7286_v24 = vld [vmem:[%s6987_s12 + $0xc8] sm:$0xff]  ;;  %v7386_v8 = vld [vmem:[%s6987_s12 + $0x130] sm:$0xff] }
  0x4f   : > { %1117 = vmatprep.subr.bf16.mxu1 %v6497_v37  ;;  %v1872_v28 = vpack.c.bf16 %v7286_v24, %v7254_v61  ;;  %v7311_v37 = vld [vmem:[%s6987_s12 + $0xf8] sm:$0xff]  ;;  %v6647_v61 = vld [vmem:[%s9450_s1 + $0x4c4] ss:$8 sps:$4 sm:$0xff]  }
  0x50   : > { %v251_v45 = vpack.c.bf16 %v7311_v37, %v7286_v24 }
  0x51   : > { %1175 = vmatpush1.bf16.msra.mxu0 %v6513_v7  ;;  %v7383_v7 = vld [vmem:[%s6987_s12 + $0x100] sm:$0xff] }
  0x52   : > { %1118 = vmatpush2.bf16.msra.mxu1 %v6495_v46  ;;  %1176 = vmatprep.subr.bf16.mxu0 %v6521_v33  ;;  %v1875_v46 = vpack.c.bf16 %v7321_v42, %v7311_v37  ;;  %v1876_v11 = vpack.c.bf16 %v7386_v8, %v7383_v7  ;;  %v1242_v33 = vld [vmem:[%s6987_s12 + $0x38] sm:$0xfc] }
  0x53   : > { %1119 = vmatprep.subr.bf16.mxu1 %v6500_v50  ;;  %v7342_v50 = vld [vmem:[%s6987_s12 + $0x70] sm:$0xff] }
  0x54   : > { %784 = vmatmul.mubr.bf16.gmra.mxu0 %v490_v49  ;;  %v7339_v49 = vld [vmem:[%s6987_s12 + $0x40] sm:$0xff]  ;;  %v249_v18 = vpack.c.bf16 %v7354_v56, %v7342_v50  ;;  %v6659_v42 = vld [vmem:[%s9450_s1 + $0x594] ss:$8 sps:$4 sm:$0xff]  }
  0x55   : > { %793 = vmatprep.mubr.bf16.mxu0 %v494_v59  ;;  %1177 = vmatpush1.bf16.msra.mxu0 %v6519_v32  ;;  %v1870_v52 = vpack.c.bf16 %v7342_v50, %v7339_v49  ;;  %v250_v59 = vpack.c.bf16 %v7318_v41, %v7289_v25  ;;  %v246_v4 = vpack.c.bf16 %v7339_v49, %v222_v62  ;;  %v1243_v62 = vld [vmem:[%s6987_s12 + $0x40] sm:$0xfc]  ;;  %v6626_v49 = vld [vmem:[%s9450_s1 + $0x514] ss:$8 sps:$4 sm:$0xff]   ;;  %v6621_v50 = vld [vmem:[%s9450_s1 + $0x430] ss:$8 sps:$4 sm:$0xff]  }
  0x56   : > { %1120 = vmatpush2.bf16.msra.mxu1 %v6498_v51  ;;  %v496_v51 = vpack.c.bf16 %v456_v40, %v447_v39  ;;  %1764 = vmatprep.subr.bf16.mxu0 %v6539_v57  ;;  %v1344_v39 = vrot.slane %v1242_v33, 2  ;;  %v1237_v57 = vld [vmem:[%s6987_s12 + $0x10] sm:$0xfc]  ;;  %v1244_v33 = vld [vmem:[%s6987_s12 + $0x48] sm:$0x3] }
  0x57   : > { %1681 = vmatprep.subr.bf16.mxu1 %v6506_v58  ;;  %v7360_v58 = vld [vmem:[%s6987_s12 + $0xd0] sm:$0xff]  ;;  %v6654_v25 = vld [vmem:[%s9450_s1 + $0x5a0] ss:$8 sps:$4 sm:$0xff]  }
  0x58   : > { %v1873_v63 = vpack.c.bf16 %v7360_v58, %v7354_v56  ;;  %v252_v32 = vpack.c.bf16 %v7383_v7, %v7360_v58  ;;  %v6633_v56 = vld [vmem:[%s9450_s1 + $0x410] ss:$8 sps:$4 sm:$0xff]  }
  0x59   : > { %1122 = vmatmul.mubr.bf16.vlgmr.msra.gmra.mxu1 %v244_v13  ;;  %v5646_v58 = vld [vmem:[%s6987_s12 + $0x30] sm:$0xff] }
  0x5a   : > { %1682 = vmatpush1.bf16.msra.mxu1 %v6504_v9  ;;  %1131 = vmatprep.mubr.bf16.mxu1 %v248_v17  ;;  %v7389_v9 = vld [vmem:[%s6987_s12 + $0x150] sm:$0xff]  ;;  %v6533_v17 = vld [vmem:[%s9450_s1 + $0x264] ss:$8 sps:$4 sm:$0xff]  }
  0x5b   : > { %1683 = vmatprep.subr.bf16.mxu1 %v6509_v16  ;;  %v253_v13 = vpack.c.bf16 %v7389_v9, %v7324_v43  ;;  %v6554_v16 = vld [vmem:[%s9450_s1 + $0x364] ss:$8 sps:$4 sm:$0xff]  }
  0x5c   : > { %794 = vmatmul.mubr.bf16.gmra.mxu0 %v493_v21  ;;  %v6560_v21 = vld [vmem:[%s9450_s1 + $0x404] ss:$8 sps:$4 sm:$0xff]  }
  0x5d   : > { %803 = vmatprep.mubr.bf16.mxu0 %v497_v30  ;;  %v1236_v30 = vld [vmem:[%s6987_s12 + $0x8] sm:$0xfc] }
  0x5e   : > { %1684 = vmatpush1.bf16.msra.mxu1 %v6507_v34  ;;  %v1245_v34 = vld [vmem:[%s6987_s12 + $0x50] sm:$0x3] }
  0x5f   : > { %1685 = vmatprep.subr.bf16.mxu1 %v6512_v36  ;;  %v1335_v36 = vrot.slane %v1236_v30, 2  ;;  %v1345_v40 = vrot.slane %v1245_v34, 2  ;;  %v6561_v30 = vld [vmem:[%s9450_s1 + $0x300] ss:$8 sps:$4 sm:$0xff]  }
  0x61   : > { %1132 = vmatmul.mubr.bf16.gmra.mxu1 %v247_v38  ;;  %v1336_v38 = vrot.slane %v1239_v31, 2 }
  0x62   : > { %1686 = vmatpush1.bf16.msra.mxu1 %v6510_v44  ;;  %1141 = vmatprep.mubr.bf16.mxu1 %v251_v45  ;;  %v6540_v44 = vld [vmem:[%s9450_s1 + $0x340] ss:$8 sps:$4 sm:$0xff]  }
  0x63   : > { %1687 = vmatprep.subr.bf16.mxu1 %v6518_v48  ;;  %v1337_v45 = vsel %vm1331_vm2, %v1335_v36, %v1336_v38  ;;  %v6545_v48 = vld [vmem:[%s9450_s1 + $0x334] ss:$8 sps:$4 sm:$0xff]  }
  0x64   : > { %804 = vmatmul.mubr.bf16.gmra.mxu0 %v496_v51  ;;  %v1346_v51 = vsel %vm1331_vm2, %v1344_v39, %v1345_v40  ;;  %v6566_v40 = vld [vmem:[%s9450_s1 + $0x3f4] ss:$8 sps:$4 sm:$0xff]  }
  0x65   : > { %1194 = vmatprep.mubr.bf16.mxu0 %v9454_v2  ;;  %v1429_v55 = vpack.c.bf16 %v1346_v51, %v1337_v45 }
  0x66   : > { %1688 = vmatpush1.bf16.msra.mxu1 %v6516_v53  ;;  %v6543_v53 = vld [vmem:[%s9450_s1 + $0x330] ss:$8 sps:$4 sm:$0xff]  }
  0x67   : > { %1689 = vmatprep.subr.bf16.mxu1 %v6524_v54  ;;  %v7456_v54 = vld [vmem:[%s6987_s12 + $0x160] sm:$0xff] }
  0x69   : > { %1142 = vmatmul.mubr.bf16.gmra.mxu1 %v250_v59  ;;  %v1240_v59 = vld [vmem:[%s6987_s12 + $0x28] sm:$0x3] }
  0x6a   : > { %1690 = vmatpush1.bf16.msra.mxu1 %v6522_v0  ;;  %1151 = vmatprep.mubr.bf16.mxu1 %v254_v1  ;;  %v1246_v0 = vld [vmem:[%s6987_s12 + $0x58] sm:$0x3]  ;;  %v6551_v1 = vld [vmem:[%s9450_s1 + $0x324] ss:$8 sps:$4 sm:$0xff]  }
  0x6b   : > { %1691 = vmatprep.subr.bf16.mxu1 %v6527_v3  ;;  %v255_v3 = vpack.c.bf16 %v7456_v54, %v7386_v8 }
  0x6c   : > { %5562 = vmatmul.mubr.msk.bf16.vlgmr.msra.gmra.mxu0 %vm728_vm1, %v246_v4  ;;  %v1338_v4 = vrot.slane %v1237_v57, 2  ;;  %v1251_v57 = vld [vmem:[%s6987_s12 + $0x80] sm:$0x3] }
  0x6d   : > { %1204 = vmatprep.mubr.bf16.mxu0 %v9454_v2  ;;  %1765 = vmatpush1.bf16.msra.mxu0 %v6537_v6  ;;  %v1347_v6 = vrot.slane %v1243_v62, 2  ;;  %v6572_v62 = vld [vmem:[%s9450_s1 + $0x3e4] ss:$8 sps:$4 sm:$0xff]  }
  0x6e   : > { %1692 = vmatpush1.bf16.msra.mxu1 %v6525_v5  ;;  %1766 = vmatprep.subr.bf16.mxu0 %v6548_v10  ;;  %v1339_v5 = vrot.slane %v1240_v59, 2  ;;  %v1348_v10 = vrot.slane %v1246_v0, 2  ;;  %v6567_v59 = vld [vmem:[%s9450_s1 + $0x2f0] ss:$8 sps:$4 sm:$0xff]   ;;  %v1342_v0 = vrot.slane %v1244_v33, 2 }
  0x6f   : > { %1693 = vmatprep.subr.bf16.mxu1 %v6530_v12  ;;  %v6549_v12 = vld [vmem:[%s9450_s1 + $0x320] ss:$8 sps:$4 sm:$0xff]  }
  0x71   : > { %1152 = vmatmul.mubr.bf16.gmra.mxu1 %v253_v13  ;;  %1767 = vmatpush1.bf16.msra.mxu0 %v6546_v14  ;;  %v6557_v13 = vld [vmem:[%s9450_s1 + $0x314] ss:$8 sps:$4 sm:$0xff]   ;;  %v6555_v14 = vld [vmem:[%s9450_s1 + $0x310] ss:$8 sps:$4 sm:$0xff]  }
  0x72   : > { %1694 = vmatpush1.bf16.msra.mxu1 %v6528_v15  ;;  %1768 = vmatprep.subr.bf16.mxu0 %v6554_v16  ;;  %v1249_v15 = vld [vmem:[%s6987_s12 + $0x70] sm:$0xfc]  ;;  %v1340_v16 = vsel %vm1331_vm2, %v1338_v4, %v1339_v5  ;;  %v6575_v4 = vld [vmem:[%s9450_s1 + $0x2e4] ss:$8 sps:$4 sm:$0xff]  }
  0x73   : > { %1695 = vmatprep.subr.bf16.mxu1 %v6533_v17  ;;  %1713 = vmatprep.mubr.bf16.mxu1 %v1429_v55  ;;  %v1349_v17 = vsel %vm1331_vm2, %v1347_v6, %v1348_v10  ;;  %v1356_v34 = vrot.slane %v1249_v15, 2  ;;  %v1248_v55 = vld [vmem:[%s6987_s12 + $0x68] sm:$0xfc]  ;;  %v1261_v10 = vld [vmem:[%s6987_s12 + $0xd0] sm:$0xfc] }
  0x74   : > { %5563 = vmatmul.mubr.msk.bf16.gmra.mxu0 %vm728_vm1, %v249_v18  ;;  %v1252_v18 = vld [vmem:[%s6987_s12 + $0x88] sm:$0x3]  ;;  %v1430_v31 = vpack.c.bf16 %v1349_v17, %v1340_v16  ;;  %v1353_v16 = vrot.slane %v1248_v55, 2  ;;  %v1354_v17 = vrot.slane %v1251_v57, 2  ;;  %v6579_v55 = vld [vmem:[%s9450_s1 + $0x4b0] ss:$8 sps:$4 sm:$0xff]  }
  0x75   : > { %1214 = vmatprep.mubr.bf16.mxu0 %v9454_v2  ;;  %1769 = vmatpush1.bf16.msra.mxu0 %v6552_v20  ;;  %v1258_v20 = vld [vmem:[%s6987_s12 + $0xb8] sm:$0x3]  ;;  %v1357_v36 = vrot.slane %v1252_v18, 2  ;;  %v6570_v15 = vld [vmem:[%s9450_s1 + $0x3e0] ss:$8 sps:$4 sm:$0xff]  }
  0x76   : > { %1696 = vmatpush1.bf16.msra.mxu1 %v6531_v19  ;;  %2121 = vmatprep.subr.bf16.mxu0 %v6560_v21  ;;  %v1255_v19 = vld [vmem:[%s6987_s12 + $0xa0] sm:$0xfc]  ;;  %v1366_v39 = vrot.slane %v1258_v20, 2 }
  0x77   : > { %1697 = vmatprep.subr.bf16.mxu1 %v6536_v23  ;;  %v6558_v21 = vld [vmem:[%s9450_s1 + $0x400] ss:$8 sps:$4 sm:$0xff]   ;;  %v6563_v23 = vld [vmem:[%s9450_s1 + $0x304] ss:$8 sps:$4 sm:$0xff]   ;;  %v1365_v38 = vrot.slane %v1255_v19, 2  ;;  %v1358_v5 = vsel %vm1331_vm2, %v1356_v34, %v1357_v36  ;;  %v1374_v36 = vrot.slane %v1261_v10, 2 }
  0x78   : > { %v7532_v20 = vld [vmem:[%s6987_s12 + $0x60] sm:$0xfc]  ;;  %v7552_v34 = vld [vmem:[%s6987_s12 + $0xc8] sm:$0xfc] }
  0x79   : > { %v1367_v6 = vsel %vm1331_vm2, %v1365_v38, %v1366_v39  ;;  %v6584_v57 = vld [vmem:[%s9450_s1 + $0x3c4] ss:$8 sps:$4 sm:$0xff]   ;;  %v1371_v10 = vrot.slane %v7552_v34, 2  ;;  %v1268_v34 = vld [vmem:[%s6987_s12 + $0x108] sm:$0x3] }
  0x7a   : > { %1698 = vmatpush2.bf16.msra.mxu1 %v6534_v26  ;;  %v1235_v26 = vld [vmem:[%s6987_s12] sm:$0xfc]  ;;  %v1433_v33 = vpack.c.bf16 %v1367_v6, %v1358_v5 }
  0x7b   : > { %1699 = vmatprep.subr.bf16.mxu1 %v6542_v27  ;;  %v1238_v27 = vld [vmem:[%s6987_s12 + $0x18] sm:$0x3]  ;;  %v1332_v45 = vrot.slane %v1235_v26, 2  ;;  %v6593_v6 = vld [vmem:[%s9450_s1 + $0x4a4] ss:$8 sps:$4 sm:$0xff]  }
  0x7c   : > { %5564 = vmatmul.mubr.msk.bf16.gmra.mxu0 %vm728_vm1, %v252_v32  ;;  %v1241_v32 = vld [vmem:[%s6987_s12 + $0x30] sm:$0xfc]  ;;  %v1333_v51 = vrot.slane %v1238_v27, 2 }
  0x7d   : > { %1224 = vmatprep.mubr.bf16.mxu0 %v9454_v2 }
  0x7e   : > { %1700 = vmatpush2.bf16.msra.mxu1 %v6540_v44  ;;  %v6569_v44 = vld [vmem:[%s9450_s1 + $0x2f4] ss:$8 sps:$4 sm:$0xff]   ;;  %v1334_v26 = vsel %vm1331_vm2, %v1332_v45, %v1333_v51  ;;  %v1350_v51 = vrot.slane %v7532_v20, 2 }
  0x7f   : > { %1701 = vmatprep.subr.bf16.mxu1 %v6545_v48  ;;  %v6564_v48 = vld [vmem:[%s9450_s1 + $0x3f0] ss:$8 sps:$4 sm:$0xff]  }
  0x82   : > { %1702 = vmatpush2.bf16.msra.mxu1 %v6543_v53  ;;  %v1341_v53 = vrot.slane %v1241_v32, 2  ;;  %v7549_v32 = vld [vmem:[%s6987_s12 + $0xa8] sm:$0x3] }
  0x83   : > { %1703 = vmatprep.subr.bf16.mxu1 %v6551_v1  ;;  %v1254_v1 = vld [vmem:[%s6987_s12 + $0x98] sm:$0xfc]  ;;  %v1360_v5 = vrot.slane %v7549_v32, 2  ;;  %v1262_v32 = vld [vmem:[%s6987_s12 + $0xd8] sm:$0x3] }
  0x84   : > { %5565 = vmatmul.mubr.msk.bf16.gmra.mxu0 %vm728_vm1, %v255_v3  ;;  %v1257_v3 = vld [vmem:[%s6987_s12 + $0xb0] sm:$0x3]  ;;  %v1362_v18 = vrot.slane %v1254_v1, 2  ;;  %v1343_v27 = vsel %vm1331_vm2, %v1341_v53, %v1342_v0  ;;  %v1263_v53 = vld [vmem:[%s6987_s12 + $0xe0] sm:$0x3] }
  0x85   : > { %1786 = vmatprep.mubr.bf16.mxu0 %v9454_v2  ;;  %v1363_v19 = vrot.slane %v1257_v3, 2  ;;  %v1428_v45 = vpack.c.bf16 %v1343_v27, %v1334_v26  ;;  %v1266_v3 = vld [vmem:[%s6987_s12 + $0xf8] sm:$0xfc]  ;;  %v1279_v26 = vld [vmem:[%s6987_s12 + $0x160] sm:$0xfc] }
  0x86   : > { %1704 = vmatpush2.bf16.msra.mxu1 %v6549_v12  ;;  %v1264_v12 = vld [vmem:[%s6987_s12 + $0xe8] sm:$0x3]  ;;  %v1282_v27 = vld [vmem:[%s6987_s12 + $0x178] sm:$0x3] }
  0x87   : > { %1705 = vmatprep.subr.bf16.mxu1 %v6557_v13  ;;  %v1267_v13 = vld [vmem:[%s6987_s12 + $0x100] sm:$0xfc]  ;;  %v1375_v38 = vrot.slane %v1264_v12, 2 }
  0x88   : > { %v1383_v39 = vrot.slane %v1267_v13, 2 }
  0x89   : > { %v1376_v12 = vsel %vm1331_vm2, %v1374_v36, %v1375_v38  ;;  %v6602_v36 = vld [vmem:[%s9450_s1 + $0x494] ss:$8 sps:$4 sm:$0xff]  }
  0x8a   : > { %1706 = vmatpush2.bf16.msra.mxu1 %v6555_v14  ;;  %v1270_v14 = vld [vmem:[%s6987_s12 + $0x118] sm:$0x3] }
  0x8b   : > { %1707 = vmatprep.subr.bf16.mxu1 %v6563_v23  ;;  %v6578_v23 = vld [vmem:[%s9450_s1 + $0x3d4] ss:$8 sps:$4 sm:$0xff]  }
  0x8c   : > { %5642 = vmatmul.mubr.msk.bf16.vlgmr.msra.gmra.mxu0 %vm728_vm1, %v1430_v31  ;;  %v7546_v31 = vld [vmem:[%s6987_s12 + $0x90] sm:$0xfc] }
  0x8d   : > { %2122 = vmatpush1.bf16.msra.mxu0 %v6558_v21  ;;  %1796 = vmatprep.mubr.bf16.mxu0 %v9454_v2  ;;  %v6573_v21 = vld [vmem:[%s9450_s1 + $0x2e0] ss:$8 sps:$4 sm:$0xff]   ;;  %v1359_v1 = vrot.slane %v7546_v31, 2 }
  0x8e   : > { %1708 = vmatpush2.bf16.msra.mxu1 %v6561_v30  ;;  %2123 = vmatprep.subr.bf16.mxu0 %v6566_v40  ;;  %v7543_v30 = vld [vmem:[%s6987_s12 + $0x78] sm:$0x3]  ;;  %v1384_v40 = vrot.slane %v1270_v14, 2  ;;  %v1372_v14 = vrot.slane %v1263_v53, 2 }
  0x8f   : > { %1709 = vmatprep.subr.bf16.mxu1 %v6569_v44  ;;  %v6576_v44 = vld [vmem:[%s9450_s1 + $0x3d0] ss:$8 sps:$4 sm:$0xff]   ;;  %v1351_v0 = vrot.slane %v7543_v30, 2  ;;  %v1259_v30 = vld [vmem:[%s6987_s12 + $0xc0] sm:$0xfc] }
  0x90   : > { %v1385_v13 = vsel %vm1331_vm2, %v1383_v39, %v1384_v40  ;;  %v1401_v40 = vrot.slane %v1279_v26, 2 }
  0x91   : > { %2124 = vmatpush1.bf16.msra.mxu0 %v6564_v48  ;;  %v6581_v48 = vld [vmem:[%s9450_s1 + $0x4b4] ss:$8 sps:$4 sm:$0xff]   ;;  %v1436_v31 = vpack.c.bf16 %v1385_v13, %v1376_v12  ;;  %v1352_v53 = vsel %vm1331_vm2, %v1350_v51, %v1351_v0  ;;  %v1281_v12 = vld [vmem:[%s6987_s12 + $0x170] sm:$0x3]  ;;  %v1368_v0 = vrot.slane %v1259_v30, 2 }
  0x92   : > { %1710 = vmatpush2.bf16.msra.mxu1 %v6567_v59  ;;  %2125 = vmatprep.subr.bf16.mxu0 %v6572_v62  ;;  %v1355_v59 = vsel %vm1331_vm2, %v1353_v16, %v1354_v17  ;;  %v1364_v62 = vsel %vm1331_vm2, %v1362_v18, %v1363_v19  ;;  %v1276_v16 = vld [vmem:[%s6987_s12 + $0x148] sm:$0x3]  ;;  %v1380_v19 = vrot.slane %v1266_v3, 2 }
  0x93   : > { %1711 = vmatprep.subr.bf16.mxu1 %v6575_v4  ;;  %v1269_v4 = vld [vmem:[%s6987_s12 + $0x110] sm:$0x3]  ;;  %v6582_v17 = vld [vmem:[%s9450_s1 + $0x3c0] ss:$8 sps:$4 sm:$0xff]   ;;  %v1432_v18 = vpack.c.bf16 %v1364_v62, %v1355_v59  ;;  %v1393_v39 = vrot.slane %v1276_v16, 2  ;;  %v1373_v62 = vsel %vm1331_vm2, %v1371_v10, %v1372_v14  ;;  %v1369_v10 = vrot.slane %v1262_v32, 2 }
  0x94   : > { %5643 = vmatmul.mubr.msk.bf16.gmra.mxu0 %vm728_vm1, %v1433_v33  ;;  %v1381_v20 = vrot.slane %v1269_v4, 2  ;;  %v1265_v33 = vld [vmem:[%s6987_s12 + $0xf0] sm:$0xfc]  ;;  %v1275_v59 = vld [vmem:[%s6987_s12 + $0x140] sm:$0x3]  ;;  %v1378_v14 = vrot.slane %v1268_v34, 2 }
  0x95   : > { %2126 = vmatpush1.bf16.msra.mxu0 %v6570_v15  ;;  %1806 = vmatprep.mubr.bf16.mxu0 %v9454_v2  ;;  %v1273_v15 = vld [vmem:[%s6987_s12 + $0x130] sm:$0xfc]  ;;  %v1278_v4 = vld [vmem:[%s6987_s12 + $0x158] sm:$0xfc]  ;;  %v1377_v13 = vrot.slane %v1265_v33, 2  ;;  %v1370_v30 = vsel %vm1331_vm2, %v1368_v0, %v1369_v10 }
  0x96   : > { %1712 = vmatpush2.bf16.msra.mxu1 %v6573_v21  ;;  %2127 = vmatprep.subr.bf16.mxu0 %v6578_v23  ;;  %v6587_v21 = vld [vmem:[%s9450_s1 + $0x3b4] ss:$8 sps:$4 sm:$0xff]   ;;  %v6591_v23 = vld [vmem:[%s9450_s1 + $0x4a0] ss:$8 sps:$4 sm:$0xff]   ;;  %v1392_v38 = vrot.slane %v1273_v15, 2  ;;  %v1382_v3 = vsel %vm1331_vm2, %v1380_v19, %v1381_v20  ;;  %v1398_v19 = vrot.slane %v1278_v4, 2 }
  0x97   : > { %2204 = vmatprep.subr.bf16.mxu1 %v6581_v48  ;;  %v1402_v48 = vrot.slane %v1282_v27, 2  ;;  %v6600_v15 = vld [vmem:[%s9450_s1 + $0x490] ss:$8 sps:$4 sm:$0xff]   ;;  %v6588_v16 = vld [vmem:[%s9450_s1 + $0x3a0] ss:$8 sps:$4 sm:$0xff]   ;;  %v1399_v20 = vrot.slane %v1281_v12, 2 }
  0x98   : > { %v6614_v27 = vld [vmem:[%s9450_s1 + $0x534] ss:$8 sps:$4 sm:$0xff]   ;;  %v1274_v32 = vld [vmem:[%s6987_s12 + $0x138] sm:$0x3]  ;;  %v6597_v12 = vld [vmem:[%s9450_s1 + $0x480] ss:$8 sps:$4 sm:$0xff]  }
  0x99   : > { %1714 = vmatmul.mubr.bf16.vlgmr.msra.gmra.mxu1 %v1428_v45  ;;  %2128 = vmatpush1.bf16.msra.mxu0 %v6576_v44  ;;  %v1361_v45 = vsel %vm1331_vm2, %v1359_v1, %v1360_v5  ;;  %v1272_v44 = vld [vmem:[%s6987_s12 + $0x128] sm:$0xfc]  ;;  %v1394_v1 = vsel %vm1331_vm2, %v1392_v38, %v1393_v39  ;;  %v1403_v5 = vsel %vm1331_vm2, %v1401_v40, %v1402_v48  ;;  %v1277_v33 = vld [vmem:[%s6987_s12 + $0x150] sm:$0xfc]  ;;  %v1280_v38 = vld [vmem:[%s6987_s12 + $0x168] sm:$0x3] }
  0x9a   : > { %2205 = vmatpush1.bf16.msra.mxu1 %v6579_v55  ;;  %2129 = vmatprep.subr.bf16.mxu0 %v6584_v57  ;;  %v6585_v55 = vld [vmem:[%s9450_s1 + $0x3b0] ss:$8 sps:$4 sm:$0xff]   ;;  %v1431_v51 = vpack.c.bf16 %v1361_v45, %v1352_v53  ;;  %v6590_v57 = vld [vmem:[%s9450_s1 + $0x3a4] ss:$8 sps:$4 sm:$0xff]   ;;  %v1439_v26 = vpack.c.bf16 %v1403_v5, %v1394_v1  ;;  %v1387_v53 = vrot.slane %v1274_v32, 2 }
  0x9b   : > { %1723 = vmatprep.mubr.bf16.mxu1 %v1432_v18  ;;  %2206 = vmatprep.subr.bf16.mxu1 %v6593_v6  ;;  %v1435_v6 = vpack.c.bf16 %v1382_v3, %v1373_v62  ;;  %v1390_v18 = vrot.slane %v1275_v59, 2  ;;  %v6594_v39 = vld [vmem:[%s9450_s1 + $0x390] ss:$8 sps:$4 sm:$0xff]   ;;  %v1395_v62 = vrot.slane %v1277_v33, 2  ;;  %v1396_v3 = vrot.slane %v1280_v38, 2 }
  0x9c   : > { %5644 = vmatmul.mubr.msk.bf16.gmra.mxu0 %vm728_vm1, %v1436_v31  ;;  %v1379_v31 = vsel %vm1331_vm2, %v1377_v13, %v1378_v14  ;;  %v5647_v45 = vld [vmem:[%s6987_s12 + $0x38] sm:$0xff]  ;;  %v6608_v1 = vld [vmem:[%s9450_s1 + $0x464] ss:$8 sps:$4 sm:$0xff]   ;;  %v6606_v5 = vld [vmem:[%s9450_s1 + $0x460] ss:$8 sps:$4 sm:$0xff]  }
  0x9d   : > { %2130 = vmatpush1.bf16.msra.mxu0 %v6582_v17  ;;  %1816 = vmatprep.mubr.bf16.mxu0 %v9454_v2  ;;  %v1389_v17 = vrot.slane %v1272_v44, 2  ;;  %v1434_v40 = vpack.c.bf16 %v1379_v31, %v1370_v30  ;;  %v6599_v44 = vld [vmem:[%s9450_s1 + $0x484] ss:$8 sps:$4 sm:$0xff]   ;;  %v1869_v4 = vpack.c.bf16 %v7251_v60, %v5647_v45  ;;  %v6603_v60 = vld [vmem:[%s9450_s1 + $0x470] ss:$8 sps:$4 sm:$0xff]  }
  0x9e   : > { %2131 = vmatprep.subr.bf16.mxu0 %v6587_v21  ;;  %2207 = vmatpush1.bf16.msra.mxu1 %v6591_v23  ;;  %v6596_v21 = vld [vmem:[%s9450_s1 + $0x394] ss:$8 sps:$4 sm:$0xff]   ;;  %v1271_v23 = vld [vmem:[%s6987_s12 + $0x120] sm:$0xfc]  ;;  %v6609_v10 = vld [vmem:[%s9450_s1 + $0x450] ss:$8 sps:$4 sm:$0xff]  }
  0x9f   : > { %2208 = vmatprep.subr.bf16.mxu1 %v6602_v36  ;;  %v1391_v34 = vsel %vm1331_vm2, %v1389_v17, %v1390_v18  ;;  %v1400_v36 = vsel %vm1331_vm2, %v1398_v19, %v1399_v20  ;;  %v1386_v48 = vrot.slane %v1271_v23, 2  ;;  %v6612_v13 = vld [vmem:[%s9450_s1 + $0x530] ss:$8 sps:$4 sm:$0xff]   ;;  %v6617_v14 = vld [vmem:[%s9450_s1 + $0x444] ss:$8 sps:$4 sm:$0xff]  }
  0xa0   : > { %v1438_v59 = vpack.c.bf16 %v1400_v36, %v1391_v34  ;;  %v6618_v17 = vld [vmem:[%s9450_s1 + $0x520] ss:$8 sps:$4 sm:$0xff]   ;;  %v6623_v18 = vld [vmem:[%s9450_s1 + $0x434] ss:$8 sps:$4 sm:$0xff]   ;;  %v6629_v19 = vld [vmem:[%s9450_s1 + $0x424] ss:$8 sps:$4 sm:$0xff]  }
  0xa1   : > { %1724 = vmatmul.mubr.bf16.gmra.mxu1 %v1431_v51  ;;  %2132 = vmatpush1.bf16.msra.mxu0 %v6585_v55  ;;  %v6605_v55 = vld [vmem:[%s9450_s1 + $0x474] ss:$8 sps:$4 sm:$0xff]   ;;  %v1388_v51 = vsel %vm1331_vm2, %v1386_v48, %v1387_v53  ;;  %v6632_v20 = vld [vmem:[%s9450_s1 + $0x504] ss:$8 sps:$4 sm:$0xff]   ;;  %v5754_v30 = vld [vmem:[%s6987_s12 + $0x50] sm:$0x1] }
  0xa2   : > { %2133 = vmatprep.subr.bf16.mxu0 %v6590_v57  ;;  %1733 = vmatprep.mubr.bf16.mxu1 %v1435_v6  ;;  %v1397_v57 = vsel %vm1331_vm2, %v1395_v62, %v1396_v3  ;;  %v6611_v6 = vld [vmem:[%s9450_s1 + $0x454] ss:$8 sps:$4 sm:$0xff]   ;;  %v5757_v31 = vld [vmem:[%s6987_s12 + $0x68] sm:$0xfe]  ;;  %v5760_v32 = vld [vmem:[%s6987_s12 + $0x80] sm:$0x1] }
  0xa3   : > { %2209 = vmatpush1.bf16.msra.mxu1 %v6600_v15  ;;  %v1437_v0 = vpack.c.bf16 %v1397_v57, %v1388_v51  ;;  %v6620_v15 = vld [vmem:[%s9450_s1 + $0x524] ss:$8 sps:$4 sm:$0xff]   ;;  %v6638_v23 = vld [vmem:[%s9450_s1 + $0x4f4] ss:$8 sps:$4 sm:$0xff]   ;;  %v6636_v33 = vld [vmem:[%s9450_s1 + $0x4f0] ss:$8 sps:$4 sm:$0xff]  }
  0xa4   : > { %5645 = vmatmul.mubr.msk.bf16.gmra.mxu0 %vm728_vm1, %v1439_v26  ;;  %2728 = vmatprep.subr.bf16.mxu1 %v6614_v27  ;;  %v6627_v26 = vld [vmem:[%s9450_s1 + $0x420] ss:$8 sps:$4 sm:$0xff]   ;;  %v6653_v34 = vld [vmem:[%s9450_s1 + $0x5e4] ss:$8 sps:$4 sm:$0xff]   ;;  %v2391_v48 = vrot.slane %v5757_v31, 1  ;;  %v2392_v53 = vrot.slane %v5760_v32, 1 }
  0xa5   : > { %2134 = vmatpush1.bf16.msra.mxu0 %v6588_v16  ;;  %2153 = vmatprep.mubr.bf16.mxu0 %v1869_v4  ;;  %v6615_v16 = vld [vmem:[%s9450_s1 + $0x440] ss:$8 sps:$4 sm:$0xff]   ;;  %v6641_v36 = vld [vmem:[%s9450_s1 + $0x4e4] ss:$8 sps:$4 sm:$0xff]   ;;  %v6644_v62 = vld [vmem:[%s9450_s1 + $0x4d4] ss:$8 sps:$4 sm:$0xff]  }
  0xa6   : > { %2135 = vmatprep.subr.bf16.mxu0 %v6596_v21  ;;  %v6630_v27 = vld [vmem:[%s9450_s1 + $0x500] ss:$8 sps:$4 sm:$0xff]   ;;  %v6635_v21 = vld [vmem:[%s9450_s1 + $0x414] ss:$8 sps:$4 sm:$0xff]   ;;  %v2393_v8 = vsel %vm390_vm0, %v2391_v48, %v2392_v53  ;;  %v6642_v4 = vld [vmem:[%s9450_s1 + $0x4d0] ss:$8 sps:$4 sm:$0xff]  }
  0xa7   : > { %v6651_v45 = vld [vmem:[%s9450_s1 + $0x5e0] ss:$8 sps:$4 sm:$0xff]   ;;  %v6650_v51 = vld [vmem:[%s9450_s1 + $0x5b4] ss:$8 sps:$4 sm:$0xff]   ;;  %v6648_v57 = vld [vmem:[%s9450_s1 + $0x5b0] ss:$8 sps:$4 sm:$0xff]  }
  0xa8   : > { %v6680_v31 = vld [vmem:[%s9450_s1 + $0x654] ss:$8 sps:$4 sm:$0xff]   ;;  %v5756_v32 = vld [vmem:[%s6987_s12 + $0x60] sm:$0xfe] }
  0xa9   : > { %1734 = vmatmul.mubr.bf16.gmra.mxu1 %v1434_v40  ;;  %2136 = vmatpush1.bf16.msra.mxu0 %v6594_v39  ;;  %v1868_v39 = vpack.c.bf16 %v7305_v35, %v5646_v58  ;;  %v2383_v40 = vrot.slane %v5754_v30, 1  ;;  %v6662_v35 = vld [vmem:[%s9450_s1 + $0x5d4] ss:$8 sps:$4 sm:$0xff]   ;;  %v5753_v58 = vld [vmem:[%s6987_s12 + $0x48] sm:$0x1] }
  0xaa   : > { %2137 = vmatprep.subr.bf16.mxu0 %v6599_v44  ;;  %1743 = vmatprep.mubr.bf16.mxu1 %v1438_v59  ;;  %v6639_v44 = vld [vmem:[%s9450_s1 + $0x4e0] ss:$8 sps:$4 sm:$0xff]   ;;  %v5669_v59 = vld [vmem:[%s6987_s12 + $0x190] sm:$0xff] }
  0xab   : > { %v1879_v3 = vpack.c.bf16 %v5669_v59, %v7456_v54  ;;  %v6645_v54 = vld [vmem:[%s9450_s1 + $0x4c0] ss:$8 sps:$4 sm:$0xff]   ;;  %v6678_v59 = vld [vmem:[%s9450_s1 + $0x650] ss:$8 sps:$4 sm:$0xff]  }
  0xad   : > { %2138 = vmatpush2.bf16.msra.mxu0 %v6597_v12  ;;  %v6668_v12 = vld [vmem:[%s9450_s1 + $0x5c4] ss:$8 sps:$4 sm:$0xff]  }
  0xae   : > { %2139 = vmatprep.subr.bf16.mxu0 %v6605_v55  ;;  %v6674_v55 = vld [vmem:[%s9450_s1 + $0x664] ss:$8 sps:$4 sm:$0xff]  }
  0xb1   : > { %1744 = vmatmul.mubr.bf16.gmra.mxu1 %v1437_v0  ;;  %2140 = vmatpush2.bf16.msra.mxu0 %v6603_v60  ;;  %v5668_v60 = vld [vmem:[%s6987_s12 + $0x188] sm:$0xff]  ;;  %v5667_v0 = vld [vmem:[%s6987_s12 + $0x180] sm:$0xff] }
  0xb2   : > { %2141 = vmatprep.subr.bf16.mxu0 %v6608_v1  ;;  %2226 = vmatprep.mubr.bf16.mxu1 %v9454_v2  ;;  %v5752_v1 = vld [vmem:[%s6987_s12 + $0x40] sm:$0xfe]  ;;  %v1877_v41 = vpack.c.bf16 %v5667_v0, %v7389_v9  ;;  %v6671_v9 = vld [vmem:[%s9450_s1 + $0x574] ss:$8 sps:$4 sm:$0xff]  }
  0xb3   : > { %v2385_v43 = vrot.slane %v5752_v1, 1  ;;  %v5762_v0 = vld [vmem:[%s6987_s12 + $0x90] sm:$0xfe]  ;;  %v5765_v1 = vld [vmem:[%s6987_s12 + $0xa8] sm:$0x1] }
  0xb5   : > { %2142 = vmatpush2.bf16.msra.mxu0 %v6606_v5  ;;  %v5755_v5 = vld [vmem:[%s6987_s12 + $0x58] sm:$0x1] }
  0xb6   : > { %2143 = vmatprep.subr.bf16.mxu0 %v6611_v6  ;;  %v5758_v6 = vld [vmem:[%s6987_s12 + $0x70] sm:$0xfe] }
  0xb9   : > { %2144 = vmatpush2.bf16.msra.mxu0 %v6609_v10  ;;  %5746 = vmatmul.mubr.msk.bf16.vlgmr.msra.gmra.mxu1 %vm728_vm1, %v1870_v52  ;;  %v6624_v52 = vld [vmem:[%s9450_s1 + $0x510] ss:$8 sps:$4 sm:$0xff]   ;;  %v5761_v10 = vld [vmem:[%s6987_s12 + $0x88] sm:$0x1] }
  0xba   : > { %2729 = vmatpush1.bf16.msra.mxu1 %v6612_v13  ;;  %2145 = vmatprep.subr.bf16.mxu0 %v6617_v14  ;;  %v6665_v13 = vld [vmem:[%s9450_s1 + $0x584] ss:$8 sps:$4 sm:$0xff]   ;;  %v2394_v14 = vrot.slane %v5758_v6, 1 }
  0xbb   : > { %2730 = vmatprep.subr.bf16.mxu1 %v6620_v15  ;;  %2236 = vmatprep.mubr.bf16.mxu1 %v9454_v2  ;;  %v2395_v15 = vrot.slane %v5761_v10, 1  ;;  %v5768_v6 = vld [vmem:[%s6987_s12 + $0xc0] sm:$0xfe]  ;;  %v5771_v10 = vld [vmem:[%s6987_s12 + $0xd8] sm:$0x1] }
  0xbd   : > { %2146 = vmatpush2.bf16.msra.mxu0 %v6615_v16  ;;  %v6663_v16 = vld [vmem:[%s9450_s1 + $0x580] ss:$8 sps:$4 sm:$0xff]  }
  0xbe   : > { %2731 = vmatpush1.bf16.msra.mxu1 %v6618_v17  ;;  %2147 = vmatprep.subr.bf16.mxu0 %v6623_v18  ;;  %v6669_v18 = vld [vmem:[%s9450_s1 + $0x570] ss:$8 sps:$4 sm:$0xff]  }
  0xbf   : > { %2732 = vmatprep.subr.bf16.mxu1 %v6626_v49  ;;  %v5764_v49 = vld [vmem:[%s6987_s12 + $0xa0] sm:$0xfe] }
  0xc1   : > { %2148 = vmatpush2.bf16.msra.mxu0 %v6621_v50  ;;  %5747 = vmatmul.mubr.msk.bf16.gmra.mxu1 %vm728_vm1, %v1873_v63  ;;  %v5751_v63 = vld [vmem:[%s6987_s12 + $0x38] sm:$0xfe]  ;;  %v6677_v50 = vld [vmem:[%s9450_s1 + $0x564] ss:$8 sps:$4 sm:$0xff]  }
  0xc2   : > { %2733 = vmatpush1.bf16.msra.mxu1 %v6624_v52  ;;  %2149 = vmatprep.subr.bf16.mxu0 %v6629_v19  ;;  %v2382_v38 = vrot.slane %v5751_v63, 1  ;;  %v2396_v19 = vsel %vm390_vm0, %v2394_v14, %v2395_v15  ;;  %v6675_v63 = vld [vmem:[%s9450_s1 + $0x560] ss:$8 sps:$4 sm:$0xff]  }
  0xc3   : > { %2734 = vmatprep.subr.bf16.mxu1 %v6632_v20  ;;  %2246 = vmatprep.mubr.bf16.mxu1 %v9454_v2  ;;  %v5750_v20 = vld [vmem:[%s6987_s12 + $0x30] sm:$0xfe] }
  0xc4   : > { %v2384_v7 = vsel %vm390_vm0, %v2382_v38, %v2383_v40  ;;  %v2403_v38 = vrot.slane %v5764_v49, 1  ;;  %v2379_v53 = vrot.slane %v5750_v20, 1  ;;  %v6695_v20 = vld [vmem:[%s9450_s1 + $0x714] ss:$8 sps:$4 sm:$0xff]  }
  0xc5   : > { %2150 = vmatpush2.bf16.msra.mxu0 %v6627_v26  ;;  %v2476_v24 = vpack.c.bf16 %v2393_v8, %v2384_v7  ;;  %v5767_v26 = vld [vmem:[%s6987_s12 + $0xb8] sm:$0x1]  ;;  %v5769_v8 = vld [vmem:[%s6987_s12 + $0xc8] sm:$0xfe] }
  0xc6   : > { %2735 = vmatpush1.bf16.msra.mxu1 %v6630_v27  ;;  %2151 = vmatprep.subr.bf16.mxu0 %v6635_v21  ;;  %v5770_v27 = vld [vmem:[%s6987_s12 + $0xd0] sm:$0xfe]  ;;  %v5773_v21 = vld [vmem:[%s6987_s12 + $0xe8] sm:$0x1] }
  0xc7   : > { %2736 = vmatprep.subr.bf16.mxu1 %v6638_v23  ;;  %v2412_v40 = vrot.slane %v5770_v27, 1  ;;  %v2413_v48 = vrot.slane %v5773_v21, 1 }
  0xc9   : > { %2152 = vmatpush2.bf16.msra.mxu0 %v6633_v56  ;;  %5748 = vmatmul.mubr.msk.bf16.gmra.mxu1 %vm728_vm1, %v1876_v11  ;;  %v6660_v11 = vld [vmem:[%s9450_s1 + $0x5d0] ss:$8 sps:$4 sm:$0xff]   ;;  %v6672_v56 = vld [vmem:[%s9450_s1 + $0x660] ss:$8 sps:$4 sm:$0xff]  }
  0xca   : > { %2737 = vmatpush1.bf16.msra.mxu1 %v6636_v33  ;;  %2811 = vmatprep.subr.bf16.mxu0 %v6653_v34  ;;  %v5759_v33 = vld [vmem:[%s6987_s12 + $0x78] sm:$0x1]  ;;  %v6683_v34 = vld [vmem:[%s9450_s1 + $0x554] ss:$8 sps:$4 sm:$0xff]  }
  0xcb   : > { %2738 = vmatprep.subr.bf16.mxu1 %v6641_v36  ;;  %2256 = vmatprep.mubr.bf16.mxu1 %v9454_v2  ;;  %v7871_v36 = vld [vmem:[%s6987_s12 + $0x98] sm:$0xfe]  ;;  %v2389_v7 = vrot.slane %v5759_v33, 1 }
  0xcc   : > { %2154 = vmatmul.mubr.bf16.vlgmr.msra.gmra.mxu0 %v1868_v39  ;;  %v2404_v39 = vrot.slane %v5767_v26, 1 }
  0xcd   : > { %2163 = vmatprep.mubr.bf16.mxu0 %v1872_v28  ;;  %2812 = vmatpush1.bf16.msra.mxu0 %v6651_v45  ;;  %v6666_v28 = vld [vmem:[%s9450_s1 + $0x5c0] ss:$8 sps:$4 sm:$0xff]   ;;  %v2380_v45 = vrot.slane %v5753_v58, 1  ;;  %v2398_v58 = vrot.slane %v5765_v1, 1 }
  0xce   : > { %2739 = vmatpush1.bf16.msra.mxu1 %v6639_v44  ;;  %2813 = vmatprep.subr.bf16.mxu0 %v6662_v35  ;;  %v5766_v44 = vld [vmem:[%s6987_s12 + $0xb0] sm:$0x1] }
  0xcf   : > { %2740 = vmatprep.subr.bf16.mxu1 %v6644_v62  ;;  %v2388_v62 = vrot.slane %v5756_v32, 1  ;;  %v2407_v32 = vrot.slane %v5771_v10, 1 }
  0xd1   : > { %5749 = vmatmul.mubr.msk.bf16.gmra.mxu1 %vm728_vm1, %v1879_v3  ;;  %2814 = vmatpush1.bf16.msra.mxu0 %v6660_v11  ;;  %v6681_v11 = vld [vmem:[%s9450_s1 + $0x550] ss:$8 sps:$4 sm:$0xff]   ;;  %v6686_v3 = vld [vmem:[%s9450_s1 + $0x644] ss:$8 sps:$4 sm:$0xff]  }
  0xd2   : > { %2741 = vmatpush1.bf16.msra.mxu1 %v6642_v4  ;;  %2815 = vmatprep.subr.bf16.mxu0 %v6668_v12  ;;  %v5772_v4 = vld [vmem:[%s6987_s12 + $0xe0] sm:$0x1]  ;;  %v7889_v12 = vld [vmem:[%s6987_s12 + $0x100] sm:$0xfe] }
  0xd3   : > { %2742 = vmatprep.subr.bf16.mxu1 %v6647_v61  ;;  %2760 = vmatprep.mubr.bf16.mxu1 %v2476_v24  ;;  %v6689_v61 = vld [vmem:[%s9450_s1 + $0x544] ss:$8 sps:$4 sm:$0xff]   ;;  %v2405_v24 = vsel %vm390_vm0, %v2403_v38, %v2404_v39  ;;  %v2421_v14 = vrot.slane %v7889_v12, 1 }
  0xd4   : > { %2164 = vmatmul.mubr.bf16.gmra.mxu0 %v1871_v29  ;;  %v6909_v29 = vld [vmem:[%s6987_s12 + $0x158] sm:$0xff]  ;;  %v6707_v38 = vld [vmem:[%s9450_s1 + $0x704] ss:$8 sps:$4 sm:$0xff]  }
  0xd5   : > { %2173 = vmatprep.mubr.bf16.mxu0 %v1875_v46  ;;  %2816 = vmatpush1.bf16.msra.mxu0 %v6666_v28  ;;  %v1878_v37 = vpack.c.bf16 %v5668_v60, %v6909_v29  ;;  %v6657_v46 = vld [vmem:[%s9450_s1 + $0x590] ss:$8 sps:$4 sm:$0xff]   ;;  %v2414_v28 = vsel %vm390_vm0, %v2412_v40, %v2413_v48  ;;  %v5785_v60 = vld [vmem:[%s6987_s12 + $0x148] sm:$0x1]  ;;  %v7907_v29 = vsel %vm390_vm0, %v2379_v53, %v2380_v45  ;;  %v5788_v45 = vld [vmem:[%s6987_s12 + $0x160] sm:$0xfe] }
  0xd6   : > { %2743 = vmatpush1.bf16.msra.mxu1 %v6645_v54  ;;  %3335 = vmatprep.subr.bf16.mxu0 %v6674_v55  ;;  %v5779_v54 = vld [vmem:[%s6987_s12 + $0x118] sm:$0x1]  ;;  %v5782_v55 = vld [vmem:[%s6987_s12 + $0x130] sm:$0xfe]  ;;  %v5885_v12 = vld [vmem:[%s6987_s12 + $0x68] sm:$0xfc] }
  0xd7   : > { %2744 = vmatprep.subr.bf16.mxu1 %v6650_v51  ;;  %v2400_v51 = vrot.slane %v7871_v36, 1  ;;  %v2422_v15 = vrot.slane %v5779_v54, 1 }
  0xd9   : > { %v7834_v17 = vpop.f32.mrf.mxu1  ;;  %v2423_v48 = vsel %vm390_vm0, %v2421_v14, %v2422_v15 }
  0xda   : > { %2745 = vmatpush2.bf16.msra.mxu1 %v6648_v57  ;;  %v2401_v57 = vrot.slane %v5766_v44, 1  ;;  %v5791_v44 = vld [vmem:[%s6987_s12 + $0x178] sm:$0x1] }
  0xdb   : > { %2746 = vmatprep.subr.bf16.mxu1 %v6656_v22  ;;  %v7853_v23 = vpop.f32.mrf.mxu1 }
  0xdc   : > { %2174 = vmatmul.mubr.bf16.gmra.mxu0 %v1874_v47  ;;  %v2386_v47 = vrot.slane %v5755_v5, 1  ;;  %v6687_v5 = vld [vmem:[%s9450_s1 + $0x540] ss:$8 sps:$4 sm:$0xff]   ;;  %v2402_v27 = vsel %vm390_vm0, %v2400_v51, %v2401_v57  ;;  %v5774_v51 = vld [vmem:[%s6987_s12 + $0xf0] sm:$0xfe] }
  0xdd   : > { %2183 = vmatprep.mubr.bf16.mxu0 %v1878_v37  ;;  %v7874_v35 = vpop.f32.mrf.mxu1  ;;  %v7910_v37 = vsel %vm390_vm0, %v2388_v62, %v2389_v7  ;;  %v5797_v62 = vld [vmem:[%s6987_s12 + $0x1a8] sm:$0x1]  ;;  %v5879_v7 = vld [vmem:[%s6987_s12 + $0x38] sm:$0xfc] }
  0xde   : > { %2747 = vmatpush2.bf16.msra.mxu1 %v6654_v25  ;;  %v2387_v52 = vsel %vm390_vm0, %v2385_v43, %v2386_v47  ;;  %v6684_v25 = vld [vmem:[%s9450_s1 + $0x640] ss:$8 sps:$4 sm:$0xff]   ;;  %v7925_v47 = vld [vmem:[%s6987_s12 + $0x110] sm:$0x1]  ;;  %v2475_v49 = vpack.c.bf16 %v7910_v37, %v7907_v29  ;;  %v5783_v29 = vld [vmem:[%s6987_s12 + $0x138] sm:$0x1] }
  0xdf   : > { %2748 = vmatprep.subr.bf16.mxu1 %v6659_v42  ;;  %v2477_v30 = vpack.c.bf16 %v2396_v19, %v2387_v52  ;;  %v7901_v22 = vpop.f32.mrf.mxu1  ;;  %v2409_v42 = vrot.slane %v5769_v8, 1  ;;  %v7937_v52 = vld [vmem:[%s6987_s12 + $0x140] sm:$0x1]  ;;  %v6690_v19 = vld [vmem:[%s9450_s1 + $0x630] ss:$8 sps:$4 sm:$0xff]   ;;  %v2449_v1 = vrot.slane %v5797_v62, 1 }
  0xe0   : > { %v2428_v40 = vrot.slane %v7937_v52, 1  ;;  %v6696_v8 = vld [vmem:[%s9450_s1 + $0x620] ss:$8 sps:$4 sm:$0xff]   ;;  %v6716_v37 = vld [vmem:[%s9450_s1 + $0x6f4] ss:$8 sps:$4 sm:$0xff]   ;;  %v2989_v10 = vrot.slane %v5879_v7, 2 }
  0xe1   : > { %v5777_v57 = vld [vmem:[%s6987_s12 + $0x108] sm:$0x1]  ;;  %v6699_v52 = vld [vmem:[%s9450_s1 + $0x610] ss:$8 sps:$4 sm:$0xff]  }
  0xe2   : > { %2749 = vmatpush2.bf16.msra.mxu1 %v6657_v46  ;;  %v2410_v46 = vrot.slane %v5772_v4, 1  ;;  %v5882_v4 = vld [vmem:[%s6987_s12 + $0x50] sm:$0x3] }
  0xe3   : > { %2750 = vmatprep.subr.bf16.mxu1 %v6665_v13  ;;  %v2480_v13 = vpack.c.bf16 %v2414_v28, %v2405_v24  ;;  %v7922_v43 = vpop.f32.mrf.mxu1  ;;  %v6701_v24 = vld [vmem:[%s9450_s1 + $0x614] ss:$8 sps:$4 sm:$0xff]  }
  0xe4   : > { %2184 = vmatmul.mubr.bf16.gmra.mxu0 %v1877_v41  ;;  %v7920_v41 = vld [vmem:[%s6987_s12 + $0xf8] sm:$0xfe]  ;;  %v2411_v21 = vsel %vm390_vm0, %v2409_v42, %v2410_v46  ;;  %v2439_v42 = vrot.slane %v5788_v45, 1  ;;  %v2440_v46 = vrot.slane %v5791_v44, 1  ;;  %v6702_v45 = vld [vmem:[%s9450_s1 + $0x600] ss:$8 sps:$4 sm:$0xff]  }
  0xe5   : > { %2833 = vmatprep.mubr.bf16.mxu0 %v9454_v2  ;;  %v7945_v26 = vpop.f32.mrf.mxu1  ;;  %v2418_v33 = vrot.slane %v7920_v41, 1  ;;  %v2998_v41 = vrot.slane %v5885_v12, 2 }
  0xe6   : > { %2751 = vmatpush2.bf16.msra.mxu1 %v6663_v16  ;;  %v2430_v16 = vrot.slane %v5782_v55, 1  ;;  %v6705_v55 = vld [vmem:[%s9450_s1 + $0x700] ss:$8 sps:$4 sm:$0xff]  }
  0xe7   : > { %2752 = vmatprep.subr.bf16.mxu1 %v6671_v9  ;;  %v2431_v9 = vrot.slane %v5785_v60, 1  ;;  %v7958_v36 = vpop.f32.mrf.mxu1  ;;  %v5780_v60 = vld [vmem:[%s6987_s12 + $0x120] sm:$0xfe] }
  0xe9   : > { %v2432_v53 = vsel %vm390_vm0, %v2430_v16, %v2431_v9 }
  0xea   : > { %2753 = vmatpush2.bf16.msra.mxu1 %v6669_v18  ;;  %v6692_v18 = vld [vmem:[%s9450_s1 + $0x634] ss:$8 sps:$4 sm:$0xff]  }
  0xeb   : > { %2754 = vmatprep.subr.bf16.mxu1 %v6677_v50  ;;  %v7934_v50 = vld [vmem:[%s6987_s12 + $0x128] sm:$0xfe] }
  0xec   : > { %5874 = vmatmul.mubr.msk.bf16.vlgmr.msra.gmra.mxu0 %vm728_vm1, %v2477_v30  ;;  %v6698_v30 = vld [vmem:[%s9450_s1 + $0x624] ss:$8 sps:$4 sm:$0xff]   ;;  %v2427_v39 = vrot.slane %v7934_v50, 1  ;;  %v5796_v50 = vld [vmem:[%s6987_s12 + $0x1a0] sm:$0x1] }
  0xed   : > { %3336 = vmatpush1.bf16.msra.mxu0 %v6672_v56  ;;  %2843 = vmatprep.mubr.bf16.mxu0 %v9454_v2  ;;  %v2397_v56 = vrot.slane %v5762_v0, 1 }
  0xee   : > { %2755 = vmatpush2.bf16.msra.mxu1 %v6675_v63  ;;  %3337 = vmatprep.subr.bf16.mxu0 %v6680_v31  ;;  %v6693_v63 = vld [vmem:[%s9450_s1 + $0x710] ss:$8 sps:$4 sm:$0xff]   ;;  %v2406_v31 = vrot.slane %v5768_v6, 1  ;;  %v2429_v16 = vsel %vm390_vm0, %v2427_v39, %v2428_v40  ;;  %v2446_v40 = vrot.slane %v5796_v50, 1 }
  0xef   : > { %2756 = vmatprep.subr.bf16.mxu1 %v6683_v34  ;;  %v2419_v34 = vrot.slane %v7925_v47, 1  ;;  %v2399_v28 = vsel %vm390_vm0, %v2397_v56, %v2398_v58  ;;  %v5790_v6 = vld [vmem:[%s6987_s12 + $0x170] sm:$0x1]  ;;  %v6704_v56 = vld [vmem:[%s9450_s1 + $0x604] ss:$8 sps:$4 sm:$0xff]  }
  0xf0   : > { %v2408_v54 = vsel %vm390_vm0, %v2406_v31, %v2407_v32 }
  0xf1   : > { %3338 = vmatpush1.bf16.msra.mxu0 %v6678_v59  ;;  %v5794_v59 = vld [vmem:[%s6987_s12 + $0x190] sm:$0xfe]  ;;  %v2420_v15 = vsel %vm390_vm0, %v2418_v33, %v2419_v34  ;;  %v2478_v9 = vpack.c.bf16 %v2408_v54, %v2399_v28  ;;  %v5795_v28 = vld [vmem:[%s6987_s12 + $0x198] sm:$0x1] }
  0xf2   : > { %2757 = vmatpush2.bf16.msra.mxu1 %v6681_v11  ;;  %3339 = vmatprep.subr.bf16.mxu0 %v6686_v3  ;;  %v2479_v11 = vpack.c.bf16 %v2411_v21, %v2402_v27  ;;  %v7976_v3 = vpop.f32.mrf.mxu1  ;;  %v2448_v0 = vrot.slane %v5794_v59, 1  ;;  %v2441_v27 = vsel %vm390_vm0, %v2439_v42, %v2440_v46  ;;  %v2482_v58 = vpack.c.bf16 %v2429_v16, %v2420_v15  ;;  %v6714_v33 = vld [vmem:[%s9450_s1 + $0x6f0] ss:$8 sps:$4 sm:$0xff]   ;;  %v6710_v59 = vld [vmem:[%s9450_s1 + $0x5f4] ss:$8 sps:$4 sm:$0xff]  }
  0xf3   : > { %2758 = vmatprep.subr.bf16.mxu1 %v6689_v61  ;;  %v5888_v61 = vld [vmem:[%s6987_s12 + $0x80] sm:$0x3]  ;;  %v6708_v54 = vld [vmem:[%s9450_s1 + $0x5f0] ss:$8 sps:$4 sm:$0xff]  }
  0xf4   : > { %5875 = vmatmul.mubr.msk.bf16.gmra.mxu0 %vm728_vm1, %v2480_v13  ;;  %v2990_v13 = vrot.slane %v5882_v4, 2  ;;  %v2999_v47 = vrot.slane %v5888_v61, 2  ;;  %v7998_v14 = vpop.f32.mrf.mxu1  ;;  %v2450_v21 = vsel %vm390_vm0, %v2448_v0, %v2449_v1  ;;  %v5789_v61 = vld [vmem:[%s6987_s12 + $0x168] sm:$0x1]  ;;  %v6719_v0 = vld [vmem:[%s9450_s1 + $0x6d4] ss:$8 sps:$4 sm:$0xff]  }
  0xf5   : > { %3340 = vmatpush1.bf16.msra.mxu0 %v6684_v25  ;;  %2853 = vmatprep.mubr.bf16.mxu0 %v9454_v2  ;;  %v2483_v25 = vpack.c.bf16 %v2432_v53, %v2423_v48  ;;  %v2486_v48 = vpack.c.bf16 %v2450_v21, %v2441_v27  ;;  %v6728_v53 = vld [vmem:[%s9450_s1 + $0x794] ss:$8 sps:$4 sm:$0xff]   ;;  %v6711_v46 = vld [vmem:[%s9450_s1 + $0x6e0] ss:$8 sps:$4 sm:$0xff]  }
  0xf6   : > { %2759 = vmatpush2.bf16.msra.mxu1 %v6687_v5  ;;  %3341 = vmatprep.subr.bf16.mxu0 %v6692_v18  ;;  %v5787_v5 = vld [vmem:[%s6987_s12 + $0x158] sm:$0xfe]  ;;  %v2415_v18 = vrot.slane %v5774_v51, 1  ;;  %v3000_v31 = vsel %vm1331_vm2, %v2998_v41, %v2999_v47  ;;  %v8016_v32 = vpop.f32.mrf.mxu1  ;;  %v6713_v51 = vld [vmem:[%s9450_s1 + $0x6e4] ss:$8 sps:$4 sm:$0xff]  }
  0xf7   : > { %3418 = vmatprep.subr.bf16.mxu1 %v6695_v20  ;;  %v2424_v20 = vrot.slane %v5780_v60, 1  ;;  %v2436_v34 = vrot.slane %v5787_v5, 1  ;;  %v5886_v41 = vld [vmem:[%s6987_s12 + $0x70] sm:$0xfc]  ;;  %v5889_v47 = vld [vmem:[%s6987_s12 + $0x88] sm:$0x3] }
  0xf8   : > { %v3002_v27 = vrot.slane %v5889_v47, 2  ;;  %v6735_v47 = vld [vmem:[%s9450_s1 + $0x690] ss:$8 sps:$4 sm:$0xff]  }
  0xf9   : > { %2761 = vmatmul.mubr.bf16.vlgmr.msra.gmra.mxu1 %v2475_v49  ;;  %3342 = vmatpush1.bf16.msra.mxu0 %v6690_v19  ;;  %v5793_v49 = vld [vmem:[%s6987_s12 + $0x188] sm:$0xfe]  ;;  %v2416_v19 = vrot.slane %v5777_v57, 1 }
  0xfa   : > { %3419 = vmatpush1.bf16.msra.mxu1 %v6693_v63  ;;  %3343 = vmatprep.subr.bf16.mxu0 %v6698_v30  ;;  %v2425_v63 = vrot.slane %v5783_v29, 1  ;;  %v2991_v30 = vsel %vm1331_vm2, %v2989_v10, %v2990_v13  ;;  %v2445_v39 = vrot.slane %v5793_v49, 1  ;;  %v5883_v13 = vld [vmem:[%s6987_s12 + $0x58] sm:$0x3]  ;;  %v6722_v49 = vld [vmem:[%s9450_s1 + $0x6c4] ss:$8 sps:$4 sm:$0xff]  }
  0xfb   : > { %2770 = vmatprep.mubr.bf16.mxu1 %v2479_v11  ;;  %3420 = vmatprep.subr.bf16.mxu1 %v6707_v38  ;;  %v2437_v38 = vrot.slane %v5790_v6, 1  ;;  %v3083_v44 = vpack.c.bf16 %v3000_v31, %v2991_v30  ;;  %v2417_v62 = vsel %vm390_vm0, %v2415_v18, %v2416_v19  ;;  %v8033_v11 = vpop.f32.mrf.mxu1  ;;  %v5880_v6 = vld [vmem:[%s6987_s12 + $0x40] sm:$0xfc]  ;;  %v2993_v19 = vrot.slane %v5883_v13, 2  ;;  %v5910_v13 = vld [vmem:[%s6987_s12 + $0x130] sm:$0xfc] }
  0xfc   : > { %5876 = vmatmul.mubr.msk.bf16.gmra.mxu0 %vm728_vm1, %v2483_v25  ;;  %v2426_v7 = vsel %vm390_vm0, %v2424_v20, %v2425_v63  ;;  %v2447_v12 = vsel %vm390_vm0, %v2445_v39, %v2446_v40  ;;  %v2434_v25 = vrot.slane %v5789_v61, 1  ;;  %v3001_v20 = vrot.slane %v5886_v41, 2  ;;  %v6725_v63 = vld [vmem:[%s9450_s1 + $0x6b4] ss:$8 sps:$4 sm:$0xff]   ;;  %v5892_v31 = vld [vmem:[%s6987_s12 + $0xa0] sm:$0xfc] }
  0xfd   : > { %3344 = vmatpush1.bf16.msra.mxu0 %v6696_v8  ;;  %2863 = vmatprep.mubr.bf16.mxu0 %v9454_v2  ;;  %v5786_v8 = vld [vmem:[%s6987_s12 + $0x150] sm:$0xfe]  ;;  %v2438_v4 = vsel %vm390_vm0, %v2436_v34, %v2437_v38  ;;  %v8047_v42 = vpop.f32.mrf.mxu1 }
  0xfe   : > { %3345 = vmatprep.subr.bf16.mxu0 %v6701_v24  ;;  %3421 = vmatpush1.bf16.msra.mxu1 %v6705_v55  ;;  %v5792_v24 = vld [vmem:[%s6987_s12 + $0x180] sm:$0xfe]  ;;  %v2481_v55 = vpack.c.bf16 %v2426_v7, %v2417_v62  ;;  %v2433_v57 = vrot.slane %v5786_v8, 1  ;;  %v2485_v60 = vpack.c.bf16 %v2447_v12, %v2438_v4  ;;  %v3003_v38 = vsel %vm1331_vm2, %v3001_v20, %v3002_v27  ;;  %v5898_v39 = vld [vmem:[%s6987_s12 + $0xd0] sm:$0xfc] }
  0xff   : > { %3422 = vmatprep.subr.bf16.mxu1 %v6716_v37  ;;  %v2442_v29 = vrot.slane %v5792_v24, 1  ;;  %v2443_v37 = vrot.slane %v5795_v28, 1  ;;  %v8058_v10 = vpop.f32.mrf.mxu1  ;;  %v6731_v62 = vld [vmem:[%s9450_s1 + $0x6a4] ss:$8 sps:$4 sm:$0xff]   ;;  %v3010_v8 = vrot.slane %v5892_v31, 2  ;;  %v3019_v12 = vrot.slane %v5898_v39, 2 }
 0x100   : > { %v2435_v1 = vsel %vm390_vm0, %v2433_v57, %v2434_v25  ;;  %v6740_v25 = vld [vmem:[%s9450_s1 + $0x774] ss:$8 sps:$4 sm:$0xff]   ;;  %v5894_v20 = vld [vmem:[%s6987_s12 + $0xb0] sm:$0x3]  ;;  %v3037_v39 = vrot.slane %v5910_v13, 2 }
 0x101   : > { %2771 = vmatmul.mubr.bf16.gmra.mxu1 %v2478_v9  ;;  %3346 = vmatpush1.bf16.msra.mxu0 %v6699_v52  ;;  %v2444_v5 = vsel %vm390_vm0, %v2442_v29, %v2443_v37  ;;  %v6717_v9 = vld [vmem:[%s9450_s1 + $0x6d0] ss:$8 sps:$4 sm:$0xff]   ;;  %v2992_v52 = vrot.slane %v5880_v6, 2  ;;  %v8070_v21 = vpop.f32.mrf.mxu1  ;;  %v8221_v13 = vld [vmem:[%s6987_s12 + $0xa8] sm:$0x3] }
 0x102   : > { %3347 = vmatprep.subr.bf16.mxu0 %v6704_v56  ;;  %2780 = vmatprep.mubr.bf16.mxu1 %v2482_v58  ;;  %v2484_v18 = vpack.c.bf16 %v2444_v5, %v2435_v1  ;;  %v6720_v58 = vld [vmem:[%s9450_s1 + $0x6c0] ss:$8 sps:$4 sm:$0xff]   ;;  %v5907_v6 = vld [vmem:[%s6987_s12 + $0x118] sm:$0x3] }
 0x103   : > { %3423 = vmatpush1.bf16.msra.mxu1 %v6714_v33  ;;  %v5895_v33 = vld [vmem:[%s6987_s12 + $0xb8] sm:$0x3]  ;;  %v8090_v40 = vpop.f32.mrf.mxu1  ;;  %v5904_v5 = vld [vmem:[%s6987_s12 + $0x100] sm:$0xfc] }
 0x104   : > { %5877 = vmatmul.mubr.msk.bf16.gmra.mxu0 %vm728_vm1, %v2486_v48  ;;  %3775 = vmatprep.subr.bf16.mxu1 %v6728_v53  ;;  %v5901_v48 = vld [vmem:[%s6987_s12 + $0xe8] sm:$0x3]  ;;  %v3011_v4 = vrot.slane %v5895_v33, 2 }
 0x105   : > { %3348 = vmatpush1.bf16.msra.mxu0 %v6702_v45  ;;  %3367 = vmatprep.mubr.bf16.mxu0 %v3083_v44  ;;  %v6726_v45 = vld [vmem:[%s9450_s1 + $0x790] ss:$8 sps:$4 sm:$0xff]   ;;  %v3020_v61 = vrot.slane %v5901_v48, 2  ;;  %v8105_v24 = vpop.f32.mrf.mxu1 }
 0x106   : > { %3349 = vmatprep.subr.bf16.mxu0 %v6710_v59  ;;  %9456 = vst [vmem:[#allocation2_spill] sm:$0xff] %v8105_v24  ;;  %v6242_v24 = vld [vmem:[%s6987_s12 + $0x80] sm:$0x3] }
 0x107   : > { %v3021_v1 = vsel %vm1331_vm2, %v3019_v12, %v3020_v61  ;;  %v3008_v61 = vrot.slane %v5894_v20, 2  ;;  %v6767_v20 = vld [vmem:[%s9450_s1 + $0x844] ss:$8 sps:$4 sm:$0xff]  }
 0x109   : > { %2781 = vmatmul.mubr.bf16.gmra.mxu1 %v2481_v55  ;;  %3350 = vmatpush1.bf16.msra.mxu0 %v6708_v54  ;;  %v6734_v54 = vld [vmem:[%s9450_s1 + $0x784] ss:$8 sps:$4 sm:$0xff]  }
 0x10a   : > { %3351 = vmatprep.subr.bf16.mxu0 %v6713_v51  ;;  %2790 = vmatprep.mubr.bf16.mxu1 %v2485_v60  ;;  %v6732_v51 = vld [vmem:[%s9450_s1 + $0x780] ss:$8 sps:$4 sm:$0xff]  }
 0x10c   : > { %v775_v15 = vpop.f32.mrf.mxu0 }
 0x10d   : > { %3352 = vmatpush2.bf16.msra.mxu0 %v6711_v46  ;;  %v849_v16 = vadd.f32 %v7834_v17, %v775_v15  ;;  %v8134_v46 = vld [vmem:[%s6987_s12 + $0x30] sm:$0xfc]  ;;  %v8148_v15 = vld [vmem:[%s6987_s12 + $0x60] sm:$0xfc] }
 0x10e   : > { %v777_v50 = vpop.f32.mrf.mxu0  ;;  %3353 = vmatprep.subr.bf16.mxu0 %v6719_v0  ;;  %v8137_v0 = vld [vmem:[%s6987_s12 + $0x48] sm:$0x3] }
 0x10f   : > { %v851_v17 = vadd.f32 %v7853_v23, %v777_v50  ;;  %v2994_v23 = vsel %vm1331_vm2, %v2992_v52, %v2993_v19  ;;  %v6743_v50 = vld [vmem:[%s9450_s1 + $0x684] ss:$8 sps:$4 sm:$0xff]   ;;  %v5887_v52 = vld [vmem:[%s6987_s12 + $0x78] sm:$0x3]  ;;  %v5891_v19 = vld [vmem:[%s6987_s12 + $0x98] sm:$0xfc] }
 0x110   : > { %v779_v56 = vpop.f32.mrf.mxu0  ;;  %v3084_v59 = vpack.c.bf16 %v3003_v38, %v2994_v23  ;;  %v5900_v23 = vld [vmem:[%s6987_s12 + $0xe0] sm:$0x3]  ;;  %v3029_v38 = vrot.slane %v5907_v6, 2  ;;  %v3007_v12 = vrot.slane %v5891_v19, 2  ;;  %v5899_v19 = vld [vmem:[%s6987_s12 + $0xd8] sm:$0x3] }
 0x111   : > { %2791 = vmatmul.mubr.bf16.gmra.mxu1 %v2484_v18  ;;  %3354 = vmatpush2.bf16.msra.mxu0 %v6717_v9  ;;  %v8080_v30 = vadd.f32 %v7874_v35, %v779_v56  ;;  %v6723_v35 = vld [vmem:[%s9450_s1 + $0x6b0] ss:$8 sps:$4 sm:$0xff]  }
 0x112   : > { %v8084_v34 = vpop.f32.mrf.mxu0  ;;  %3355 = vmatprep.subr.bf16.mxu0 %v6722_v49  ;;  %3440 = vmatprep.mubr.bf16.mxu1 %v9454_v2  ;;  %v6738_v49 = vld [vmem:[%s9450_s1 + $0x770] ss:$8 sps:$4 sm:$0xff]  }
 0x114   : > { %v785_v53 = vpop.f32.mrf.mxu0 }
 0x115   : > { %3356 = vmatpush2.bf16.msra.mxu0 %v6720_v58  ;;  %v8100_v44 = vadd.f32 %v7922_v43, %v785_v53  ;;  %v6729_v43 = vld [vmem:[%s9450_s1 + $0x6a0] ss:$8 sps:$4 sm:$0xff]  }
 0x116   : > { %v787_v7 = vpop.f32.mrf.mxu0  ;;  %3357 = vmatprep.subr.bf16.mxu0 %v6725_v63  ;;  %v3028_v63 = vrot.slane %v5904_v5, 2  ;;  %v8215_v5 = vld [vmem:[%s6987_s12 + $0x190] sm:$0xfc] }
 0x117   : > { %v8108_v28 = vadd.f32 %v7945_v26, %v787_v7  ;;  %v6737_v26 = vld [vmem:[%s9450_s1 + $0x694] ss:$8 sps:$4 sm:$0xff]  }
 0x118   : > { %v789_v55 = vpop.f32.mrf.mxu0  ;;  %v6749_v7 = vld [vmem:[%s9450_s1 + $0x674] ss:$8 sps:$4 sm:$0xff]  }
 0x119   : > { %3358 = vmatpush2.bf16.msra.mxu0 %v6723_v35  ;;  %6002 = vmatmul.mubr.msk.bf16.vlgmr.msra.gmra.mxu1 %vm728_vm1, %v3084_v59  ;;  %v8124_v57 = vadd.f32 %v7958_v36, %v789_v55  ;;  %v1123_v60 = vpop.f32.mrf.mxu1  ;;  %v3012_v36 = vsel %vm1331_vm2, %v3010_v8, %v3011_v4  ;;  %v2987_v59 = vrot.slane %v8137_v0, 2  ;;  %v2995_v8 = vrot.slane %v8148_v15, 2  ;;  %v6752_v55 = vld [vmem:[%s9450_s1 + $0x754] ss:$8 sps:$4 sm:$0xff]  }
 0x11a   : > { %3776 = vmatpush1.bf16.msra.mxu1 %v6726_v45  ;;  %v8129_v29 = vadd.f32 %v1123_v60, %v849_v16  ;;  %v8131_v37 = vpop.f32.mrf.mxu0  ;;  %3359 = vmatprep.subr.bf16.mxu0 %v6731_v62  ;;  %v5913_v16 = vld [vmem:[%s6987_s12 + $0x148] sm:$0x3]  ;;  %v3087_v58 = vpack.c.bf16 %v3021_v1, %v3012_v36  ;;  %v2986_v45 = vrot.slane %v8134_v46, 2  ;;  %v2996_v4 = vrot.slane %v5887_v52, 2  ;;  %v8209_v36 = vld [vmem:[%s6987_s12 + $0x160] sm:$0xfc] }
 0x11b   : > { %v1125_v41 = vpop.f32.mrf.mxu1  ;;  %3777 = vmatprep.subr.bf16.mxu1 %v6734_v54  ;;  %3450 = vmatprep.mubr.bf16.mxu1 %v9454_v2  ;;  %v3038_v48 = vrot.slane %v5913_v16, 2  ;;  %v3030_v46 = vsel %vm1331_vm2, %v3028_v63, %v3029_v38  ;;  %v8212_v1 = vld [vmem:[%s6987_s12 + $0x178] sm:$0x3]  ;;  %v8237_v52 = vsel %vm1331_vm2, %v3007_v12, %v3008_v61  ;;  %v8251_v63 = vld [vmem:[%s6987_s12 + $0x110] sm:$0x3] }
 0x11c   : > { %v8152_v9 = vadd.f32 %v1125_v41, %v851_v17  ;;  %v795_v18 = vpop.f32.mrf.mxu0  ;;  %v5897_v17 = vld [vmem:[%s6987_s12 + $0xc8] sm:$0xfc]  ;;  %v8224_v41 = vld [vmem:[%s6987_s12 + $0xc0] sm:$0xfc] }
 0x11d   : > { %3360 = vmatpush2.bf16.msra.mxu0 %v6729_v43  ;;  %v8164_v27 = vadd.f32 %v7998_v14, %v795_v18  ;;  %v1127_v56 = vpop.f32.mrf.mxu1  ;;  %v6741_v14 = vld [vmem:[%s9450_s1 + $0x680] ss:$8 sps:$4 sm:$0xff]   ;;  %v3039_v0 = vsel %vm1331_vm2, %v3037_v39, %v3038_v48  ;;  %v6750_v18 = vld [vmem:[%s9450_s1 + $0x750] ss:$8 sps:$4 sm:$0xff]   ;;  %v3013_v61 = vrot.slane %v8224_v41, 2 }
 0x11e   : > { %3778 = vmatpush1.bf16.msra.mxu1 %v6732_v51  ;;  %v8168_v31 = vadd.f32 %v1127_v56, %v8080_v30  ;;  %v797_v33 = vpop.f32.mrf.mxu0  ;;  %3361 = vmatprep.subr.bf16.mxu0 %v6737_v26  ;;  %v6746_v30 = vld [vmem:[%s9450_s1 + $0x764] ss:$8 sps:$4 sm:$0xff]   ;;  %v3016_v51 = vrot.slane %v5897_v17, 2  ;;  %v3017_v26 = vrot.slane %v5900_v23, 2  ;;  %v3046_v23 = vrot.slane %v8209_v36, 2 }
 0x11f   : > { %v8172_v53 = vadd.f32 %v8016_v32, %v797_v33  ;;  %v8174_v35 = vpop.f32.mrf.mxu1  ;;  %3779 = vmatprep.subr.bf16.mxu1 %v6740_v25  ;;  %v6744_v32 = vld [vmem:[%s9450_s1 + $0x760] ss:$8 sps:$4 sm:$0xff]   ;;  %v3090_v33 = vpack.c.bf16 %v3039_v0, %v3030_v46  ;;  %v3026_v46 = vrot.slane %v8251_v63, 2  ;;  %v8302_v41 = vld [vmem:[%s6987_s12 + $0xf0] sm:$0xfc] }
 0x120   : > { %v799_v62 = vpop.f32.mrf.mxu0  ;;  %v3018_v17 = vsel %vm1331_vm2, %v3016_v51, %v3017_v26  ;;  %v8258_v48 = vld [vmem:[%s6987_s12 + $0x128] sm:$0xfc] }
 0x121   : > { %3362 = vmatpush2.bf16.msra.mxu0 %v6735_v47  ;;  %v8192_v43 = vadd.f32 %v8033_v11, %v799_v62  ;;  %v1133_v54 = vpop.f32.mrf.mxu1  ;;  %6003 = vmatmul.mubr.msk.bf16.gmra.mxu1 %vm728_vm1, %v3087_v58  ;;  %v8204_v11 = vld [vmem:[%s6987_s12 + $0x90] sm:$0xfc]  ;;  %v5925_v47 = vld [vmem:[%s6987_s12 + $0x1a8] sm:$0x3]  ;;  %v8248_v58 = vld [vmem:[%s6987_s12 + $0xf8] sm:$0xfc]  ;;  %v3086_v12 = vpack.c.bf16 %v3018_v17, %v8237_v52 }
 0x122   : > { %3780 = vmatpush1.bf16.msra.mxu1 %v6738_v49  ;;  %v8199_v60 = vadd.f32 %v1133_v54, %v8100_v44  ;;  %v8201_v25 = vpop.f32.mrf.mxu0  ;;  %3363 = vmatprep.subr.bf16.mxu0 %v6743_v50  ;;  %v6747_v44 = vld [vmem:[%s9450_s1 + $0x670] ss:$8 sps:$4 sm:$0xff]   ;;  %v2988_v49 = vsel %vm1331_vm2, %v2986_v45, %v2987_v59  ;;  %v2997_v50 = vsel %vm1331_vm2, %v2995_v8, %v2996_v4  ;;  %v6753_v4 = vld [vmem:[%s9450_s1 + $0x740] ss:$8 sps:$4 sm:$0xff]   ;;  %v3014_v54 = vrot.slane %v5899_v19, 2 }
 0x123   : > { %v1135_v6 = vpop.f32.mrf.mxu1  ;;  %3781 = vmatprep.subr.bf16.mxu1 %v6746_v30  ;;  %3460 = vmatprep.mubr.bf16.mxu1 %v9454_v2  ;;  %v3056_v30 = vrot.slane %v5925_v47, 2  ;;  %v3082_v62 = vpack.c.bf16 %v2997_v50, %v2988_v49  ;;  %v3034_v0 = vrot.slane %v8258_v48, 2  ;;  %v8305_v47 = vld [vmem:[%s6987_s12 + $0x108] sm:$0x3]  ;;  %v6756_v52 = vld [vmem:[%s9450_s1 + $0x730] ss:$8 sps:$4 sm:$0xff]  }
 0x124   : > { %v8229_v15 = vadd.f32 %v1135_v6, %v8108_v28  ;;  %v805_v16 = vpop.f32.mrf.mxu0  ;;  %v6776_v6 = vld [vmem:[%s9450_s1 + $0x834] ss:$8 sps:$4 sm:$0xff]  }
 0x125   : > { %3364 = vmatpush2.bf16.msra.mxu0 %v6741_v14  ;;  %v8244_v28 = vadd.f32 %v8058_v10, %v805_v16  ;;  %v1137_v56 = vpop.f32.mrf.mxu1  ;;  %v3047_v10 = vrot.slane %v8212_v1, 2  ;;  %v3055_v14 = vrot.slane %v8215_v5, 2  ;;  %v8308_v16 = vld [vmem:[%s6987_s12 + $0x120] sm:$0xfc]  ;;  %v6010_v17 = vld [vmem:[%s6987_s12 + $0x98] sm:$0xff] }
 0x126   : > { %3782 = vmatpush1.bf16.msra.mxu1 %v6744_v32  ;;  %v8255_v38 = vadd.f32 %v1137_v56, %v8124_v57  ;;  %v807_v39 = vpop.f32.mrf.mxu0  ;;  %3365 = vmatprep.subr.bf16.mxu0 %v6749_v7  ;;  %v6755_v57 = vld [vmem:[%s9450_s1 + $0x744] ss:$8 sps:$4 sm:$0xff]   ;;  %v3004_v32 = vrot.slane %v8204_v11, 2  ;;  %v5912_v7 = vld [vmem:[%s6987_s12 + $0x140] sm:$0x3]  ;;  %v3025_v11 = vrot.slane %v8248_v58, 2 }
 0x127   : > { %v8263_v45 = vadd.f32 %v8070_v21, %v807_v39  ;;  %v8265_v59 = vpop.f32.mrf.mxu1  ;;  %3783 = vmatprep.subr.bf16.mxu1 %v6752_v55  ;;  %v3005_v21 = vrot.slane %v8221_v13, 2  ;;  %v6765_v55 = vld [vmem:[%s9450_s1 + $0x840] ss:$8 sps:$4 sm:$0xff]   ;;  %v3035_v5 = vrot.slane %v5912_v7, 2  ;;  %v3057_v13 = vsel %vm1331_vm2, %v3055_v14, %v3056_v30  ;;  %v5918_v30 = vld [vmem:[%s6987_s12 + $0x170] sm:$0x3] }
 0x128   : > { %v809_v8 = vpop.f32.mrf.mxu0  ;;  %v6007_v56 = vld [vmem:[%s6987_s12 + $0x68] sm:$0xff] }
 0x129   : > { %3366 = vmatpush2.bf16.msra.mxu0 %v6747_v44  ;;  %v8282_v51 = vadd.f32 %v8090_v40, %v809_v8  ;;  %v1143_v26 = vpop.f32.mrf.mxu1  ;;  %6004 = vmatmul.mubr.msk.bf16.gmra.mxu1 %vm728_vm1, %v3090_v33  ;;  %v6758_v40 = vld [vmem:[%s9450_s1 + $0x734] ss:$8 sps:$4 sm:$0xff]   ;;  %v3048_v44 = vsel %vm1331_vm2, %v3046_v23, %v3047_v10  ;;  %v3006_v19 = vsel %vm1331_vm2, %v3004_v32, %v3005_v21  ;;  %v6774_v23 = vld [vmem:[%s9450_s1 + $0x830] ss:$8 sps:$4 sm:$0xff]   ;;  %v5924_v8 = vld [vmem:[%s6987_s12 + $0x1a0] sm:$0x3] }
 0x12a   : > { %3784 = vmatpush1.bf16.msra.mxu1 %v6750_v18  ;;  %v8289_v36 = vadd.f32 %v1143_v26, %v8164_v27  ;;  %v8291_v1 = vpop.f32.mrf.mxu0  ;;  %3858 = vmatprep.subr.bf16.mxu0 %v6767_v20  ;;  %v8311_v18 = vld [vmem:[%s6987_s12 + $0x138] sm:$0x3]  ;;  %v3015_v20 = vsel %vm1331_vm2, %v3013_v61, %v3014_v54  ;;  %v5915_v33 = vld [vmem:[%s6987_s12 + $0x158] sm:$0xfc]  ;;  %v3093_v39 = vpack.c.bf16 %v3057_v13, %v3048_v44  ;;  %v6759_v21 = vld [vmem:[%s9450_s1 + $0x720] ss:$8 sps:$4 sm:$0xff]  }
 0x12b   : > { %9457 = vst [vmem:[#allocation3_spill] sm:$0xff] %v8291_v1  ;;  %v1145_v27 = vpop.f32.mrf.mxu1  ;;  %3785 = vmatprep.subr.bf16.mxu1 %v6755_v57  ;;  %3470 = vmatprep.mubr.bf16.mxu1 %v9454_v2  ;;  %v3036_v14 = vsel %vm1331_vm2, %v3034_v0, %v3035_v5  ;;  %v6782_v57 = vld [vmem:[%s9450_s1 + $0x824] ss:$8 sps:$4 sm:$0xff]   ;;  %v3022_v61 = vrot.slane %v8302_v41, 2  ;;  %v3023_v54 = vrot.slane %v8305_v47, 2  ;;  %v3032_v26 = vrot.slane %v8311_v18, 2 }
 0x12c   : > { %v8315_v49 = vadd.f32 %v1145_v27, %v8172_v53  ;;  %3368 = vmatmul.mubr.bf16.vlgmr.msra.gmra.mxu0 %v3082_v62  ;;  %v1196_v50 = vpop.f32.mrf.mxu0  ;;  %v6761_v53 = vld [vmem:[%s9450_s1 + $0x724] ss:$8 sps:$4 sm:$0xff]   ;;  %v3043_v0 = vrot.slane %v5915_v33, 2  ;;  %v6780_v5 = vld [vmem:[%s9450_s1 + $0x820] ss:$8 sps:$4 sm:$0xff]   ;;  %v3053_v13 = vrot.slane %v5924_v8, 2 }
 0x12d   : > { %v1147_v58 = vpop.f32.mrf.mxu1  ;;  %v8325_v63 = vadd.f32 %v1196_v50, %v8129_v29  ;;  %3377 = vmatprep.mubr.bf16.mxu0 %v3086_v12  ;;  %3859 = vmatpush1.bf16.msra.mxu0 %v6765_v55  ;;  %v3027_v29 = vsel %vm1331_vm2, %v3025_v11, %v3026_v46  ;;  %v5921_v62 = vld [vmem:[%s6987_s12 + $0x188] sm:$0xfc]  ;;  %v3031_v55 = vrot.slane %v8308_v16, 2  ;;  %v6764_v47 = vld [vmem:[%s9450_s1 + $0x814] ss:$8 sps:$4 sm:$0xff]  }
 0x12e   : > { %3786 = vmatpush1.bf16.msra.mxu1 %v6753_v4  ;;  %v8335_v48 = vadd.f32 %v1147_v58, %v8192_v43  ;;  %v1198_v10 = vpop.f32.mrf.mxu0  ;;  %3860 = vmatprep.subr.bf16.mxu0 %v6776_v6  ;;  %v3085_v43 = vpack.c.bf16 %v3015_v20, %v3006_v19  ;;  %v3523_v4 = vpack.c.bf16 %v6010_v17, %v6007_v56  ;;  %v6788_v27 = vld [vmem:[%s9450_s1 + $0x8c4] ss:$8 sps:$4 sm:$0xff]   ;;  %v6762_v18 = vld [vmem:[%s9450_s1 + $0x810] ss:$8 sps:$4 sm:$0xff]  }
 0x12f   : > { %v8344_v32 = vpop.f32.mrf.mxu1  ;;  %v8347_v7 = vadd.f32 %v1198_v10, %v8152_v9  ;;  %3787 = vmatprep.subr.bf16.mxu1 %v6758_v40  ;;  %v3089_v46 = vpack.c.bf16 %v3036_v14, %v3027_v29  ;;  %v3044_v40 = vrot.slane %v5918_v30, 2  ;;  %v5914_v50 = vld [vmem:[%s6987_s12 + $0x150] sm:$0xfc]  ;;  %v3024_v56 = vsel %vm1331_vm2, %v3022_v61, %v3023_v54  ;;  %v6770_v10 = vld [vmem:[%s9450_s1 + $0x804] ss:$8 sps:$4 sm:$0xff]  }
 0x130   : > { %v1200_v12 = vpop.f32.mrf.mxu0  ;;  %v3033_v17 = vsel %vm1331_vm2, %v3031_v55, %v3032_v26  ;;  %v3040_v30 = vrot.slane %v5914_v50, 2  ;;  %v6771_v26 = vld [vmem:[%s9450_s1 + $0x7f0] ss:$8 sps:$4 sm:$0xff]   ;;  %v6791_v50 = vld [vmem:[%s9450_s1 + $0x7c4] ss:$8 sps:$4 sm:$0xff]  }
 0x131   : > { %v1153_v11 = vpop.f32.mrf.mxu1  ;;  %v8358_v9 = vadd.f32 %v1200_v12, %v8168_v31  ;;  %6005 = vmatmul.mubr.msk.bf16.gmra.mxu1 %vm728_vm1, %v3093_v39  ;;  %3861 = vmatpush1.bf16.msra.mxu0 %v6774_v23  ;;  %v3052_v31 = vrot.slane %v5921_v62, 2  ;;  %v3045_v33 = vsel %vm1331_vm2, %v3043_v0, %v3044_v40  ;;  %v5923_v39 = vld [vmem:[%s6987_s12 + $0x198] sm:$0x3]  ;;  %v3088_v14 = vpack.c.bf16 %v3033_v17, %v3024_v56  ;;  %v6773_v12 = vld [vmem:[%s9450_s1 + $0x7f4] ss:$8 sps:$4 sm:$0xff]  }
 0x132   : > { %3788 = vmatpush1.bf16.msra.mxu1 %v6756_v52  ;;  %v8365_v6 = vadd.f32 %v1153_v11, %v8244_v28  ;;  %v8367_v44 = vpop.f32.mrf.mxu0  ;;  %3862 = vmatprep.subr.bf16.mxu0 %v6782_v57  ;;  %v5917_v52 = vld [vmem:[%s6987_s12 + $0x168] sm:$0x3]  ;;  %v3050_v8 = vrot.slane %v5923_v39, 2  ;;  %v6014_v39 = vld [vmem:[%s6987_s12 + $0xd0] sm:$0xff]  ;;  %v6245_v1 = vld [vmem:[%s6987_s12 + $0x98] sm:$0xfc] }
 0x133   : > { %v1155_v41 = vpop.f32.mrf.mxu1  ;;  %3789 = vmatprep.subr.bf16.mxu1 %v6761_v53  ;;  %3807 = vmatprep.mubr.bf16.mxu1 %v3523_v4  ;;  %v3054_v23 = vsel %vm1331_vm2, %v3052_v31, %v3053_v13  ;;  %v3041_v62 = vrot.slane %v5917_v52, 2  ;;  %v6777_v31 = vld [vmem:[%s9450_s1 + $0x7e0] ss:$8 sps:$4 sm:$0xff]  }
 0x134   : > { %v8376_v28 = vadd.f32 %v1155_v41, %v8263_v45  ;;  %3378 = vmatmul.mubr.bf16.gmra.mxu0 %v3085_v43  ;;  %v1206_v16 = vpop.f32.mrf.mxu0  ;;  %v5920_v45 = vld [vmem:[%s6987_s12 + $0x180] sm:$0xfc]  ;;  %v3092_v57 = vpack.c.bf16 %v3054_v23, %v3045_v33  ;;  %v6795_v33 = vld [vmem:[%s9450_s1 + $0x7b0] ss:$8 sps:$4 sm:$0xff]  }
 0x135   : > { %v1157_v19 = vpop.f32.mrf.mxu1  ;;  %v8384_v20 = vadd.f32 %v1206_v16, %v8199_v60  ;;  %3387 = vmatprep.mubr.bf16.mxu0 %v3089_v46  ;;  %3863 = vmatpush1.bf16.msra.mxu0 %v6780_v5  ;;  %v3049_v43 = vrot.slane %v5920_v45, 2  ;;  %v3042_v61 = vsel %vm1331_vm2, %v3040_v30, %v3041_v62  ;;  %v6011_v41 = vld [vmem:[%s6987_s12 + $0xa0] sm:$0xff]  ;;  %v6783_v16 = vld [vmem:[%s9450_s1 + $0x7d0] ss:$8 sps:$4 sm:$0xff]   ;;  %v6794_v45 = vld [vmem:[%s9450_s1 + $0x8b4] ss:$8 sps:$4 sm:$0xff]  }
 0x136   : > { %3790 = vmatpush1.bf16.msra.mxu1 %v6759_v21  ;;  %v1158_v58 = vadd.f32 %v1157_v19, %v8282_v51  ;;  %v1208_v53 = vpop.f32.mrf.mxu0  ;;  %4382 = vmatprep.subr.bf16.mxu0 %v6788_v27  ;;  %v6786_v56 = vld [vmem:[%s9450_s1 + $0x8c0] ss:$8 sps:$4 sm:$0xff]   ;;  %v6803_v30 = vld [vmem:[%s9450_s1 + $0x7a4] ss:$8 sps:$4 sm:$0xff]  }
 0x137   : > { %v8394_v60 = vadd.f32 %v1208_v53, %v8229_v15  ;;  %3791 = vmatprep.subr.bf16.mxu1 %v6764_v47  ;;  %v6768_v15 = vld [vmem:[%s9450_s1 + $0x800] ss:$8 sps:$4 sm:$0xff]   ;;  %v3051_v54 = vsel %vm1331_vm2, %v3049_v43, %v3050_v8  ;;  %v6792_v53 = vld [vmem:[%s9450_s1 + $0x8b0] ss:$8 sps:$4 sm:$0xff]  }
 0x138   : > { %v1210_v29 = vpop.f32.mrf.mxu0  ;;  %v3091_v0 = vpack.c.bf16 %v3051_v54, %v3042_v61  ;;  %v6798_v43 = vld [vmem:[%s9450_s1 + $0x8a0] ss:$8 sps:$4 sm:$0xff]   ;;  %v6804_v54 = vld [vmem:[%s9450_s1 + $0x890] ss:$8 sps:$4 sm:$0xff]  }
 0x139   : > { %v8400_v51 = vadd.f32 %v1210_v29, %v8255_v38  ;;  %v6800_v29 = vld [vmem:[%s9450_s1 + $0x8a4] ss:$8 sps:$4 sm:$0xff]   ;;  %v6801_v8 = vld [vmem:[%s9450_s1 + $0x7a0] ss:$8 sps:$4 sm:$0xff]  }
 0x13a   : > { %3792 = vmatpush2.bf16.msra.mxu1 %v6762_v18  ;;  %v8402_v4 = vpop.f32.mrf.mxu0 }
 0x13b   : > { %3793 = vmatprep.subr.bf16.mxu1 %v6770_v10  ;;  %v6017_v10 = vld [vmem:[%s6987_s12 + $0x100] sm:$0xff] }
 0x13c   : > { %3388 = vmatmul.mubr.bf16.gmra.mxu0 %v3088_v14  ;;  %v1216_v21 = vpop.f32.mrf.mxu0 }
 0x13d   : > { %v8411_v38 = vadd.f32 %v1216_v21, %v8289_v36  ;;  %3397 = vmatprep.mubr.bf16.mxu0 %v3092_v57  ;;  %v6779_v36 = vld [vmem:[%s9450_s1 + $0x7e4] ss:$8 sps:$4 sm:$0xff]   ;;  %v3527_v57 = vpack.c.bf16 %v6017_v10, %v6014_v39  ;;  %v6009_v21 = vld [vmem:[%s6987_s12 + $0x90] sm:$0xff] }
 0x13e   : > { %3794 = vmatpush2.bf16.msra.mxu1 %v6768_v15  ;;  %v1218_v55 = vpop.f32.mrf.mxu0  ;;  %v6806_v15 = vld [vmem:[%s9450_s1 + $0x894] ss:$8 sps:$4 sm:$0xff]  }
 0x13f   : > { %v8419_v11 = vadd.f32 %v1218_v55, %v8315_v49  ;;  %3795 = vmatprep.subr.bf16.mxu1 %v6773_v12  ;;  %v6785_v49 = vld [vmem:[%s9450_s1 + $0x7d4] ss:$8 sps:$4 sm:$0xff]   ;;  %v6006_v12 = vld [vmem:[%s6987_s12 + $0x60] sm:$0xff] }
 0x140   : > { %v1220_v46 = vpop.f32.mrf.mxu0  ;;  %v6809_v55 = vld [vmem:[%s9450_s1 + $0x974] ss:$8 sps:$4 sm:$0xff]  }
 0x141   : > { %v8425_v40 = vadd.f32 %v1220_v46, %v8335_v48  ;;  %v6008_v48 = vld [vmem:[%s6987_s12 + $0x70] sm:$0xff]  ;;  %v6812_v46 = vld [vmem:[%s9450_s1 + $0x884] ss:$8 sps:$4 sm:$0xff]  }
 0x142   : > { %3796 = vmatpush2.bf16.msra.mxu1 %v6771_v26  ;;  %v8427_v5 = vpop.f32.mrf.mxu0  ;;  %v3524_v52 = vpack.c.bf16 %v6011_v41, %v6008_v48  ;;  %v6013_v26 = vld [vmem:[%s6987_s12 + $0xc8] sm:$0xff]  ;;  %v3522_v48 = vpack.c.bf16 %v6009_v21, %v6006_v12  ;;  %v6022_v12 = vld [vmem:[%s6987_s12 + $0x158] sm:$0xff] }
 0x143   : > { %9458 = vst [vmem:[#allocation4_spill] sm:$0xff] %v8427_v5  ;;  %3797 = vmatprep.subr.bf16.mxu1 %v6779_v36  ;;  %v6807_v36 = vld [vmem:[%s9450_s1 + $0x970] ss:$8 sps:$4 sm:$0xff]   ;;  %v6111_v41 = vld [vmem:[%s6987_s12 + $0x68] sm:$0xfe] }
 0x144   : > { %3398 = vmatmul.mubr.bf16.gmra.mxu0 %v3091_v0  ;;  %v1226_v13 = vpop.f32.mrf.mxu0  ;;  %v6016_v0 = vld [vmem:[%s6987_s12 + $0xf8] sm:$0xff] }
 0x145   : > { %v8436_v27 = vadd.f32 %v1226_v13, %v8365_v6  ;;  %3880 = vmatprep.mubr.bf16.mxu0 %v9454_v2  ;;  %v6023_v13 = vld [vmem:[%s6987_s12 + $0x160] sm:$0xff] }
 0x146   : > { %3798 = vmatpush2.bf16.msra.mxu1 %v6777_v31  ;;  %v1228_v47 = vpop.f32.mrf.mxu0 }
 0x147   : > { %v8445_v18 = vadd.f32 %v1228_v47, %v8376_v28  ;;  %3799 = vmatprep.subr.bf16.mxu1 %v6785_v49  ;;  %v6789_v28 = vld [vmem:[%s9450_s1 + $0x7c0] ss:$8 sps:$4 sm:$0xff]   ;;  %v6020_v49 = vld [vmem:[%s6987_s12 + $0x130] sm:$0xff] }
 0x148   : > { %v1230_v6 = vpop.f32.mrf.mxu0  ;;  %v3530_v39 = vpack.c.bf16 %v6023_v13, %v6020_v49  ;;  %v6813_v13 = vld [vmem:[%s9450_s1 + $0x870] ss:$8 sps:$4 sm:$0xff]  }
 0x149   : > { %v8450_v19 = vadd.f32 %v1230_v6, %v1158_v58  ;;  %v6797_v58 = vld [vmem:[%s9450_s1 + $0x7b4] ss:$8 sps:$4 sm:$0xff]   ;;  %v3526_v6 = vpack.c.bf16 %v6016_v0, %v6013_v26 }
 0x14a   : > { %3800 = vmatpush2.bf16.msra.mxu1 %v6783_v16  ;;  %v8455_v17 = vpop.f32.mrf.mxu0  ;;  %v6114_v16 = vld [vmem:[%s6987_s12 + $0x80] sm:$0x1] }
 0x14b   : > { %9459 = vst [vmem:[#allocation5_spill] sm:$0xff] %v8455_v17  ;;  %3801 = vmatprep.subr.bf16.mxu1 %v6791_v50  ;;  %v8523_v50 = vpop.f32.mrf.mxu1 }
 0x14c   : > { %6106 = vmatmul.mubr.msk.bf16.vlgmr.msra.gmra.mxu0 %vm728_vm1, %v3524_v52  ;;  %v1788_v23 = vpop.f32.mrf.mxu0  ;;  %9460 = vst [vmem:[#allocation6_spill] sm:$0xff] %v8523_v50  ;;  %v6821_v52 = vld [vmem:[%s9450_s1 + $0x964] ss:$8 sps:$4 sm:$0xff]  }
 0x14d   : > { %4383 = vmatpush1.bf16.msra.mxu0 %v6786_v56  ;;  %3890 = vmatprep.mubr.bf16.mxu0 %v9454_v2  ;;  %v6117_v56 = vld [vmem:[%s6987_s12 + $0x98] sm:$0xfe] }
 0x14e   : > { %3802 = vmatpush2.bf16.msra.mxu1 %v6789_v28  ;;  %4384 = vmatprep.subr.bf16.mxu0 %v6794_v45  ;;  %v8479_v14 = vpop.f32.mrf.mxu0  ;;  %v6120_v28 = vld [vmem:[%s6987_s12 + $0xb0] sm:$0x1]  ;;  %v6810_v45 = vld [vmem:[%s9450_s1 + $0x880] ss:$8 sps:$4 sm:$0xff]  }
 0x14f   : > { %3803 = vmatprep.subr.bf16.mxu1 %v6797_v58  ;;  %v6815_v58 = vld [vmem:[%s9450_s1 + $0x874] ss:$8 sps:$4 sm:$0xff]   ;;  %v4046_v26 = vrot.slane %v6120_v28, 1 }
 0x150   : > { %v8484_v62 = vpop.f32.mrf.mxu0 }
 0x151   : > { %4385 = vmatpush1.bf16.msra.mxu0 %v6792_v53  ;;  %v6012_v53 = vld [vmem:[%s6987_s12 + $0xc0] sm:$0xff] }
 0x152   : > { %3804 = vmatpush2.bf16.msra.mxu1 %v6795_v33  ;;  %4386 = vmatprep.subr.bf16.mxu0 %v6800_v29  ;;  %v8497_v61 = vpop.f32.mrf.mxu0  ;;  %v6015_v29 = vld [vmem:[%s6987_s12 + $0xf0] sm:$0xff] }
 0x153   : > { %3805 = vmatprep.subr.bf16.mxu1 %v6803_v30  ;;  %v4036_v30 = vrot.slane %v6111_v41, 1 }
 0x154   : > { %6107 = vmatmul.mubr.msk.bf16.gmra.mxu0 %vm728_vm1, %v3527_v57  ;;  %v8514_v31 = vpop.f32.mrf.mxu0  ;;  %v4037_v57 = vrot.slane %v6114_v16, 1  ;;  %v6026_v16 = vld [vmem:[%s6987_s12 + $0x190] sm:$0xff] }
 0x155   : > { %4387 = vmatpush1.bf16.msra.mxu0 %v6798_v43  ;;  %3900 = vmatprep.mubr.bf16.mxu0 %v9454_v2 }
 0x156   : > { %3806 = vmatpush2.bf16.msra.mxu1 %v6801_v8  ;;  %4388 = vmatprep.subr.bf16.mxu0 %v6806_v15  ;;  %v8520_v47 = vpop.f32.mrf.mxu0  ;;  %v6819_v8 = vld [vmem:[%s9450_s1 + $0x960] ss:$8 sps:$4 sm:$0xff]  }
 0x157   : > { %4465 = vmatprep.subr.bf16.mxu1 %v6809_v55  ;;  %v6019_v15 = vld [vmem:[%s6987_s12 + $0x128] sm:$0xff]  ;;  %v4045_v55 = vrot.slane %v6117_v56, 1 }
 0x158   : > { %v8537_v33 = vpop.f32.mrf.mxu0  ;;  %v3529_v41 = vpack.c.bf16 %v6022_v12, %v6019_v15  ;;  %v6818_v56 = vld [vmem:[%s9450_s1 + $0x864] ss:$8 sps:$4 sm:$0xff]  }
 0x159   : > { %3808 = vmatmul.mubr.bf16.vlgmr.msra.gmra.mxu1 %v3522_v48  ;;  %4389 = vmatpush1.bf16.msra.mxu0 %v6804_v54  ;;  %v1715_v10 = vpop.f32.mrf.mxu1  ;;  %v3525_v48 = vpack.c.bf16 %v6015_v29, %v6012_v53  ;;  %v6025_v12 = vld [vmem:[%s6987_s12 + $0x188] sm:$0xff] }
 0x15a   : > { %4466 = vmatpush1.bf16.msra.mxu1 %v6807_v36  ;;  %v1789_v43 = vadd.f32 %v1788_v23, %v1715_v10  ;;  %4390 = vmatprep.subr.bf16.mxu0 %v6812_v46  ;;  %v8545_v21 = vpop.f32.mrf.mxu0  ;;  %v6830_v23 = vld [vmem:[%s9450_s1 + $0x954] ss:$8 sps:$4 sm:$0xff]  }
 0x15b   : > { %v1717_v54 = vpop.f32.mrf.mxu1  ;;  %3817 = vmatprep.mubr.bf16.mxu1 %v3526_v6  ;;  %4467 = vmatprep.subr.bf16.mxu1 %v6821_v52  ;;  %v6029_v6 = vld [vmem:[%s6987_s12 + $0x1c0] sm:$0xff]  ;;  %v6824_v10 = vld [vmem:[%s9450_s1 + $0x854] ss:$8 sps:$4 sm:$0xff]  }
 0x15c   : > { %v8551_v36 = vadd.f32 %v1789_v43, %v8325_v63  ;;  %v1791_v46 = vadd.f32 %v8479_v14, %v1717_v54  ;;  %6108 = vmatmul.mubr.msk.bf16.gmra.mxu0 %vm728_vm1, %v3530_v39  ;;  %v8555_v0 = vpop.f32.mrf.mxu0  ;;  %v4038_v63 = vsel %vm390_vm0, %v4036_v30, %v4037_v57  ;;  %v6816_v39 = vld [vmem:[%s9450_s1 + $0x860] ss:$8 sps:$4 sm:$0xff]   ;;  %v3533_v29 = vpack.c.bf16 %v6029_v6, %v6026_v16  ;;  %v6842_v30 = vld [vmem:[%s9450_s1 + $0x9f4] ss:$8 sps:$4 sm:$0xff]  }
 0x15d   : > { %4391 = vmatpush1.bf16.msra.mxu0 %v6810_v45  ;;  %v1719_v49 = vpop.f32.mrf.mxu1  ;;  %3910 = vmatprep.mubr.bf16.mxu0 %v9454_v2  ;;  %v4047_v45 = vsel %vm390_vm0, %v4045_v55, %v4046_v26  ;;  %v6018_v43 = vld [vmem:[%s6987_s12 + $0x120] sm:$0xff]  ;;  %v6028_v26 = vld [vmem:[%s6987_s12 + $0x1b8] sm:$0xff] }
 0x15e   : > { %v8565_v14 = vadd.f32 %v1791_v46, %v8347_v7  ;;  %v1793_v52 = vadd.f32 %v8484_v62, %v1719_v49  ;;  %4392 = vmatprep.subr.bf16.mxu0 %v6815_v58  ;;  %4468 = vmatpush1.bf16.msra.mxu1 %v6819_v8  ;;  %v1810_v28 = vpop.f32.mrf.mxu0  ;;  %v6828_v7 = vld [vmem:[%s9450_s1 + $0x950] ss:$8 sps:$4 sm:$0xff]   ;;  %v4130_v15 = vpack.c.bf16 %v4047_v45, %v4038_v63 }
 0x15f   : > { %v1721_v53 = vpop.f32.mrf.mxu1  ;;  %4469 = vmatprep.subr.bf16.mxu1 %v6830_v23  ;;  %v6021_v8 = vld [vmem:[%s6987_s12 + $0x150] sm:$0xff] }
 0x160   : > { %v8579_v62 = vadd.f32 %v1793_v52, %v8358_v9  ;;  %v8582_v58 = vadd.f32 %v8497_v61, %v1721_v53  ;;  %v1812_v9 = vpop.f32.mrf.mxu0  ;;  %v3528_v49 = vpack.c.bf16 %v6021_v8, %v6018_v43  ;;  %v6833_v52 = vld [vmem:[%s9450_s1 + $0x934] ss:$8 sps:$4 sm:$0xff]   ;;  %v6831_v8 = vld [vmem:[%s9450_s1 + $0x930] ss:$8 sps:$4 sm:$0xff]  }
 0x161   : > { %3818 = vmatmul.mubr.bf16.gmra.mxu1 %v3525_v48  ;;  %4393 = vmatpush1.bf16.msra.mxu0 %v6813_v13  ;;  %v1725_v57 = vpop.f32.mrf.mxu1  ;;  %v6112_v53 = vld [vmem:[%s6987_s12 + $0x70] sm:$0xfe] }
 0x162   : > { %v1799_v61 = vadd.f32 %v8514_v31, %v1725_v57  ;;  %4394 = vmatprep.subr.bf16.mxu0 %v6818_v56  ;;  %3827 = vmatprep.mubr.bf16.mxu1 %v3529_v41  ;;  %v6822_v31 = vld [vmem:[%s9450_s1 + $0x850] ss:$8 sps:$4 sm:$0xff]   ;;  %v1814_v13 = vpop.f32.mrf.mxu0  ;;  %v3532_v41 = vpack.c.bf16 %v6028_v26, %v6025_v12  ;;  %v6024_v56 = vld [vmem:[%s6987_s12 + $0x180] sm:$0xff] }
 0x163   : > { %v1727_v55 = vpop.f32.mrf.mxu1  ;;  %4470 = vmatpush1.bf16.msra.mxu1 %v6828_v7 }
 0x164   : > { %v8596_v54 = vadd.f32 %v1799_v61, %v8384_v20  ;;  %v1801_v23 = vadd.f32 %v8520_v47, %v1727_v55  ;;  %6109 = vmatmul.mubr.msk.bf16.gmra.mxu0 %vm728_vm1, %v3533_v29  ;;  %4989 = vmatprep.subr.bf16.mxu1 %v6842_v30  ;;  %v6827_v47 = vld [vmem:[%s9450_s1 + $0x944] ss:$8 sps:$4 sm:$0xff]   ;;  %v1818_v45 = vpop.f32.mrf.mxu0  ;;  %v6121_v29 = vld [vmem:[%s6987_s12 + $0xb8] sm:$0x1]  ;;  %v4039_v61 = vrot.slane %v6112_v53, 1 }
 0x165   : > { %4395 = vmatpush1.bf16.msra.mxu0 %v6816_v39  ;;  %v1729_v46 = vpop.f32.mrf.mxu1  ;;  %4414 = vmatprep.mubr.bf16.mxu0 %v4130_v15  ;;  %v6115_v39 = vld [vmem:[%s6987_s12 + $0x88] sm:$0x1]  ;;  %v6837_v53 = vld [vmem:[%s9450_s1 + $0x910] ss:$8 sps:$4 sm:$0xff]  }
 0x166   : > { %v8604_v48 = vadd.f32 %v1801_v23, %v8394_v60  ;;  %v1803_v20 = vadd.f32 %v8537_v33, %v1729_v46  ;;  %4396 = vmatprep.subr.bf16.mxu0 %v6824_v10  ;;  %v6825_v33 = vld [vmem:[%s9450_s1 + $0x940] ss:$8 sps:$4 sm:$0xff]   ;;  %v4040_v12 = vrot.slane %v6115_v39, 1  ;;  %v4049_v23 = vrot.slane %v6121_v29, 1 }
 0x167   : > { %v1731_v16 = vpop.f32.mrf.mxu1  ;;  %v6118_v10 = vld [vmem:[%s6987_s12 + $0xa0] sm:$0xfe] }
 0x168   : > { %v8611_v6 = vadd.f32 %v1803_v20, %v8400_v51  ;;  %v8614_v63 = vadd.f32 %v8545_v21, %v1731_v16  ;;  %v6027_v21 = vld [vmem:[%s6987_s12 + $0x1b0] sm:$0xff] }
 0x169   : > { %3828 = vmatmul.mubr.bf16.gmra.mxu1 %v3528_v49  ;;  %4397 = vmatpush1.bf16.msra.mxu0 %v6822_v31  ;;  %v1735_v60 = vpop.f32.mrf.mxu1  ;;  %v3531_v15 = vpack.c.bf16 %v6027_v21, %v6024_v56  ;;  %v6124_v16 = vld [vmem:[%s6987_s12 + $0xd0] sm:$0xfe]  ;;  %v6133_v56 = vld [vmem:[%s6987_s12 + $0x118] sm:$0x1] }
 0x16a   : > { %v1809_v51 = vadd.f32 %v8555_v0, %v1735_v60  ;;  %4398 = vmatprep.subr.bf16.mxu0 %v6827_v47  ;;  %3837 = vmatprep.mubr.bf16.mxu1 %v3532_v41  ;;  %v1820_v0 = vpop.f32.mrf.mxu0  ;;  %v6839_v41 = vld [vmem:[%s9450_s1 + $0x914] ss:$8 sps:$4 sm:$0xff]   ;;  %v6127_v60 = vld [vmem:[%s6987_s12 + $0xe8] sm:$0x1] }
 0x16b   : > { %v1737_v7 = vpop.f32.mrf.mxu1  ;;  %v4058_v29 = vrot.slane %v6127_v60, 1  ;;  %v6849_v60 = vld [vmem:[%s9450_s1 + $0x8f0] ss:$8 sps:$4 sm:$0xff]  }
 0x16c   : > { %v8630_v30 = vadd.f32 %v1809_v51, %v8411_v38  ;;  %v1811_v57 = vadd.f32 %v1810_v28, %v1737_v7  ;;  %v6836_v38 = vld [vmem:[%s9450_s1 + $0x924] ss:$8 sps:$4 sm:$0xff]   ;;  %v4048_v28 = vrot.slane %v6118_v10, 1  ;;  %v1822_v20 = vpop.f32.mrf.mxu0  ;;  %v4057_v10 = vrot.slane %v6124_v16, 1 }
 0x16d   : > { %4399 = vmatpush2.bf16.msra.mxu0 %v6825_v33  ;;  %v1739_v43 = vpop.f32.mrf.mxu1 }
 0x16e   : > { %9461 = vst [vmem:[#allocation7_spill] sm:$0xff] %v8630_v30  ;;  %v8636_v55 = vadd.f32 %v1811_v57, %v8419_v11  ;;  %v1813_v26 = vadd.f32 %v1812_v9, %v1739_v43  ;;  %4400 = vmatprep.subr.bf16.mxu0 %v6833_v52  ;;  %v6834_v9 = vld [vmem:[%s9450_s1 + $0x920] ss:$8 sps:$4 sm:$0xff]   ;;  %v1824_v39 = vpop.f32.mrf.mxu0 }
 0x16f   : > { %v1741_v46 = vpop.f32.mrf.mxu1  ;;  %v6130_v52 = vld [vmem:[%s6987_s12 + $0x100] sm:$0xfe] }
 0x170   : > { %9462 = vst [vmem:[#allocation8_spill] sm:$0xff] %v8636_v55  ;;  %v8642_v31 = vadd.f32 %v1813_v26, %v8425_v40  ;;  %v8644_v49 = vadd.f32 %v1814_v13, %v1741_v46  ;;  %v4041_v40 = vsel %vm390_vm0, %v4039_v61, %v4040_v12  ;;  %v4050_v13 = vsel %vm390_vm0, %v4048_v28, %v4049_v23  ;;  %v6846_v28 = vld [vmem:[%s9450_s1 + $0x9e0] ss:$8 sps:$4 sm:$0xff]  }
 0x171   : > { %3838 = vmatmul.mubr.bf16.gmra.mxu1 %v3531_v15  ;;  %4401 = vmatpush2.bf16.msra.mxu0 %v6831_v8  ;;  %v1745_v11 = vpop.f32.mrf.mxu1  ;;  %v4131_v7 = vpack.c.bf16 %v4050_v13, %v4041_v40  ;;  %v6845_v8 = vld [vmem:[%s9450_s1 + $0x904] ss:$8 sps:$4 sm:$0xff]   ;;  %v4066_v15 = vrot.slane %v6130_v52, 1  ;;  %v6136_v13 = vld [vmem:[%s6987_s12 + $0x130] sm:$0xfe] }
 0x172   : > { %9463 = vst [vmem:[#allocation9_spill] sm:$0xff] %v8642_v31  ;;  %9464 = vst [vmem:[#allocation10_spill] sm:$0xff] %v8644_v49  ;;  %v1819_v47 = vadd.f32 %v1818_v45, %v1745_v11  ;;  %4402 = vmatprep.subr.bf16.mxu0 %v6836_v38  ;;  %4487 = vmatprep.mubr.bf16.mxu1 %v9454_v2  ;;  %v6843_v38 = vld [vmem:[%s9450_s1 + $0x900] ss:$8 sps:$4 sm:$0xff]   ;;  %v6116_v11 = vld [vmem:[%s6987_s12 + $0x90] sm:$0xfe] }
 0x173   : > { %v1747_v33 = vpop.f32.mrf.mxu1  ;;  %v6110_v23 = vld [vmem:[%s6987_s12 + $0x60] sm:$0xfe]  ;;  %v6248_v31 = vld [vmem:[%s6987_s12 + $0xb0] sm:$0x3] }
 0x174   : > { %v8660_v51 = vadd.f32 %v1819_v47, %v8436_v27  ;;  %v1821_v45 = vadd.f32 %v1820_v0, %v1747_v33  ;;  %v6840_v27 = vld [vmem:[%s9450_s1 + $0x9f0] ss:$8 sps:$4 sm:$0xff]   ;;  %v4067_v0 = vrot.slane %v6133_v56, 1  ;;  %v6854_v47 = vld [vmem:[%s9450_s1 + $0x9d4] ss:$8 sps:$4 sm:$0xff]  }
 0x175   : > { %4403 = vmatpush2.bf16.msra.mxu0 %v6834_v9  ;;  %v1749_v21 = vpop.f32.mrf.mxu1  ;;  %v6119_v9 = vld [vmem:[%s6987_s12 + $0xa8] sm:$0x1]  ;;  %v6142_v52 = vld [vmem:[%s6987_s12 + $0x160] sm:$0xfe]  ;;  %v6145_v56 = vld [vmem:[%s6987_s12 + $0x178] sm:$0x1] }
 0x176   : > { %9465 = vst [vmem:[#allocation11_spill] sm:$0xff] %v8660_v51  ;;  %v8666_v57 = vadd.f32 %v1821_v45, %v8445_v18  ;;  %v1823_v43 = vadd.f32 %v1822_v20, %v1749_v21  ;;  %4404 = vmatprep.subr.bf16.mxu0 %v6839_v41  ;;  %v6848_v18 = vld [vmem:[%s9450_s1 + $0x9e4] ss:$8 sps:$4 sm:$0xff]   ;;  %v6851_v20 = vld [vmem:[%s9450_s1 + $0x8f4] ss:$8 sps:$4 sm:$0xff]   ;;  %v4059_v41 = vsel %vm390_vm0, %v4057_v10, %v4058_v29  ;;  %v4043_v10 = vrot.slane %v6119_v9, 1 }
 0x177   : > { %v1751_v61 = vpop.f32.mrf.mxu1  ;;  %v4068_v40 = vsel %vm390_vm0, %v4066_v15, %v4067_v0  ;;  %v6139_v33 = vld [vmem:[%s6987_s12 + $0x148] sm:$0x1]  ;;  %v6852_v45 = vld [vmem:[%s9450_s1 + $0x9d0] ss:$8 sps:$4 sm:$0xff]   ;;  %v6857_v21 = vld [vmem:[%s9450_s1 + $0x8e4] ss:$8 sps:$4 sm:$0xff]  }
 0x178   : > { %9466 = vst [vmem:[#allocation12_spill] sm:$0xff] %v8666_v57  ;;  %v8678_v12 = vadd.f32 %v1823_v43, %v8450_v19  ;;  %v8680_v26 = vadd.f32 %v1824_v39, %v1751_v61  ;;  %v6113_v19 = vld [vmem:[%s6987_s12 + $0x78] sm:$0x1]  ;;  %v6123_v43 = vld [vmem:[%s6987_s12 + $0xc8] sm:$0xfe]  ;;  %v4134_v15 = vpack.c.bf16 %v4068_v40, %v4059_v41  ;;  %v4075_v61 = vrot.slane %v6136_v13, 1 }
 0x179   : > { %4405 = vmatpush2.bf16.msra.mxu0 %v6837_v53  ;;  %6234 = vmatmul.mubr.msk.bf16.vlgmr.msra.gmra.mxu1 %vm728_vm1, %v4131_v7  ;;  %v8690_v46 = vpop.f32.mrf.mxu1  ;;  %v4033_v53 = vrot.slane %v6110_v23, 1  ;;  %v4034_v39 = vrot.slane %v6113_v19, 1  ;;  %v4042_v7 = vrot.slane %v6116_v11, 1  ;;  %v6132_v0 = vld [vmem:[%s6987_s12 + $0x110] sm:$0x1]  ;;  %v4054_v13 = vrot.slane %v6123_v43, 1 }
 0x17a   : > { %9467 = vst [vmem:[#allocation13_spill] sm:$0xff] %v8678_v12  ;;  %9468 = vst [vmem:[#allocation14_spill] sm:$0xff] %v8680_v26  ;;  %4990 = vmatpush1.bf16.msra.mxu1 %v6840_v27  ;;  %4406 = vmatprep.subr.bf16.mxu0 %v6845_v8  ;;  %v6126_v27 = vld [vmem:[%s6987_s12 + $0xe0] sm:$0x1]  ;;  %v6129_v8 = vld [vmem:[%s6987_s12 + $0xf8] sm:$0xfe] }
 0x17b   : > { %4991 = vmatprep.subr.bf16.mxu1 %v6848_v18  ;;  %v8704_v16 = vpop.f32.mrf.mxu1  ;;  %4497 = vmatprep.mubr.bf16.mxu1 %v9454_v2  ;;  %v4076_v18 = vrot.slane %v6139_v33, 1  ;;  %v4084_v2 = vrot.slane %v6142_v52, 1  ;;  %v4085_v12 = vrot.slane %v6145_v56, 1  ;;  %v8731_v19 = vld [vmem:[%s6987_s12 + $0xc0] sm:$0xfe]  ;;  %v8749_v41 = vsel %vm390_vm0, %v4042_v7, %v4043_v10 }
 0x17c   : > { %v8734_v11 = vld [vmem:[%s6987_s12 + $0xd8] sm:$0x1]  ;;  %v6858_v9 = vld [vmem:[%s9450_s1 + $0x9c0] ss:$8 sps:$4 sm:$0xff]   ;;  %v6866_v40 = vld [vmem:[%s9450_s1 + $0x9b4] ss:$8 sps:$4 sm:$0xff]  }
 0x17d   : > { %4407 = vmatpush2.bf16.msra.mxu0 %v6843_v38  ;;  %v8719_v29 = vpop.f32.mrf.mxu1  ;;  %v6860_v38 = vld [vmem:[%s9450_s1 + $0x9c4] ss:$8 sps:$4 sm:$0xff]   ;;  %v4055_v33 = vrot.slane %v6126_v27, 1  ;;  %v4063_v52 = vrot.slane %v6129_v8, 1  ;;  %v4064_v56 = vrot.slane %v6132_v0, 1  ;;  %v4077_v43 = vsel %vm390_vm0, %v4075_v61, %v4076_v18 }
 0x17e   : > { %4992 = vmatpush1.bf16.msra.mxu1 %v6846_v28  ;;  %4408 = vmatprep.subr.bf16.mxu0 %v6851_v20  ;;  %v6855_v28 = vld [vmem:[%s9450_s1 + $0x8e0] ss:$8 sps:$4 sm:$0xff]   ;;  %v6863_v20 = vld [vmem:[%s9450_s1 + $0x8d4] ss:$8 sps:$4 sm:$0xff]   ;;  %v4086_v27 = vsel %vm390_vm0, %v4084_v2, %v4085_v12  ;;  %v6157_v7 = vld [vmem:[%s6987_s12 + $0x1d8] sm:$0x1]  ;;  %v855_v61 = vadd.f32 %v7901_v22, %v8084_v34 }
 0x17f   : > { %4993 = vmatprep.subr.bf16.mxu1 %v6854_v47  ;;  %v8725_v23 = vpop.f32.mrf.mxu1  ;;  %v8746_v47 = vsel %vm390_vm0, %v4033_v53, %v4034_v39  ;;  %v8758_v53 = vld [vmem:[%s6987_s12 + $0xf0] sm:$0xfe]  ;;  %v8766_v10 = vld [vmem:[%s6987_s12 + $0x128] sm:$0xfe]  ;;  %v6151_v0 = vld [vmem:[%s6987_s12 + $0x1a8] sm:$0x1]  ;;  %v4056_v51 = vsel %vm390_vm0, %v4054_v13, %v4055_v33  ;;  %v4065_v22 = vsel %vm390_vm0, %v4063_v52, %v4064_v56  ;;  %v4137_v50 = vpack.c.bf16 %v4086_v27, %v4077_v43 }
 0x180   : > { %v6154_v39 = vld [vmem:[%s6987_s12 + $0x1c0] sm:$0xfe]  ;;  %v6864_v2 = vld [vmem:[%s9450_s1 + $0x9b0] ss:$8 sps:$4 sm:$0xff]   ;;  %v6138_v18 = vld [vmem:[%s6987_s12 + $0x140] sm:$0x1]  ;;  %v4129_v17 = vpack.c.bf16 %v8749_v41, %v8746_v47  ;;  %v4133_v43 = vpack.c.bf16 %v4065_v22, %v4056_v51 }
 0x181   : > { %4409 = vmatpush2.bf16.msra.mxu0 %v6849_v60  ;;  %6235 = vmatmul.mubr.msk.bf16.gmra.mxu1 %vm728_vm1, %v4134_v15  ;;  %v8755_v26 = vpop.f32.mrf.mxu1  ;;  %v8761_v60 = vld [vmem:[%s6987_s12 + $0x108] sm:$0x1]  ;;  %v9469_v15 = vmov 0   ;;  %v6881_v12 = vld [vmem:[%s9450_s1 + $0xaa4] ss:$8 sps:$4 sm:$0xff]   ;;  %v4094_v5 = vrot.slane %v6151_v0, 1 }
 0x182   : > { %4994 = vmatpush1.bf16.msra.mxu1 %v6852_v45  ;;  %4410 = vmatprep.subr.bf16.mxu0 %v6857_v21  ;;  %v6148_v45 = vld [vmem:[%s6987_s12 + $0x190] sm:$0xfe]  ;;  %v6239_v57 = vld [vmem:[%s6987_s12 + $0x68] sm:$0xfc]  ;;  %v6144_v49 = vld [vmem:[%s6987_s12 + $0x170] sm:$0x1] }
 0x183   : > { %4995 = vmatprep.subr.bf16.mxu1 %v6860_v38  ;;  %v6861_v21 = vld [vmem:[%s9450_s1 + $0x8d0] ss:$8 sps:$4 sm:$0xff]   ;;  %v8774_v8 = vpop.f32.mrf.mxu1  ;;  %4507 = vmatprep.mubr.bf16.mxu1 %v9469_v15  ;;  %v4093_v55 = vrot.slane %v6148_v45, 1  ;;  %v4102_v30 = vrot.slane %v6154_v39, 1  ;;  %v6869_v47 = vld [vmem:[%s9450_s1 + $0x9a4] ss:$8 sps:$4 sm:$0xff]  }
 0x184   : > { %v8790_v38 = vld [vmem:[%s6987_s12 + $0x158] sm:$0xfe]  ;;  %v4060_v41 = vrot.slane %v8758_v53, 1  ;;  %v4061_v13 = vrot.slane %v8761_v60, 1  ;;  %v4072_v33 = vrot.slane %v8766_v10, 1  ;;  %v4644_v56 = vrot.slane %v6242_v24, 2 }
 0x185   : > { %4411 = vmatpush2.bf16.msra.mxu0 %v6855_v28  ;;  %v8797_v34 = vpop.f32.mrf.mxu1  ;;  %v4103_v28 = vrot.slane %v6157_v7, 1  ;;  %v4652_v39 = vrot.slane %v6245_v1, 2  ;;  %v4653_v7 = vrot.slane %v6248_v31, 2  ;;  %v4081_v27 = vrot.slane %v8790_v38, 1  ;;  %v8816_v45 = vld [vmem:[%s6987_s12 + $0x120] sm:$0xfe] }
 0x186   : > { %4996 = vmatpush1.bf16.msra.mxu1 %v6858_v9  ;;  %4412 = vmatprep.subr.bf16.mxu0 %v6863_v20  ;;  %v4073_v9 = vrot.slane %v6138_v18, 1  ;;  %v6879_v20 = vld [vmem:[%s9450_s1 + $0xaa0] ss:$8 sps:$4 sm:$0xff]   ;;  %v4082_v53 = vrot.slane %v6144_v49, 1  ;;  %v8819_v60 = vld [vmem:[%s6987_s12 + $0x138] sm:$0x1]  ;;  %v1130_v10 = vadd.f32 %v8174_v35, %v855_v61  ;;  %v4095_v31 = vsel %vm390_vm0, %v4093_v55, %v4094_v5 }
 0x187   : > { %4997 = vmatprep.subr.bf16.mxu1 %v6866_v40  ;;  %v8812_v52 = vpop.f32.mrf.mxu1  ;;  %v4643_v40 = vrot.slane %v6239_v57, 2  ;;  %v6867_v24 = vld [vmem:[%s9450_s1 + $0x9a0] ss:$8 sps:$4 sm:$0xff]   ;;  %v6890_v1 = vld [vmem:[%s9450_s1 + $0xa94] ss:$8 sps:$4 sm:$0xff]   ;;  %v4104_v49 = vsel %vm390_vm0, %v4102_v30, %v4103_v28  ;;  %v9471_v51 = vrot.slane %v8731_v19, 1  ;;  %v4654_v18 = vsel %vm1331_vm2, %v4652_v39, %v4653_v7 }
 0x188   : > { %v6872_v35 = vld [vmem:[%s9450_s1 + $0x994] ss:$8 sps:$4 sm:$0xff]   ;;  %v8841_v0 = vsel %vm390_vm0, %v4072_v33, %v4073_v9  ;;  %v6870_v30 = vld [vmem:[%s9450_s1 + $0x990] ss:$8 sps:$4 sm:$0xff]   ;;  %v4069_v19 = vrot.slane %v8816_v45, 1  ;;  %v4070_v61 = vrot.slane %v8819_v60, 1  ;;  %v4083_v38 = vsel %vm390_vm0, %v4081_v27, %v4082_v53 }
 0x189   : > { %4413 = vmatpush2.bf16.msra.mxu0 %v6861_v21  ;;  %6236 = vmatmul.mubr.msk.bf16.gmra.mxu1 %vm728_vm1, %v4137_v50  ;;  %v9470_v50 = vrot.slane %v8734_v11, 1  ;;  %v4062_v21 = vsel %vm390_vm0, %v4060_v41, %v4061_v13  ;;  %v6140_v55 = vld [vmem:[%s6987_s12 + $0x150] sm:$0xfe]  ;;  %v6143_v11 = vld [vmem:[%s6987_s12 + $0x168] sm:$0x1]  ;;  %v4140_v41 = vpack.c.bf16 %v4104_v49, %v4095_v31  ;;  %v1203_v13 = vadd.f32 %v8367_v44, %v1130_v10 }
 0x18a   : > { %4998 = vmatpush1.bf16.msra.mxu1 %v6864_v2  ;;  %5072 = vmatprep.subr.bf16.mxu0 %v6881_v12  ;;  %v8851_v2 = vpop.f32.mrf.mxu1  ;;  %v4645_v12 = vsel %vm1331_vm2, %v4643_v40, %v4644_v56  ;;  %v6147_v22 = vld [vmem:[%s6987_s12 + $0x188] sm:$0xfe]  ;;  %v6150_v28 = vld [vmem:[%s6987_s12 + $0x1a0] sm:$0x1]  ;;  %v6153_v40 = vld [vmem:[%s6987_s12 + $0x1b8] sm:$0xfe]  ;;  %v4136_v53 = vpack.c.bf16 %v4083_v38, %v8841_v0 }
 0x18b   : > { %4999 = vmatprep.subr.bf16.mxu1 %v6869_v47  ;;  %v4053_v57 = vsel %vm390_vm0, %v9471_v51, %v9470_v50  ;;  %4517 = vmatprep.mubr.bf16.mxu1 %v9469_v15  ;;  %v6888_v47 = vld [vmem:[%s9450_s1 + $0xa90] ss:$8 sps:$4 sm:$0xff]   ;;  %v6875_v44 = vld [vmem:[%s9450_s1 + $0x984] ss:$8 sps:$4 sm:$0xff]   ;;  %v4078_v7 = vrot.slane %v6140_v55, 1  ;;  %v4079_v45 = vrot.slane %v6143_v11, 1 }
 0x18c   : > { %4415 = vmatmul.mubr.bf16.vlgmr.msra.gmra.mxu0 %v4129_v17  ;;  %v2155_v5 = vpop.f32.mrf.mxu0  ;;  %v4132_v9 = vpack.c.bf16 %v4062_v21, %v4053_v57  ;;  %v6156_v56 = vld [vmem:[%s6987_s12 + $0x1d0] sm:$0x1]  ;;  %v8876_v60 = vpop.f32.mrf.mxu1  ;;  %v4090_v10 = vrot.slane %v6147_v22, 1  ;;  %v6900_v49 = vld [vmem:[%s9450_s1 + $0xa80] ss:$8 sps:$4 sm:$0xff]  }
 0x18d   : > { %v2229_v17 = vadd.f32 %v8690_v46, %v2155_v5  ;;  %4424 = vmatprep.mubr.bf16.mxu0 %v4133_v43  ;;  %5073 = vmatpush1.bf16.msra.mxu0 %v6879_v20  ;;  %v6902_v46 = vld [vmem:[%s9450_s1 + $0xa84] ss:$8 sps:$4 sm:$0xff]   ;;  %v4737_v43 = vpack.c.bf16 %v4654_v18, %v4645_v12  ;;  %v4100_v31 = vrot.slane %v6156_v56, 1  ;;  %v6149_v11 = vld [vmem:[%s6987_s12 + $0x198] sm:$0x1] }
 0x18e   : > { %5000 = vmatpush1.bf16.msra.mxu1 %v6867_v24  ;;  %v2157_v33 = vpop.f32.mrf.mxu0  ;;  %5074 = vmatprep.subr.bf16.mxu0 %v6890_v1  ;;  %v4091_v24 = vrot.slane %v6150_v28, 1  ;;  %v4099_v1 = vrot.slane %v6153_v40, 1  ;;  %v8902_v0 = vpop.f32.mrf.mxu1  ;;  %v6155_v18 = vld [vmem:[%s6987_s12 + $0x1c8] sm:$0x1]  ;;  %v6884_v22 = vld [vmem:[%s9450_s1 + $0xa64] ss:$8 sps:$4 sm:$0xff]  }
 0x18f   : > { %v8869_v20 = vadd.f32 %v2229_v17, %v8551_v36  ;;  %v2231_v39 = vadd.f32 %v8704_v16, %v2157_v33  ;;  %5001 = vmatprep.subr.bf16.mxu1 %v6872_v35  ;;  %v865_v35 = vadd.f32 %v7976_v3, %v8131_v37  ;;  %v6878_v3 = vld [vmem:[%s9450_s1 + $0xa74] ss:$8 sps:$4 sm:$0xff]   ;;  %v4097_v56 = vrot.slane %v6155_v18, 1  ;;  %v9477_v18 = vld [vmem:[#allocation3_spill] sm:$0xff] }
 0x190   : > { %v2159_v27 = vpop.f32.mrf.mxu0  ;;  %v4101_v55 = vsel %vm390_vm0, %v4099_v1, %v4100_v31  ;;  %v6249_v1 = vld [vmem:[%s6987_s12 + $0xb8] sm:$0x3]  ;;  %v9472_v31 = vld [vmem:[#allocation7_spill] sm:$0xff] }
 0x191   : > { %v8879_v36 = vadd.f32 %v2231_v39, %v8565_v14  ;;  %v2233_v16 = vadd.f32 %v8719_v29, %v2159_v27  ;;  %6237 = vmatmul.mubr.msk.bf16.gmra.mxu1 %vm728_vm1, %v4140_v41  ;;  %5075 = vmatpush1.bf16.msra.mxu0 %v6888_v47  ;;  %v6873_v14 = vld [vmem:[%s9450_s1 + $0x980] ss:$8 sps:$4 sm:$0xff]   ;;  %v1830_v29 = vadd.f32 %v8582_v58, %v1203_v13  ;;  %v2254_v13 = vpop.f32.mrf.mxu1 }
 0x192   : > { %5002 = vmatpush1.bf16.msra.mxu1 %v6870_v30  ;;  %v2161_v50 = vpop.f32.mrf.mxu0  ;;  %5076 = vmatprep.subr.bf16.mxu0 %v6902_v46  ;;  %v1140_v37 = vadd.f32 %v8265_v59, %v865_v35  ;;  %v4071_v58 = vsel %vm390_vm0, %v4069_v19, %v4070_v61  ;;  %v6146_v59 = vld [vmem:[%s6987_s12 + $0x180] sm:$0xfe]  ;;  %v6876_v19 = vld [vmem:[%s9450_s1 + $0xa70] ss:$8 sps:$4 sm:$0xff]  }
 0x193   : > { %v8893_v51 = vadd.f32 %v2233_v16, %v8579_v62  ;;  %v2235_v57 = vadd.f32 %v8725_v23, %v2161_v50  ;;  %5003 = vmatprep.subr.bf16.mxu1 %v6875_v44  ;;  %5021 = vmatprep.mubr.bf16.mxu1 %v4737_v43  ;;  %v4080_v62 = vsel %vm390_vm0, %v4078_v7, %v4079_v45  ;;  %v6152_v61 = vld [vmem:[%s6987_s12 + $0x1b0] sm:$0xfe]  ;;  %v4087_v33 = vrot.slane %v6146_v59, 1  ;;  %v6882_v46 = vld [vmem:[%s9450_s1 + $0xa60] ss:$8 sps:$4 sm:$0xff]   ;;  %v2258_v27 = vpop.f32.mrf.mxu1 }
 0x194   : > { %4425 = vmatmul.mubr.bf16.gmra.mxu0 %v4132_v9  ;;  %v2165_v21 = vpop.f32.mrf.mxu0  ;;  %v4092_v23 = vsel %vm390_vm0, %v4090_v10, %v4091_v24  ;;  %v1213_v17 = vadd.f32 %v8402_v4, %v1140_v37  ;;  %v4135_v47 = vpack.c.bf16 %v4080_v62, %v4071_v58  ;;  %v4088_v9 = vrot.slane %v6149_v11, 1  ;;  %v6240_v45 = vld [vmem:[%s6987_s12 + $0x70] sm:$0xfc]  ;;  %v6243_v10 = vld [vmem:[%s6987_s12 + $0x88] sm:$0x3]  ;;  %v9475_v59 = vld [vmem:[#allocation10_spill] sm:$0xff] }
 0x195   : > { %v8905_v5 = vadd.f32 %v2235_v57, %v1830_v29  ;;  %v2239_v30 = vadd.f32 %v8755_v26, %v2165_v21  ;;  %4434 = vmatprep.mubr.bf16.mxu0 %v4136_v53  ;;  %5077 = vmatpush1.bf16.msra.mxu0 %v6900_v49  ;;  %v4139_v41 = vpack.c.bf16 %v4101_v55, %v4092_v23  ;;  %v6893_v35 = vld [vmem:[%s9450_s1 + $0xa44] ss:$8 sps:$4 sm:$0xff]   ;;  %v9473_v50 = vld [vmem:[#allocation4_spill] sm:$0xff]  ;;  %v2260_v57 = vpop.f32.mrf.mxu1  ;;  %v4647_v37 = vrot.slane %v6243_v10, 2  ;;  %v6891_v55 = vld [vmem:[%s9450_s1 + $0xa40] ss:$8 sps:$4 sm:$0xff]  }
 0x196   : > { %5004 = vmatpush1.bf16.msra.mxu1 %v6873_v14  ;;  %v2167_v12 = vpop.f32.mrf.mxu0  ;;  %v1834_v39 = vadd.f32 %v8614_v63, %v1213_v17  ;;  %v875_v7 = vadd.f32 %v8047_v42, %v8201_v25  ;;  %v4089_v63 = vsel %vm390_vm0, %v4087_v33, %v4088_v9  ;;  %v6885_v42 = vld [vmem:[%s9450_s1 + $0xa50] ss:$8 sps:$4 sm:$0xff]   ;;  %v6246_v25 = vld [vmem:[%s6987_s12 + $0xa0] sm:$0xfc] }
 0x197   : > { %v8918_v38 = vadd.f32 %v2239_v30, %v8596_v54  ;;  %v2241_v26 = vadd.f32 %v8774_v8, %v2167_v12  ;;  %5005 = vmatprep.subr.bf16.mxu1 %v6878_v3  ;;  %v4096_v54 = vrot.slane %v6152_v61, 1  ;;  %v4646_v3 = vrot.slane %v6240_v45, 2  ;;  %v9474_v21 = vld [vmem:[#allocation8_spill] sm:$0xff]  ;;  %v9476_v12 = vld [vmem:[#allocation9_spill] sm:$0xff]  ;;  %v9478_v17 = vld [vmem:[#allocation2_spill] sm:$0xff] }
 0x198   : > { %v2169_v28 = vpop.f32.mrf.mxu0  ;;  %v1150_v24 = vadd.f32 %v8344_v32, %v875_v7  ;;  %v4655_v23 = vrot.slane %v6246_v25, 2  ;;  %v4656_v30 = vrot.slane %v6249_v1, 2  ;;  %v6252_v9 = vld [vmem:[%s6987_s12 + $0xd0] sm:$0xfc] }
 0x199   : > { %v8925_v40 = vadd.f32 %v2241_v26, %v8604_v48  ;;  %v2243_v4 = vadd.f32 %v8797_v34, %v2169_v28  ;;  %v6887_v34 = vld [vmem:[%s9450_s1 + $0xa54] ss:$8 sps:$4 sm:$0xff]   ;;  %v885_v26 = vadd.f32 %v9478_v17, %v9477_v18  ;;  %v2262_v28 = vpop.f32.mrf.mxu1  ;;  %v4664_v25 = vrot.slane %v6252_v9, 2 }
 0x19a   : > { %5006 = vmatpush2.bf16.msra.mxu1 %v6876_v19  ;;  %v2171_v8 = vpop.f32.mrf.mxu0  ;;  %v1223_v32 = vadd.f32 %v9473_v50, %v1150_v24  ;;  %v4657_v33 = vsel %vm1331_vm2, %v4655_v23, %v4656_v30  ;;  %v6897_v24 = vld [vmem:[%s9450_s1 + $0xa20] ss:$8 sps:$4 sm:$0xff]   ;;  %v6244_v50 = vld [vmem:[%s6987_s12 + $0x90] sm:$0xfc]  ;;  %v9484_v30 = vld [vmem:[#allocation13_spill] sm:$0xff] }
 0x19b   : > { %v8933_v44 = vadd.f32 %v2243_v4, %v8611_v6  ;;  %v2245_v48 = vadd.f32 %v8812_v52, %v2171_v8  ;;  %5007 = vmatprep.subr.bf16.mxu1 %v6884_v22  ;;  %v4098_v52 = vsel %vm390_vm0, %v4096_v54, %v4097_v56  ;;  %v6255_v4 = vld [vmem:[%s6987_s12 + $0xe8] sm:$0x3]  ;;  %v9479_v54 = vld [vmem:[#allocation6_spill] sm:$0xff]  ;;  %v2264_v10 = vpop.f32.mrf.mxu1 }
 0x19c   : > { %4435 = vmatmul.mubr.bf16.gmra.mxu0 %v4135_v47  ;;  %v2175_v43 = vpop.f32.mrf.mxu0  ;;  %v4138_v29 = vpack.c.bf16 %v4098_v52, %v4089_v63  ;;  %v1838_v11 = vadd.f32 %v9475_v59, %v1223_v32  ;;  %v1160_v56 = vadd.f32 %v9479_v54, %v885_v26  ;;  %v9481_v63 = vld [vmem:[#allocation5_spill] sm:$0xff]  ;;  %v4665_v1 = vrot.slane %v6255_v4, 2  ;;  %v6247_v32 = vld [vmem:[%s6987_s12 + $0xa8] sm:$0x3]  ;;  %v6264_v4 = vld [vmem:[%s6987_s12 + $0x130] sm:$0xfc] }
 0x19d   : > { %v8941_v53 = vadd.f32 %v2245_v48, %v1834_v39  ;;  %v2249_v6 = vadd.f32 %v8851_v2, %v2175_v43  ;;  %4444 = vmatprep.mubr.bf16.mxu0 %v4139_v41  ;;  %v6258_v39 = vld [vmem:[%s6987_s12 + $0x100] sm:$0xfc]  ;;  %v6261_v48 = vld [vmem:[%s6987_s12 + $0x118] sm:$0x3]  ;;  %v6905_v59 = vld [vmem:[%s9450_s1 + $0xa14] ss:$8 sps:$4 sm:$0xff]  }
 0x19e   : > { %5008 = vmatpush2.bf16.msra.mxu1 %v6882_v46  ;;  %v2177_v16 = vpop.f32.mrf.mxu0  ;;  %v6894_v46 = vld [vmem:[%s9450_s1 + $0xa30] ss:$8 sps:$4 sm:$0xff]   ;;  %v1233_v52 = vadd.f32 %v9481_v63, %v1160_v56  ;;  %v4650_v18 = vrot.slane %v6247_v32, 2  ;;  %v4666_v17 = vsel %vm1331_vm2, %v4664_v25, %v4665_v1  ;;  %v6267_v56 = vld [vmem:[%s6987_s12 + $0x148] sm:$0x3] }
 0x19f   : > { %v8955_v49 = vadd.f32 %v2249_v6, %v9472_v31  ;;  %v2251_v2 = vadd.f32 %v8876_v60, %v2177_v16  ;;  %5009 = vmatprep.subr.bf16.mxu1 %v6887_v34  ;;  %v9480_v34 = vld [vmem:[#allocation11_spill] sm:$0xff]  ;;  %v8998_v6 = vld [vmem:[%s6987_s12 + $0x60] sm:$0xfc]  ;;  %v9482_v31 = vld [vmem:[#allocation12_spill] sm:$0xff] }
 0x1a0   : > { %v2179_v14 = vpop.f32.mrf.mxu0  ;;  %v6257_v26 = vld [vmem:[%s6987_s12 + $0xf8] sm:$0xfc]  ;;  %v6256_v63 = vld [vmem:[%s6987_s12 + $0xf0] sm:$0xfc] }
 0x1a1   : > { %v8963_v58 = vadd.f32 %v2251_v2, %v9474_v21  ;;  %v2253_v62 = vadd.f32 %v8902_v0, %v2179_v14  ;;  %v6896_v0 = vld [vmem:[%s9450_s1 + $0xa34] ss:$8 sps:$4 sm:$0xff]   ;;  %v4673_v14 = vrot.slane %v6258_v39, 2  ;;  %v6254_v21 = vld [vmem:[%s6987_s12 + $0xe0] sm:$0x3]  ;;  %v4670_v39 = vrot.slane %v6257_v26, 2 }
 0x1a2   : > { %5010 = vmatpush2.bf16.msra.mxu1 %v6885_v42  ;;  %v2181_v60 = vpop.f32.mrf.mxu0  ;;  %v6241_v42 = vld [vmem:[%s6987_s12 + $0x78] sm:$0x3]  ;;  %v4662_v9 = vrot.slane %v6254_v21, 2  ;;  %v6266_v21 = vld [vmem:[%s6987_s12 + $0x140] sm:$0x3] }
 0x1a3   : > { %v8971_v19 = vadd.f32 %v2253_v62, %v9476_v12  ;;  %v2255_v61 = vadd.f32 %v2254_v13, %v2181_v60  ;;  %5011 = vmatprep.subr.bf16.mxu1 %v6893_v35  ;;  %v4648_v13 = vsel %vm1331_vm2, %v4646_v3, %v4647_v37  ;;  %v4640_v3 = vrot.slane %v8998_v6, 2  ;;  %v6251_v37 = vld [vmem:[%s6987_s12 + $0xc8] sm:$0xfc]  ;;  %v9483_v62 = vld [vmem:[#allocation14_spill] sm:$0xff]  ;;  %v6903_v12 = vld [vmem:[%s9450_s1 + $0xa10] ss:$8 sps:$4 sm:$0xff]  }
 0x1a4   : > { %4445 = vmatmul.mubr.bf16.gmra.mxu0 %v4138_v29  ;;  %v2185_v22 = vpop.f32.mrf.mxu0  ;;  %v4738_v16 = vpack.c.bf16 %v4657_v33, %v4648_v13  ;;  %v4674_v29 = vrot.slane %v6261_v48, 2  ;;  %v1842_v23 = vadd.f32 %v9483_v62, %v1233_v52  ;;  %v4661_v33 = vrot.slane %v6251_v37, 2  ;;  %v6259_v52 = vld [vmem:[%s6987_s12 + $0x108] sm:$0x3]  ;;  %v6263_v37 = vld [vmem:[%s6987_s12 + $0x128] sm:$0xfc] }
 0x1a5   : > { %v8978_v47 = vadd.f32 %v2255_v61, %v1838_v11  ;;  %v2259_v41 = vadd.f32 %v2258_v27, %v2185_v22  ;;  %5094 = vmatprep.mubr.bf16.mxu0 %v9469_v15  ;;  %v6899_v27 = vld [vmem:[%s9450_s1 + $0xa24] ss:$8 sps:$4 sm:$0xff]   ;;  %v4641_v11 = vrot.slane %v6241_v42, 2  ;;  %v6260_v22 = vld [vmem:[%s6987_s12 + $0x110] sm:$0x3] }
 0x1a6   : > { %5012 = vmatpush2.bf16.msra.mxu1 %v6891_v55  ;;  %v2187_v8 = vpop.f32.mrf.mxu0  ;;  %v4675_v13 = vsel %vm1331_vm2, %v4673_v14, %v4674_v29  ;;  %v4671_v48 = vrot.slane %v6260_v22, 2  ;;  %v6906_v42 = vld [vmem:[%s9450_s1 + $0xa00] ss:$8 sps:$4 sm:$0xff]   ;;  %v4663_v32 = vsel %vm1331_vm2, %v4661_v33, %v4662_v9  ;;  %v4667_v29 = vrot.slane %v6256_v63, 2  ;;  %v6269_v62 = vld [vmem:[%s6987_s12 + $0x158] sm:$0xfc] }
 0x1a7   : > { %v8992_v7 = vadd.f32 %v2259_v41, %v9480_v34  ;;  %v2261_v43 = vadd.f32 %v2260_v57, %v2187_v8  ;;  %5013 = vmatprep.subr.bf16.mxu1 %v6896_v0  ;;  %v4649_v0 = vrot.slane %v6244_v50, 2  ;;  %v6908_v41 = vld [vmem:[%s9450_s1 + $0xa04] ss:$8 sps:$4 sm:$0xff]   ;;  %v4741_v6 = vpack.c.bf16 %v4675_v13, %v4666_v17  ;;  %v6285_v26 = vld [vmem:[%s6987_s12 + $0x1d8] sm:$0x3] }
 0x1a8   : > { %v2189_v45 = vpop.f32.mrf.mxu0  ;;  %v6270_v8 = vld [vmem:[%s6987_s12 + $0x160] sm:$0xfc]  ;;  %v4642_v25 = vsel %vm1331_vm2, %v4640_v3, %v4641_v11  ;;  %v4672_v14 = vsel %vm1331_vm2, %v4670_v39, %v4671_v48  ;;  %v6276_v11 = vld [vmem:[%s6987_s12 + $0x190] sm:$0xfc]  ;;  %v4679_v22 = vrot.slane %v6263_v37, 2  ;;  %v4688_v13 = vrot.slane %v6269_v62, 2 }
 0x1a9   : > { %v9006_v2 = vadd.f32 %v2261_v43, %v9482_v31  ;;  %v2263_v35 = vadd.f32 %v2262_v28, %v2189_v45  ;;  %v6250_v34 = vld [vmem:[%s6987_s12 + $0xc0] sm:$0xfc]  ;;  %v6253_v43 = vld [vmem:[%s6987_s12 + $0xd8] sm:$0x3]  ;;  %v4682_v45 = vrot.slane %v6264_v4, 2  ;;  %v4651_v1 = vsel %vm1331_vm2, %v4649_v0, %v4650_v18 }
 0x1aa   : > { %5014 = vmatpush2.bf16.msra.mxu1 %v6894_v46  ;;  %v2191_v57 = vpop.f32.mrf.mxu0  ;;  %v6273_v46 = vld [vmem:[%s6987_s12 + $0x178] sm:$0x3]  ;;  %v4659_v50 = vrot.slane %v6253_v43, 2  ;;  %v6279_v18 = vld [vmem:[%s6987_s12 + $0x1a8] sm:$0x3]  ;;  %v4700_v48 = vrot.slane %v6276_v11, 2 }
 0x1ab   : > { %v9015_v60 = vadd.f32 %v2263_v35, %v9484_v30  ;;  %v2265_v55 = vadd.f32 %v2264_v10, %v2191_v57  ;;  %5015 = vmatprep.subr.bf16.mxu1 %v6899_v27  ;;  %v4683_v10 = vrot.slane %v6267_v56, 2  ;;  %v4658_v35 = vrot.slane %v6250_v34, 2  ;;  %v6282_v17 = vld [vmem:[%s6987_s12 + $0x1c0] sm:$0xfc]  ;;  %v6284_v37 = vld [vmem:[%s6987_s12 + $0x1d0] sm:$0x3] }
 0x1ac   : > { %6362 = vmatmul.mubr.msk.bf16.vlgmr.msra.gmra.mxu0 %vm728_vm1, %v4738_v16  ;;  %v9024_v61 = vpop.f32.mrf.mxu0  ;;  %v4691_v16 = vrot.slane %v6270_v8, 2  ;;  %v4668_v57 = vrot.slane %v6259_v52, 2  ;;  %v4736_v30 = vpack.c.bf16 %v4651_v1, %v4642_v25  ;;  %v4701_v34 = vrot.slane %v6279_v18, 2  ;;  %v6271_v25 = vld [vmem:[%s6987_s12 + $0x168] sm:$0x3] }
 0x1ad   : > { %v9029_v28 = vadd.f32 %v2265_v55, %v1842_v23  ;;  %5104 = vmatprep.mubr.bf16.mxu0 %v9469_v15  ;;  %v6272_v23 = vld [vmem:[%s6987_s12 + $0x170] sm:$0x3]  ;;  %v4684_v55 = vsel %vm1331_vm2, %v4682_v45, %v4683_v10  ;;  %v4660_v9 = vsel %vm1331_vm2, %v4658_v35, %v4659_v50  ;;  %v4709_v43 = vrot.slane %v6282_v17, 2  ;;  %v6265_v45 = vld [vmem:[%s6987_s12 + $0x138] sm:$0x3] }
 0x1ae   : > { %5016 = vmatpush2.bf16.msra.mxu1 %v6897_v24  ;;  %v9037_v54 = vpop.f32.mrf.mxu0  ;;  %v4692_v24 = vrot.slane %v6273_v46, 2  ;;  %v4689_v33 = vrot.slane %v6272_v23, 2  ;;  %v4669_v4 = vsel %vm1331_vm2, %v4667_v29, %v4668_v57  ;;  %v6262_v46 = vld [vmem:[%s6987_s12 + $0x120] sm:$0xfc]  ;;  %v6268_v10 = vld [vmem:[%s6987_s12 + $0x150] sm:$0xfc] }
 0x1af   : > { %5017 = vmatprep.subr.bf16.mxu1 %v6905_v59  ;;  %v4676_v1 = vrot.slane %v6262_v46, 2  ;;  %v6275_v35 = vld [vmem:[%s6987_s12 + $0x188] sm:$0xfc]  ;;  %v6278_v29 = vld [vmem:[%s6987_s12 + $0x1a0] sm:$0x3]  ;;  %v4677_v62 = vrot.slane %v6265_v45, 2 }
 0x1b0   : > { %v9044_v27 = vpop.f32.mrf.mxu0  ;;  %v4693_v59 = vsel %vm1331_vm2, %v4691_v16, %v4692_v24  ;;  %v6281_v57 = vld [vmem:[%s6987_s12 + $0x1b8] sm:$0xfc]  ;;  %v4685_v23 = vrot.slane %v6268_v10, 2  ;;  %v4686_v11 = vrot.slane %v6271_v25, 2  ;;  %v4697_v17 = vrot.slane %v6275_v35, 2 }
 0x1b1   : > { %v4744_v56 = vpack.c.bf16 %v4693_v59, %v4684_v55 }
 0x1b2   : > { %5018 = vmatpush2.bf16.msra.mxu1 %v6903_v12  ;;  %v9053_v31 = vpop.f32.mrf.mxu0  ;;  %v4740_v12 = vpack.c.bf16 %v4672_v14, %v4663_v32  ;;  %v4739_v32 = vpack.c.bf16 %v4669_v4, %v4660_v9  ;;  %v4687_v46 = vsel %vm1331_vm2, %v4685_v23, %v4686_v11 }
 0x1b3   : > { %5019 = vmatprep.subr.bf16.mxu1 %v6908_v41  ;;  %v4680_v41 = vrot.slane %v6266_v21, 2 }
 0x1b4   : > { %6363 = vmatmul.mubr.msk.bf16.gmra.mxu0 %vm728_vm1, %v4741_v6  ;;  %v9059_v3 = vpop.f32.mrf.mxu0  ;;  %v4710_v6 = vrot.slane %v6285_v26, 2  ;;  %v4698_v26 = vrot.slane %v6278_v29, 2 }
 0x1b5   : > { %5114 = vmatprep.mubr.bf16.mxu0 %v9469_v15  ;;  %v4681_v24 = vsel %vm1331_vm2, %v4679_v22, %v4680_v41  ;;  %v4706_v22 = vrot.slane %v6281_v57, 2 }
 0x1b6   : > { %5020 = vmatpush2.bf16.msra.mxu1 %v6906_v42  ;;  %v9068_v0 = vpop.f32.mrf.mxu0  ;;  %v4690_v42 = vsel %vm1331_vm2, %v4688_v13, %v4689_v33  ;;  %v4711_v55 = vsel %vm1331_vm2, %v4709_v43, %v4710_v6  ;;  %v6283_v6 = vld [vmem:[%s6987_s12 + $0x1c8] sm:$0x3] }
 0x1b7   : > { %v4743_v59 = vpack.c.bf16 %v4690_v42, %v4681_v24 }
 0x1b8   : > { %v9075_v8 = vpop.f32.mrf.mxu0 }
 0x1b9   : > { %5022 = vmatmul.mubr.bf16.vlgmr.msra.gmra.mxu1 %v4736_v30  ;;  %v2762_v39 = vpop.f32.mrf.mxu1  ;;  %v4702_v30 = vsel %vm1331_vm2, %v4700_v48, %v4701_v34  ;;  %v6280_v48 = vld [vmem:[%s6987_s12 + $0x1b0] sm:$0xfc] }
 0x1ba   : > { %v2836_v63 = vadd.f32 %v9024_v61, %v2762_v39  ;;  %5031 = vmatprep.mubr.bf16.mxu1 %v4740_v12  ;;  %v9079_v52 = vpop.f32.mrf.mxu0  ;;  %v6274_v39 = vld [vmem:[%s6987_s12 + $0x180] sm:$0xfc]  ;;  %v4703_v42 = vrot.slane %v6280_v48, 2 }
 0x1bb   : > { %v2764_v16 = vpop.f32.mrf.mxu1 }
 0x1bc   : > { %v9088_v50 = vadd.f32 %v2836_v63, %v8869_v20  ;;  %v2838_v61 = vadd.f32 %v9037_v54, %v2764_v16  ;;  %6364 = vmatmul.mubr.msk.bf16.gmra.mxu0 %vm728_vm1, %v4744_v56  ;;  %v2855_v14 = vpop.f32.mrf.mxu0  ;;  %v4678_v56 = vsel %vm1331_vm2, %v4676_v1, %v4677_v62  ;;  %v4694_v16 = vrot.slane %v6274_v39, 2 }
 0x1bd   : > { %v2766_v21 = vpop.f32.mrf.mxu1  ;;  %5124 = vmatprep.mubr.bf16.mxu0 %v9469_v15  ;;  %v4707_v15 = vrot.slane %v6284_v37, 2  ;;  %v4742_v45 = vpack.c.bf16 %v4687_v46, %v4678_v56 }
 0x1be   : > { %v9099_v20 = vadd.f32 %v2838_v61, %v8879_v36  ;;  %v2840_v54 = vadd.f32 %v9044_v27, %v2766_v21  ;;  %v2857_v12 = vpop.f32.mrf.mxu0  ;;  %v4747_v36 = vpack.c.bf16 %v4711_v55, %v4702_v30  ;;  %v4704_v61 = vrot.slane %v6283_v6, 2 }
 0x1bf   : > { %v2768_v18 = vpop.f32.mrf.mxu1  ;;  %v4708_v43 = vsel %vm1331_vm2, %v4706_v22, %v4707_v15 }
 0x1c0   : > { %v9103_v41 = vadd.f32 %v2840_v54, %v8893_v51  ;;  %v2842_v13 = vadd.f32 %v9053_v31, %v2768_v18  ;;  %v2859_v33 = vpop.f32.mrf.mxu0  ;;  %v6277_v51 = vld [vmem:[%s6987_s12 + $0x198] sm:$0x3]  ;;  %v4699_v31 = vsel %vm1331_vm2, %v4697_v17, %v4698_v26  ;;  %s6376_s12 = sshll.u32 %s9542_s16, 6 }
 0x1c1   : > { %5032 = vmatmul.mubr.bf16.gmra.mxu1 %v4739_v32  ;;  %v2772_v27 = vpop.f32.mrf.mxu1  ;;  %v4695_v24 = vrot.slane %v6277_v51, 2  ;;  %v4746_v35 = vpack.c.bf16 %v4708_v43, %v4699_v31  ;;  %s9383_s14 = scalar_lea.vmem %s9451_s2, %s6376_s12 }
 0x1c2   : > { %v9107_v9 = vadd.f32 %v2842_v13, %v8905_v5  ;;  %v2846_v4 = vadd.f32 %v9059_v3, %v2772_v27  ;;  %5041 = vmatprep.mubr.bf16.mxu1 %v4743_v59  ;;  %v2861_v10 = vpop.f32.mrf.mxu0 }
 0x1c3   : > { %v2774_v34 = vpop.f32.mrf.mxu1 }
 0x1c4   : > { %v9119_v63 = vadd.f32 %v2846_v4, %v8918_v38  ;;  %v2848_v5 = vadd.f32 %v9068_v0, %v2774_v34  ;;  %6365 = vmatmul.mubr.msk.bf16.gmra.mxu0 %vm728_vm1, %v4747_v36  ;;  %v2865_v57 = vpop.f32.mrf.mxu0 }
 0x1c5   : > { %v2776_v3 = vpop.f32.mrf.mxu1 }
 0x1c6   : > { %v9124_v25 = vadd.f32 %v2848_v5, %v8925_v40  ;;  %v2850_v1 = vadd.f32 %v9075_v8, %v2776_v3  ;;  %v4696_v40 = vsel %vm1331_vm2, %v4694_v16, %v4695_v24  ;;  %v4705_v8 = vsel %vm1331_vm2, %v4703_v42, %v4704_v61 }
 0x1c7   : > { %v2778_v32 = vpop.f32.mrf.mxu1  ;;  %v4745_v55 = vpack.c.bf16 %v4705_v8, %v4696_v40 }
 0x1c8   : > { %v9128_v38 = vadd.f32 %v2850_v1, %v8933_v44  ;;  %v2852_v0 = vadd.f32 %v9079_v52, %v2778_v32  ;;  %v2867_v52 = vpop.f32.mrf.mxu0 }
 0x1c9   : > { %5042 = vmatmul.mubr.bf16.gmra.mxu1 %v4742_v45  ;;  %v2782_v29 = vpop.f32.mrf.mxu1 }
 0x1ca   : > { %v9132_v37 = vadd.f32 %v2852_v0, %v8941_v53  ;;  %v2856_v21 = vadd.f32 %v2855_v14, %v2782_v29  ;;  %5051 = vmatprep.mubr.bf16.mxu1 %v4746_v35  ;;  %v2869_v17 = vpop.f32.mrf.mxu0 }
 0x1cb   : > { %v2784_v62 = vpop.f32.mrf.mxu1 }
 0x1cc   : > { %v9137_v23 = vadd.f32 %v2856_v21, %v8955_v49  ;;  %v2858_v44 = vadd.f32 %v2857_v12, %v2784_v62  ;;  %v2871_v13 = vpop.f32.mrf.mxu0 }
 0x1cd   : > { %v2786_v30 = vpop.f32.mrf.mxu1 }
 0x1ce   : > { %v9140_v54 = vadd.f32 %v2858_v44, %v8963_v58  ;;  %v2860_v59 = vadd.f32 %v2859_v33, %v2786_v30 }
 0x1cf   : > { %v2788_v53 = vpop.f32.mrf.mxu1 }
 0x1d0   : > { %v9143_v14 = vadd.f32 %v2860_v59, %v8971_v19  ;;  %v2862_v11 = vadd.f32 %v2861_v10, %v2788_v53 }
 0x1d1   : > { %5052 = vmatmul.mubr.bf16.gmra.mxu1 %v4745_v55  ;;  %v2792_v18 = vpop.f32.mrf.mxu1 }
 0x1d2   : > { %v9146_v26 = vadd.f32 %v2862_v11, %v8978_v47  ;;  %v2866_v49 = vadd.f32 %v2865_v57, %v2792_v18 }
 0x1d3   : > { %v2794_v12 = vpop.f32.mrf.mxu1 }
 0x1d4   : > { %v9149_v22 = vadd.f32 %v2866_v49, %v8992_v7  ;;  %v2868_v15 = vadd.f32 %v2867_v52, %v2794_v12 }
 0x1d5   : > { %v2796_v58 = vpop.f32.mrf.mxu1 }
 0x1d6   : > { %v9152_v36 = vadd.f32 %v2868_v15, %v9006_v2  ;;  %v2870_v19 = vadd.f32 %v2869_v17, %v2796_v58 }
 0x1d7   : > { %v2798_v27 = vpop.f32.mrf.mxu1 }
 0x1d8   : > { %v9155_v33 = vadd.f32 %v2870_v19, %v9015_v60  ;;  %v2872_v4 = vadd.f32 %v2871_v13, %v2798_v27 }
 0x1d9   : > { %v3442_v56 = vpop.f32.mrf.mxu1 }
 0x1da   : > { %v9158_v47 = vadd.f32 %v2872_v4, %v9029_v28 }
 0x1db   : > { %v3444_v46 = vpop.f32.mrf.mxu1 }
 0x1dd   : > { %v3446_v39 = vpop.f32.mrf.mxu1 }
 0x1df   : > { %v3448_v7 = vpop.f32.mrf.mxu1 }
 0x1e1   : > { %v3452_v51 = vpop.f32.mrf.mxu1 }
 0x1e3   : > { %v3454_v48 = vpop.f32.mrf.mxu1 }
 0x1e5   : > { %v3456_v34 = vpop.f32.mrf.mxu1 }
 0x1e7   : > { %v3458_v31 = vpop.f32.mrf.mxu1 }
 0x1e9   : > { %v3462_v2 = vpop.f32.mrf.mxu1 }
 0x1eb   : > { %v3464_v10 = vpop.f32.mrf.mxu1 }
 0x1ec   : > { %v3369_v43 = vpop.f32.mrf.mxu0 }
 0x1ed   : > { %v3443_v6 = vadd.f32 %v3442_v56, %v3369_v43  ;;  %v3466_v61 = vpop.f32.mrf.mxu1 }
 0x1ee   : > { %v3371_v5 = vpop.f32.mrf.mxu0 }
 0x1ef   : > { %v9161_v3 = vadd.f32 %v3443_v6, %v9088_v50  ;;  %v3445_v60 = vadd.f32 %v3444_v46, %v3371_v5 }
 0x1f0   : > { %v3373_v45 = vpop.f32.mrf.mxu0 }
 0x1f1   : > { %v9164_v28 = vadd.f32 %v3445_v60, %v9099_v20  ;;  %v3447_v16 = vadd.f32 %v3446_v39, %v3373_v45  ;;  %v3468_v20 = vpop.f32.mrf.mxu1 }
 0x1f2   : > { %v3375_v24 = vpop.f32.mrf.mxu0 }
 0x1f3   : > { %v9167_v42 = vadd.f32 %v3447_v16, %v9103_v41  ;;  %v3449_v1 = vadd.f32 %v3448_v7, %v3375_v24 }
 0x1f4   : > { %v3379_v35 = vpop.f32.mrf.mxu0 }
 0x1f5   : > { %v9170_v32 = vadd.f32 %v3449_v1, %v9107_v9  ;;  %v3453_v0 = vadd.f32 %v3452_v51, %v3379_v35  ;;  %v3472_v9 = vpop.f32.mrf.mxu1 }
 0x1f6   : > { %v3381_v50 = vpop.f32.mrf.mxu0 }
 0x1f7   : > { %v9173_v29 = vadd.f32 %v3453_v0, %v9119_v63  ;;  %v3455_v57 = vadd.f32 %v3454_v48, %v3381_v50 }
 0x1f8   : > { %v3383_v21 = vpop.f32.mrf.mxu0 }
 0x1f9   : > { %v9176_v40 = vadd.f32 %v3455_v57, %v9124_v25  ;;  %v3457_v8 = vadd.f32 %v3456_v34, %v3383_v21  ;;  %v3474_v25 = vpop.f32.mrf.mxu1 }
 0x1fa   : > { %v3385_v41 = vpop.f32.mrf.mxu0 }
 0x1fb   : > { %v9179_v62 = vadd.f32 %v3457_v8, %v9128_v38  ;;  %v3459_v44 = vadd.f32 %v3458_v31, %v3385_v41 }
 0x1fc   : > { %v3389_v30 = vpop.f32.mrf.mxu0 }
 0x1fd   : > { %v9182_v55 = vadd.f32 %v3459_v44, %v9132_v37  ;;  %v3463_v52 = vadd.f32 %v3462_v2, %v3389_v30  ;;  %v3476_v37 = vpop.f32.mrf.mxu1 }
 0x1fe   : > { %v3391_v63 = vpop.f32.mrf.mxu0 }
 0x1ff   : > { %v9185_v59 = vadd.f32 %v3463_v52, %v9137_v23  ;;  %v3465_v53 = vadd.f32 %v3464_v10, %v3391_v63 }
 0x200   : > { %v3393_v11 = vpop.f32.mrf.mxu0 }
 0x201   : > { %v9188_v18 = vadd.f32 %v3465_v53, %v9140_v54  ;;  %v3467_v17 = vadd.f32 %v3466_v61, %v3393_v11  ;;  %v3478_v54 = vpop.f32.mrf.mxu1 }
 0x202   : > { %v3395_v38 = vpop.f32.mrf.mxu0 }
 0x203   : > { %v9191_v49 = vadd.f32 %v3467_v17, %v9143_v14  ;;  %v3469_v12 = vadd.f32 %v3468_v20, %v3395_v38 }
 0x204   : > { %v3399_v15 = vpop.f32.mrf.mxu0 }
 0x205   : > { %v9194_v58 = vadd.f32 %v3469_v12, %v9146_v26  ;;  %v3473_v13 = vadd.f32 %v3472_v9, %v3399_v15 }
 0x206   : > { %v3401_v23 = vpop.f32.mrf.mxu0 }
 0x207   : > { %v9197_v19 = vadd.f32 %v3473_v13, %v9149_v22  ;;  %v3475_v27 = vadd.f32 %v3474_v25, %v3401_v23 }
 0x208   : > { %v3403_v4 = vpop.f32.mrf.mxu0 }
 0x209   : > { %9485 = vst [vmem:[#allocation7_spill] sm:$0xff] %v9197_v19  ;;  %v9200_v56 = vadd.f32 %v3475_v27, %v9152_v36  ;;  %v3477_v46 = vadd.f32 %v3476_v37, %v3403_v4 }
 0x20a   : > { %v3405_v14 = vpop.f32.mrf.mxu0 }
 0x20b   : > { %9486 = vst [vmem:[#allocation4_spill] sm:$0xff] %v9200_v56  ;;  %v9203_v39 = vadd.f32 %v3477_v46, %v9155_v33  ;;  %v3479_v7 = vadd.f32 %v3478_v54, %v3405_v14 }
 0x20c   : > { %v9208_v51 = vpop.f32.mrf.mxu0 }
 0x20d   : > { %9487 = vst [vmem:[#allocation8_spill] sm:$0xff] %v9203_v39  ;;  %v9206_v26 = vadd.f32 %v3479_v7, %v9158_v47 }
 0x20e   : > { %v9210_v48 = vpop.f32.mrf.mxu0 }
 0x20f   : > { %9488 = vst [vmem:[#allocation10_spill] sm:$0xff] %v9206_v26 }
 0x210   : > { %v9212_v22 = vpop.f32.mrf.mxu0 }
 0x212   : > { %v9218_v36 = vpop.f32.mrf.mxu0 }
 0x214   : > { %v9222_v33 = vpop.f32.mrf.mxu0 }
 0x216   : > { %v9228_v6 = vpop.f32.mrf.mxu0 }
 0x218   : > { %v9234_v45 = vpop.f32.mrf.mxu0 }
 0x219   : > { %v9214_v34 = vpop.f32.mrf.mxu1 }
 0x21a   : > { %v9240_v24 = vpop.f32.mrf.mxu0 }
 0x21b   : > { %v9216_v31 = vpop.f32.mrf.mxu1 }
 0x21c   : > { %v9246_v61 = vpop.f32.mrf.mxu0 }
 0x21d   : > { %v9220_v43 = vpop.f32.mrf.mxu1 }
 0x21e   : > { %v9252_v57 = vpop.f32.mrf.mxu0 }
 0x21f   : > { %v9224_v2 = vpop.f32.mrf.mxu1 }
 0x220   : > { %v9258_v8 = vpop.f32.mrf.mxu0 }
 0x221   : > { %v9226_v47 = vpop.f32.mrf.mxu1 }
 0x222   : > { %v9262_v44 = vpop.f32.mrf.mxu0 }
 0x223   : > { %v9230_v5 = vpop.f32.mrf.mxu1 }
 0x224   : > { %v9264_v9 = vpop.f32.mrf.mxu0 }
 0x225   : > { %v9232_v60 = vpop.f32.mrf.mxu1 }
 0x226   : > { %v9266_v63 = vpop.f32.mrf.mxu0 }
 0x227   : > { %v9236_v10 = vpop.f32.mrf.mxu1  ;;  %9492 = vst [vmem:[#allocation6_spill] sm:$0xff] %v9266_v63 }
 0x228   : > { %v9268_v11 = vpop.f32.mrf.mxu0 }
 0x229   : > { %v9238_v16 = vpop.f32.mrf.mxu1  ;;  %9493 = vst [vmem:[#allocation11_spill] sm:$0xff] %v9268_v11 }
 0x22a   : > { %v9272_v17 = vpop.f32.mrf.mxu0 }
 0x22b   : > { %v9242_v1 = vpop.f32.mrf.mxu1  ;;  %9494 = vst [vmem:[#allocation5_spill] sm:$0xff] %v9272_v17 }
 0x22d   : > { %v9244_v35 = vpop.f32.mrf.mxu1 }
 0x22f   : > { %v9248_v0 = vpop.f32.mrf.mxu1 }
 0x231   : > { %v9250_v50 = vpop.f32.mrf.mxu1 }
 0x233   : > { %v9254_v21 = vpop.f32.mrf.mxu1 }
 0x234   : > { %9489 = vst [vmem:[#allocation9_spill] sm:$0xff] %v9254_v21 }
 0x235   : > { %v9256_v20 = vpop.f32.mrf.mxu1 }
 0x236   : > { %9490 = vst [vmem:[#allocation3_spill] sm:$0xff] %v9256_v20 }
 0x237   : > { %v9260_v41 = vpop.f32.mrf.mxu1 }
 0x238   : > { %9491 = vst [vmem:[#allocation2_spill] sm:$0xff] %v9260_v41 }
 0x239   : > { %v4489_v30 = vpop.f32.mrf.mxu1 }
 0x23b   : > { %v4491_v52 = vpop.f32.mrf.mxu1 }
 0x23d   : > { %v4493_v53 = vpop.f32.mrf.mxu1 }
 0x23f   : > { %v9270_v25 = vpop.f32.mrf.mxu1 }
 0x241   : > { %v9274_v38 = vpop.f32.mrf.mxu1 }
 0x243   : > { %v9276_v37 = vpop.f32.mrf.mxu1 }
 0x245   : > { %v9278_v27 = vpop.f32.mrf.mxu1 }
 0x246   : > { %9495 = vst [vmem:[#allocation12_spill] sm:$0xff] %v9278_v27 }
 0x247   : > { %v9284_v46 = vpop.f32.mrf.mxu1 }
 0x248   : > { %9496 = vst [vmem:[#allocation14_spill] sm:$0xff] %v9284_v46 }
 0x249   : > { %v9290_v26 = vpop.f32.mrf.mxu1 }
 0x24a   : > { %9498 = vst [vmem:[#allocation15_spill] sm:$0xff] %v9290_v26 }
 0x24b   : > { %v9296_v41 = vpop.f32.mrf.mxu1 }
 0x24c   : > { %v4416_v12 = vpop.f32.mrf.mxu0  ;;  %9501 = vst [vmem:[#allocation18_spill] sm:$0xff] %v9296_v41 }
 0x24d   : > { %v9302_v56 = vpop.f32.mrf.mxu1 }
 0x24e   : > { %v4418_v15 = vpop.f32.mrf.mxu0  ;;  %9504 = vst [vmem:[#allocation21_spill] sm:$0xff] %v9302_v56  ;;  %v4490_v56 = vadd.f32 %v4489_v30, %v4416_v12 }
 0x24f   : > { %v9308_v19 = vpop.f32.mrf.mxu1 }
 0x250   : > { %v4420_v13 = vpop.f32.mrf.mxu0  ;;  %9507 = vst [vmem:[#allocation24_spill] sm:$0xff] %v9308_v19 }
 0x252   : > { %v4422_v23 = vpop.f32.mrf.mxu0 }
 0x254   : > { %v9280_v4 = vpop.f32.mrf.mxu0 }
 0x256   : > { %v9282_v54 = vpop.f32.mrf.mxu0 }
 0x258   : > { %v9286_v14 = vpop.f32.mrf.mxu0 }
 0x25a   : > { %v9288_v7 = vpop.f32.mrf.mxu0 }
 0x25b   : > { %9497 = vst [vmem:[#allocation13_spill] sm:$0xff] %v9288_v7 }
 0x25c   : > { %v9292_v39 = vpop.f32.mrf.mxu0 }
 0x25d   : > { %9499 = vst [vmem:[#allocation16_spill] sm:$0xff] %v9292_v39  ;;  %v9314_v39 = vpop.f32.mrf.mxu1 }
 0x25e   : > { %v9294_v17 = vpop.f32.mrf.mxu0  ;;  %9510 = vst [vmem:[#allocation27_spill] sm:$0xff] %v9314_v39 }
 0x25f   : > { %9500 = vst [vmem:[#allocation17_spill] sm:$0xff] %v9294_v17  ;;  %v9316_v7 = vpop.f32.mrf.mxu1 }
 0x260   : > { %v9298_v11 = vpop.f32.mrf.mxu0  ;;  %9511 = vst [vmem:[#allocation28_spill] sm:$0xff] %v9316_v7  ;;  %v3893_v7 = vadd.f32 %v9222_v33, %v9226_v47  ;;  %v3899_v33 = vadd.f32 %v9240_v24, %v9236_v10  ;;  %v3905_v47 = vadd.f32 %v9252_v57, %v9242_v1  ;;  %v4496_v24 = vadd.f32 %v9270_v25, %v4422_v23 }
 0x261   : > { %9502 = vst [vmem:[#allocation19_spill] sm:$0xff] %v9298_v11  ;;  %v9318_v27 = vpop.f32.mrf.mxu1 }
 0x262   : > { %v9300_v20 = vpop.f32.mrf.mxu0  ;;  %9512 = vst [vmem:[#allocation29_spill] sm:$0xff] %v9318_v27  ;;  %v9514_v25 = vld [vmem:[#allocation13_spill] sm:$0xff] }
 0x263   : > { %9503 = vst [vmem:[#allocation20_spill] sm:$0xff] %v9300_v20  ;;  %v9332_v27 = vpop.f32.mrf.mxu1 }
 0x264   : > { %v9304_v63 = vpop.f32.mrf.mxu0 }
 0x265   : > { %9505 = vst [vmem:[#allocation22_spill] sm:$0xff] %v9304_v63  ;;  %v3883_v63 = vadd.f32 %v9208_v51, %v9214_v34 }
 0x266   : > { %v9306_v21 = vpop.f32.mrf.mxu0 }
 0x267   : > { %9506 = vst [vmem:[#allocation23_spill] sm:$0xff] %v9306_v21  ;;  %v3885_v21 = vadd.f32 %v9210_v48, %v9216_v31  ;;  %v3921_v51 = vadd.f32 %v3883_v63, %v9161_v3  ;;  %v3895_v48 = vadd.f32 %v9228_v6, %v9230_v5  ;;  %v4492_v31 = vadd.f32 %v4491_v52, %v4418_v15 }
 0x268   : > { %v9310_v46 = vpop.f32.mrf.mxu0  ;;  %v3903_v3 = vadd.f32 %v9246_v61, %v9238_v16  ;;  %v4494_v6 = vadd.f32 %v4493_v53, %v4420_v13 }
 0x269   : > { %9508 = vst [vmem:[#allocation25_spill] sm:$0xff] %v9310_v46  ;;  %v3889_v46 = vadd.f32 %v9218_v36, %v9224_v2  ;;  %v3922_v34 = vadd.f32 %v3885_v21, %v9164_v28  ;;  %v3926_v16 = vadd.f32 %v3895_v48, %v9176_v40 }
 0x26a   : > { %v9312_v26 = vpop.f32.mrf.mxu0 }
 0x26b   : > { %9509 = vst [vmem:[#allocation26_spill] sm:$0xff] %v9312_v26  ;;  %v3887_v26 = vadd.f32 %v9212_v22, %v9220_v43  ;;  %v3897_v43 = vadd.f32 %v9234_v45, %v9232_v60  ;;  %v3924_v28 = vadd.f32 %v3889_v46, %v9170_v32  ;;  %v3909_v60 = vadd.f32 %v9262_v44, %v9248_v0 }
 0x26c   : > { %v5096_v17 = vpop.f32.mrf.mxu0  ;;  %v4528_v45 = vadd.f32 %v4490_v56, %v3921_v51  ;;  %v4529_v32 = vadd.f32 %v4492_v31, %v3922_v34  ;;  %v9368_v56 = vadd.f32 %v3905_v47, %v9188_v18  ;;  %v9518_v34 = vld [vmem:[#allocation6_spill] sm:$0xff] }
 0x26d   : > { %v3923_v36 = vadd.f32 %v3887_v26, %v9167_v42  ;;  %v3925_v42 = vadd.f32 %v3893_v7, %v9173_v29  ;;  %v3907_v26 = vadd.f32 %v9258_v8, %v9244_v35  ;;  %v3927_v57 = vadd.f32 %v3897_v43, %v9179_v62  ;;  %v9516_v7 = vld [vmem:[#allocation7_spill] sm:$0xff] }
 0x26e   : > { %v5098_v41 = vpop.f32.mrf.mxu0  ;;  %v3928_v29 = vadd.f32 %v3899_v33, %v9182_v55  ;;  %v9365_v35 = vadd.f32 %v3903_v3, %v9185_v59  ;;  %v3913_v62 = vadd.f32 %v9264_v9, %v9250_v50  ;;  %v4500_v55 = vadd.f32 %v9274_v38, %v9280_v4  ;;  %v9513_v50 = vld [vmem:[#allocation12_spill] sm:$0xff] }
 0x26f   : > { %v4530_v40 = vadd.f32 %v4494_v6, %v3923_v36  ;;  %v9371_v52 = vadd.f32 %v3907_v26, %v9191_v49  ;;  %v4531_v49 = vadd.f32 %v4496_v24, %v3924_v28  ;;  %v4504_v9 = vadd.f32 %v9513_v50, %v9286_v14  ;;  %v9519_v26 = vld [vmem:[#allocation16_spill] sm:$0xff]  ;;  %v9522_v24 = vld [vmem:[#allocation18_spill] sm:$0xff] }
 0x270   : > { %v5100_v11 = vpop.f32.mrf.mxu0  ;;  %v9395_v51 = vadd.f32 %v3913_v62, %v9516_v7  ;;  %v9525_v62 = vld [vmem:[#allocation20_spill] sm:$0xff] }
 0x271   : > { %v4534_v28 = vadd.f32 %v4504_v9, %v3927_v57 }
 0x272   : > { %v5102_v20 = vpop.f32.mrf.mxu0 }
 0x274   : > { %v5106_v19 = vpop.f32.mrf.mxu0 }
 0x276   : > { %v9328_v39 = vpop.f32.mrf.mxu0 }
 0x278   : > { %v9338_v22 = vpop.f32.mrf.mxu0 }
 0x279   : > { %v5023_v2 = vpop.f32.mrf.mxu1 }
 0x27a   : > { %v5097_v5 = vadd.f32 %v5096_v17, %v5023_v2  ;;  %v9350_v21 = vpop.f32.mrf.mxu0  ;;  %v9515_v17 = vld [vmem:[#allocation14_spill] sm:$0xff] }
 0x27b   : > { %v5025_v10 = vpop.f32.mrf.mxu1  ;;  %v4506_v38 = vadd.f32 %v9515_v17, %v9514_v25 }
 0x27c   : > { %v5099_v1 = vadd.f32 %v5098_v41, %v5025_v10  ;;  %v9360_v61 = vpop.f32.mrf.mxu0  ;;  %v5135_v8 = vadd.f32 %v5097_v5, %v4528_v45  ;;  %v9374_v41 = vadd.f32 %v3909_v60, %v9194_v58  ;;  %v9520_v60 = vld [vmem:[#allocation15_spill] sm:$0xff] }
 0x27d   : > { %v5027_v0 = vpop.f32.mrf.mxu1  ;;  %v4535_v5 = vadd.f32 %v4506_v38, %v3928_v29  ;;  %v4510_v45 = vadd.f32 %v9520_v60, %v9519_v26  ;;  %v9526_v29 = vld [vmem:[#allocation24_spill] sm:$0xff] }
 0x27e   : > { %v5136_v44 = vadd.f32 %v5099_v1, %v4529_v32  ;;  %v5101_v30 = vadd.f32 %v5100_v11, %v5027_v0  ;;  %v9385_v18 = vpop.f32.mrf.mxu0  ;;  %v4502_v11 = vadd.f32 %v9276_v37, %v9282_v54  ;;  %v5256_v12 = vmul.f32 %v5135_v8, %v5135_v8  ;;  %v9521_v32 = vld [vmem:[#allocation17_spill] sm:$0xff]  ;;  %v9527_v38 = vld [vmem:[#allocation4_spill] sm:$0xff] }
 0x27f   : > { %v5029_v59 = vpop.f32.mrf.mxu1  ;;  %v4532_v37 = vadd.f32 %v4500_v55, %v3925_v42  ;;  %v4512_v1 = vadd.f32 %v9522_v24, %v9521_v32  ;;  %v4516_v55 = vadd.f32 %v9526_v29, %v9525_v62  ;;  %v9535_v32 = vld [vmem:[#allocation28_spill] sm:$0xff] }
 0x280   : > { %v6377_v63 = vpack.c.bf16 %v5136_v44, %v5135_v8  ;;  %v5137_v53 = vadd.f32 %v5101_v30, %v4530_v40  ;;  %v5103_v58 = vadd.f32 %v5102_v20, %v5029_v59  ;;  %v9517_v20 = vld [vmem:[#allocation9_spill] sm:$0xff]  ;;  %v5257_v54 = vmul.f32 %v5136_v44, %v5136_v44  ;;  %v5120_v31 = vpop.f32.mrf.mxu0 }
 0x281   : > { %v5033_v15 = vpop.f32.mrf.mxu1  ;;  %v3915_v48 = vadd.f32 %v9518_v34, %v9517_v20  ;;  %v4533_v2 = vadd.f32 %v4502_v11, %v3926_v16  ;;  %v9524_v30 = vld [vmem:[#allocation21_spill] sm:$0xff] }
 0x282   : > { %5199 = vst [vmem:[%s9383_s14] sm:$0xff] %v6377_v63  ;;  %v5207_v13 = vadd.f32 %v5137_v53, %v5135_v8  ;;  %v5258_v23 = vmul.f32 %v5137_v53, %v5137_v53  ;;  %v5138_v4 = vadd.f32 %v5103_v58, %v4531_v49  ;;  %v5107_v46 = vadd.f32 %v5106_v19, %v5033_v15  ;;  %v5122_v57 = vpop.f32.mrf.mxu0  ;;  %v9528_v15 = vld [vmem:[#allocation3_spill] sm:$0xff] }
 0x283   : > { %v5035_v14 = vpop.f32.mrf.mxu1 }
 0x284   : > { %v5272_v36 = vadd.f32 %v5258_v23, %v5256_v12  ;;  %v6378_v43 = vpack.c.bf16 %v5138_v4, %v5137_v53  ;;  %v5220_v33 = vadd.f32 %v5138_v4, %v5136_v44  ;;  %v5259_v3 = vmul.f32 %v5138_v4, %v5138_v4  ;;  %v9523_v44 = vld [vmem:[#allocation19_spill] sm:$0xff]  ;;  %v5126_v7 = vpop.f32.mrf.mxu0 }
 0x285   : > { %v5139_v47 = vadd.f32 %v5107_v46, %v4532_v37  ;;  %v5109_v19 = vadd.f32 %v9328_v39, %v5035_v14  ;;  %v5037_v6 = vpop.f32.mrf.mxu1  ;;  %v4514_v39 = vadd.f32 %v9524_v30, %v9523_v44  ;;  %v3934_v12 = vadd.f32 %v3915_v48, %v9527_v38  ;;  %v9530_v14 = vld [vmem:[#allocation2_spill] sm:$0xff] }
 0x286   : > { %5200 = vst [vmem:[%s9383_s14 + $0x8] sm:$0xff] %v6378_v43  ;;  %v5285_v10 = vadd.f32 %v5259_v3, %v5257_v54  ;;  %v5111_v42 = vadd.f32 %v9338_v22, %v5037_v6  ;;  %v4536_v4 = vadd.f32 %v4510_v45, %v9365_v35  ;;  %v9533_v6 = vld [vmem:[#allocation27_spill] sm:$0xff] }
 0x287   : > { %v5208_v8 = vadd.f32 %v5207_v13, %v5139_v47  ;;  %v5260_v0 = vmul.f32 %v5139_v47, %v5139_v47  ;;  %v5140_v40 = vadd.f32 %v5109_v19, %v4533_v2  ;;  %v5039_v16 = vpop.f32.mrf.mxu1  ;;  %v9529_v13 = vld [vmem:[#allocation11_spill] sm:$0xff]  ;;  %v4538_v35 = vadd.f32 %v4514_v39, %v9371_v52  ;;  %v9532_v19 = vld [vmem:[#allocation22_spill] sm:$0xff] }
 0x288   : > { %v5141_v59 = vadd.f32 %v5111_v42, %v4534_v28  ;;  %v5113_v49 = vadd.f32 %v9350_v21, %v5039_v16  ;;  %v3917_v23 = vadd.f32 %v9529_v13, %v9528_v15  ;;  %v4539_v2 = vadd.f32 %v4516_v55, %v9374_v41  ;;  %v9538_v55 = vld [vmem:[#allocation8_spill] sm:$0xff] }
 0x289   : > { %v5273_v63 = vadd.f32 %v5272_v36, %v5260_v0  ;;  %v6379_v22 = vpack.c.bf16 %v5140_v40, %v5139_v47  ;;  %v5221_v53 = vadd.f32 %v5220_v33, %v5140_v40  ;;  %v5261_v58 = vmul.f32 %v5140_v40, %v5140_v40  ;;  %v5043_v11 = vpop.f32.mrf.mxu1  ;;  %v9531_v36 = vld [vmem:[#allocation5_spill] sm:$0xff] }
 0x28a   : > { %v5209_v50 = vadd.f32 %v5208_v8, %v5141_v59  ;;  %v5262_v9 = vmul.f32 %v5141_v59, %v5141_v59  ;;  %v5142_v25 = vadd.f32 %v5113_v49, %v4535_v5  ;;  %v5117_v17 = vadd.f32 %v9360_v61, %v5043_v11 }
 0x28b   : > { %5201 = vst [vmem:[%s9383_s14 + $0x10] sm:$0xff] %v6379_v22  ;;  %v5286_v21 = vadd.f32 %v5285_v10, %v5261_v58  ;;  %v5045_v46 = vpop.f32.mrf.mxu1  ;;  %v3919_v43 = vadd.f32 %v9531_v36, %v9530_v14  ;;  %v4537_v61 = vadd.f32 %v4512_v1, %v9368_v56  ;;  %v4520_v5 = vadd.f32 %v9533_v6, %v9532_v19  ;;  %v5128_v10 = vpop.f32.mrf.mxu0  ;;  %v9534_v56 = vld [vmem:[#allocation23_spill] sm:$0xff]  ;;  %v9537_v1 = vld [vmem:[#allocation29_spill] sm:$0xff] }
 0x28c   : > { %v5274_v20 = vadd.f32 %v5273_v63, %v5262_v9  ;;  %v6380_v34 = vpack.c.bf16 %v5142_v25, %v5141_v59  ;;  %v5222_v37 = vadd.f32 %v5221_v53, %v5142_v25  ;;  %v5263_v54 = vmul.f32 %v5142_v25, %v5142_v25  ;;  %v9539_v63 = vld [vmem:[#allocation26_spill] sm:$0xff] }
 0x28d   : > { %v5143_v48 = vadd.f32 %v5117_v17, %v4536_v4  ;;  %v5119_v33 = vadd.f32 %v9385_v18, %v5045_v46  ;;  %v5047_v3 = vpop.f32.mrf.mxu1  ;;  %v4522_v24 = vadd.f32 %v9535_v32, %v9534_v56  ;;  %v9536_v18 = vld [vmem:[#allocation25_spill] sm:$0xff]  ;;  %v3935_v59 = vadd.f32 %v3917_v23, %v9538_v55  ;;  %v9540_v4 = vld [vmem:[#allocation10_spill] sm:$0xff] }
 0x28e   : > { %5202 = vst [vmem:[%s9383_s14 + $0x18] sm:$0xff] %v6380_v34  ;;  %v5287_v28 = vadd.f32 %v5286_v21, %v5263_v54  ;;  %v5121_v47 = vadd.f32 %v5120_v31, %v5047_v3  ;;  %v4524_v52 = vadd.f32 %v9537_v1, %v9536_v18  ;;  %v4540_v49 = vadd.f32 %v4520_v5, %v9395_v51 }
 0x28f   : > { %v5210_v26 = vadd.f32 %v5209_v50, %v5143_v48  ;;  %v5264_v60 = vmul.f32 %v5143_v48, %v5143_v48  ;;  %v5144_v45 = vadd.f32 %v5119_v33, %v4537_v61  ;;  %v5049_v42 = vpop.f32.mrf.mxu1  ;;  %v4526_v22 = vadd.f32 %v9332_v27, %v9539_v63 }
 0x290   : > { %v5145_v8 = vadd.f32 %v5121_v47, %v4538_v35  ;;  %v5123_v41 = vadd.f32 %v5122_v57, %v5049_v42  ;;  %v5130_v57 = vpop.f32.mrf.mxu0  ;;  %v4541_v17 = vadd.f32 %v4522_v24, %v3934_v12  ;;  %v3936_v23 = vadd.f32 %v3919_v43, %v9540_v4 }
 0x291   : > { %v5275_v0 = vadd.f32 %v5274_v20, %v5264_v60  ;;  %v6381_v40 = vpack.c.bf16 %v5144_v45, %v5143_v48  ;;  %v5223_v31 = vadd.f32 %v5222_v37, %v5144_v45  ;;  %v5265_v16 = vmul.f32 %v5144_v45, %v5144_v45  ;;  %v5053_v44 = vpop.f32.mrf.mxu1 }
 0x292   : > { %v5211_v30 = vadd.f32 %v5210_v26, %v5145_v8  ;;  %v5266_v39 = vmul.f32 %v5145_v8, %v5145_v8  ;;  %v5146_v62 = vadd.f32 %v5123_v41, %v4539_v2  ;;  %v5127_v29 = vadd.f32 %v5126_v7, %v5053_v44  ;;  %v5132_v20 = vpop.f32.mrf.mxu0 }
 0x293   : > { %5203 = vst [vmem:[%s9383_s14 + $0x20] sm:$0xff] %v6381_v40  ;;  %v5288_v53 = vadd.f32 %v5287_v28, %v5265_v16  ;;  %v5055_v58 = vpop.f32.mrf.mxu1  ;;  %v4542_v21 = vadd.f32 %v4524_v52, %v3935_v59  ;;  %v4543_v54 = vadd.f32 %v4526_v22, %v3936_v23  ;;  %v5239_v1 = vlaneseq }
 0x294   : > { %v5276_v11 = vadd.f32 %v5275_v0, %v5266_v39  ;;  %v6382_v50 = vpack.c.bf16 %v5146_v62, %v5145_v8  ;;  %v5224_v9 = vadd.f32 %v5223_v31, %v5146_v62  ;;  %v5267_v25 = vmul.f32 %v5146_v62, %v5146_v62 }
 0x295   : > { %v5147_v38 = vadd.f32 %v5127_v29, %v4540_v49  ;;  %v5129_v15 = vadd.f32 %v5128_v10, %v5055_v58  ;;  %v5057_v13 = vpop.f32.mrf.mxu1  ;;  %v6919_v10 = vmov 1966171168   ;;  %v5240_v39 = vshrl.u32 %v5239_v1, 7 }
 0x296   : > { %5204 = vst [vmem:[%s9383_s14 + $0x28] sm:$0xff] %v6382_v50  ;;  %v5289_v51 = vadd.f32 %v5288_v53, %v5267_v25  ;;  %v5131_v46 = vadd.f32 %v5130_v57, %v5057_v13  ;;  %v5237_v42 = vunpack.c.l.s4 %v6919_v10  ;;  %vm5253_vm3 = vcmp.lt.s32.totalorder %v5239_v1, 256 }
 0x297   : > { %v5212_v27 = vadd.f32 %v5211_v30, %v5147_v38  ;;  %v5268_v7 = vmul.f32 %v5147_v38, %v5147_v38  ;;  %v5148_v34 = vadd.f32 %v5129_v15, %v4541_v17  ;;  %v5059_v37 = vpop.f32.mrf.mxu1 }
 0x298   : > { %v5149_v14 = vadd.f32 %v5131_v46, %v4542_v21  ;;  %v5133_v36 = vadd.f32 %v5132_v20, %v5059_v37  ;;  %v5238_v40 = vunpack.c.0.s8 %v5237_v42 }
 0x299   : > { %v5277_v61 = vadd.f32 %v5276_v11, %v5268_v7  ;;  %v6383_v12 = vpack.c.bf16 %v5148_v34, %v5147_v38  ;;  %v5225_v48 = vadd.f32 %v5224_v9, %v5148_v34  ;;  %v5269_v33 = vmul.f32 %v5148_v34, %v5148_v34 }
 0x29a   : > { %v5213_v3 = vadd.f32 %v5212_v27, %v5149_v14  ;;  %v5270_v43 = vmul.f32 %v5149_v14, %v5149_v14  ;;  %v5150_v35 = vadd.f32 %v5133_v36, %v4543_v54  ;;  %v5241_v22 = vsub.s32 %v5238_v40, %v5240_v39 }
 0x29b   : > { %5205 = vst [vmem:[%s9383_s14 + $0x30] sm:$0xff] %v6383_v12  ;;  %v5290_v2 = vadd.f32 %v5289_v51, %v5269_v33 }
 0x29c   : > { %v5214_v28 = vrot.slane %v5213_v3, 4  ;;  %v5278_v47 = vadd.f32 %v5277_v61, %v5270_v43  ;;  %v6384_v19 = vpack.c.bf16 %v5150_v35, %v5149_v14  ;;  %v5226_v6 = vadd.f32 %v5225_v48, %v5150_v35 }
 0x29d   : > { %v5271_v5 = vmul.f32 %v5150_v35, %v5150_v35 }
 0x29e   : > { %v5215_v26 = vadd.f32 %v5214_v28, %v5213_v3  ;;  %v5279_v60 = vrot.slane %v5278_v47, 4  ;;  %5206 = vst [vmem:[%s9383_s14 + $0x38] sm:$0xff] %v6384_v19  ;;  %v5227_v45 = vrot.slane %v5226_v6, 4 }
 0x29f   : > { %v5291_v56 = vadd.f32 %v5290_v2, %v5271_v5 }
 0x2a0   : > { %v5216_v32 = vrot.slane %v5215_v26, 2  ;;  %v5280_v24 = vadd.f32 %v5279_v60, %v5278_v47  ;;  %v5228_v18 = vadd.f32 %v5227_v45, %v5226_v6 }
 0x2a1   : > { %v5292_v52 = vrot.slane %v5291_v56, 4 }
 0x2a2   : > { %v5217_v8 = vadd.f32 %v5216_v32, %v5215_v26  ;;  %v5281_v41 = vrot.slane %v5280_v24, 2  ;;  %v5229_v0 = vrot.slane %v5228_v18, 2 }
 0x2a3   : > { %v5293_v31 = vadd.f32 %v5292_v52, %v5291_v56 }
 0x2a4   : > { %v5218_v16 = vrot.slane %v5217_v8, 1  ;;  %v5282_v44 = vadd.f32 %v5281_v41, %v5280_v24  ;;  %v5230_v30 = vadd.f32 %v5229_v0, %v5228_v18 }
 0x2a5   : > { %v5294_v62 = vrot.slane %v5293_v31, 2 }
 0x2a6   : > { %v5231_v29 = vrot.slane %v5230_v30, 1  ;;  %v5283_v55 = vrot.slane %v5282_v44, 1  ;;  %v5219_v49 = vadd.f32 %v5218_v16, %v5217_v8 }
 0x2a7   : > { %v5295_v59 = vadd.f32 %v5294_v62, %v5293_v31 }
 0x2a8   : > { %v5232_v63 = vadd.f32 %v5231_v29, %v5230_v30  ;;  %v5284_v58 = vadd.f32 %v5283_v55, %v5282_v44 }
 0x2a9   : > { %v5296_v53 = vrot.slane %v5295_v59, 1 }
 0x2aa   : > { %v5235_v57 = vcombine.low %v5219_v49, %v5232_v63 }
 0x2ab   : > { %v5297_v11 = vadd.f32 %v5296_v53, %v5295_v59 }
 0x2ac   : > { %v5242_v50 = vrot.slane %v5235_v57, %v5241_v22 }
 0x2ad   : > { %v5300_v9 = vcombine.low %v5284_v58, %v5297_v11 }
 0x2ae   : > { %v5249_v25 = vrot.slane %v5242_v50, %v5241_v22 }
 0x2af   : > { %v5307_v17 = vrot.slane %v5300_v9, %v5241_v22 }
 0x2b0   : > { %5255 = vst.msk [vmem:[%s214_s20] sm:$0x3] %vm5253_vm3, %v5249_v25 }
 0x2b1   : > { %v5314_v38 = vrot.slane %v5307_v17, %v5241_v22 }
 0x2b3   : > { %5316 = vst.msk [vmem:[%s218_s23] sm:$0x3] %vm5253_vm3, %v5314_v38 }
 0x2b4 PF: > { %s15_s15 = sadd.s32 1, %s6916_s15  }
 0x2b5   : > { %p12_p4 = scmp.ge.s32.totalorder %s15_s15, 4  }
 0x2b7   :  { %14 = sbr.rel (!%p12_p4) target bundleno = 1 (0x1), region = 92 }

// kernel: decoder_forward.10
= control target key start
LH: loop header
LB: loop body
LE: loop exit
PB: predicated region body
PF: predicated region fallthrough
CT: control target
= control target key end

     0   :  { %s5140_s15 = smov 0   ;;  %s6702_s0 = inlined_call_operand.vmem [shape: f32[2,10,10,256], index: 0, kind: input, shape index: {}]   ;;  %s6703_s1 = inlined_call_operand.vmem [shape: bf16[9,256,256], index: 1, kind: input, shape index: {}]   ;;  %s6704_s2 = inlined_call_operand.vmem [shape: bf16[2,64,256], index: 2, kind: output, shape index: {0}]   ;;  %s6705_s3 = inlined_call_operand.vmem [shape: f32[2,1,256], index: 3, kind: output, shape index: {1}]   ;;  %s6706_s4 = inlined_call_operand.vmem [shape: f32[2,1,256], index: 4, kind: output, shape index: {2}]  }
   0x1 LB: > { %s3899_s16 = sadd.s32 4294967295, %s5112_s15   ;;  %p3903_p0 = scmp.ge.s32.totalorder %s5112_s15, 1  ;;  %s5112_s15 = sphi %s5140_s15, %s15_s15  }
   0x2   : > { %p167_p1 = scmp.lt.s32.totalorder %s5112_s15, 3 }
   0x4   : > { %p168_p2 = pnand %p3903_p0, %p167_p1 }
   0x6   : > { %171 = sbr.rel (%p168_p2) target bundleno = 572 (0x23c), region = 28 }
   0xb   : > { %v4674_v0 = vld [vmem:[%s6703_s1 + $0x174] ss:$8 sps:$4 sm:$0xff]   ;;  %v4678_v2 = vld [vmem:[%s6703_s1 + $0x170] ss:$8 sps:$4 sm:$0xff]   ;;  %v4680_v4 = vld [vmem:[%s6703_s1 + $0x164] ss:$8 sps:$4 sm:$0xff]  }
   0xc   : > { %v4676_v1 = vld [vmem:[%s6703_s1 + $0x74] ss:$8 sps:$4 sm:$0xff]   ;;  %605 = vmatprep.subr.bf16.mxu0 %v4674_v0  ;;  %v4679_v3 = vld [vmem:[%s6703_s1 + $0x70] ss:$8 sps:$4 sm:$0xff]   ;;  %v4682_v5 = vld [vmem:[%s6703_s1 + $0x64] ss:$8 sps:$4 sm:$0xff]  }
   0xd   : > { %838 = vmatprep.subr.bf16.mxu1 %v4676_v1  ;;  %606 = vmatpush1.bf16.msra.mxu0 %v4678_v2  ;;  %v4684_v6 = vld [vmem:[%s6703_s1 + $0x160] ss:$8 sps:$4 sm:$0xff]   ;;  %v4686_v8 = vld [vmem:[%s6703_s1 + $0x154] ss:$8 sps:$4 sm:$0xff]   ;;  %v4690_v10 = vld [vmem:[%s6703_s1 + $0x150] ss:$8 sps:$4 sm:$0xff]  }
   0xe   : > { %839 = vmatpush1.bf16.msra.mxu1 %v4679_v3  ;;  %607 = vmatprep.subr.bf16.mxu0 %v4680_v4  ;;  %v4685_v7 = vld [vmem:[%s6703_s1 + $0x60] ss:$8 sps:$4 sm:$0xff]   ;;  %v4688_v9 = vld [vmem:[%s6703_s1 + $0x54] ss:$8 sps:$4 sm:$0xff]   ;;  %v4691_v11 = vld [vmem:[%s6703_s1 + $0x50] ss:$8 sps:$4 sm:$0xff]  }
   0xf   : > { %840 = vmatprep.subr.bf16.mxu1 %v4682_v5  ;;  %v4692_v12 = vld [vmem:[%s6703_s1 + $0x144] ss:$8 sps:$4 sm:$0xff]   ;;  %v4696_v14 = vld [vmem:[%s6703_s1 + $0x140] ss:$8 sps:$4 sm:$0xff]   ;;  %v4698_v16 = vld [vmem:[%s6703_s1 + $0x134] ss:$8 sps:$4 sm:$0xff]  }
  0x10   : > { %v4694_v13 = vld [vmem:[%s6703_s1 + $0x44] ss:$8 sps:$4 sm:$0xff]   ;;  %v4697_v15 = vld [vmem:[%s6703_s1 + $0x40] ss:$8 sps:$4 sm:$0xff]   ;;  %v4700_v17 = vld [vmem:[%s6703_s1 + $0x34] ss:$8 sps:$4 sm:$0xff]  }
  0x11   : > { %608 = vmatpush1.bf16.msra.mxu0 %v4684_v6  ;;  %v4702_v18 = vld [vmem:[%s6703_s1 + $0x130] ss:$8 sps:$4 sm:$0xff]   ;;  %v4704_v20 = vld [vmem:[%s6703_s1 + $0x124] ss:$8 sps:$4 sm:$0xff]   ;;  %v4708_v22 = vld [vmem:[%s6703_s1 + $0x120] ss:$8 sps:$4 sm:$0xff]  }
  0x12   : > { %841 = vmatpush1.bf16.msra.mxu1 %v4685_v7  ;;  %609 = vmatprep.subr.bf16.mxu0 %v4686_v8  ;;  %v4703_v19 = vld [vmem:[%s6703_s1 + $0x30] ss:$8 sps:$4 sm:$0xff]   ;;  %v4706_v21 = vld [vmem:[%s6703_s1 + $0x24] ss:$8 sps:$4 sm:$0xff]   ;;  %v4709_v23 = vld [vmem:[%s6703_s1 + $0x20] ss:$8 sps:$4 sm:$0xff]  }
  0x13   : > { %842 = vmatprep.subr.bf16.mxu1 %v4688_v9  ;;  %v4710_v24 = vld [vmem:[%s6703_s1 + $0x114] ss:$8 sps:$4 sm:$0xff]   ;;  %v4714_v26 = vld [vmem:[%s6703_s1 + $0x110] ss:$8 sps:$4 sm:$0xff]   ;;  %v4716_v28 = vld [vmem:[%s6703_s1 + $0x104] ss:$8 sps:$4 sm:$0xff]  }
  0x14   : > { %v4712_v25 = vld [vmem:[%s6703_s1 + $0x14] ss:$8 sps:$4 sm:$0xff]   ;;  %v4715_v27 = vld [vmem:[%s6703_s1 + $0x10] ss:$8 sps:$4 sm:$0xff]   ;;  %v4718_v29 = vld [vmem:[%s6703_s1 + $0x4] ss:$8 sps:$4 sm:$0xff]  }
  0x15   : > { %610 = vmatpush1.bf16.msra.mxu0 %v4690_v10  ;;  %v4720_v30 = vld [vmem:[%s6703_s1 + $0x100] ss:$8 sps:$4 sm:$0xff]   ;;  %p201_p3 = scmp.lt.s32.totalorder %s3899_s16, 1  ;;  %v4722_v32 = vld [vmem:[%s6703_s1 + $0x1f4] ss:$8 sps:$4 sm:$0xff]   ;;  %vm339_vm0 = vcmask 1046528  }
  0x16   : > { %843 = vmatpush1.bf16.msra.mxu1 %v4691_v11  ;;  %611 = vmatprep.subr.bf16.mxu0 %v4692_v12  ;;  %v4721_v31 = vld [vmem:[%s6703_s1] ss:$8 sps:$4 sm:$0xff]   ;;  %v4724_v33 = vld [vmem:[%s6703_s1 + $0xf4] ss:$8 sps:$4 sm:$0xff]   ;;  %v4726_v34 = vld [vmem:[%s6703_s1 + $0x1f0] ss:$8 sps:$4 sm:$0xff]  }
  0x17   : > { %844 = vmatprep.subr.bf16.mxu1 %v4694_v13  ;;  %v4727_v35 = vld [vmem:[%s6703_s1 + $0xf0] ss:$8 sps:$4 sm:$0xff]   ;;  %s6750_s16 = smov (!%p201_p3, %s3899_s16), 1  ;;  %v4728_v36 = vld [vmem:[%s6703_s1 + $0x1e4] ss:$8 sps:$4 sm:$0xff]   ;;  %vm975_vm1 = vcmask 1045504  }
  0x18   : > { %v4730_v37 = vld [vmem:[%s6703_s1 + $0xe4] ss:$8 sps:$4 sm:$0xff]   ;;  %v4732_v38 = vld [vmem:[%s6703_s1 + $0x1e0] ss:$8 sps:$4 sm:$0xff]   ;;  %s4664_s23 = smul.u32 320, %s6750_s16  ;;  %s3907_s21 = sshll.u32 %s6750_s16, 1 }
  0x19   : > { %612 = vmatpush1.bf16.msra.mxu0 %v4696_v14  ;;  %v4733_v39 = vld [vmem:[%s6703_s1 + $0xe0] ss:$8 sps:$4 sm:$0xff]   ;;  %v4734_v40 = vld [vmem:[%s6703_s1 + $0x1d4] ss:$8 sps:$4 sm:$0xff]   ;;  %v4738_v42 = vld [vmem:[%s6703_s1 + $0x1d0] ss:$8 sps:$4 sm:$0xff]   ;;  %s214_s24 = scalar_lea.vmem %s6705_s3, %s3907_s21  ;;  %s218_s27 = scalar_lea.vmem %s6706_s4, %s3907_s21 }
  0x1a   : > { %845 = vmatpush1.bf16.msra.mxu1 %v4697_v15  ;;  %613 = vmatprep.subr.bf16.mxu0 %v4698_v16  ;;  %v4736_v41 = vld [vmem:[%s6703_s1 + $0xd4] ss:$8 sps:$4 sm:$0xff]   ;;  %v4739_v43 = vld [vmem:[%s6703_s1 + $0xd0] ss:$8 sps:$4 sm:$0xff]   ;;  %s5290_s10 = scalar_lea.vmem %s6702_s0, %s4664_s23  ;;  %v4740_v44 = vld [vmem:[%s6703_s1 + $0x1c4] ss:$8 sps:$4 sm:$0xff]  }
  0x1b   : > { %846 = vmatprep.subr.bf16.mxu1 %v4700_v17  ;;  %v4742_v45 = vld [vmem:[%s6703_s1 + $0xc4] ss:$8 sps:$4 sm:$0xff]   ;;  %v4744_v46 = vld [vmem:[%s6703_s1 + $0x1c0] ss:$8 sps:$4 sm:$0xff]   ;;  %v278_v49 = vld [vmem:[%s5290_s10 + $0x18] sm:$0x1] }
  0x1c   : > { %v4745_v47 = vld [vmem:[%s6703_s1 + $0xc0] ss:$8 sps:$4 sm:$0xff]   ;;  %v282_v51 = vld [vmem:[%s5290_s10 + $0x38] sm:$0x1]  ;;  %v344_v53 = vrot.slane %v278_v49, 1 }
  0x1d   : > { %614 = vmatpush1.bf16.msra.mxu0 %v4702_v18  ;;  %v276_v48 = vld [vmem:[%s5290_s10 + $0x8] sm:$0xfe]  ;;  %v350_v55 = vrot.slane %v282_v51, 1  ;;  %v4746_v58 = vld [vmem:[%s6703_s1 + $0x1b4] ss:$8 sps:$4 sm:$0xff]  }
  0x1e   : > { %847 = vmatpush1.bf16.msra.mxu1 %v4703_v19  ;;  %615 = vmatprep.subr.bf16.mxu0 %v4704_v20  ;;  %v280_v50 = vld [vmem:[%s5290_s10 + $0x28] sm:$0xfe]  ;;  %v343_v52 = vrot.slane %v276_v48, 1  ;;  %v4748_v59 = vld [vmem:[%s6703_s1 + $0xb4] ss:$8 sps:$4 sm:$0xff]  }
  0x1f   : > { %848 = vmatprep.subr.bf16.mxu1 %v4706_v21  ;;  %v349_v54 = vrot.slane %v280_v50, 1  ;;  %v220_v56 = vld [vmem:[%s5290_s10 + $0x8] sm:$0xff]  ;;  %v4750_v63 = vld [vmem:[%s6703_s1 + $0x1b0] ss:$8 sps:$4 sm:$0xff]   ;;  %v4758_v6 = vld [vmem:[%s6703_s1 + $0x194] ss:$8 sps:$4 sm:$0xff]  }
  0x20   : > { %v5310_v57 = vld [vmem:[%s5290_s10 + $0x28] sm:$0xff]  ;;  %v345_v61 = vsel %vm339_vm0, %v343_v52, %v344_v53  ;;  %v4751_v1 = vld [vmem:[%s6703_s1 + $0xb0] ss:$8 sps:$4 sm:$0xff]   ;;  %v4760_v7 = vld [vmem:[%s6703_s1 + $0x94] ss:$8 sps:$4 sm:$0xff]  }
  0x21   : > { %616 = vmatpush1.bf16.msra.mxu0 %v4708_v22  ;;  %v236_v60 = vpack.c.bf16 %v5310_v57, %v220_v56  ;;  %v351_v62 = vsel %vm339_vm0, %v349_v54, %v350_v55  ;;  %v4752_v2 = vld [vmem:[%s6703_s1 + $0x1a4] ss:$8 sps:$4 sm:$0xff]   ;;  %v4756_v4 = vld [vmem:[%s6703_s1 + $0x1a0] ss:$8 sps:$4 sm:$0xff]   ;;  %v277_v9 = vld [vmem:[%s5290_s10 + $0x10] sm:$0x1] }
  0x22   : > { %849 = vmatpush1.bf16.msra.mxu1 %v4709_v23  ;;  %617 = vmatprep.subr.bf16.mxu0 %v4710_v24  ;;  %v405_v0 = vpack.c.bf16 %v351_v62, %v345_v61  ;;  %v4754_v3 = vld [vmem:[%s6703_s1 + $0xa4] ss:$8 sps:$4 sm:$0xff]   ;;  %v4757_v5 = vld [vmem:[%s6703_s1 + $0xa0] ss:$8 sps:$4 sm:$0xff]   ;;  %v281_v11 = vld [vmem:[%s5290_s10 + $0x30] sm:$0x1] }
  0x23   : > { %850 = vmatprep.subr.bf16.mxu1 %v4712_v25  ;;  %870 = vmatprep.mubr.bf16.mxu1 %v236_v60  ;;  %v275_v8 = vld [vmem:[%s5290_s10] sm:$0xfe]  ;;  %v4762_v12 = vld [vmem:[%s6703_s1 + $0x190] ss:$8 sps:$4 sm:$0xff]   ;;  %v341_v15 = vrot.slane %v277_v9, 1  ;;  %v347_v17 = vrot.slane %v281_v11, 1 }
  0x24   : > { %637 = vmatprep.mubr.bf16.mxu0 %v405_v0  ;;  %v279_v10 = vld [vmem:[%s5290_s10 + $0x20] sm:$0xfe]  ;;  %v4763_v13 = vld [vmem:[%s6703_s1 + $0x90] ss:$8 sps:$4 sm:$0xff]   ;;  %v340_v14 = vrot.slane %v275_v8, 1  ;;  %v5421_v49 = vld [vmem:[%s5290_s10 + $0x48] sm:$0xff] }
  0x25   : > { %618 = vmatpush1.bf16.msra.mxu0 %v4714_v26  ;;  %v346_v16 = vrot.slane %v279_v10, 1  ;;  %v4764_v18 = vld [vmem:[%s6703_s1 + $0x184] ss:$8 sps:$4 sm:$0xff]   ;;  %v4768_v20 = vld [vmem:[%s6703_s1 + $0x180] ss:$8 sps:$4 sm:$0xff]  }
  0x26   : > { %851 = vmatpush1.bf16.msra.mxu1 %v4715_v27  ;;  %619 = vmatprep.subr.bf16.mxu0 %v4716_v28  ;;  %v4766_v19 = vld [vmem:[%s6703_s1 + $0x84] ss:$8 sps:$4 sm:$0xff]   ;;  %v4769_v21 = vld [vmem:[%s6703_s1 + $0x80] ss:$8 sps:$4 sm:$0xff]   ;;  %v342_v23 = vsel %vm339_vm0, %v340_v14, %v341_v15  ;;  %v4772_v26 = vld [vmem:[%s6703_s1 + $0x274] ss:$8 sps:$4 sm:$0xff]  }
  0x27   : > { %852 = vmatprep.subr.bf16.mxu1 %v4718_v29  ;;  %v219_v22 = vld [vmem:[%s5290_s10] sm:$0xff]  ;;  %v348_v24 = vsel %vm339_vm0, %v346_v16, %v347_v17  ;;  %v4775_v27 = vld [vmem:[%s6703_s1 + $0x374] ss:$8 sps:$4 sm:$0xff]   ;;  %v5424_v51 = vld [vmem:[%s5290_s10 + $0x68] sm:$0xff] }
  0x28   : > { %v5371_v25 = vld [vmem:[%s5290_s10 + $0x20] sm:$0xff]  ;;  %v404_v28 = vpack.c.bf16 %v348_v24, %v342_v23  ;;  %v285_v53 = vld [vmem:[%s5290_s10 + $0x50] sm:$0x1]  ;;  %v238_v56 = vpack.c.bf16 %v5424_v51, %v5421_v49  ;;  %v4799_v8 = vld [vmem:[%s6703_s1 + $0x334] ss:$8 sps:$4 sm:$0xff]  }
  0x29   : > { %620 = vmatpush1.bf16.msra.mxu0 %v4720_v30  ;;  %v235_v29 = vpack.c.bf16 %v5371_v25, %v219_v22  ;;  %v4770_v30 = vld [vmem:[%s6703_s1 + $0x270] ss:$8 sps:$4 sm:$0xff]   ;;  %v283_v52 = vld [vmem:[%s5290_s10 + $0x40] sm:$0xfe]  ;;  %v353_v61 = vrot.slane %v285_v53, 1  ;;  %v5479_v24 = vld [vmem:[%s5290_s10 + $0x88] sm:$0xff] }
  0x2a   : > { %853 = vmatpush1.bf16.msra.mxu1 %v4721_v31  ;;  %621 = vmatprep.subr.bf16.mxu0 %v4722_v32  ;;  %v4773_v31 = vld [vmem:[%s6703_s1 + $0x370] ss:$8 sps:$4 sm:$0xff]   ;;  %v4778_v32 = vld [vmem:[%s6703_s1 + $0x264] ss:$8 sps:$4 sm:$0xff]   ;;  %v4788_v54 = vld [vmem:[%s6703_s1 + $0x240] ss:$8 sps:$4 sm:$0xff]  }
  0x2b   : > { %854 = vmatprep.subr.bf16.mxu1 %v4724_v33  ;;  %v4781_v33 = vld [vmem:[%s6703_s1 + $0x364] ss:$8 sps:$4 sm:$0xff]   ;;  %v352_v60 = vrot.slane %v283_v52, 1  ;;  %v4794_v11 = vld [vmem:[%s6703_s1 + $0x230] ss:$8 sps:$4 sm:$0xff]  }
  0x2c   : > { %v4805_v14 = vld [vmem:[%s6703_s1 + $0x324] ss:$8 sps:$4 sm:$0xff]   ;;  %v294_v16 = vld [vmem:[%s5290_s10 + $0x98] sm:$0x1] }
  0x2d   : > { %622 = vmatpush2.bf16.msra.mxu0 %v4726_v34  ;;  %v4776_v34 = vld [vmem:[%s6703_s1 + $0x260] ss:$8 sps:$4 sm:$0xff]   ;;  %v368_v22 = vrot.slane %v294_v16, 1  ;;  %v4814_v52 = vld [vmem:[%s6703_s1 + $0x204] ss:$8 sps:$4 sm:$0xff]  }
  0x2e   : > { %855 = vmatpush2.bf16.msra.mxu1 %v4727_v35  ;;  %623 = vmatprep.subr.bf16.mxu0 %v4728_v36  ;;  %v4779_v35 = vld [vmem:[%s6703_s1 + $0x360] ss:$8 sps:$4 sm:$0xff]   ;;  %v4784_v36 = vld [vmem:[%s6703_s1 + $0x254] ss:$8 sps:$4 sm:$0xff]   ;;  %v4817_v53 = vld [vmem:[%s6703_s1 + $0x304] ss:$8 sps:$4 sm:$0xff]  }
  0x2f   : > { %856 = vmatprep.subr.bf16.mxu1 %v4730_v37  ;;  %v4787_v37 = vld [vmem:[%s6703_s1 + $0x354] ss:$8 sps:$4 sm:$0xff]   ;;  %v292_v15 = vld [vmem:[%s5290_s10 + $0x88] sm:$0xfe] }
  0x30   : > { %v296_v17 = vld [vmem:[%s5290_s10 + $0xa8] sm:$0xfe] }
  0x31   : > { %624 = vmatpush2.bf16.msra.mxu0 %v4732_v38  ;;  %v4782_v38 = vld [vmem:[%s6703_s1 + $0x250] ss:$8 sps:$4 sm:$0xff]   ;;  %v373_v23 = vrot.slane %v296_v17, 1 }
  0x32   : > { %857 = vmatpush2.bf16.msra.mxu1 %v4733_v39  ;;  %625 = vmatprep.subr.bf16.mxu0 %v4734_v40  ;;  %v4785_v39 = vld [vmem:[%s6703_s1 + $0x350] ss:$8 sps:$4 sm:$0xff]   ;;  %v4790_v40 = vld [vmem:[%s6703_s1 + $0x244] ss:$8 sps:$4 sm:$0xff]  }
  0x33   : > { %858 = vmatprep.subr.bf16.mxu1 %v4736_v41  ;;  %v4793_v41 = vld [vmem:[%s6703_s1 + $0x344] ss:$8 sps:$4 sm:$0xff]  }
  0x35   : > { %626 = vmatpush2.bf16.msra.mxu0 %v4738_v42  ;;  %v284_v42 = vld [vmem:[%s5290_s10 + $0x48] sm:$0xfe] }
  0x36   : > { %859 = vmatpush2.bf16.msra.mxu1 %v4739_v43  ;;  %627 = vmatprep.subr.bf16.mxu0 %v4740_v44  ;;  %v286_v43 = vld [vmem:[%s5290_s10 + $0x58] sm:$0x1]  ;;  %v288_v44 = vld [vmem:[%s5290_s10 + $0x68] sm:$0xfe] }
  0x37   : > { %860 = vmatprep.subr.bf16.mxu1 %v4742_v45  ;;  %v290_v45 = vld [vmem:[%s5290_s10 + $0x78] sm:$0x1]  ;;  %v361_v48 = vrot.slane %v288_v44, 1 }
  0x38   : > { %v362_v50 = vrot.slane %v290_v45, 1 }
  0x39   : > { %628 = vmatpush2.bf16.msra.mxu0 %v4744_v46  ;;  %v355_v46 = vrot.slane %v284_v42, 1  ;;  %v5502_v42 = vld [vmem:[%s5290_s10 + $0xa0] sm:$0xff] }
  0x3a   : > { %861 = vmatpush2.bf16.msra.mxu1 %v4745_v47  ;;  %629 = vmatprep.subr.bf16.mxu0 %v4746_v58  ;;  %v356_v47 = vrot.slane %v286_v43, 1  ;;  %v287_v58 = vld [vmem:[%s5290_s10 + $0x60] sm:$0xfe]  ;;  %v363_v62 = vsel %vm339_vm0, %v361_v48, %v362_v50  ;;  %v4809_v48 = vld [vmem:[%s6703_s1 + $0x310] ss:$8 sps:$4 sm:$0xff]  }
  0x3b   : > { %862 = vmatprep.subr.bf16.mxu1 %v4748_v59  ;;  %v289_v59 = vld [vmem:[%s5290_s10 + $0x70] sm:$0x1] }
  0x3c   : > { %v357_v55 = vsel %vm339_vm0, %v355_v46, %v356_v47  ;;  %v359_v0 = vrot.slane %v289_v59, 1  ;;  %v4806_v46 = vld [vmem:[%s6703_s1 + $0x210] ss:$8 sps:$4 sm:$0xff]   ;;  %v300_v59 = vld [vmem:[%s5290_s10 + $0xc8] sm:$0xfe] }
  0x3d   : > { %630 = vmatpush2.bf16.msra.mxu0 %v4750_v63  ;;  %v358_v63 = vrot.slane %v287_v58, 1  ;;  %v4823_v58 = vld [vmem:[%s6703_s1 + $0x3f4] ss:$8 sps:$4 sm:$0xff]  }
  0x3e   : > { %863 = vmatpush2.bf16.msra.mxu1 %v4751_v1  ;;  %631 = vmatprep.subr.bf16.mxu0 %v4752_v2  ;;  %v5438_v1 = vld [vmem:[%s5290_s10 + $0x40] sm:$0xff] }
  0x3f   : > { %864 = vmatprep.subr.bf16.mxu1 %v4754_v3  ;;  %v5441_v2 = vld [vmem:[%s5290_s10 + $0x60] sm:$0xff]  ;;  %v360_v9 = vsel %vm339_vm0, %v358_v63, %v359_v0  ;;  %v379_v63 = vrot.slane %v300_v59, 1  ;;  %v4842_v59 = vld [vmem:[%s6703_s1 + $0x2b0] ss:$8 sps:$4 sm:$0xff]  }
  0x40   : > { %v4791_v3 = vld [vmem:[%s6703_s1 + $0x340] ss:$8 sps:$4 sm:$0xff]  }
  0x41   : > { %632 = vmatpush2.bf16.msra.mxu0 %v4756_v4  ;;  %v4796_v4 = vld [vmem:[%s6703_s1 + $0x234] ss:$8 sps:$4 sm:$0xff]  }
  0x42   : > { %865 = vmatpush2.bf16.msra.mxu1 %v4757_v5  ;;  %633 = vmatprep.subr.bf16.mxu0 %v4758_v6  ;;  %v407_v5 = vpack.c.bf16 %v363_v62, %v357_v55  ;;  %v354_v6 = vsel %vm339_vm0, %v352_v60, %v353_v61  ;;  %v4815_v55 = vld [vmem:[%s6703_s1 + $0x300] ss:$8 sps:$4 sm:$0xff]   ;;  %v302_v60 = vld [vmem:[%s5290_s10 + $0xd8] sm:$0x1] }
  0x43   : > { %866 = vmatprep.subr.bf16.mxu1 %v4760_v7  ;;  %v237_v7 = vpack.c.bf16 %v5441_v2, %v5438_v1  ;;  %v406_v10 = vpack.c.bf16 %v360_v9, %v354_v6  ;;  %v304_v61 = vld [vmem:[%s5290_s10 + $0xe8] sm:$0xfe]  ;;  %v306_v62 = vld [vmem:[%s5290_s10 + $0xf8] sm:$0x1]  ;;  %v380_v0 = vrot.slane %v302_v60, 1 }
  0x44   : > { %v5540_v6 = vld [vmem:[%s5290_s10 + $0xe8] sm:$0xff]  ;;  %v4818_v9 = vld [vmem:[%s6703_s1 + $0x2f0] ss:$8 sps:$4 sm:$0xff]  }
  0x45   : > { %634 = vmatpush2.bf16.msra.mxu0 %v4762_v12  ;;  %v4797_v12 = vld [vmem:[%s6703_s1 + $0x330] ss:$8 sps:$4 sm:$0xff]  }
  0x46   : > { %867 = vmatpush2.bf16.msra.mxu1 %v4763_v13  ;;  %635 = vmatprep.subr.bf16.mxu0 %v4764_v18  ;;  %v4802_v13 = vld [vmem:[%s6703_s1 + $0x224] ss:$8 sps:$4 sm:$0xff]   ;;  %v4800_v18 = vld [vmem:[%s6703_s1 + $0x220] ss:$8 sps:$4 sm:$0xff]   ;;  %v4845_v60 = vld [vmem:[%s6703_s1 + $0x3b0] ss:$8 sps:$4 sm:$0xff]  }
  0x47   : > { %868 = vmatprep.subr.bf16.mxu1 %v4766_v19  ;;  %v4803_v19 = vld [vmem:[%s6703_s1 + $0x320] ss:$8 sps:$4 sm:$0xff]  }
  0x49   : > { %636 = vmatpush2.bf16.msra.mxu0 %v4768_v20  ;;  %v298_v20 = vld [vmem:[%s5290_s10 + $0xb8] sm:$0x1] }
  0x4a   : > { %869 = vmatpush2.bf16.msra.mxu1 %v4769_v21  ;;  %1241 = vmatprep.subr.bf16.mxu0 %v4772_v26  ;;  %v367_v21 = vrot.slane %v292_v15, 1  ;;  %v4808_v26 = vld [vmem:[%s6703_s1 + $0x214] ss:$8 sps:$4 sm:$0xff]  }
  0x4b   : > { %1548 = vmatprep.subr.bf16.mxu1 %v4775_v27  ;;  %v4811_v27 = vld [vmem:[%s6703_s1 + $0x314] ss:$8 sps:$4 sm:$0xff]  }
  0x4c   : > { %638 = vmatmul.mubr.bf16.vlgmr.msra.gmra.mxu0 %v404_v28  ;;  %v374_v28 = vrot.slane %v298_v20, 1  ;;  %v5557_v20 = vld [vmem:[%s5290_s10 + $0xe0] sm:$0xff] }
  0x4d   : > { %871 = vmatmul.mubr.bf16.vlgmr.msra.gmra.mxu1 %v235_v29  ;;  %1242 = vmatpush1.bf16.msra.mxu0 %v4770_v30  ;;  %v5488_v29 = vld [vmem:[%s5290_s10 + $0xa8] sm:$0xff]  ;;  %v291_v30 = vld [vmem:[%s5290_s10 + $0x80] sm:$0xfe] }
  0x4e   : > { %1549 = vmatpush1.bf16.msra.mxu1 %v4773_v31  ;;  %1243 = vmatprep.subr.bf16.mxu0 %v4778_v32  ;;  %v293_v31 = vld [vmem:[%s5290_s10 + $0x90] sm:$0x1]  ;;  %v369_v32 = vsel %vm339_vm0, %v367_v21, %v368_v22  ;;  %v4826_v22 = vld [vmem:[%s6703_s1 + $0x2e4] ss:$8 sps:$4 sm:$0xff]  }
  0x4f   : > { %1550 = vmatprep.subr.bf16.mxu1 %v4781_v33  ;;  %647 = vmatprep.mubr.bf16.mxu0 %v407_v5  ;;  %v240_v33 = vpack.c.bf16 %v5488_v29, %v5479_v24  ;;  %v386_v5 = vrot.slane %v306_v62, 1  ;;  %v4821_v21 = vld [vmem:[%s6703_s1 + $0x3f0] ss:$8 sps:$4 sm:$0xff]   ;;  %v4853_v62 = vld [vmem:[%s6703_s1 + $0x3a4] ss:$8 sps:$4 sm:$0xff]  }
  0x50   : > { %880 = vmatprep.mubr.bf16.mxu1 %v238_v56  ;;  %v4820_v56 = vld [vmem:[%s6703_s1 + $0x2f4] ss:$8 sps:$4 sm:$0xff]  }
  0x51   : > { %1244 = vmatpush1.bf16.msra.mxu0 %v4776_v34  ;;  %v295_v34 = vld [vmem:[%s5290_s10 + $0xa0] sm:$0xfe] }
  0x52   : > { %1551 = vmatpush1.bf16.msra.mxu1 %v4779_v35  ;;  %1245 = vmatprep.subr.bf16.mxu0 %v4784_v36  ;;  %v297_v35 = vld [vmem:[%s5290_s10 + $0xb0] sm:$0x1]  ;;  %v364_v36 = vrot.slane %v291_v30, 1 }
  0x53   : > { %1552 = vmatprep.subr.bf16.mxu1 %v4787_v37  ;;  %v365_v37 = vrot.slane %v293_v31, 1 }
  0x54   : > { %648 = vmatmul.mubr.bf16.gmra.mxu0 %v406_v10  ;;  %v381_v10 = vsel %vm339_vm0, %v379_v63, %v380_v0  ;;  %v4848_v63 = vld [vmem:[%s6703_s1 + $0x2a0] ss:$8 sps:$4 sm:$0xff]  }
  0x55   : > { %1246 = vmatpush1.bf16.msra.mxu0 %v4782_v38  ;;  %881 = vmatmul.mubr.bf16.gmra.mxu1 %v237_v7  ;;  %v375_v38 = vsel %vm339_vm0, %v373_v23, %v374_v28  ;;  %v366_v44 = vsel %vm339_vm0, %v364_v36, %v365_v37  ;;  %v299_v7 = vld [vmem:[%s5290_s10 + $0xc0] sm:$0xfe]  ;;  %v4833_v36 = vld [vmem:[%s6703_s1 + $0x3d0] ss:$8 sps:$4 sm:$0xff]  }
  0x56   : > { %1553 = vmatpush1.bf16.msra.mxu1 %v4785_v39  ;;  %1247 = vmatprep.subr.bf16.mxu0 %v4790_v40  ;;  %v370_v39 = vrot.slane %v295_v34, 1  ;;  %v371_v40 = vrot.slane %v297_v35, 1  ;;  %v409_v43 = vpack.c.bf16 %v375_v38, %v369_v32  ;;  %v4829_v28 = vld [vmem:[%s6703_s1 + $0x3e4] ss:$8 sps:$4 sm:$0xff]   ;;  %v1348_v32 = vpack.c.bf16 %v5421_v49, %v5310_v57  ;;  %v4827_v34 = vld [vmem:[%s6703_s1 + $0x3e0] ss:$8 sps:$4 sm:$0xff]  }
  0x57   : > { %1554 = vmatprep.subr.bf16.mxu1 %v4793_v41  ;;  %v5499_v41 = vld [vmem:[%s5290_s10 + $0x80] sm:$0xff]  ;;  %890 = vmatprep.mubr.bf16.mxu1 %v240_v33  ;;  %v4832_v35 = vld [vmem:[%s6703_s1 + $0x2d4] ss:$8 sps:$4 sm:$0xff]   ;;  %v4830_v49 = vld [vmem:[%s6703_s1 + $0x2d0] ss:$8 sps:$4 sm:$0xff]  }
  0x58   : > { %v239_v45 = vpack.c.bf16 %v5502_v42, %v5499_v41  ;;  %v372_v47 = vsel %vm339_vm0, %v370_v39, %v371_v40  ;;  %657 = vmatprep.mubr.bf16.mxu0 %v409_v43  ;;  %v4824_v33 = vld [vmem:[%s6703_s1 + $0x2e0] ss:$8 sps:$4 sm:$0xff]   ;;  %v4835_v57 = vld [vmem:[%s6703_s1 + $0x3d4] ss:$8 sps:$4 sm:$0xff]   ;;  %v4838_v37 = vld [vmem:[%s6703_s1 + $0x2c4] ss:$8 sps:$4 sm:$0xff]  }
  0x59   : > { %1248 = vmatpush1.bf16.msra.mxu0 %v4788_v54  ;;  %v408_v50 = vpack.c.bf16 %v372_v47, %v366_v44  ;;  %v4812_v54 = vld [vmem:[%s6703_s1 + $0x200] ss:$8 sps:$4 sm:$0xff]   ;;  %v914_v39 = vld [vmem:[%s5290_s10 + $0x18] sm:$0x3]  ;;  %v4841_v44 = vld [vmem:[%s6703_s1 + $0x3c4] ss:$8 sps:$4 sm:$0xff]  }
  0x5a   : > { %1555 = vmatpush1.bf16.msra.mxu1 %v4791_v3  ;;  %1249 = vmatprep.subr.bf16.mxu0 %v4796_v4  ;;  %v385_v3 = vrot.slane %v304_v61, 1  ;;  %v5537_v4 = vld [vmem:[%s5290_s10 + $0xc8] sm:$0xff]  ;;  %v918_v43 = vld [vmem:[%s5290_s10 + $0x38] sm:$0x3] }
  0x5b   : > { %1556 = vmatprep.subr.bf16.mxu1 %v4799_v8  ;;  %v301_v8 = vld [vmem:[%s5290_s10 + $0xd0] sm:$0x1]  ;;  %v912_v38 = vld [vmem:[%s5290_s10 + $0x8] sm:$0xfc] }
  0x5c   : > { %658 = vmatmul.mubr.bf16.gmra.mxu0 %v408_v50  ;;  %v377_v15 = vrot.slane %v301_v8, 1  ;;  %v387_v16 = vsel %vm339_vm0, %v385_v3, %v386_v5  ;;  %v916_v40 = vld [vmem:[%s5290_s10 + $0x28] sm:$0xfc]  ;;  %v4856_v3 = vld [vmem:[%s6703_s1 + $0x294] ss:$8 sps:$4 sm:$0xff]  }
  0x5d   : > { %1250 = vmatpush1.bf16.msra.mxu0 %v4794_v11  ;;  %891 = vmatmul.mubr.bf16.gmra.mxu1 %v239_v45  ;;  %v242_v11 = vpack.c.bf16 %v5540_v6, %v5537_v4  ;;  %v411_v23 = vpack.c.bf16 %v387_v16, %v381_v10  ;;  %v979_v45 = vrot.slane %v912_v38, 2  ;;  %v985_v47 = vrot.slane %v916_v40, 2  ;;  %v4836_v50 = vld [vmem:[%s6703_s1 + $0x2c0] ss:$8 sps:$4 sm:$0xff]   ;;  %v4850_v61 = vld [vmem:[%s6703_s1 + $0x2a4] ss:$8 sps:$4 sm:$0xff]  }
  0x5e   : > { %1557 = vmatpush1.bf16.msra.mxu1 %v4797_v12  ;;  %1251 = vmatprep.subr.bf16.mxu0 %v4802_v13  ;;  %v303_v12 = vld [vmem:[%s5290_s10 + $0xe0] sm:$0xfe]  ;;  %v305_v13 = vld [vmem:[%s5290_s10 + $0xf0] sm:$0x1]  ;;  %v4859_v5 = vld [vmem:[%s6703_s1 + $0x394] ss:$8 sps:$4 sm:$0xff]  }
  0x5f   : > { %1558 = vmatprep.subr.bf16.mxu1 %v4805_v14  ;;  %v376_v14 = vrot.slane %v299_v7, 1  ;;  %v382_v17 = vrot.slane %v303_v12, 1  ;;  %667 = vmatprep.mubr.bf16.mxu0 %v411_v23  ;;  %v4851_v0 = vld [vmem:[%s6703_s1 + $0x3a0] ss:$8 sps:$4 sm:$0xff]   ;;  %v913_v8 = vld [vmem:[%s5290_s10 + $0x10] sm:$0x3] }
  0x60   : > { %900 = vmatprep.mubr.bf16.mxu1 %v242_v11  ;;  %v911_v7 = vld [vmem:[%s5290_s10] sm:$0xfc]  ;;  %v917_v10 = vld [vmem:[%s5290_s10 + $0x30] sm:$0x3]  ;;  %v922_v16 = vld [vmem:[%s5290_s10 + $0x58] sm:$0x3] }
  0x61   : > { %1252 = vmatpush1.bf16.msra.mxu0 %v4800_v18  ;;  %v383_v18 = vrot.slane %v305_v13, 1  ;;  %v4854_v11 = vld [vmem:[%s6703_s1 + $0x290] ss:$8 sps:$4 sm:$0xff]   ;;  %v976_v13 = vrot.slane %v911_v7, 2  ;;  %v4862_v23 = vld [vmem:[%s6703_s1 + $0x284] ss:$8 sps:$4 sm:$0xff]  }
  0x62   : > { %1559 = vmatpush1.bf16.msra.mxu1 %v4803_v19  ;;  %1253 = vmatprep.subr.bf16.mxu0 %v4808_v26  ;;  %v5554_v19 = vld [vmem:[%s5290_s10 + $0xc0] sm:$0xff]  ;;  %v378_v26 = vsel %vm339_vm0, %v376_v14, %v377_v15  ;;  %v4857_v12 = vld [vmem:[%s6703_s1 + $0x390] ss:$8 sps:$4 sm:$0xff]   ;;  %v920_v14 = vld [vmem:[%s5290_s10 + $0x48] sm:$0xfc]  ;;  %v977_v15 = vrot.slane %v913_v8, 2 }
  0x63   : > { %1560 = vmatprep.subr.bf16.mxu1 %v4811_v27  ;;  %v241_v27 = vpack.c.bf16 %v5557_v20, %v5554_v19  ;;  %v384_v30 = vsel %vm339_vm0, %v382_v17, %v383_v18  ;;  %v924_v17 = vld [vmem:[%s5290_s10 + $0x68] sm:$0xfc]  ;;  %v923_v38 = vld [vmem:[%s5290_s10 + $0x60] sm:$0xfc]  ;;  %v4866_v40 = vld [vmem:[%s6703_s1 + $0x470] ss:$8 sps:$4 sm:$0xff]  }
  0x64   : > { %v410_v31 = vpack.c.bf16 %v384_v30, %v378_v26  ;;  %v4865_v26 = vld [vmem:[%s6703_s1 + $0x384] ss:$8 sps:$4 sm:$0xff]   ;;  %v991_v30 = vrot.slane %v920_v14, 2  ;;  %v4878_v14 = vld [vmem:[%s6703_s1 + $0x450] ss:$8 sps:$4 sm:$0xff]  }
  0x65   : > { %1254 = vmatpush1.bf16.msra.mxu0 %v4806_v46  ;;  %901 = vmatmul.mubr.bf16.gmra.mxu1 %v241_v27  ;;  %v980_v46 = vrot.slane %v914_v39, 2  ;;  %v4860_v27 = vld [vmem:[%s6703_s1 + $0x280] ss:$8 sps:$4 sm:$0xff]   ;;  %v925_v39 = vld [vmem:[%s5290_s10 + $0x70] sm:$0x3] }
  0x66   : > { %1561 = vmatpush1.bf16.msra.mxu1 %v4809_v48  ;;  %1255 = vmatprep.subr.bf16.mxu0 %v4814_v52  ;;  %v986_v48 = vrot.slane %v918_v43, 2  ;;  %v4869_v43 = vld [vmem:[%s6703_s1 + $0x570] ss:$8 sps:$4 sm:$0xff]  }
  0x67   : > { %1562 = vmatprep.subr.bf16.mxu1 %v4817_v53  ;;  %668 = vmatmul.mubr.bf16.gmra.mxu0 %v410_v31  ;;  %v981_v52 = vsel %vm975_vm1, %v979_v45, %v980_v46  ;;  %v992_v31 = vrot.slane %v922_v16, 2  ;;  %v938_v16 = vld [vmem:[%s5290_s10 + $0xd8] sm:$0x3] }
  0x68   : > { %1580 = vmatprep.mubr.bf16.mxu1 %v1348_v32  ;;  %v987_v53 = vsel %vm975_vm1, %v985_v47, %v986_v48  ;;  %v997_v32 = vrot.slane %v924_v17, 2  ;;  %v4874_v48 = vld [vmem:[%s6703_s1 + $0x464] ss:$8 sps:$4 sm:$0xff]  }
  0x69   : > { %1256 = vmatpush1.bf16.msra.mxu0 %v4812_v54  ;;  %v4839_v54 = vld [vmem:[%s6703_s1 + $0x3c0] ss:$8 sps:$4 sm:$0xff]  }
  0x6a   : > { %1563 = vmatpush1.bf16.msra.mxu1 %v4815_v55  ;;  %1257 = vmatprep.subr.bf16.mxu0 %v4820_v56  ;;  %v1041_v55 = vpack.c.bf16 %v987_v53, %v981_v52  ;;  %v4844_v56 = vld [vmem:[%s6703_s1 + $0x2b4] ss:$8 sps:$4 sm:$0xff]   ;;  %v994_v53 = vrot.slane %v923_v38, 2  ;;  %v935_v38 = vld [vmem:[%s5290_s10 + $0xc0] sm:$0xfc] }
  0x6b   : > { %1564 = vmatprep.subr.bf16.mxu1 %v4823_v58  ;;  %v4847_v58 = vld [vmem:[%s6703_s1 + $0x3b4] ss:$8 sps:$4 sm:$0xff]  }
  0x6c   : > { %1273 = vmatprep.mubr.bf16.mxu0 %v1041_v55  ;;  %v930_v55 = vld [vmem:[%s5290_s10 + $0x98] sm:$0x3] }
  0x6d   : > { %1258 = vmatpush2.bf16.msra.mxu0 %v4818_v9  ;;  %v915_v9 = vld [vmem:[%s5290_s10 + $0x20] sm:$0xfc] }
  0x6e   : > { %1565 = vmatpush2.bf16.msra.mxu1 %v4821_v21  ;;  %1259 = vmatprep.subr.bf16.mxu0 %v4826_v22  ;;  %v982_v18 = vrot.slane %v915_v9, 2  ;;  %v983_v21 = vrot.slane %v917_v10, 2  ;;  %v926_v22 = vld [vmem:[%s5290_s10 + $0x78] sm:$0x3]  ;;  %v927_v9 = vld [vmem:[%s5290_s10 + $0x80] sm:$0xfc] }
  0x6f   : > { %1566 = vmatprep.subr.bf16.mxu1 %v4829_v28  ;;  %v4863_v28 = vld [vmem:[%s6703_s1 + $0x380] ss:$8 sps:$4 sm:$0xff]   ;;  %v929_v10 = vld [vmem:[%s5290_s10 + $0x90] sm:$0x3] }
  0x71   : > { %1260 = vmatpush2.bf16.msra.mxu0 %v4824_v33  ;;  %v998_v33 = vrot.slane %v926_v22, 2 }
  0x72   : > { %1567 = vmatpush2.bf16.msra.mxu1 %v4827_v34  ;;  %1261 = vmatprep.subr.bf16.mxu0 %v4832_v35  ;;  %v919_v34 = vld [vmem:[%s5290_s10 + $0x40] sm:$0xfc]  ;;  %v921_v35 = vld [vmem:[%s5290_s10 + $0x50] sm:$0x3] }
  0x73   : > { %1568 = vmatprep.subr.bf16.mxu1 %v4835_v57  ;;  %v978_v57 = vsel %vm975_vm1, %v976_v13, %v977_v15  ;;  %v988_v45 = vrot.slane %v919_v34, 2  ;;  %v989_v46 = vrot.slane %v921_v35, 2  ;;  %v999_v52 = vsel %vm975_vm1, %v997_v32, %v998_v33  ;;  %v936_v13 = vld [vmem:[%s5290_s10 + $0xc8] sm:$0xfc]  ;;  %v4881_v15 = vld [vmem:[%s6703_s1 + $0x550] ss:$8 sps:$4 sm:$0xff]  }
  0x74   : > { %v942_v32 = vld [vmem:[%s5290_s10 + $0xf8] sm:$0x3]  ;;  %v4884_v33 = vld [vmem:[%s6703_s1 + $0x440] ss:$8 sps:$4 sm:$0xff]  }
  0x75   : > { %1262 = vmatpush2.bf16.msra.mxu0 %v4830_v49  ;;  %v984_v49 = vsel %vm975_vm1, %v982_v18, %v983_v21  ;;  %v990_v8 = vsel %vm975_vm1, %v988_v45, %v989_v46  ;;  %v1349_v18 = vpack.c.bf16 %v5499_v41, %v5441_v2  ;;  %v4886_v21 = vld [vmem:[%s6703_s1 + $0x444] ss:$8 sps:$4 sm:$0xff]   ;;  %v1352_v41 = vpack.c.bf16 %v5537_v4, %v5488_v29  ;;  %v4887_v34 = vld [vmem:[%s6703_s1 + $0x540] ss:$8 sps:$4 sm:$0xff]   ;;  %v4892_v29 = vld [vmem:[%s6703_s1 + $0x434] ss:$8 sps:$4 sm:$0xff]  }
  0x76   : > { %1569 = vmatpush2.bf16.msra.mxu1 %v4833_v36  ;;  %1263 = vmatprep.subr.bf16.mxu0 %v4838_v37  ;;  %v4868_v36 = vld [vmem:[%s6703_s1 + $0x474] ss:$8 sps:$4 sm:$0xff]   ;;  %v1040_v47 = vpack.c.bf16 %v984_v49, %v978_v57  ;;  %v4889_v2 = vld [vmem:[%s6703_s1 + $0x544] ss:$8 sps:$4 sm:$0xff]   ;;  %v1015_v57 = vrot.slane %v936_v13, 2  ;;  %v1016_v49 = vrot.slane %v938_v16, 2 }
  0x77   : > { %1570 = vmatprep.subr.bf16.mxu1 %v4841_v44  ;;  %v4871_v37 = vld [vmem:[%s6703_s1 + $0x574] ss:$8 sps:$4 sm:$0xff]   ;;  %v1347_v44 = vpack.c.bf16 %v5438_v1, %v5371_v25  ;;  %v4877_v25 = vld [vmem:[%s6703_s1 + $0x564] ss:$8 sps:$4 sm:$0xff]   ;;  %v4872_v1 = vld [vmem:[%s6703_s1 + $0x460] ss:$8 sps:$4 sm:$0xff]  }
  0x78   : > { %v4895_v4 = vld [vmem:[%s6703_s1 + $0x534] ss:$8 sps:$4 sm:$0xff]   ;;  %v941_v45 = vld [vmem:[%s5290_s10 + $0xf0] sm:$0x3]  ;;  %v4925_v16 = vld [vmem:[%s6703_s1 + $0x5e4] ss:$8 sps:$4 sm:$0xff]  }
  0x79   : > { %1264 = vmatpush2.bf16.msra.mxu0 %v4836_v50  ;;  %v993_v50 = vsel %vm975_vm1, %v991_v30, %v992_v31  ;;  %v4890_v46 = vld [vmem:[%s6703_s1 + $0x430] ss:$8 sps:$4 sm:$0xff]  }
  0x7a   : > { %1571 = vmatpush2.bf16.msra.mxu1 %v4839_v54  ;;  %1265 = vmatprep.subr.bf16.mxu0 %v4844_v56  ;;  %v928_v54 = vld [vmem:[%s5290_s10 + $0x88] sm:$0xfc]  ;;  %v995_v56 = vrot.slane %v925_v39, 2  ;;  %v937_v39 = vld [vmem:[%s5290_s10 + $0xd0] sm:$0x3] }
  0x7b   : > { %1572 = vmatprep.subr.bf16.mxu1 %v4847_v58  ;;  %v932_v58 = vld [vmem:[%s5290_s10 + $0xa8] sm:$0xfc]  ;;  %v4914_v13 = vld [vmem:[%s6703_s1 + $0x4f0] ss:$8 sps:$4 sm:$0xff]  }
  0x7d   : > { %1266 = vmatpush2.bf16.msra.mxu0 %v4842_v59  ;;  %v934_v59 = vld [vmem:[%s5290_s10 + $0xb8] sm:$0x3] }
  0x7e   : > { %1573 = vmatpush2.bf16.msra.mxu1 %v4845_v60  ;;  %1267 = vmatprep.subr.bf16.mxu0 %v4850_v61  ;;  %v4875_v60 = vld [vmem:[%s6703_s1 + $0x560] ss:$8 sps:$4 sm:$0xff]   ;;  %v1043_v61 = vpack.c.bf16 %v999_v52, %v993_v50  ;;  %v1010_v7 = vrot.slane %v934_v59, 2  ;;  %v1351_v50 = vpack.c.bf16 %v5554_v19, %v5502_v42  ;;  %v4898_v52 = vld [vmem:[%s6703_s1 + $0x424] ss:$8 sps:$4 sm:$0xff]  }
  0x7f   : > { %1574 = vmatprep.subr.bf16.mxu1 %v4853_v62  ;;  %v1350_v62 = vpack.c.bf16 %v5479_v24, %v5424_v51  ;;  %v996_v51 = vsel %vm975_vm1, %v994_v53, %v995_v56  ;;  %v4883_v24 = vld [vmem:[%s6703_s1 + $0x554] ss:$8 sps:$4 sm:$0xff]   ;;  %v1017_v53 = vsel %vm975_vm1, %v1015_v57, %v1016_v49  ;;  %v1012_v56 = vrot.slane %v935_v38, 2  ;;  %v4901_v42 = vld [vmem:[%s6703_s1 + $0x524] ss:$8 sps:$4 sm:$0xff]  }
  0x80   : > { %v1042_v17 = vpack.c.bf16 %v996_v51, %v990_v8  ;;  %v4896_v19 = vld [vmem:[%s6703_s1 + $0x420] ss:$8 sps:$4 sm:$0xff]   ;;  %v4905_v8 = vld [vmem:[%s6703_s1 + $0x510] ss:$8 sps:$4 sm:$0xff]  }
  0x81   : > { %1268 = vmatpush2.bf16.msra.mxu0 %v4848_v63  ;;  %v4880_v63 = vld [vmem:[%s6703_s1 + $0x454] ss:$8 sps:$4 sm:$0xff]   ;;  %v4250_v49 = vld [vmem:[%s5290_s10 + $0x48] sm:$0xfc] }
  0x82   : > { %1575 = vmatpush2.bf16.msra.mxu1 %v4851_v0  ;;  %1269 = vmatprep.subr.bf16.mxu0 %v4856_v3  ;;  %v1003_v0 = vrot.slane %v928_v54, 2  ;;  %v1004_v3 = vrot.slane %v930_v55, 2  ;;  %v4084_v55 = vld [vmem:[%s5290_s10 + $0x108] sm:$0xff]  ;;  %v2128_v38 = vrot.slane %v4250_v49, 2  ;;  %v5950_v49 = vld [vmem:[%s5290_s10 + $0x90] sm:$0x1] }
  0x83   : > { %1576 = vmatprep.subr.bf16.mxu1 %v4859_v5  ;;  %v1009_v5 = vrot.slane %v932_v58, 2  ;;  %v1013_v58 = vrot.slane %v937_v39, 2 }
  0x84   : > { %v1005_v22 = vsel %vm975_vm1, %v1003_v0, %v1004_v3  ;;  %v4083_v3 = vld [vmem:[%s5290_s10 + $0x100] sm:$0xff] }
  0x85   : > { %1270 = vmatpush2.bf16.msra.mxu0 %v4854_v11  ;;  %v931_v11 = vld [vmem:[%s5290_s10 + $0xa0] sm:$0xfc]  ;;  %v1353_v51 = vpack.c.bf16 %v4083_v3, %v5557_v20 }
  0x86   : > { %1577 = vmatpush2.bf16.msra.mxu1 %v4857_v12  ;;  %1271 = vmatprep.subr.bf16.mxu0 %v4862_v23  ;;  %v933_v12 = vld [vmem:[%s5290_s10 + $0xb0] sm:$0x3]  ;;  %v1011_v23 = vsel %vm975_vm1, %v1009_v5, %v1010_v7  ;;  %v1006_v30 = vrot.slane %v931_v11, 2  ;;  %v4911_v20 = vld [vmem:[%s6703_s1 + $0x500] ss:$8 sps:$4 sm:$0xff]  }
  0x87   : > { %1578 = vmatprep.subr.bf16.mxu1 %v4865_v26  ;;  %v940_v26 = vld [vmem:[%s5290_s10 + $0xe8] sm:$0xfc]  ;;  %v1007_v31 = vrot.slane %v933_v12, 2  ;;  %v1045_v35 = vpack.c.bf16 %v1011_v23, %v1005_v22  ;;  %v4902_v7 = vld [vmem:[%s6703_s1 + $0x410] ss:$8 sps:$4 sm:$0xff]  }
  0x88   : > { %v4916_v11 = vld [vmem:[%s6703_s1 + $0x4f4] ss:$8 sps:$4 sm:$0xff]   ;;  %v4156_v22 = vld [vmem:[%s5290_s10 + $0x58] sm:$0x1] }
  0x89   : > { %1272 = vmatpush2.bf16.msra.mxu0 %v4860_v27  ;;  %v1000_v27 = vrot.slane %v927_v9, 2  ;;  %v4913_v9 = vld [vmem:[%s6703_s1 + $0x504] ss:$8 sps:$4 sm:$0xff]   ;;  %v4919_v12 = vld [vmem:[%s6703_s1 + $0x5f4] ss:$8 sps:$4 sm:$0xff]  }
  0x8a   : > { %1579 = vmatpush2.bf16.msra.mxu1 %v4863_v28  ;;  %1966 = vmatprep.subr.bf16.mxu0 %v4868_v36  ;;  %v1001_v28 = vrot.slane %v929_v10, 2  ;;  %v1021_v36 = vrot.slane %v940_v26, 2  ;;  %v4908_v10 = vld [vmem:[%s6703_s1 + $0x400] ss:$8 sps:$4 sm:$0xff]  }
  0x8b   : > { %2384 = vmatprep.subr.bf16.mxu1 %v4871_v37  ;;  %v1022_v37 = vrot.slane %v942_v32, 2  ;;  %v4928_v32 = vld [vmem:[%s6703_s1 + $0x4d4] ss:$8 sps:$4 sm:$0xff]  }
  0x8c   : > { %1274 = vmatmul.mubr.bf16.vlgmr.msra.gmra.mxu0 %v1040_v47  ;;  %v4893_v47 = vld [vmem:[%s6703_s1 + $0x530] ss:$8 sps:$4 sm:$0xff]  }
  0x8d   : > { %1581 = vmatmul.mubr.bf16.vlgmr.msra.gmra.mxu1 %v1347_v44  ;;  %1967 = vmatpush1.bf16.msra.mxu0 %v4866_v40  ;;  %v1002_v40 = vsel %vm975_vm1, %v1000_v27, %v1001_v28  ;;  %v939_v44 = vld [vmem:[%s5290_s10 + $0xe0] sm:$0xfc]  ;;  %v1023_v54 = vsel %vm975_vm1, %v1021_v36, %v1022_v37  ;;  %v1711_v28 = vrot.slane %v4156_v22, 1  ;;  %v4252_v36 = vld [vmem:[%s5290_s10 + $0x58] sm:$0x3] }
  0x8e   : > { %2385 = vmatpush1.bf16.msra.mxu1 %v4869_v43  ;;  %1968 = vmatprep.subr.bf16.mxu0 %v4874_v48  ;;  %v1008_v43 = vsel %vm975_vm1, %v1006_v30, %v1007_v31  ;;  %v1018_v59 = vrot.slane %v939_v44, 2  ;;  %v4920_v30 = vld [vmem:[%s6703_s1 + $0x4e0] ss:$8 sps:$4 sm:$0xff]   ;;  %v4926_v37 = vld [vmem:[%s6703_s1 + $0x4d0] ss:$8 sps:$4 sm:$0xff]   ;;  %v2129_v39 = vrot.slane %v4252_v36, 2 }
  0x8f   : > { %2386 = vmatprep.subr.bf16.mxu1 %v4877_v25  ;;  %1283 = vmatprep.mubr.bf16.mxu0 %v1043_v61  ;;  %v1044_v48 = vpack.c.bf16 %v1008_v43, %v1002_v40  ;;  %v1019_v25 = vrot.slane %v941_v45, 2  ;;  %v4899_v61 = vld [vmem:[%s6703_s1 + $0x520] ss:$8 sps:$4 sm:$0xff]   ;;  %v4929_v40 = vld [vmem:[%s6703_s1 + $0x5d0] ss:$8 sps:$4 sm:$0xff]  }
  0x90   : > { %1590 = vmatprep.mubr.bf16.mxu1 %v1350_v62  ;;  %v4904_v62 = vld [vmem:[%s6703_s1 + $0x414] ss:$8 sps:$4 sm:$0xff]   ;;  %v4923_v31 = vld [vmem:[%s6703_s1 + $0x5e0] ss:$8 sps:$4 sm:$0xff]   ;;  %v4934_v44 = vld [vmem:[%s6703_s1 + $0x4c4] ss:$8 sps:$4 sm:$0xff]  }
  0x91   : > { %1969 = vmatpush1.bf16.msra.mxu0 %v4872_v1  ;;  %v1047_v1 = vpack.c.bf16 %v1023_v54, %v1017_v53  ;;  %v1020_v0 = vsel %vm975_vm1, %v1018_v59, %v1019_v25  ;;  %v4937_v45 = vld [vmem:[%s6703_s1 + $0x5c4] ss:$8 sps:$4 sm:$0xff]   ;;  %v4943_v53 = vld [vmem:[%s6703_s1 + $0x5b4] ss:$8 sps:$4 sm:$0xff]   ;;  %v4938_v54 = vld [vmem:[%s6703_s1 + $0x4b0] ss:$8 sps:$4 sm:$0xff]  }
  0x92   : > { %2387 = vmatpush1.bf16.msra.mxu1 %v4875_v60  ;;  %1970 = vmatprep.subr.bf16.mxu0 %v4880_v63  ;;  %v1354_v60 = vpack.c.bf16 %v4084_v55, %v5540_v6  ;;  %v1014_v63 = vsel %vm975_vm1, %v1012_v56, %v1013_v58  ;;  %v4907_v6 = vld [vmem:[%s6703_s1 + $0x514] ss:$8 sps:$4 sm:$0xff]   ;;  %v4941_v55 = vld [vmem:[%s6703_s1 + $0x5b0] ss:$8 sps:$4 sm:$0xff]   ;;  %v4149_v56 = vld [vmem:[%s5290_s10 + $0x20] sm:$0xfe] }
  0x93   : > { %2388 = vmatprep.subr.bf16.mxu1 %v4883_v24  ;;  %v1046_v5 = vpack.c.bf16 %v1020_v0, %v1014_v63  ;;  %v4910_v24 = vld [vmem:[%s6703_s1 + $0x404] ss:$8 sps:$4 sm:$0xff]   ;;  %v4151_v58 = vld [vmem:[%s5290_s10 + $0x30] sm:$0x1]  ;;  %v4944_v63 = vld [vmem:[%s6703_s1 + $0x4a0] ss:$8 sps:$4 sm:$0xff]  }
  0x94   : > { %1284 = vmatmul.mubr.bf16.gmra.mxu0 %v1042_v17  ;;  %v4150_v17 = vld [vmem:[%s5290_s10 + $0x28] sm:$0xfe]  ;;  %v4153_v25 = vld [vmem:[%s5290_s10 + $0x40] sm:$0xfe]  ;;  %v1701_v3 = vrot.slane %v4149_v56, 1 }
  0x95   : > { %1591 = vmatmul.mubr.bf16.gmra.mxu1 %v1349_v18  ;;  %1971 = vmatpush1.bf16.msra.mxu0 %v4878_v14  ;;  %v4917_v14 = vld [vmem:[%s6703_s1 + $0x5f0] ss:$8 sps:$4 sm:$0xff]   ;;  %v1704_v23 = vrot.slane %v4150_v17, 1  ;;  %v4946_v59 = vld [vmem:[%s6703_s1 + $0x4a4] ss:$8 sps:$4 sm:$0xff]  }
  0x96   : > { %2389 = vmatpush1.bf16.msra.mxu1 %v4881_v15  ;;  %1972 = vmatprep.subr.bf16.mxu0 %v4886_v21  ;;  %v4922_v15 = vld [vmem:[%s6703_s1 + $0x4e4] ss:$8 sps:$4 sm:$0xff]   ;;  %v4152_v18 = vld [vmem:[%s5290_s10 + $0x38] sm:$0x1]  ;;  %v4947_v0 = vld [vmem:[%s6703_s1 + $0x5a0] ss:$8 sps:$4 sm:$0xff]  }
  0x97   : > { %2390 = vmatprep.subr.bf16.mxu1 %v4889_v2  ;;  %1293 = vmatprep.mubr.bf16.mxu0 %v1045_v35  ;;  %v4154_v21 = vld [vmem:[%s5290_s10 + $0x48] sm:$0xfe]  ;;  %v1705_v26 = vrot.slane %v4152_v18, 1  ;;  %v4248_v35 = vld [vmem:[%s5290_s10 + $0x38] sm:$0x3] }
  0x98   : > { %1600 = vmatprep.mubr.bf16.mxu1 %v1352_v41  ;;  %v1710_v27 = vrot.slane %v4154_v21, 1  ;;  %v4931_v41 = vld [vmem:[%s6703_s1 + $0x5d4] ss:$8 sps:$4 sm:$0xff]   ;;  %v4953_v17 = vld [vmem:[%s6703_s1 + $0x590] ss:$8 sps:$4 sm:$0xff]  }
  0x99   : > { %1973 = vmatpush1.bf16.msra.mxu0 %v4884_v33  ;;  %v1706_v2 = vsel %vm339_vm0, %v1704_v23, %v1705_v26  ;;  %v5922_v18 = vld [vmem:[%s5290_s10 + $0x70] sm:$0x1]  ;;  %v4254_v21 = vld [vmem:[%s5290_s10 + $0x68] sm:$0xfc]  ;;  %v4256_v22 = vld [vmem:[%s5290_s10 + $0x78] sm:$0x3] }
  0x9a   : > { %2391 = vmatpush1.bf16.msra.mxu1 %v4887_v34  ;;  %1974 = vmatprep.subr.bf16.mxu0 %v4892_v29  ;;  %v1712_v33 = vsel %vm339_vm0, %v1710_v27, %v1711_v28  ;;  %v4246_v34 = vld [vmem:[%s5290_s10 + $0x28] sm:$0xfc]  ;;  %v4168_v56 = vld [vmem:[%s5290_s10 + $0xb8] sm:$0x1] }
  0x9b   : > { %2392 = vmatprep.subr.bf16.mxu1 %v4895_v4  ;;  %v1766_v57 = vpack.c.bf16 %v1712_v33, %v1706_v2  ;;  %v2122_v29 = vrot.slane %v4246_v34, 2  ;;  %v2123_v4 = vrot.slane %v4248_v35, 2  ;;  %v4958_v23 = vld [vmem:[%s6703_s1 + $0x484] ss:$8 sps:$4 sm:$0xff]   ;;  %v4260_v2 = vld [vmem:[%s5290_s10 + $0x98] sm:$0x3] }
  0x9c   : > { %1294 = vmatmul.mubr.bf16.gmra.mxu0 %v1044_v48  ;;  %v4932_v48 = vld [vmem:[%s6703_s1 + $0x4c0] ss:$8 sps:$4 sm:$0xff]   ;;  %v4961_v26 = vld [vmem:[%s6703_s1 + $0x584] ss:$8 sps:$4 sm:$0xff]  }
  0x9d   : > { %1601 = vmatmul.mubr.bf16.gmra.mxu1 %v1351_v50  ;;  %1975 = vmatpush1.bf16.msra.mxu0 %v4890_v46  ;;  %v2124_v43 = vsel %vm975_vm1, %v2122_v29, %v2123_v4  ;;  %v2130_v46 = vsel %vm975_vm1, %v2128_v38, %v2129_v39  ;;  %v4935_v50 = vld [vmem:[%s6703_s1 + $0x5c0] ss:$8 sps:$4 sm:$0xff]   ;;  %v1714_v29 = vrot.slane %v5922_v18, 1  ;;  %v2134_v4 = vrot.slane %v4254_v21, 2 }
  0x9e   : > { %2393 = vmatpush1.bf16.msra.mxu1 %v4893_v47  ;;  %1976 = vmatprep.subr.bf16.mxu0 %v4898_v52  ;;  %v2184_v47 = vpack.c.bf16 %v2130_v46, %v2124_v43  ;;  %v4940_v52 = vld [vmem:[%s6703_s1 + $0x4b4] ss:$8 sps:$4 sm:$0xff]   ;;  %v4956_v38 = vld [vmem:[%s6703_s1 + $0x480] ss:$8 sps:$4 sm:$0xff]   ;;  %v2141_v43 = vrot.slane %v4260_v2, 2 }
  0x9f   : > { %2394 = vmatprep.subr.bf16.mxu1 %v4901_v42  ;;  %1303 = vmatprep.mubr.bf16.mxu0 %v1047_v1  ;;  %v4155_v42 = vld [vmem:[%s5290_s10 + $0x50] sm:$0x1]  ;;  %v4959_v39 = vld [vmem:[%s6703_s1 + $0x580] ss:$8 sps:$4 sm:$0xff]  }
  0xa0   : > { %1610 = vmatprep.mubr.bf16.mxu1 %v1354_v60  ;;  %v4247_v1 = vld [vmem:[%s5290_s10 + $0x30] sm:$0x3]  ;;  %v4949_v60 = vld [vmem:[%s6703_s1 + $0x5a4] ss:$8 sps:$4 sm:$0xff]   ;;  %v4968_v18 = vld [vmem:[%s6703_s1 + $0x660] ss:$8 sps:$4 sm:$0xff]  }
  0xa1   : > { %1977 = vmatpush1.bf16.msra.mxu0 %v4896_v19  ;;  %v4245_v19 = vld [vmem:[%s5290_s10 + $0x20] sm:$0xfc] }
  0xa2   : > { %2395 = vmatpush1.bf16.msra.mxu1 %v4899_v61  ;;  %1978 = vmatprep.subr.bf16.mxu0 %v4904_v62  ;;  %v4249_v61 = vld [vmem:[%s5290_s10 + $0x40] sm:$0xfc]  ;;  %v4251_v62 = vld [vmem:[%s5290_s10 + $0x50] sm:$0x3] }
  0xa3   : > { %2396 = vmatprep.subr.bf16.mxu1 %v4907_v6  ;;  %v1702_v6 = vrot.slane %v4151_v58, 1  ;;  %v4170_v58 = vld [vmem:[%s5290_s10 + $0xc8] sm:$0xfe] }
  0xa4   : > { %1304 = vmatmul.mubr.bf16.gmra.mxu0 %v1046_v5  ;;  %v4952_v5 = vld [vmem:[%s6703_s1 + $0x494] ss:$8 sps:$4 sm:$0xff]   ;;  %v4971_v21 = vld [vmem:[%s6703_s1 + $0x760] ss:$8 sps:$4 sm:$0xff]  }
  0xa5   : > { %1611 = vmatmul.mubr.bf16.gmra.mxu1 %v1353_v51  ;;  %1979 = vmatpush1.bf16.msra.mxu0 %v4902_v7  ;;  %v4955_v7 = vld [vmem:[%s6703_s1 + $0x594] ss:$8 sps:$4 sm:$0xff]   ;;  %v1708_v51 = vrot.slane %v4155_v42, 1  ;;  %v5933_v27 = vsel %vm339_vm0, %v1701_v3, %v1702_v6 }
  0xa6   : > { %2397 = vmatpush1.bf16.msra.mxu1 %v4905_v8  ;;  %1980 = vmatprep.subr.bf16.mxu0 %v4910_v24  ;;  %v1707_v8 = vrot.slane %v4153_v25, 1  ;;  %v2119_v24 = vrot.slane %v4245_v19, 2  ;;  %v4967_v25 = vld [vmem:[%s6703_s1 + $0x774] ss:$8 sps:$4 sm:$0xff]   ;;  %v1720_v19 = vrot.slane %v5950_v49, 1 }
  0xa7   : > { %2398 = vmatprep.subr.bf16.mxu1 %v4913_v9  ;;  %1998 = vmatprep.mubr.bf16.mxu0 %v1766_v57  ;;  %v2120_v9 = vrot.slane %v4247_v1, 2  ;;  %v5947_v57 = vld [vmem:[%s5290_s10 + $0x80] sm:$0xfe] }
  0xa8   : > { %2416 = vmatprep.mubr.bf16.mxu1 %v2184_v47  ;;  %v5936_v28 = vsel %vm339_vm0, %v1707_v8, %v1708_v51  ;;  %v4964_v47 = vld [vmem:[%s6703_s1 + $0x674] ss:$8 sps:$4 sm:$0xff]   ;;  %v1719_v42 = vrot.slane %v5947_v57, 1  ;;  %v1729_v51 = vrot.slane %v4168_v56, 1  ;;  %v4174_v56 = vld [vmem:[%s5290_s10 + $0xe8] sm:$0xfe] }
  0xa9   : > { %1981 = vmatpush1.bf16.msra.mxu0 %v4908_v10  ;;  %v2125_v10 = vrot.slane %v4249_v61, 2  ;;  %v1765_v46 = vpack.c.bf16 %v5936_v28, %v5933_v27  ;;  %v4962_v61 = vld [vmem:[%s6703_s1 + $0x670] ss:$8 sps:$4 sm:$0xff]   ;;  %v4261_v28 = vld [vmem:[%s5290_s10 + $0xa0] sm:$0xfc] }
  0xaa   : > { %2399 = vmatpush1.bf16.msra.mxu1 %v4911_v20  ;;  %1982 = vmatprep.subr.bf16.mxu0 %v4916_v11  ;;  %v2126_v20 = vrot.slane %v4251_v62, 2  ;;  %v4158_v11 = vld [vmem:[%s5290_s10 + $0x68] sm:$0xfe]  ;;  %v4965_v62 = vld [vmem:[%s6703_s1 + $0x770] ss:$8 sps:$4 sm:$0xff]  }
  0xab   : > { %2400 = vmatprep.subr.bf16.mxu1 %v4919_v12  ;;  %v4160_v12 = vld [vmem:[%s5290_s10 + $0x78] sm:$0x1] }
  0xac   : > { %v5944_v33 = vsel %vm975_vm1, %v2125_v10, %v2126_v20  ;;  %v6010_v10 = vld [vmem:[%s5290_s10 + $0xa0] sm:$0xfe]  ;;  %v6013_v20 = vld [vmem:[%s5290_s10 + $0xb0] sm:$0x1] }
  0xad   : > { %1983 = vmatpush2.bf16.msra.mxu0 %v4914_v13  ;;  %v4162_v13 = vld [vmem:[%s5290_s10 + $0x88] sm:$0xfe] }
  0xae   : > { %2401 = vmatpush2.bf16.msra.mxu1 %v4917_v14  ;;  %1984 = vmatprep.subr.bf16.mxu0 %v4922_v15  ;;  %v4164_v14 = vld [vmem:[%s5290_s10 + $0x98] sm:$0x1]  ;;  %v5913_v15 = vld [vmem:[%s5290_s10 + $0x60] sm:$0xfe]  ;;  %v1722_v34 = vrot.slane %v4162_v13, 1 }
  0xaf   : > { %2402 = vmatprep.subr.bf16.mxu1 %v4925_v16  ;;  %v4950_v16 = vld [vmem:[%s6703_s1 + $0x490] ss:$8 sps:$4 sm:$0xff]   ;;  %v1723_v35 = vrot.slane %v4164_v14, 1  ;;  %v1713_v36 = vrot.slane %v5913_v15, 1  ;;  %v4262_v13 = vld [vmem:[%s5290_s10 + $0xa8] sm:$0xfc] }
  0xb0   : > { %v4264_v15 = vld [vmem:[%s5290_s10 + $0xb8] sm:$0x3] }
  0xb1   : > { %1985 = vmatpush2.bf16.msra.mxu0 %v4920_v30  ;;  %v1716_v30 = vrot.slane %v4158_v11, 1  ;;  %v6016_v11 = vld [vmem:[%s5290_s10 + $0xc0] sm:$0xfe]  ;;  %v2147_v27 = vrot.slane %v4264_v15, 2  ;;  %v4270_v15 = vld [vmem:[%s5290_s10 + $0xe8] sm:$0xfc] }
  0xb2   : > { %2403 = vmatpush2.bf16.msra.mxu1 %v4923_v31  ;;  %1986 = vmatprep.subr.bf16.mxu0 %v4928_v32  ;;  %v1717_v31 = vrot.slane %v4160_v12, 1  ;;  %v4258_v32 = vld [vmem:[%s5290_s10 + $0x88] sm:$0xfc]  ;;  %v6019_v12 = vld [vmem:[%s5290_s10 + $0xd0] sm:$0x1] }
  0xb3   : > { %2404 = vmatprep.subr.bf16.mxu1 %v4931_v41  ;;  %v5941_v41 = vsel %vm975_vm1, %v2119_v24, %v2120_v9  ;;  %v1734_v24 = vrot.slane %v4170_v58, 1  ;;  %v4176_v58 = vld [vmem:[%s5290_s10 + $0xf8] sm:$0x1] }
  0xb5   : > { %1987 = vmatpush2.bf16.msra.mxu0 %v4926_v37  ;;  %v2135_v37 = vrot.slane %v4256_v22, 2  ;;  %v1715_v22 = vsel %vm339_vm0, %v1713_v36, %v1714_v29  ;;  %v4267_v29 = vld [vmem:[%s5290_s10 + $0xd0] sm:$0x3] }
  0xb6   : > { %2405 = vmatpush2.bf16.msra.mxu1 %v4929_v40  ;;  %1988 = vmatprep.subr.bf16.mxu0 %v4934_v44  ;;  %v2140_v40 = vrot.slane %v4258_v32, 2  ;;  %v4253_v44 = vld [vmem:[%s5290_s10 + $0x60] sm:$0xfc]  ;;  %v4979_v32 = vld [vmem:[%s6703_s1 + $0x754] ss:$8 sps:$4 sm:$0xff]  }
  0xb7   : > { %2406 = vmatprep.subr.bf16.mxu1 %v4937_v45  ;;  %v4255_v45 = vld [vmem:[%s5290_s10 + $0x70] sm:$0x3]  ;;  %v2136_v1 = vsel %vm975_vm1, %v2134_v4, %v2135_v37  ;;  %v1725_v4 = vrot.slane %v6010_v10, 1  ;;  %v1726_v37 = vrot.slane %v6013_v20, 1 }
  0xb9   : > { %1989 = vmatpush2.bf16.msra.mxu0 %v4932_v48  ;;  %v5968_v48 = vld [vmem:[%s5290_s10 + $0x80] sm:$0xfc] }
  0xba   : > { %2407 = vmatpush2.bf16.msra.mxu1 %v4935_v50  ;;  %1990 = vmatprep.subr.bf16.mxu0 %v4940_v52  ;;  %v5971_v50 = vld [vmem:[%s5290_s10 + $0x90] sm:$0x3]  ;;  %v5974_v52 = vld [vmem:[%s5290_s10 + $0xa8] sm:$0xfe]  ;;  %v2137_v3 = vrot.slane %v5968_v48, 2 }
  0xbb   : > { %2408 = vmatprep.subr.bf16.mxu1 %v4943_v53  ;;  %v2183_v53 = vpack.c.bf16 %v5944_v33, %v5941_v41  ;;  %v2138_v6 = vrot.slane %v5971_v50, 2  ;;  %v1728_v8 = vrot.slane %v5974_v52, 1  ;;  %v4982_v52 = vld [vmem:[%s6703_s1 + $0x644] ss:$8 sps:$4 sm:$0xff]  }
  0xbd   : > { %1991 = vmatpush2.bf16.msra.mxu0 %v4938_v54  ;;  %v5979_v54 = vsel %vm339_vm0, %v1716_v30, %v1717_v31  ;;  %v1721_v30 = vsel %vm339_vm0, %v1719_v42, %v1720_v19  ;;  %v4976_v31 = vld [vmem:[%s6703_s1 + $0x654] ss:$8 sps:$4 sm:$0xff]   ;;  %v2139_v57 = vsel %vm975_vm1, %v2137_v3, %v2138_v6  ;;  %v6047_v49 = vsel %vm339_vm0, %v1728_v8, %v1729_v51 }
  0xbe   : > { %2409 = vmatpush2.bf16.msra.mxu1 %v4941_v55  ;;  %1992 = vmatprep.subr.bf16.mxu0 %v4946_v59  ;;  %v5982_v55 = vsel %vm339_vm0, %v1722_v34, %v1723_v35  ;;  %v4172_v59 = vld [vmem:[%s5290_s10 + $0xd8] sm:$0x1]  ;;  %v4263_v34 = vld [vmem:[%s5290_s10 + $0xb0] sm:$0x3]  ;;  %v4265_v35 = vld [vmem:[%s5290_s10 + $0xc0] sm:$0xfc]  ;;  %v1767_v48 = vpack.c.bf16 %v1721_v30, %v1715_v22  ;;  %v1727_v19 = vsel %vm339_vm0, %v1725_v4, %v1726_v37 }
  0xbf   : > { %2410 = vmatprep.subr.bf16.mxu1 %v4949_v60  ;;  %v2131_v60 = vrot.slane %v4253_v44, 2  ;;  %v1735_v9 = vrot.slane %v4172_v59, 1  ;;  %v1768_v14 = vpack.c.bf16 %v5982_v55, %v5979_v54  ;;  %v2143_v44 = vrot.slane %v4261_v28, 2  ;;  %v4178_v59 = vld [vmem:[%s5290_s10 + $0x108] sm:$0xfe] }
  0xc0   : > { %v4988_v8 = vld [vmem:[%s6703_s1 + $0x634] ss:$8 sps:$4 sm:$0xff]   ;;  %v1746_v10 = vrot.slane %v4178_v59, 1  ;;  %v4986_v22 = vld [vmem:[%s6703_s1 + $0x630] ss:$8 sps:$4 sm:$0xff]  }
  0xc1   : > { %1993 = vmatpush2.bf16.msra.mxu0 %v4944_v63  ;;  %v2142_v63 = vsel %vm975_vm1, %v2140_v40, %v2141_v43  ;;  %v6050_v36 = vsel %vm339_vm0, %v1734_v24, %v1735_v9  ;;  %v4974_v40 = vld [vmem:[%s6703_s1 + $0x650] ss:$8 sps:$4 sm:$0xff]   ;;  %v4991_v51 = vld [vmem:[%s6703_s1 + $0x734] ss:$8 sps:$4 sm:$0xff]   ;;  %v1740_v24 = vrot.slane %v4174_v56, 1  ;;  %v1741_v9 = vrot.slane %v4176_v58, 1 }
  0xc2   : > { %2411 = vmatpush2.bf16.msra.mxu1 %v4947_v0  ;;  %1994 = vmatprep.subr.bf16.mxu0 %v4952_v5  ;;  %v2132_v0 = vrot.slane %v4255_v45, 2  ;;  %v4970_v5 = vld [vmem:[%s6703_s1 + $0x664] ss:$8 sps:$4 sm:$0xff]   ;;  %v4977_v43 = vld [vmem:[%s6703_s1 + $0x750] ss:$8 sps:$4 sm:$0xff]   ;;  %v2144_v45 = vrot.slane %v4263_v34, 2  ;;  %v1770_v42 = vpack.c.bf16 %v6050_v36, %v6047_v49 }
  0xc3   : > { %2412 = vmatprep.subr.bf16.mxu1 %v4955_v7  ;;  %v4973_v7 = vld [vmem:[%s6703_s1 + $0x764] ss:$8 sps:$4 sm:$0xff]   ;;  %v4275_v49 = vld [vmem:[%s5290_s10 + $0x110] sm:$0x3] }
  0xc4   : > { %v2133_v2 = vsel %vm975_vm1, %v2131_v60, %v2132_v0  ;;  %v6082_v60 = vld [vmem:[%s5290_s10 + $0xf0] sm:$0x1]  ;;  %v2145_v6 = vsel %vm975_vm1, %v2143_v44, %v2144_v45  ;;  %v4273_v34 = vld [vmem:[%s5290_s10 + $0x100] sm:$0xfc] }
  0xc5   : > { %1995 = vmatpush2.bf16.msra.mxu0 %v4950_v16  ;;  %v4266_v16 = vld [vmem:[%s5290_s10 + $0xc8] sm:$0xfc]  ;;  %v2185_v50 = vpack.c.bf16 %v2139_v57, %v2133_v2  ;;  %v5001_v56 = vld [vmem:[%s6703_s1 + $0x710] ss:$8 sps:$4 sm:$0xff]  }
  0xc6   : > { %2413 = vmatpush2.bf16.msra.mxu1 %v4953_v17  ;;  %1996 = vmatprep.subr.bf16.mxu0 %v4958_v23  ;;  %v4268_v17 = vld [vmem:[%s5290_s10 + $0xd8] sm:$0x3]  ;;  %v2186_v23 = vpack.c.bf16 %v2142_v63, %v2136_v1  ;;  %v2152_v41 = vrot.slane %v4266_v16, 2  ;;  %v6079_v1 = vld [vmem:[%s5290_s10 + $0xe0] sm:$0xfe] }
  0xc7   : > { %2414 = vmatprep.subr.bf16.mxu1 %v4961_v26  ;;  %v2146_v26 = vrot.slane %v4262_v13, 2  ;;  %v2153_v33 = vrot.slane %v4268_v17, 2  ;;  %v4983_v63 = vld [vmem:[%s6703_s1 + $0x740] ss:$8 sps:$4 sm:$0xff]   ;;  %v4272_v17 = vld [vmem:[%s5290_s10 + $0xf8] sm:$0x3] }
  0xc8   : > { %v2159_v28 = vrot.slane %v4272_v17, 2  ;;  %v4994_v4 = vld [vmem:[%s6703_s1 + $0x624] ss:$8 sps:$4 sm:$0xff]   ;;  %v4992_v44 = vld [vmem:[%s6703_s1 + $0x620] ss:$8 sps:$4 sm:$0xff]  }
  0xc9   : > { %1997 = vmatpush2.bf16.msra.mxu0 %v4956_v38  ;;  %v1731_v38 = vrot.slane %v6016_v11, 1  ;;  %v2148_v54 = vsel %vm975_vm1, %v2146_v26, %v2147_v27  ;;  %v2154_v55 = vsel %vm975_vm1, %v2152_v41, %v2153_v33  ;;  %v1737_v11 = vrot.slane %v6079_v1, 1  ;;  %v4271_v33 = vld [vmem:[%s5290_s10 + $0xf0] sm:$0x3]  ;;  %v4997_v37 = vld [vmem:[%s6703_s1 + $0x724] ss:$8 sps:$4 sm:$0xff]  }
  0xca   : > { %2415 = vmatpush2.bf16.msra.mxu1 %v4959_v39  ;;  %2691 = vmatprep.subr.bf16.mxu0 %v4964_v47  ;;  %v1732_v39 = vrot.slane %v6019_v12, 1  ;;  %v2150_v47 = vrot.slane %v4267_v29, 2  ;;  %v2188_v3 = vpack.c.bf16 %v2154_v55, %v2148_v54  ;;  %v1738_v12 = vrot.slane %v6082_v60, 1  ;;  %v4995_v45 = vld [vmem:[%s6703_s1 + $0x720] ss:$8 sps:$4 sm:$0xff]  }
  0xcb   : > { %3109 = vmatprep.subr.bf16.mxu1 %v4967_v25  ;;  %v4180_v25 = vld [vmem:[%s5290_s10 + $0x118] sm:$0x1]  ;;  %v2158_v27 = vrot.slane %v4270_v15, 2  ;;  %v2156_v36 = vrot.slane %v4271_v33, 2  ;;  %v2161_v29 = vrot.slane %v4273_v34, 2 }
  0xcc   : > { %1999 = vmatmul.mubr.bf16.vlgmr.msra.gmra.mxu0 %v1765_v46  ;;  %v2149_v46 = vrot.slane %v4265_v35, 2  ;;  %v1733_v0 = vsel %vm339_vm0, %v1731_v38, %v1732_v39  ;;  %v1747_v20 = vrot.slane %v4180_v25, 1  ;;  %v2162_v39 = vrot.slane %v4275_v49, 2  ;;  %v4998_v55 = vld [vmem:[%s6703_s1 + $0x610] ss:$8 sps:$4 sm:$0xff]  }
  0xcd   : > { %2417 = vmatmul.mubr.bf16.vlgmr.msra.gmra.mxu1 %v2183_v53  ;;  %2692 = vmatpush1.bf16.msra.mxu0 %v4962_v61  ;;  %v4985_v53 = vld [vmem:[%s6703_s1 + $0x744] ss:$8 sps:$4 sm:$0xff]   ;;  %v1769_v16 = vpack.c.bf16 %v1733_v0, %v1727_v19  ;;  %v2160_v57 = vsel %vm975_vm1, %v2158_v27, %v2159_v28  ;;  %v5007_v19 = vld [vmem:[%s6703_s1 + $0x700] ss:$8 sps:$4 sm:$0xff]   ;;  %v5012_v1 = vld [vmem:[%s6703_s1 + $0x6f4] ss:$8 sps:$4 sm:$0xff]  }
  0xce   : > { %3110 = vmatpush1.bf16.msra.mxu1 %v4965_v62  ;;  %2693 = vmatprep.subr.bf16.mxu0 %v4970_v5  ;;  %v6085_v61 = vld [vmem:[%s5290_s10 + $0x100] sm:$0xfe]  ;;  %v2151_v5 = vsel %vm975_vm1, %v2149_v46, %v2150_v47  ;;  %v1748_v2 = vsel %vm339_vm0, %v1746_v10, %v1747_v20  ;;  %v1739_v46 = vsel %vm339_vm0, %v1737_v11, %v1738_v12  ;;  %v5015_v60 = vld [vmem:[%s6703_s1 + $0x7f4] ss:$8 sps:$4 sm:$0xff]   ;;  %v4344_v10 = vld [vmem:[%s5290_s10 + $0x68] sm:$0xff] }
  0xcf   : > { %3111 = vmatprep.subr.bf16.mxu1 %v4973_v7  ;;  %2008 = vmatprep.mubr.bf16.mxu0 %v1768_v14  ;;  %v4980_v62 = vld [vmem:[%s6703_s1 + $0x640] ss:$8 sps:$4 sm:$0xff]   ;;  %v4179_v7 = vld [vmem:[%s5290_s10 + $0x110] sm:$0x1]  ;;  %v1743_v13 = vrot.slane %v6085_v61, 1  ;;  %v2187_v26 = vpack.c.bf16 %v2151_v5, %v2145_v6 }
  0xd0   : > { %2426 = vmatprep.mubr.bf16.mxu1 %v2186_v23  ;;  %v1744_v14 = vrot.slane %v4179_v7, 1  ;;  %v4989_v23 = vld [vmem:[%s6703_s1 + $0x730] ss:$8 sps:$4 sm:$0xff]   ;;  %v5006_v59 = vld [vmem:[%s6703_s1 + $0x604] ss:$8 sps:$4 sm:$0xff]  }
  0xd1   : > { %2694 = vmatpush1.bf16.msra.mxu0 %v4968_v18  ;;  %v4274_v18 = vld [vmem:[%s5290_s10 + $0x108] sm:$0xfc]  ;;  %v5010_v61 = vld [vmem:[%s6703_s1 + $0x6f0] ss:$8 sps:$4 sm:$0xff]   ;;  %v5024_v5 = vld [vmem:[%s6703_s1 + $0x6d4] ss:$8 sps:$4 sm:$0xff]  }
  0xd2   : > { %3112 = vmatpush1.bf16.msra.mxu1 %v4971_v21  ;;  %2695 = vmatprep.subr.bf16.mxu0 %v4976_v31  ;;  %v4276_v21 = vld [vmem:[%s5290_s10 + $0x118] sm:$0x3]  ;;  %v2164_v30 = vrot.slane %v4274_v18, 2  ;;  %v4269_v31 = vld [vmem:[%s5290_s10 + $0xe0] sm:$0xfc]  ;;  %v1745_v47 = vsel %vm339_vm0, %v1743_v13, %v1744_v14 }
  0xd3   : > { %3113 = vmatprep.subr.bf16.mxu1 %v4979_v32  ;;  %v1742_v32 = vsel %vm339_vm0, %v1740_v24, %v1741_v9  ;;  %v2165_v41 = vrot.slane %v4276_v21, 2  ;;  %v2155_v35 = vrot.slane %v4269_v31, 2  ;;  %v1771_v54 = vpack.c.bf16 %v1745_v47, %v1739_v46  ;;  %v5009_v25 = vld [vmem:[%s6703_s1 + $0x704] ss:$8 sps:$4 sm:$0xff]   ;;  %v5019_v6 = vld [vmem:[%s6703_s1 + $0x7e0] ss:$8 sps:$4 sm:$0xff]  }
  0xd4   : > { %2009 = vmatmul.mubr.bf16.gmra.mxu0 %v1767_v48  ;;  %v5000_v48 = vld [vmem:[%s6703_s1 + $0x614] ss:$8 sps:$4 sm:$0xff]   ;;  %v5021_v0 = vld [vmem:[%s6703_s1 + $0x7e4] ss:$8 sps:$4 sm:$0xff]   ;;  %v4424_v13 = vld [vmem:[%s5290_s10 + $0x58] sm:$0x1] }
  0xd5   : > { %2427 = vmatmul.mubr.bf16.gmra.mxu1 %v2185_v50  ;;  %2696 = vmatpush1.bf16.msra.mxu0 %v4974_v40  ;;  %v2166_v38 = vsel %vm975_vm1, %v2164_v30, %v2165_v41  ;;  %v1772_v40 = vpack.c.bf16 %v1748_v2, %v1742_v32  ;;  %v2157_v50 = vsel %vm975_vm1, %v2155_v35, %v2156_v36  ;;  %v5027_v7 = vld [vmem:[%s6703_s1 + $0x7d4] ss:$8 sps:$4 sm:$0xff]   ;;  %v5030_v24 = vld [vmem:[%s6703_s1 + $0x6c4] ss:$8 sps:$4 sm:$0xff]   ;;  %v4428_v15 = vld [vmem:[%s5290_s10 + $0x78] sm:$0x1] }
  0xd6   : > { %3114 = vmatpush1.bf16.msra.mxu1 %v4977_v43  ;;  %2697 = vmatprep.subr.bf16.mxu0 %v4982_v52  ;;  %v2190_v43 = vpack.c.bf16 %v2166_v38, %v2160_v57  ;;  %v2163_v52 = vsel %vm975_vm1, %v2161_v29, %v2162_v39  ;;  %v4342_v9 = vld [vmem:[%s5290_s10 + $0x48] sm:$0xff]  ;;  %v2848_v17 = vrot.slane %v4424_v13, 1  ;;  %v2854_v21 = vrot.slane %v4428_v15, 1  ;;  %v5036_v27 = vld [vmem:[%s6703_s1 + $0x6b4] ss:$8 sps:$4 sm:$0xff]  }
  0xd7   : > { %3115 = vmatprep.subr.bf16.mxu1 %v4985_v53  ;;  %2018 = vmatprep.mubr.bf16.mxu0 %v1770_v42  ;;  %v5003_v53 = vld [vmem:[%s6703_s1 + $0x714] ss:$8 sps:$4 sm:$0xff]   ;;  %v2189_v58 = vpack.c.bf16 %v2163_v52, %v2157_v50  ;;  %v5004_v42 = vld [vmem:[%s6703_s1 + $0x600] ss:$8 sps:$4 sm:$0xff]   ;;  %v5033_v20 = vld [vmem:[%s6703_s1 + $0x7c4] ss:$8 sps:$4 sm:$0xff]   ;;  %v2491_v11 = vpack.c.bf16 %v4344_v10, %v4342_v9 }
  0xd8   : > { %2436 = vmatprep.mubr.bf16.mxu1 %v2188_v3  ;;  %v5016_v3 = vld [vmem:[%s6703_s1 + $0x6e0] ss:$8 sps:$4 sm:$0xff]   ;;  %v5039_v28 = vld [vmem:[%s6703_s1 + $0x7b4] ss:$8 sps:$4 sm:$0xff]   ;;  %v5034_v32 = vld [vmem:[%s6703_s1 + $0x6b0] ss:$8 sps:$4 sm:$0xff]  }
  0xd9   : > { %2698 = vmatpush1.bf16.msra.mxu0 %v4980_v62  ;;  %v5013_v62 = vld [vmem:[%s6703_s1 + $0x7f0] ss:$8 sps:$4 sm:$0xff]   ;;  %v4422_v12 = vld [vmem:[%s5290_s10 + $0x48] sm:$0xfe]  ;;  %v5048_v57 = vld [vmem:[%s6703_s1 + $0x694] ss:$8 sps:$4 sm:$0xff]  }
  0xda   : > { %3116 = vmatpush1.bf16.msra.mxu1 %v4983_v63  ;;  %2699 = vmatprep.subr.bf16.mxu0 %v4988_v8  ;;  %v5018_v63 = vld [vmem:[%s6703_s1 + $0x6e4] ss:$8 sps:$4 sm:$0xff]   ;;  %v5022_v8 = vld [vmem:[%s6703_s1 + $0x6d0] ss:$8 sps:$4 sm:$0xff]   ;;  %v5040_v34 = vld [vmem:[%s6703_s1 + $0x6a0] ss:$8 sps:$4 sm:$0xff]  }
  0xdb   : > { %3117 = vmatprep.subr.bf16.mxu1 %v4991_v51  ;;  %v5025_v51 = vld [vmem:[%s6703_s1 + $0x7d0] ss:$8 sps:$4 sm:$0xff]   ;;  %v4426_v14 = vld [vmem:[%s5290_s10 + $0x68] sm:$0xfe]  ;;  %v5051_v49 = vld [vmem:[%s6703_s1 + $0x794] ss:$8 sps:$4 sm:$0xff]  }
  0xdc   : > { %2019 = vmatmul.mubr.bf16.gmra.mxu0 %v1769_v16  ;;  %v2847_v16 = vrot.slane %v4422_v12, 1  ;;  %v2853_v18 = vrot.slane %v4426_v14, 1  ;;  %v5037_v2 = vld [vmem:[%s6703_s1 + $0x7b0] ss:$8 sps:$4 sm:$0xff]   ;;  %v5042_v41 = vld [vmem:[%s6703_s1 + $0x6a4] ss:$8 sps:$4 sm:$0xff]  }
  0xdd   : > { %2437 = vmatmul.mubr.bf16.gmra.mxu1 %v2187_v26  ;;  %2700 = vmatpush1.bf16.msra.mxu0 %v4986_v22  ;;  %v5028_v22 = vld [vmem:[%s6703_s1 + $0x6c0] ss:$8 sps:$4 sm:$0xff]   ;;  %v5045_v33 = vld [vmem:[%s6703_s1 + $0x7a4] ss:$8 sps:$4 sm:$0xff]   ;;  %v4423_v29 = vld [vmem:[%s5290_s10 + $0x50] sm:$0x1] }
  0xde   : > { %3118 = vmatpush1.bf16.msra.mxu1 %v4989_v23  ;;  %2701 = vmatprep.subr.bf16.mxu0 %v4994_v4  ;;  %v5031_v23 = vld [vmem:[%s6703_s1 + $0x7c0] ss:$8 sps:$4 sm:$0xff]   ;;  %v2849_v26 = vsel %vm339_vm0, %v2847_v16, %v2848_v17  ;;  %v2855_v30 = vsel %vm339_vm0, %v2853_v18, %v2854_v21  ;;  %v5046_v38 = vld [vmem:[%s6703_s1 + $0x690] ss:$8 sps:$4 sm:$0xff]   ;;  %v2845_v47 = vrot.slane %v4423_v29, 1 }
  0xdf   : > { %3119 = vmatprep.subr.bf16.mxu1 %v4997_v37  ;;  %2028 = vmatprep.mubr.bf16.mxu0 %v1772_v40  ;;  %v2909_v31 = vpack.c.bf16 %v2855_v30, %v2849_v26  ;;  %v5043_v35 = vld [vmem:[%s6703_s1 + $0x7a0] ss:$8 sps:$4 sm:$0xff]   ;;  %v4427_v37 = vld [vmem:[%s5290_s10 + $0x70] sm:$0x1]  ;;  %v5054_v52 = vld [vmem:[%s6703_s1 + $0x684] ss:$8 sps:$4 sm:$0xff]  }
  0xe0   : > { %2446 = vmatprep.mubr.bf16.mxu1 %v2190_v43  ;;  %v4421_v36 = vld [vmem:[%s5290_s10 + $0x40] sm:$0xfe]  ;;  %v5049_v39 = vld [vmem:[%s6703_s1 + $0x790] ss:$8 sps:$4 sm:$0xff]   ;;  %v4430_v40 = vld [vmem:[%s5290_s10 + $0x88] sm:$0xfe] }
  0xe1   : > { %2702 = vmatpush1.bf16.msra.mxu0 %v4992_v44  ;;  %v4425_v4 = vld [vmem:[%s5290_s10 + $0x60] sm:$0xfe]  ;;  %v4432_v43 = vld [vmem:[%s5290_s10 + $0x98] sm:$0x1]  ;;  %v4434_v44 = vld [vmem:[%s5290_s10 + $0xa8] sm:$0xfe] }
  0xe2   : > { %3120 = vmatpush1.bf16.msra.mxu1 %v4995_v45  ;;  %2703 = vmatprep.subr.bf16.mxu0 %v5000_v48  ;;  %v4436_v45 = vld [vmem:[%s5290_s10 + $0xb8] sm:$0x1]  ;;  %v2844_v46 = vrot.slane %v4421_v36, 1  ;;  %v2850_v48 = vrot.slane %v4425_v4, 1  ;;  %v2851_v50 = vrot.slane %v4427_v37, 1  ;;  %v4350_v36 = vld [vmem:[%s5290_s10 + $0xc8] sm:$0xff] }
  0xe3   : > { %3121 = vmatprep.subr.bf16.mxu1 %v5003_v53  ;;  %v5057_v53 = vld [vmem:[%s6703_s1 + $0x784] ss:$8 sps:$4 sm:$0xff]   ;;  %v4440_v13 = vld [vmem:[%s5290_s10 + $0xd8] sm:$0x1]  ;;  %v5061_v21 = vld [vmem:[%s6703_s1 + $0x860] ss:$8 sps:$4 sm:$0xff]  }
  0xe4   : > { %2029 = vmatmul.mubr.bf16.gmra.mxu0 %v1771_v54  ;;  %v5052_v54 = vld [vmem:[%s6703_s1 + $0x680] ss:$8 sps:$4 sm:$0xff]   ;;  %v5058_v15 = vld [vmem:[%s6703_s1 + $0x870] ss:$8 sps:$4 sm:$0xff]   ;;  %v5063_v17 = vld [vmem:[%s6703_s1 + $0x864] ss:$8 sps:$4 sm:$0xff]  }
  0xe5   : > { %2447 = vmatmul.mubr.bf16.gmra.mxu1 %v2189_v58  ;;  %2704 = vmatpush1.bf16.msra.mxu0 %v4998_v55  ;;  %v4341_v55 = vld [vmem:[%s5290_s10 + $0x40] sm:$0xff]  ;;  %v2859_v58 = vrot.slane %v4430_v40, 1  ;;  %v4438_v9 = vld [vmem:[%s5290_s10 + $0xc8] sm:$0xfe]  ;;  %v4444_v16 = vld [vmem:[%s5290_s10 + $0xf8] sm:$0x1] }
  0xe6   : > { %3122 = vmatpush1.bf16.msra.mxu1 %v5001_v56  ;;  %2705 = vmatprep.subr.bf16.mxu0 %v5006_v59  ;;  %v4343_v56 = vld [vmem:[%s5290_s10 + $0x60] sm:$0xff]  ;;  %v2860_v59 = vrot.slane %v4432_v43, 1  ;;  %v4442_v14 = vld [vmem:[%s5290_s10 + $0xe8] sm:$0xfe]  ;;  %v4443_v4 = vld [vmem:[%s5290_s10 + $0xf0] sm:$0x1] }
  0xe7   : > { %3123 = vmatprep.subr.bf16.mxu1 %v5009_v25  ;;  %2723 = vmatprep.mubr.bf16.mxu0 %v2491_v11  ;;  %v2865_v25 = vrot.slane %v4434_v44, 1  ;;  %v2877_v30 = vrot.slane %v4442_v14, 1  ;;  %v4441_v29 = vld [vmem:[%s5290_s10 + $0xe0] sm:$0xfe]  ;;  %v4352_v40 = vld [vmem:[%s5290_s10 + $0xe8] sm:$0xff] }
  0xe8   : > { %3141 = vmatprep.mubr.bf16.mxu1 %v2909_v31  ;;  %v4446_v43 = vld [vmem:[%s5290_s10 + $0x108] sm:$0xfe]  ;;  %v4448_v44 = vld [vmem:[%s5290_s10 + $0x118] sm:$0x1]  ;;  %v5072_v14 = vld [vmem:[%s6703_s1 + $0x834] ss:$8 sps:$4 sm:$0xff]  }
  0xe9   : > { %2706 = vmatpush1.bf16.msra.mxu0 %v5004_v42  ;;  %v2866_v42 = vrot.slane %v4436_v45, 1 }
  0xea   : > { %3124 = vmatpush1.bf16.msra.mxu1 %v5007_v19  ;;  %2707 = vmatprep.subr.bf16.mxu0 %v5012_v1  ;;  %v4429_v19 = vld [vmem:[%s5290_s10 + $0x80] sm:$0xfe]  ;;  %v4431_v1 = vld [vmem:[%s5290_s10 + $0x90] sm:$0x1] }
  0xeb   : > { %3125 = vmatprep.subr.bf16.mxu1 %v5015_v60  ;;  %v4433_v60 = vld [vmem:[%s5290_s10 + $0xa0] sm:$0xfe]  ;;  %v2867_v11 = vsel %vm339_vm0, %v2865_v25, %v2866_v42  ;;  %v5064_v42 = vld [vmem:[%s6703_s1 + $0x850] ss:$8 sps:$4 sm:$0xff]  }
  0xed   : > { %2708 = vmatpush2.bf16.msra.mxu0 %v5010_v61  ;;  %v5055_v61 = vld [vmem:[%s6703_s1 + $0x780] ss:$8 sps:$4 sm:$0xff]  }
  0xee   : > { %3126 = vmatpush2.bf16.msra.mxu1 %v5013_v62  ;;  %2709 = vmatprep.subr.bf16.mxu0 %v5018_v63  ;;  %v5060_v62 = vld [vmem:[%s6703_s1 + $0x874] ss:$8 sps:$4 sm:$0xff]   ;;  %v2846_v63 = vsel %vm339_vm0, %v2844_v46, %v2845_v47 }
  0xef   : > { %3127 = vmatprep.subr.bf16.mxu1 %v5021_v0  ;;  %v2852_v0 = vsel %vm339_vm0, %v2850_v48, %v2851_v50  ;;  %v4450_v50 = vld [vmem:[%s5290_s10 + $0x128] sm:$0xfe] }
  0xf0   : > { %v2908_v10 = vpack.c.bf16 %v2852_v0, %v2846_v63  ;;  %v4351_v63 = vld [vmem:[%s5290_s10 + $0xe0] sm:$0xff]  ;;  %v2883_v0 = vrot.slane %v4446_v43, 1  ;;  %v4534_v43 = vld [vmem:[%s5290_s10 + $0xc8] sm:$0xfc] }
  0xf1   : > { %2710 = vmatpush2.bf16.msra.mxu0 %v5016_v3  ;;  %v4435_v3 = vld [vmem:[%s5290_s10 + $0xb0] sm:$0x1] }
  0xf2   : > { %3128 = vmatpush2.bf16.msra.mxu1 %v5019_v6  ;;  %2711 = vmatprep.subr.bf16.mxu0 %v5024_v5  ;;  %v4346_v6 = vld [vmem:[%s5290_s10 + $0x88] sm:$0xff]  ;;  %v2490_v5 = vpack.c.bf16 %v4343_v56, %v4341_v55  ;;  %v2863_v12 = vrot.slane %v4435_v3, 1  ;;  %v2874_v56 = vrot.slane %v4441_v29, 1  ;;  %v2884_v3 = vrot.slane %v4448_v44, 1  ;;  %v4524_v29 = vld [vmem:[%s5290_s10 + $0x78] sm:$0x3] }
  0xf3   : > { %3129 = vmatprep.subr.bf16.mxu1 %v5027_v7  ;;  %v4348_v7 = vld [vmem:[%s5290_s10 + $0xa8] sm:$0xff] }
  0xf4   : > { %v2493_v18 = vpack.c.bf16 %v4348_v7, %v4346_v6 }
  0xf5   : > { %2712 = vmatpush2.bf16.msra.mxu0 %v5022_v8  ;;  %v2856_v8 = vrot.slane %v4429_v19, 1  ;;  %v5069_v19 = vld [vmem:[%s6703_s1 + $0x844] ss:$8 sps:$4 sm:$0xff]  }
  0xf6   : > { %3130 = vmatpush2.bf16.msra.mxu1 %v5025_v51  ;;  %2713 = vmatprep.subr.bf16.mxu0 %v5030_v24  ;;  %v2857_v51 = vrot.slane %v4431_v1, 1  ;;  %v2862_v24 = vrot.slane %v4433_v60, 1 }
  0xf7   : > { %3131 = vmatprep.subr.bf16.mxu1 %v5033_v20  ;;  %v2861_v20 = vsel %vm339_vm0, %v2859_v58, %v2860_v59  ;;  %v2875_v58 = vrot.slane %v4443_v4, 1  ;;  %v4452_v59 = vld [vmem:[%s5290_s10 + $0x138] sm:$0x1] }
  0xf8   : > { %v2911_v26 = vpack.c.bf16 %v2867_v11, %v2861_v20  ;;  %v4447_v20 = vld [vmem:[%s5290_s10 + $0x110] sm:$0x1]  ;;  %v4449_v11 = vld [vmem:[%s5290_s10 + $0x120] sm:$0xfe] }
  0xf9   : > { %2714 = vmatpush2.bf16.msra.mxu0 %v5028_v22  ;;  %v6305_v22 = vld [vmem:[%s5290_s10 + $0x80] sm:$0xff] }
  0xfa   : > { %3132 = vmatpush2.bf16.msra.mxu1 %v5031_v23  ;;  %2715 = vmatprep.subr.bf16.mxu0 %v5036_v27  ;;  %v6308_v23 = vld [vmem:[%s5290_s10 + $0xa0] sm:$0xff]  ;;  %v2871_v27 = vrot.slane %v4438_v9, 1 }
  0xfb   : > { %3133 = vmatprep.subr.bf16.mxu1 %v5039_v28  ;;  %v2872_v28 = vrot.slane %v4440_v13, 1 }
  0xfd   : > { %2716 = vmatpush2.bf16.msra.mxu0 %v5034_v32 }
  0xfe   : > { %3134 = vmatpush2.bf16.msra.mxu1 %v5037_v2  ;;  %2717 = vmatprep.subr.bf16.mxu0 %v5042_v41  ;;  %v5066_v2 = vld [vmem:[%s6703_s1 + $0x854] ss:$8 sps:$4 sm:$0xff]   ;;  %v2858_v41 = vsel %vm339_vm0, %v2856_v8, %v2857_v51  ;;  %v2889_v8 = vrot.slane %v4450_v50, 1  ;;  %v2890_v51 = vrot.slane %v4452_v59, 1  ;;  %v4536_v50 = vld [vmem:[%s5290_s10 + $0xd8] sm:$0x3] }
  0xff   : > { %3135 = vmatprep.subr.bf16.mxu1 %v5045_v33  ;;  %v2864_v33 = vsel %vm339_vm0, %v2862_v24, %v2863_v12  ;;  %v4445_v24 = vld [vmem:[%s5290_s10 + $0x100] sm:$0xfe]  ;;  %v4451_v12 = vld [vmem:[%s5290_s10 + $0x130] sm:$0x1]  ;;  %v5078_v59 = vld [vmem:[%s6703_s1 + $0x814] ss:$8 sps:$4 sm:$0xff]  }
 0x100   : > { %v2910_v46 = vpack.c.bf16 %v2864_v33, %v2858_v41  ;;  %v4353_v41 = vld [vmem:[%s5290_s10 + $0x100] sm:$0xff] }
 0x101   : > { %2718 = vmatpush2.bf16.msra.mxu0 %v5040_v34  ;;  %v2878_v34 = vrot.slane %v4444_v16, 1  ;;  %v4355_v33 = vld [vmem:[%s5290_s10 + $0x120] sm:$0xff] }
 0x102   : > { %3136 = vmatpush2.bf16.msra.mxu1 %v5043_v35  ;;  %2719 = vmatprep.subr.bf16.mxu0 %v5048_v57  ;;  %v4437_v35 = vld [vmem:[%s5290_s10 + $0xc0] sm:$0xfe]  ;;  %v4439_v57 = vld [vmem:[%s5290_s10 + $0xd0] sm:$0x1] }
 0x103   : > { %3137 = vmatprep.subr.bf16.mxu1 %v5051_v49  ;;  %v2868_v47 = vrot.slane %v4437_v35, 1  ;;  %v2869_v48 = vrot.slane %v4439_v57, 1  ;;  %v2879_v55 = vsel %vm339_vm0, %v2877_v30, %v2878_v34  ;;  %v5070_v30 = vld [vmem:[%s6703_s1 + $0x830] ss:$8 sps:$4 sm:$0xff]  }
 0x104   : > { %v4520_v57 = vld [vmem:[%s5290_s10 + $0x58] sm:$0x3] }
 0x105   : > { %2720 = vmatpush2.bf16.msra.mxu0 %v5046_v38  ;;  %v2870_v9 = vsel %vm339_vm0, %v2868_v47, %v2869_v48 }
 0x106   : > { %3138 = vmatpush2.bf16.msra.mxu1 %v5049_v39  ;;  %2721 = vmatprep.subr.bf16.mxu0 %v5054_v52  ;;  %v2492_v39 = vpack.c.bf16 %v6308_v23, %v6305_v22  ;;  %v2880_v22 = vrot.slane %v4445_v24, 1  ;;  %v2881_v23 = vrot.slane %v4447_v20, 1 }
 0x107   : > { %3139 = vmatprep.subr.bf16.mxu1 %v5057_v53 }
 0x108   : > { %v2882_v44 = vsel %vm339_vm0, %v2880_v22, %v2881_v23 }
 0x109   : > { %2722 = vmatpush2.bf16.msra.mxu0 %v5052_v54  ;;  %v2873_v54 = vsel %vm339_vm0, %v2871_v27, %v2872_v28  ;;  %v2887_v27 = vrot.slane %v4451_v12, 1 }
 0x10a   : > { %3140 = vmatpush2.bf16.msra.mxu1 %v5055_v61  ;;  %3527 = vmatprep.subr.bf16.mxu0 %v5060_v62  ;;  %v2495_v61 = vpack.c.bf16 %v4352_v40, %v4350_v36  ;;  %v2913_v7 = vpack.c.bf16 %v2879_v55, %v2873_v54  ;;  %v4522_v36 = vld [vmem:[%s5290_s10 + $0x68] sm:$0xfc]  ;;  %v3272_v40 = vrot.slane %v4524_v29, 2  ;;  %v5088_v29 = vld [vmem:[%s6703_s1 + $0x8d0] ss:$8 sps:$4 sm:$0xff]  }
 0x10b   : > { %4632 = vmatprep.subr.bf16.mxu1 %v5060_v62  ;;  %v4349_v62 = vld [vmem:[%s5290_s10 + $0xc0] sm:$0xff] }
 0x10c   : > { %v639_v31 = vpop.f32.mrf.mxu0  ;;  %2724 = vmatmul.mubr.bf16.vlgmr.msra.gmra.mxu0 %v2490_v5  ;;  %v5067_v5 = vld [vmem:[%s6703_s1 + $0x840] ss:$8 sps:$4 sm:$0xff]   ;;  %v2494_v13 = vpack.c.bf16 %v4351_v63, %v4349_v62 }
 0x10d   : > { %v872_v32 = vpop.f32.mrf.mxu1  ;;  %3142 = vmatmul.mubr.bf16.vlgmr.msra.gmra.mxu1 %v2908_v10  ;;  %3528 = vmatpush1.bf16.msra.mxu0 %v5058_v15  ;;  %v2876_v10 = vsel %vm339_vm0, %v2874_v56, %v2875_v58  ;;  %v5073_v54 = vld [vmem:[%s6703_s1 + $0x820] ss:$8 sps:$4 sm:$0xff]   ;;  %v3289_v56 = vrot.slane %v4534_v43, 2  ;;  %v3290_v58 = vrot.slane %v4536_v50, 2 }
 0x10e   : > { %v6317_v49 = vadd.f32 %v872_v32, %v639_v31  ;;  %4648 = vmatpush1.bf16.msra.mxu1 %v5058_v15  ;;  %v641_v37 = vpop.f32.mrf.mxu0  ;;  %3529 = vmatprep.subr.bf16.mxu0 %v5063_v17  ;;  %v4354_v15 = vld [vmem:[%s5290_s10 + $0x108] sm:$0xff]  ;;  %v2912_v16 = vpack.c.bf16 %v2876_v10, %v2870_v9 }
 0x10f   : > { %v874_v38 = vpop.f32.mrf.mxu1  ;;  %4633 = vmatprep.subr.bf16.mxu1 %v5063_v17  ;;  %2733 = vmatprep.mubr.bf16.mxu0 %v2493_v18  ;;  %v4356_v17 = vld [vmem:[%s5290_s10 + $0x128] sm:$0xff]  ;;  %v2885_v18 = vsel %vm339_vm0, %v2883_v0, %v2884_v3 }
 0x110   : > { %v6327_v45 = vadd.f32 %v874_v38, %v641_v37  ;;  %3151 = vmatprep.mubr.bf16.mxu1 %v2911_v26  ;;  %v643_v52 = vpop.f32.mrf.mxu0  ;;  %v2886_v26 = vrot.slane %v4449_v11, 1  ;;  %v5075_v31 = vld [vmem:[%s6703_s1 + $0x824] ss:$8 sps:$4 sm:$0xff]   ;;  %v3266_v38 = vrot.slane %v4520_v57, 2 }
 0x111   : > { %v876_v53 = vpop.f32.mrf.mxu1  ;;  %3530 = vmatpush1.bf16.msra.mxu0 %v5061_v21  ;;  %v4518_v32 = vld [vmem:[%s5290_s10 + $0x48] sm:$0xfc] }
 0x112   : > { %v6333_v25 = vadd.f32 %v876_v53, %v643_v52  ;;  %4649 = vmatpush1.bf16.msra.mxu1 %v5061_v21  ;;  %v645_v1 = vpop.f32.mrf.mxu0  ;;  %3531 = vmatprep.subr.bf16.mxu0 %v5066_v2  ;;  %v2891_v21 = vsel %vm339_vm0, %v2889_v8, %v2890_v51  ;;  %v3265_v37 = vrot.slane %v4518_v32, 2  ;;  %v4538_v52 = vld [vmem:[%s5290_s10 + $0xe8] sm:$0xfc]  ;;  %v4540_v53 = vld [vmem:[%s5290_s10 + $0xf8] sm:$0x3] }
 0x113   : > { %v878_v60 = vpop.f32.mrf.mxu1  ;;  %4634 = vmatprep.subr.bf16.mxu1 %v5066_v2  ;;  %v2497_v2 = vpack.c.bf16 %v4356_v17, %v4354_v15  ;;  %v2915_v34 = vpack.c.bf16 %v2891_v21, %v2885_v18  ;;  %v5076_v51 = vld [vmem:[%s6703_s1 + $0x810] ss:$8 sps:$4 sm:$0xff]   ;;  %v5081_v9 = vld [vmem:[%s6703_s1 + $0x804] ss:$8 sps:$4 sm:$0xff]   ;;  %v5084_v17 = vld [vmem:[%s6703_s1 + $0x8f4] ss:$8 sps:$4 sm:$0xff]  }
 0x114   : > { %v6343_v6 = vadd.f32 %v878_v60, %v645_v1  ;;  %2734 = vmatmul.mubr.bf16.gmra.mxu0 %v2492_v39  ;;  %v649_v4 = vpop.f32.mrf.mxu0  ;;  %v3271_v39 = vrot.slane %v4522_v36, 2  ;;  %v3296_v1 = vrot.slane %v4540_v53, 2  ;;  %v2496_v60 = vpack.c.bf16 %v4355_v33, %v4353_v41  ;;  %v5085_v41 = vld [vmem:[%s6703_s1 + $0x8e0] ss:$8 sps:$4 sm:$0xff]   ;;  %v5090_v33 = vld [vmem:[%s6703_s1 + $0x8d4] ss:$8 sps:$4 sm:$0xff]  }
 0x115   : > { %3152 = vmatmul.mubr.bf16.gmra.mxu1 %v2910_v46  ;;  %3532 = vmatpush1.bf16.msra.mxu0 %v5064_v42  ;;  %v882_v28 = vpop.f32.mrf.mxu1  ;;  %v2888_v46 = vsel %vm339_vm0, %v2886_v26, %v2887_v27  ;;  %v3267_v0 = vsel %vm975_vm1, %v3265_v37, %v3266_v38  ;;  %v5082_v26 = vld [vmem:[%s6703_s1 + $0x8f0] ss:$8 sps:$4 sm:$0xff]   ;;  %v5093_v37 = vld [vmem:[%s6703_s1 + $0x8c4] ss:$8 sps:$4 sm:$0xff]  }
 0x116   : > { %4650 = vmatpush1.bf16.msra.mxu1 %v5064_v42  ;;  %3533 = vmatprep.subr.bf16.mxu0 %v5069_v19  ;;  %v6376_v47 = vadd.f32 %v882_v28, %v649_v4  ;;  %v651_v55 = vpop.f32.mrf.mxu0  ;;  %v4519_v53 = vld [vmem:[%s5290_s10 + $0x50] sm:$0x3] }
 0x117   : > { %4635 = vmatprep.subr.bf16.mxu1 %v5069_v19  ;;  %2743 = vmatprep.mubr.bf16.mxu0 %v2495_v61  ;;  %v884_v35 = vpop.f32.mrf.mxu1  ;;  %v3295_v19 = vrot.slane %v4538_v52, 2  ;;  %v2914_v61 = vpack.c.bf16 %v2888_v46, %v2882_v44  ;;  %v5091_v44 = vld [vmem:[%s6703_s1 + $0x8c0] ss:$8 sps:$4 sm:$0xff]  }
 0x118   : > { %3161 = vmatprep.mubr.bf16.mxu1 %v2913_v7  ;;  %v6387_v42 = vadd.f32 %v884_v35, %v651_v55  ;;  %v653_v62 = vpop.f32.mrf.mxu0  ;;  %v3291_v7 = vsel %vm975_vm1, %v3289_v56, %v3290_v58  ;;  %v4517_v52 = vld [vmem:[%s5290_s10 + $0x40] sm:$0xfc]  ;;  %v4523_v55 = vld [vmem:[%s5290_s10 + $0x70] sm:$0x3] }
 0x119   : > { %3534 = vmatpush1.bf16.msra.mxu0 %v5067_v5  ;;  %v886_v48 = vpop.f32.mrf.mxu1  ;;  %v3297_v8 = vsel %vm975_vm1, %v3295_v19, %v3296_v1  ;;  %v5094_v56 = vld [vmem:[%s6703_s1 + $0x8b0] ss:$8 sps:$4 sm:$0xff]   ;;  %v5099_v58 = vld [vmem:[%s6703_s1 + $0x8a4] ss:$8 sps:$4 sm:$0xff]   ;;  %v3263_v19 = vrot.slane %v4519_v53, 2 }
 0x11a   : > { %4651 = vmatpush1.bf16.msra.mxu1 %v5067_v5  ;;  %3535 = vmatprep.subr.bf16.mxu0 %v5072_v14  ;;  %v6390_v3 = vadd.f32 %v886_v48, %v653_v62  ;;  %v3273_v5 = vsel %vm975_vm1, %v3271_v39, %v3272_v40  ;;  %v655_v24 = vpop.f32.mrf.mxu0  ;;  %v3331_v12 = vpack.c.bf16 %v3297_v8, %v3291_v7  ;;  %v5096_v48 = vld [vmem:[%s6703_s1 + $0x8b4] ss:$8 sps:$4 sm:$0xff]   ;;  %v4533_v1 = vld [vmem:[%s5290_s10 + $0xc0] sm:$0xfc]  ;;  %v3269_v62 = vrot.slane %v4523_v55, 2 }
 0x11b   : > { %4636 = vmatprep.subr.bf16.mxu1 %v5072_v14  ;;  %v888_v63 = vpop.f32.mrf.mxu1  ;;  %v3327_v11 = vpack.c.bf16 %v3273_v5, %v3267_v0  ;;  %v5079_v14 = vld [vmem:[%s6703_s1 + $0x800] ss:$8 sps:$4 sm:$0xff]   ;;  %v5102_v5 = vld [vmem:[%s6703_s1 + $0x894] ss:$8 sps:$4 sm:$0xff]   ;;  %v4539_v7 = vld [vmem:[%s5290_s10 + $0xf0] sm:$0x3] }
 0x11c   : > { %2744 = vmatmul.mubr.bf16.gmra.mxu0 %v2494_v13  ;;  %v6401_v10 = vadd.f32 %v888_v63, %v655_v24  ;;  %v659_v13 = vpop.f32.mrf.mxu0  ;;  %v4535_v63 = vld [vmem:[%s5290_s10 + $0xd0] sm:$0x3]  ;;  %v4537_v0 = vld [vmem:[%s5290_s10 + $0xe0] sm:$0xfc]  ;;  %v4526_v8 = vld [vmem:[%s5290_s10 + $0x88] sm:$0xfc] }
 0x11d   : > { %3162 = vmatmul.mubr.bf16.gmra.mxu1 %v2912_v16  ;;  %3536 = vmatpush1.bf16.msra.mxu0 %v5070_v30  ;;  %v892_v20 = vpop.f32.mrf.mxu1  ;;  %v4530_v24 = vld [vmem:[%s5290_s10 + $0xa8] sm:$0xfc]  ;;  %v4529_v53 = vld [vmem:[%s5290_s10 + $0xa0] sm:$0xfc] }
 0x11e   : > { %4652 = vmatpush1.bf16.msra.mxu1 %v5070_v30  ;;  %3537 = vmatprep.subr.bf16.mxu0 %v5075_v31  ;;  %v6406_v15 = vadd.f32 %v892_v20, %v659_v13  ;;  %v661_v18 = vpop.f32.mrf.mxu0  ;;  %v5087_v30 = vld [vmem:[%s6703_s1 + $0x8e4] ss:$8 sps:$4 sm:$0xff]   ;;  %v4548_v13 = vld [vmem:[%s5290_s10 + $0x138] sm:$0x3] }
 0x11f   : > { %4637 = vmatprep.subr.bf16.mxu1 %v5075_v31  ;;  %2753 = vmatprep.mubr.bf16.mxu0 %v2497_v2  ;;  %v894_v16 = vpop.f32.mrf.mxu1  ;;  %v4542_v20 = vld [vmem:[%s5290_s10 + $0x108] sm:$0xfc]  ;;  %v4541_v55 = vld [vmem:[%s5290_s10 + $0x100] sm:$0xfc] }
 0x120   : > { %3171 = vmatprep.mubr.bf16.mxu1 %v2915_v34  ;;  %v6411_v21 = vadd.f32 %v894_v16, %v661_v18  ;;  %v663_v23 = vpop.f32.mrf.mxu0  ;;  %v3287_v16 = vrot.slane %v4535_v63, 2  ;;  %v3293_v18 = vrot.slane %v4539_v7, 2  ;;  %v3298_v7 = vrot.slane %v4541_v55, 2 }
 0x121   : > { %3538 = vmatpush1.bf16.msra.mxu0 %v5073_v54  ;;  %v896_v22 = vpop.f32.mrf.mxu1 }
 0x122   : > { %4653 = vmatpush1.bf16.msra.mxu1 %v5073_v54  ;;  %3539 = vmatprep.subr.bf16.mxu0 %v5078_v59  ;;  %v6416_v27 = vadd.f32 %v896_v22, %v663_v23  ;;  %v665_v31 = vpop.f32.mrf.mxu0  ;;  %v4521_v54 = vld [vmem:[%s5290_s10 + $0x60] sm:$0xfc]  ;;  %v3277_v22 = vrot.slane %v4526_v8, 2 }
 0x123   : > { %4638 = vmatprep.subr.bf16.mxu1 %v5078_v59  ;;  %v898_v28 = vpop.f32.mrf.mxu1  ;;  %v3262_v59 = vrot.slane %v4517_v52, 2 }
 0x124   : > { %2754 = vmatmul.mubr.bf16.gmra.mxu0 %v2496_v60  ;;  %v6421_v32 = vadd.f32 %v898_v28, %v665_v31  ;;  %v5097_v60 = vld [vmem:[%s6703_s1 + $0x8a0] ss:$8 sps:$4 sm:$0xff]   ;;  %v3301_v31 = vrot.slane %v4542_v20, 2 }
 0x125   : > { %3172 = vmatmul.mubr.bf16.gmra.mxu1 %v2914_v61  ;;  %3540 = vmatpush1.bf16.msra.mxu0 %v5076_v51  ;;  %v902_v2 = vpop.f32.mrf.mxu1  ;;  %v3268_v61 = vrot.slane %v4521_v54, 2  ;;  %v4531_v54 = vld [vmem:[%s5290_s10 + $0xb0] sm:$0x3] }
 0x126   : > { %4654 = vmatpush1.bf16.msra.mxu1 %v5076_v51  ;;  %3541 = vmatprep.subr.bf16.mxu0 %v5081_v9  ;;  %v4528_v51 = vld [vmem:[%s5290_s10 + $0x98] sm:$0x3] }
 0x127   : > { %4639 = vmatprep.subr.bf16.mxu1 %v5081_v9  ;;  %3559 = vmatprep.mubr.bf16.mxu0 %v3327_v11  ;;  %v904_v34 = vpop.f32.mrf.mxu1  ;;  %v669_v35 = vpop.f32.mrf.mxu0  ;;  %v4532_v9 = vld [vmem:[%s5290_s10 + $0xb8] sm:$0x3]  ;;  %v3278_v23 = vrot.slane %v4528_v51, 2 }
 0x128   : > { %3579 = vmatprep.mubr.bf16.mxu1 %v3331_v12  ;;  %v6429_v57 = vadd.f32 %v902_v2, %v669_v35  ;;  %v4544_v11 = vld [vmem:[%s5290_s10 + $0x118] sm:$0x3]  ;;  %v4546_v12 = vld [vmem:[%s5290_s10 + $0x128] sm:$0xfc]  ;;  %v3284_v28 = vrot.slane %v4532_v9, 2  ;;  %v3264_v35 = vsel %vm975_vm1, %v3262_v59, %v3263_v19 }
 0x129   : > { %3542 = vmatpush1.bf16.msra.mxu0 %v5079_v14  ;;  %v906_v36 = vpop.f32.mrf.mxu1  ;;  %v671_v4 = vpop.f32.mrf.mxu0  ;;  %v3302_v2 = vrot.slane %v4544_v11, 2  ;;  %v4547_v59 = vld [vmem:[%s5290_s10 + $0x130] sm:$0x3] }
 0x12a   : > { %4655 = vmatpush1.bf16.msra.mxu1 %v5079_v14  ;;  %3543 = vmatprep.subr.bf16.mxu0 %v5084_v17  ;;  %v6437_v38 = vadd.f32 %v904_v34, %v671_v4  ;;  %v3286_v14 = vrot.slane %v4533_v1, 2  ;;  %v5105_v34 = vld [vmem:[%s6703_s1 + $0x884] ss:$8 sps:$4 sm:$0xff]  }
 0x12b   : > { %4640 = vmatprep.subr.bf16.mxu1 %v5084_v17  ;;  %v673_v39 = vpop.f32.mrf.mxu0  ;;  %v908_v40 = vpop.f32.mrf.mxu1  ;;  %v3292_v17 = vrot.slane %v4537_v0, 2  ;;  %v3280_v0 = vrot.slane %v4529_v53, 2 }
 0x12c   : > { %v6439_v43 = vadd.f32 %v906_v36, %v673_v39  ;;  %v3270_v36 = vsel %vm975_vm1, %v3268_v61, %v3269_v62  ;;  %v3288_v4 = vsel %vm975_vm1, %v3286_v14, %v3287_v16  ;;  %v3279_v39 = vsel %vm975_vm1, %v3277_v22, %v3278_v23 }
 0x12d   : > { %3544 = vmatpush2.bf16.msra.mxu0 %v5082_v26  ;;  %v675_v46 = vpop.f32.mrf.mxu0  ;;  %v3326_v19 = vpack.c.bf16 %v3270_v36, %v3264_v35 }
 0x12e   : > { %4656 = vmatpush2.bf16.msra.mxu1 %v5082_v26  ;;  %3545 = vmatprep.subr.bf16.mxu0 %v5087_v30  ;;  %v6447_v50 = vadd.f32 %v908_v40, %v675_v46  ;;  %v3283_v26 = vrot.slane %v4530_v24, 2  ;;  %v4527_v46 = vld [vmem:[%s5290_s10 + $0x90] sm:$0x3]  ;;  %v3305_v24 = vrot.slane %v4547_v59, 2 }
 0x12f   : > { %4641 = vmatprep.subr.bf16.mxu1 %v5087_v30  ;;  %v5100_v30 = vld [vmem:[%s6703_s1 + $0x890] ss:$8 sps:$4 sm:$0xff]   ;;  %v3275_v63 = vrot.slane %v4527_v46, 2 }
 0x130   : > { %v3285_v40 = vsel %vm975_vm1, %v3283_v26, %v3284_v28 }
 0x131   : > { %3546 = vmatpush2.bf16.msra.mxu0 %v5085_v41 }
 0x132   : > { %4657 = vmatpush2.bf16.msra.mxu1 %v5085_v41  ;;  %3547 = vmatprep.subr.bf16.mxu0 %v5090_v33  ;;  %v3307_v41 = vrot.slane %v4546_v12, 2 }
 0x133   : > { %4642 = vmatprep.subr.bf16.mxu1 %v5090_v33  ;;  %v3308_v33 = vrot.slane %v4548_v13, 2 }
 0x135   : > { %3548 = vmatpush2.bf16.msra.mxu0 %v5088_v29  ;;  %v3309_v52 = vsel %vm975_vm1, %v3307_v41, %v3308_v33 }
 0x136   : > { %4658 = vmatpush2.bf16.msra.mxu1 %v5088_v29  ;;  %3549 = vmatprep.subr.bf16.mxu0 %v5093_v37  ;;  %v5103_v29 = vld [vmem:[%s6703_s1 + $0x880] ss:$8 sps:$4 sm:$0xff]  }
 0x137   : > { %4643 = vmatprep.subr.bf16.mxu1 %v5093_v37  ;;  %v3294_v37 = vsel %vm975_vm1, %v3292_v17, %v3293_v18 }
 0x138   : > { %v3330_v1 = vpack.c.bf16 %v3294_v37, %v3288_v4 }
 0x139   : > { %3550 = vmatpush2.bf16.msra.mxu0 %v5091_v44 }
 0x13a   : > { %4659 = vmatpush2.bf16.msra.mxu1 %v5091_v44  ;;  %3551 = vmatprep.subr.bf16.mxu0 %v5096_v48  ;;  %v4525_v44 = vld [vmem:[%s5290_s10 + $0x80] sm:$0xfc] }
 0x13b   : > { %4644 = vmatprep.subr.bf16.mxu1 %v5096_v48  ;;  %v3303_v48 = vsel %vm975_vm1, %v3301_v31, %v3302_v2  ;;  %v3274_v61 = vrot.slane %v4525_v44, 2 }
 0x13c   : > { %v3333_v62 = vpack.c.bf16 %v3309_v52, %v3303_v48 }
 0x13d   : > { %3552 = vmatpush2.bf16.msra.mxu0 %v5094_v56  ;;  %v3276_v11 = vsel %vm975_vm1, %v3274_v61, %v3275_v63 }
 0x13e   : > { %4660 = vmatpush2.bf16.msra.mxu1 %v5094_v56  ;;  %3553 = vmatprep.subr.bf16.mxu0 %v5099_v58  ;;  %v4543_v56 = vld [vmem:[%s5290_s10 + $0x110] sm:$0x3] }
 0x13f   : > { %4645 = vmatprep.subr.bf16.mxu1 %v5099_v58  ;;  %v4545_v58 = vld [vmem:[%s5290_s10 + $0x120] sm:$0xfc]  ;;  %v3299_v8 = vrot.slane %v4543_v56, 2  ;;  %s4623_s10 = sshll.u32 %s6750_s16, 6 }
 0x140   : > { %v3304_v51 = vrot.slane %v4545_v58, 2  ;;  %s6666_s20 = scalar_lea.vmem %s6704_s2, %s4623_s10 }
 0x141   : > { %3554 = vmatpush2.bf16.msra.mxu0 %v5097_v60  ;;  %v3300_v14 = vsel %vm975_vm1, %v3298_v7, %v3299_v8 }
 0x142   : > { %4661 = vmatpush2.bf16.msra.mxu1 %v5097_v60  ;;  %3555 = vmatprep.subr.bf16.mxu0 %v5102_v5  ;;  %v3329_v60 = vpack.c.bf16 %v3285_v40, %v3279_v39  ;;  %v3306_v16 = vsel %vm975_vm1, %v3304_v51, %v3305_v24 }
 0x143   : > { %4646 = vmatprep.subr.bf16.mxu1 %v5102_v5  ;;  %v3281_v5 = vrot.slane %v4531_v54, 2  ;;  %v3332_v31 = vpack.c.bf16 %v3306_v16, %v3300_v14 }
 0x145   : > { %3556 = vmatpush2.bf16.msra.mxu0 %v5100_v30  ;;  %v3282_v12 = vsel %vm975_vm1, %v3280_v0, %v3281_v5 }
 0x146   : > { %4662 = vmatpush2.bf16.msra.mxu1 %v5100_v30  ;;  %3557 = vmatprep.subr.bf16.mxu0 %v5105_v34  ;;  %v3328_v30 = vpack.c.bf16 %v3282_v12, %v3276_v11 }
 0x147   : > { %4647 = vmatprep.subr.bf16.mxu1 %v5105_v34 }
 0x149   : > { %3558 = vmatpush2.bf16.msra.mxu0 %v5103_v29 }
 0x14a   : > { %4663 = vmatpush2.bf16.msra.mxu1 %v5103_v29 }
 0x14c   : > { %v1275_v9 = vpop.f32.mrf.mxu0  ;;  %3560 = vmatmul.mubr.bf16.vlgmr.msra.gmra.mxu0 %v3326_v19 }
 0x14d   : > { %3580 = vmatmul.mubr.bf16.vlgmr.msra.gmra.mxu1 %v3330_v1  ;;  %v1582_v20 = vpop.f32.mrf.mxu1  ;;  %v1314_v13 = vadd.f32 %v1275_v9, %v6317_v49  ;;  %3569 = vmatprep.mubr.bf16.mxu0 %v3329_v60 }
 0x14e   : > { %3589 = vmatprep.mubr.bf16.mxu1 %v3333_v62  ;;  %v1277_v17 = vpop.f32.mrf.mxu0 }
 0x14f   : > { %v1584_v18 = vpop.f32.mrf.mxu1  ;;  %v1315_v22 = vadd.f32 %v1277_v17, %v6327_v45  ;;  %v6508_v23 = vadd.f32 %v1582_v20, %v1314_v13 }
 0x150   : > { %v1279_v26 = vpop.f32.mrf.mxu0 }
 0x151   : > { %v1586_v28 = vpop.f32.mrf.mxu1  ;;  %v1316_v2 = vadd.f32 %v1279_v26, %v6333_v25  ;;  %v6511_v41 = vadd.f32 %v1584_v18, %v1315_v22 }
 0x152   : > { %v1281_v49 = vpop.f32.mrf.mxu0 }
 0x153   : > { %v1588_v33 = vpop.f32.mrf.mxu1  ;;  %v1317_v34 = vadd.f32 %v1281_v49, %v6343_v6  ;;  %v6514_v35 = vadd.f32 %v1586_v28, %v1316_v2 }
 0x154   : > { %v1285_v36 = vpop.f32.mrf.mxu0  ;;  %3570 = vmatmul.mubr.bf16.gmra.mxu0 %v3328_v30 }
 0x155   : > { %3590 = vmatmul.mubr.bf16.gmra.mxu1 %v3332_v31  ;;  %v1592_v45 = vpop.f32.mrf.mxu1  ;;  %v1318_v29 = vadd.f32 %v1285_v36, %v6376_v47  ;;  %v6517_v4 = vadd.f32 %v1588_v33, %v1317_v34 }
 0x156   : > { %v1287_v37 = vpop.f32.mrf.mxu0 }
 0x157   : > { %v1594_v39 = vpop.f32.mrf.mxu1  ;;  %v1319_v25 = vadd.f32 %v1287_v37, %v6387_v42  ;;  %v6520_v40 = vadd.f32 %v1592_v45, %v1318_v29 }
 0x158   : > { %v1289_v44 = vpop.f32.mrf.mxu0 }
 0x159   : > { %v1596_v46 = vpop.f32.mrf.mxu1  ;;  %v1320_v6 = vadd.f32 %v1289_v44, %v6390_v3  ;;  %v6523_v48 = vadd.f32 %v1594_v39, %v1319_v25 }
 0x15a   : > { %v1291_v52 = vpop.f32.mrf.mxu0 }
 0x15b   : > { %v1598_v53 = vpop.f32.mrf.mxu1  ;;  %v1321_v54 = vadd.f32 %v1291_v52, %v6401_v10  ;;  %v6526_v55 = vadd.f32 %v1596_v46, %v1320_v6 }
 0x15c   : > { %v1295_v47 = vpop.f32.mrf.mxu0 }
 0x15d   : > { %v1602_v56 = vpop.f32.mrf.mxu1  ;;  %v1322_v58 = vadd.f32 %v1295_v47, %v6406_v15  ;;  %v6529_v59 = vadd.f32 %v1598_v53, %v1321_v54 }
 0x15e   : > { %v1297_v42 = vpop.f32.mrf.mxu0 }
 0x15f   : > { %v1604_v19 = vpop.f32.mrf.mxu1  ;;  %v1323_v1 = vadd.f32 %v1297_v42, %v6411_v21  ;;  %v6532_v60 = vadd.f32 %v1602_v56, %v1322_v58 }
 0x160   : > { %v1299_v3 = vpop.f32.mrf.mxu0 }
 0x161   : > { %v1606_v61 = vpop.f32.mrf.mxu1  ;;  %v1324_v62 = vadd.f32 %v1299_v3, %v6416_v27  ;;  %v6535_v63 = vadd.f32 %v1604_v19, %v1323_v1 }
 0x162   : > { %v1301_v10 = vpop.f32.mrf.mxu0 }
 0x163   : > { %v1608_v0 = vpop.f32.mrf.mxu1  ;;  %v1325_v5 = vadd.f32 %v1301_v10, %v6421_v32  ;;  %v6538_v7 = vadd.f32 %v1606_v61, %v1324_v62 }
 0x164   : > { %v1305_v15 = vpop.f32.mrf.mxu0 }
 0x165   : > { %v1612_v8 = vpop.f32.mrf.mxu1  ;;  %v1326_v51 = vadd.f32 %v1305_v15, %v6429_v57  ;;  %v6541_v24 = vadd.f32 %v1608_v0, %v1325_v5 }
 0x166   : > { %v1307_v21 = vpop.f32.mrf.mxu0 }
 0x167   : > { %v1614_v9 = vpop.f32.mrf.mxu1  ;;  %v1327_v20 = vadd.f32 %v1307_v21, %v6437_v38  ;;  %v6544_v11 = vadd.f32 %v1612_v8, %v1326_v51 }
 0x168   : > { %v1309_v27 = vpop.f32.mrf.mxu0 }
 0x169   : > { %v1616_v12 = vpop.f32.mrf.mxu1  ;;  %v1328_v13 = vadd.f32 %v1309_v27, %v6439_v43  ;;  %v6547_v14 = vadd.f32 %v1614_v9, %v1327_v20 }
 0x16a   : > { %v1311_v32 = vpop.f32.mrf.mxu0 }
 0x16b   : > { %v1618_v16 = vpop.f32.mrf.mxu1  ;;  %v1329_v17 = vadd.f32 %v1311_v32, %v6447_v50  ;;  %v6550_v18 = vadd.f32 %v1616_v12, %v1328_v13 }
 0x16d   : > { %v6552_v57 = vadd.f32 %v1618_v16, %v1329_v17 }
 0x18c   : > { %v2000_v22 = vpop.f32.mrf.mxu0 }
 0x18d   : > { %v6554_v26 = vpop.f32.mrf.mxu1 }
 0x18e   : > { %v2002_v38 = vpop.f32.mrf.mxu0 }
 0x18f   : > { %v6556_v28 = vpop.f32.mrf.mxu1 }
 0x190   : > { %v2004_v30 = vpop.f32.mrf.mxu0 }
 0x191   : > { %v6558_v31 = vpop.f32.mrf.mxu1 }
 0x192   : > { %v2006_v43 = vpop.f32.mrf.mxu0 }
 0x193   : > { %v6560_v2 = vpop.f32.mrf.mxu1 }
 0x194   : > { %v2010_v49 = vpop.f32.mrf.mxu0 }
 0x195   : > { %v6562_v33 = vpop.f32.mrf.mxu1 }
 0x196   : > { %v2012_v50 = vpop.f32.mrf.mxu0 }
 0x197   : > { %v6564_v34 = vpop.f32.mrf.mxu1 }
 0x198   : > { %v2014_v36 = vpop.f32.mrf.mxu0 }
 0x199   : > { %v6566_v45 = vpop.f32.mrf.mxu1 }
 0x19a   : > { %v2016_v29 = vpop.f32.mrf.mxu0 }
 0x19b   : > { %v6568_v37 = vpop.f32.mrf.mxu1 }
 0x19c   : > { %v2020_v39 = vpop.f32.mrf.mxu0 }
 0x19d   : > { %v2438_v25 = vpop.f32.mrf.mxu1 }
 0x19e   : > { %v2022_v44 = vpop.f32.mrf.mxu0 }
 0x19f   : > { %v2440_v46 = vpop.f32.mrf.mxu1 }
 0x1a0   : > { %v2024_v6 = vpop.f32.mrf.mxu0 }
 0x1a1   : > { %v6570_v52 = vpop.f32.mrf.mxu1 }
 0x1a2   : > { %6707 = vst [vmem:[#allocation2_spill] sm:$0xff] %v6570_v52  ;;  %v2026_v53 = vpop.f32.mrf.mxu0 }
 0x1a3   : > { %v6572_v54 = vpop.f32.mrf.mxu1 }
 0x1a4   : > { %6708 = vst [vmem:[#allocation3_spill] sm:$0xff] %v6572_v54  ;;  %v2030_v47 = vpop.f32.mrf.mxu0 }
 0x1a5   : > { %v6574_v56 = vpop.f32.mrf.mxu1 }
 0x1a6   : > { %6709 = vst [vmem:[#allocation4_spill] sm:$0xff] %v6574_v56  ;;  %v2032_v58 = vpop.f32.mrf.mxu0  ;;  %v2048_v56 = vadd.f32 %v2022_v44, %v6535_v63 }
 0x1a7   : > { %v6576_v42 = vpop.f32.mrf.mxu1 }
 0x1a8   : > { %6710 = vst [vmem:[#allocation5_spill] sm:$0xff] %v6576_v42  ;;  %v2034_v19 = vpop.f32.mrf.mxu0  ;;  %v2047_v42 = vadd.f32 %v2020_v39, %v6532_v60  ;;  %v2046_v60 = vadd.f32 %v2016_v29, %v6529_v59 }
 0x1a9   : > { %v6578_v1 = vpop.f32.mrf.mxu1  ;;  %v6728_v29 = vld [vmem:[#allocation2_spill] sm:$0xff] }
 0x1aa   : > { %6711 = vst [vmem:[#allocation6_spill] sm:$0xff] %v6578_v1  ;;  %v2036_v3 = vpop.f32.mrf.mxu0  ;;  %v2465_v63 = vadd.f32 %v2438_v25, %v2047_v42 }
 0x1ab   : > { %v6580_v61 = vpop.f32.mrf.mxu1  ;;  %v6729_v39 = vld [vmem:[#allocation3_spill] sm:$0xff] }
 0x1ac   : > { %6712 = vst [vmem:[#allocation7_spill] sm:$0xff] %v6580_v61 }
 0x1cc   : > { %v2725_v62 = vpop.f32.mrf.mxu0 }
 0x1cd   : > { %v6582_v10 = vpop.f32.mrf.mxu1 }
 0x1ce   : > { %6713 = vst [vmem:[#allocation8_spill] sm:$0xff] %v6582_v10  ;;  %v2727_v0 = vpop.f32.mrf.mxu0 }
 0x1cf   : > { %v6584_v5 = vpop.f32.mrf.mxu1 }
 0x1d0   : > { %6714 = vst [vmem:[#allocation9_spill] sm:$0xff] %v6584_v5  ;;  %v2729_v15 = vpop.f32.mrf.mxu0 }
 0x1d1   : > { %v6586_v8 = vpop.f32.mrf.mxu1 }
 0x1d2   : > { %6715 = vst [vmem:[#allocation10_spill] sm:$0xff] %v6586_v8  ;;  %v2731_v51 = vpop.f32.mrf.mxu0 }
 0x1d3   : > { %v6588_v21 = vpop.f32.mrf.mxu1 }
 0x1d4   : > { %6716 = vst [vmem:[#allocation11_spill] sm:$0xff] %v6588_v21  ;;  %v6590_v9 = vpop.f32.mrf.mxu0 }
 0x1d5   : > { %6717 = vst [vmem:[#allocation12_spill] sm:$0xff] %v6590_v9  ;;  %v6592_v20 = vpop.f32.mrf.mxu1 }
 0x1d6   : > { %6718 = vst [vmem:[#allocation13_spill] sm:$0xff] %v6592_v20  ;;  %v6594_v27 = vpop.f32.mrf.mxu0 }
 0x1d7   : > { %6719 = vst [vmem:[#allocation14_spill] sm:$0xff] %v6594_v27  ;;  %v6596_v12 = vpop.f32.mrf.mxu1 }
 0x1d8   : > { %6720 = vst [vmem:[#allocation15_spill] sm:$0xff] %v6596_v12  ;;  %v6598_v13 = vpop.f32.mrf.mxu0 }
 0x1d9   : > { %6721 = vst [vmem:[#allocation16_spill] sm:$0xff] %v6598_v13  ;;  %v6600_v32 = vpop.f32.mrf.mxu1  ;;  %v2039_v13 = vadd.f32 %v2000_v22, %v6508_v23  ;;  %v2044_v23 = vadd.f32 %v2012_v50, %v6523_v48  ;;  %v2049_v22 = vadd.f32 %v2024_v6, %v6538_v7  ;;  %v2052_v48 = vadd.f32 %v2032_v58, %v6547_v14  ;;  %v6735_v58 = vld [vmem:[#allocation9_spill] sm:$0xff] }
 0x1da   : > { %6722 = vst [vmem:[#allocation17_spill] sm:$0xff] %v6600_v32  ;;  %v6602_v16 = vpop.f32.mrf.mxu0  ;;  %v2040_v32 = vadd.f32 %v2002_v38, %v6511_v41  ;;  %v2466_v38 = vadd.f32 %v2440_v46, %v2048_v56  ;;  %v6731_v46 = vld [vmem:[#allocation5_spill] sm:$0xff] }
 0x1db   : > { %6723 = vst [vmem:[#allocation18_spill] sm:$0xff] %v6602_v16  ;;  %v6604_v17 = vpop.f32.mrf.mxu1  ;;  %v2041_v16 = vadd.f32 %v2004_v30, %v6514_v35  ;;  %v2462_v59 = vadd.f32 %v6564_v34, %v2044_v23  ;;  %v2470_v6 = vadd.f32 %v6731_v46, %v2052_v48 }
 0x1dc   : > { %6724 = vst [vmem:[#allocation19_spill] sm:$0xff] %v6604_v17  ;;  %v2745_v8 = vpop.f32.mrf.mxu0  ;;  %v2042_v17 = vadd.f32 %v2006_v43, %v6517_v4  ;;  %v2458_v52 = vadd.f32 %v6556_v28, %v2040_v32  ;;  %v2045_v4 = vadd.f32 %v2014_v36, %v6526_v55  ;;  %v2054_v43 = vadd.f32 %v2036_v3, %v6552_v57 }
 0x1dd   : > { %v3163_v5 = vpop.f32.mrf.mxu1  ;;  %v2459_v41 = vadd.f32 %v6558_v31, %v2041_v16  ;;  %v2053_v31 = vadd.f32 %v2034_v19, %v6550_v18  ;;  %v2772_v50 = vadd.f32 %v2745_v8, %v2465_v63  ;;  %v6736_v19 = vld [vmem:[#allocation12_spill] sm:$0xff]  ;;  %v6739_v16 = vld [vmem:[#allocation11_spill] sm:$0xff] }
 0x1de   : > { %v2747_v10 = vpop.f32.mrf.mxu0  ;;  %v2460_v35 = vadd.f32 %v6560_v2, %v2042_v17  ;;  %v2765_v7 = vadd.f32 %v2727_v0, %v2458_v52  ;;  %v6732_v52 = vld [vmem:[#allocation6_spill] sm:$0xff] }
 0x1df   : > { %v3165_v21 = vpop.f32.mrf.mxu1  ;;  %v2773_v36 = vadd.f32 %v2747_v10, %v2466_v38  ;;  %v2766_v25 = vadd.f32 %v2729_v15, %v2459_v41  ;;  %v6737_v3 = vld [vmem:[#allocation14_spill] sm:$0xff]  ;;  %v3190_v15 = vadd.f32 %v3163_v5, %v2772_v50 }
 0x1e0   : > { %v2749_v61 = vpop.f32.mrf.mxu0  ;;  %v2767_v18 = vadd.f32 %v2731_v51, %v2460_v35  ;;  %v3183_v42 = vadd.f32 %v6735_v58, %v2765_v7 }
 0x1e1   : > { %v6606_v9 = vpop.f32.mrf.mxu1  ;;  %v3191_v51 = vadd.f32 %v3165_v21, %v2773_v36 }
 0x1e2   : > { %6725 = vst [vmem:[#allocation20_spill] sm:$0xff] %v6606_v9  ;;  %v2751_v20 = vpop.f32.mrf.mxu0  ;;  %v3185_v17 = vadd.f32 %v6739_v16, %v2767_v18  ;;  %v6743_v48 = vld [vmem:[#allocation18_spill] sm:$0xff] }
 0x1e3   : > { %v6608_v1 = vpop.f32.mrf.mxu1 }
 0x1e4   : > { %6726 = vst [vmem:[#allocation21_spill] sm:$0xff] %v6608_v1  ;;  %v2755_v27 = vpop.f32.mrf.mxu0  ;;  %v2457_v1 = vadd.f32 %v6554_v26, %v2039_v13  ;;  %v2050_v26 = vadd.f32 %v2026_v53, %v6541_v24  ;;  %v2464_v24 = vadd.f32 %v6568_v37, %v2046_v60  ;;  %v6733_v53 = vld [vmem:[#allocation7_spill] sm:$0xff]  ;;  %v6738_v13 = vld [vmem:[#allocation10_spill] sm:$0xff] }
 0x1e5   : > { %v6610_v12 = vpop.f32.mrf.mxu1  ;;  %v2472_v37 = vadd.f32 %v6733_v53, %v2054_v43  ;;  %v3184_v32 = vadd.f32 %v6738_v13, %v2766_v25 }
 0x1e6   : > { %6727 = vst [vmem:[#allocation22_spill] sm:$0xff] %v6610_v12  ;;  %v2757_v54 = vpop.f32.mrf.mxu0  ;;  %v2043_v12 = vadd.f32 %v2010_v49, %v6520_v40  ;;  %v2051_v40 = vadd.f32 %v2030_v47, %v6544_v11  ;;  %v2764_v2 = vadd.f32 %v2725_v62, %v2457_v1  ;;  %v2463_v49 = vadd.f32 %v6566_v45, %v2045_v4  ;;  %v6734_v47 = vld [vmem:[#allocation8_spill] sm:$0xff] }
 0x1e7   : > { %v6618_v9 = vpop.f32.mrf.mxu1  ;;  %v2467_v11 = vadd.f32 %v6728_v29, %v2049_v22  ;;  %v2468_v14 = vadd.f32 %v6729_v39, %v2050_v26  ;;  %v2471_v45 = vadd.f32 %v6732_v52, %v2053_v31  ;;  %v2769_v62 = vadd.f32 %v6737_v3, %v2462_v59  ;;  %v6740_v26 = vld [vmem:[#allocation13_spill] sm:$0xff] }
 0x1e8   : > { %v2759_v30 = vpop.f32.mrf.mxu0  ;;  %v2461_v55 = vadd.f32 %v6562_v33, %v2043_v12  ;;  %v6730_v33 = vld [vmem:[#allocation4_spill] sm:$0xff]  ;;  %v3182_v56 = vadd.f32 %v6734_v47, %v2764_v2  ;;  %v2777_v41 = vadd.f32 %v2757_v54, %v2470_v6  ;;  %v2771_v31 = vadd.f32 %v6743_v48, %v2464_v24 }
 0x1e9   : > { %v6630_v28 = vpop.f32.mrf.mxu1  ;;  %v2469_v34 = vadd.f32 %v6730_v33, %v2051_v40  ;;  %v2774_v8 = vadd.f32 %v2749_v61, %v2467_v11  ;;  %v2775_v12 = vadd.f32 %v2751_v20, %v2468_v14  ;;  %v6741_v61 = vld [vmem:[#allocation16_spill] sm:$0xff]  ;;  %v6742_v20 = vld [vmem:[#allocation15_spill] sm:$0xff]  ;;  %v2778_v24 = vadd.f32 %v2759_v30, %v2471_v45 }
 0x1ea   : > { %v2761_v44 = vpop.f32.mrf.mxu0  ;;  %v2768_v1 = vadd.f32 %v6736_v19, %v2461_v55  ;;  %v2770_v21 = vadd.f32 %v6741_v61, %v2463_v49  ;;  %v3187_v40 = vadd.f32 %v6742_v20, %v2769_v62  ;;  %v6744_v43 = vld [vmem:[#allocation20_spill] sm:$0xff]  ;;  %v3195_v29 = vadd.f32 %v6618_v9, %v2777_v41 }
 0x1eb   : > { %v6642_v57 = vpop.f32.mrf.mxu1  ;;  %v2776_v23 = vadd.f32 %v2755_v27, %v2469_v34  ;;  %v3192_v55 = vadd.f32 %v6744_v43, %v2774_v8  ;;  %v6745_v59 = vld [vmem:[#allocation21_spill] sm:$0xff]  ;;  %v2779_v25 = vadd.f32 %v2761_v44, %v2472_v37  ;;  %v6748_v44 = vld [vmem:[#allocation19_spill] sm:$0xff] }
 0x1ec   : > { %v3186_v5 = vadd.f32 %v6740_v26, %v2768_v1  ;;  %v3193_v2 = vadd.f32 %v6745_v59, %v2775_v12  ;;  %v3189_v37 = vadd.f32 %v6748_v44, %v2771_v31  ;;  %v3196_v12 = vadd.f32 %v6630_v28, %v2778_v24 }
 0x1ed   : > { %v6746_v50 = vld [vmem:[#allocation22_spill] sm:$0xff]  ;;  %v3197_v13 = vadd.f32 %v6642_v57, %v2779_v25 }
 0x1ee   : > { %v3194_v36 = vadd.f32 %v6746_v50, %v2776_v23 }
 0x20c   : > { %v3561_v10 = vpop.f32.mrf.mxu0 }
 0x20d   : > { %v3581_v0 = vpop.f32.mrf.mxu1  ;;  %v3600_v60 = vadd.f32 %v3561_v10, %v3182_v56 }
 0x20e   : > { %v3563_v35 = vpop.f32.mrf.mxu0  ;;  %v6655_v63 = vadd.f32 %v3581_v0, %v3190_v15 }
 0x20f   : > { %v3583_v4 = vpop.f32.mrf.mxu1  ;;  %v3601_v22 = vadd.f32 %v3563_v35, %v3183_v42  ;;  %v3721_v46 = vmul.f32 %v3600_v60, %v3600_v60  ;;  %v6747_v42 = vld [vmem:[#allocation17_spill] sm:$0xff] }
 0x210   : > { %v6657_v38 = vadd.f32 %v3583_v4, %v3191_v51  ;;  %v3565_v54 = vpop.f32.mrf.mxu0  ;;  %v3188_v19 = vadd.f32 %v6747_v42, %v2770_v21 }
 0x211   : > { %v3585_v27 = vpop.f32.mrf.mxu1  ;;  %v4624_v7 = vpack.c.bf16 %v3601_v22, %v3600_v60  ;;  %v3602_v11 = vadd.f32 %v3565_v54, %v3184_v32  ;;  %v3722_v6 = vmul.f32 %v3601_v22, %v3601_v22 }
 0x212   : > { %v4628_v49 = vpack.c.bf16 %v6657_v38, %v6655_v63  ;;  %v3567_v39 = vpop.f32.mrf.mxu0  ;;  %v3610_v18 = vadd.f32 %v3585_v27, %v3192_v55  ;;  %v3729_v55 = vmul.f32 %v6655_v63, %v6655_v63 }
 0x213   : > { %v3587_v14 = vpop.f32.mrf.mxu1  ;;  %3664 = vst [vmem:[%s6666_s20] sm:$0xff] %v4624_v7  ;;  %v3603_v33 = vadd.f32 %v3567_v39, %v3185_v17  ;;  %v3672_v52 = vadd.f32 %v3602_v11, %v3600_v60  ;;  %v3723_v53 = vmul.f32 %v3602_v11, %v3602_v11  ;;  %v3730_v7 = vmul.f32 %v6657_v38, %v6657_v38 }
 0x214   : > { %3668 = vst [vmem:[%s6666_s20 + $0x20] sm:$0xff] %v4628_v49  ;;  %v3611_v34 = vadd.f32 %v3587_v14, %v3193_v2  ;;  %v3571_v47 = vpop.f32.mrf.mxu0 }
 0x215   : > { %v3591_v56 = vpop.f32.mrf.mxu1  ;;  %v4625_v30 = vpack.c.bf16 %v3603_v33, %v3602_v11  ;;  %v3685_v45 = vadd.f32 %v3603_v33, %v3601_v22  ;;  %v3724_v9 = vmul.f32 %v3603_v33, %v3603_v33  ;;  %v3737_v1 = vadd.f32 %v3723_v53, %v3721_v46 }
 0x216   : > { %v4629_v58 = vpack.c.bf16 %v3611_v34, %v3610_v18  ;;  %v3604_v3 = vadd.f32 %v3571_v47, %v3186_v5  ;;  %v3573_v62 = vpop.f32.mrf.mxu0  ;;  %v3612_v15 = vadd.f32 %v3591_v56, %v3194_v36  ;;  %v3731_v36 = vmul.f32 %v3610_v18, %v3610_v18 }
 0x217   : > { %v3593_v10 = vpop.f32.mrf.mxu1  ;;  %3665 = vst [vmem:[%s6666_s20 + $0x8] sm:$0xff] %v4625_v30  ;;  %v3750_v0 = vadd.f32 %v3724_v9, %v3722_v6  ;;  %v3605_v8 = vadd.f32 %v3573_v62, %v3187_v40  ;;  %v3732_v11 = vmul.f32 %v3611_v34, %v3611_v34 }
 0x218   : > { %3669 = vst [vmem:[%s6666_s20 + $0x28] sm:$0xff] %v4629_v58  ;;  %v3613_v51 = vadd.f32 %v3593_v10, %v3195_v29  ;;  %v3673_v32 = vadd.f32 %v3672_v52, %v3604_v3  ;;  %v3725_v16 = vmul.f32 %v3604_v3, %v3604_v3  ;;  %v3575_v17 = vpop.f32.mrf.mxu0  ;;  %v3733_v25 = vmul.f32 %v3612_v15, %v3612_v15 }
 0x219   : > { %v3595_v23 = vpop.f32.mrf.mxu1  ;;  %v4626_v41 = vpack.c.bf16 %v3605_v8, %v3604_v3  ;;  %v3686_v35 = vadd.f32 %v3685_v45, %v3605_v8  ;;  %v3726_v4 = vmul.f32 %v3605_v8, %v3605_v8  ;;  %v3606_v26 = vadd.f32 %v3575_v17, %v3188_v19 }
 0x21a   : > { %v4630_v60 = vpack.c.bf16 %v3613_v51, %v3612_v15  ;;  %v3738_v22 = vadd.f32 %v3737_v1, %v3725_v16  ;;  %v3577_v5 = vpop.f32.mrf.mxu0  ;;  %v3614_v28 = vadd.f32 %v3595_v23, %v3196_v12  ;;  %v3734_v6 = vmul.f32 %v3613_v51, %v3613_v51 }
 0x21b   : > { %v3597_v61 = vpop.f32.mrf.mxu1  ;;  %3666 = vst [vmem:[%s6666_s20 + $0x10] sm:$0xff] %v4626_v41  ;;  %v3751_v21 = vadd.f32 %v3750_v0, %v3726_v4  ;;  %v3607_v20 = vadd.f32 %v3577_v5, %v3189_v37  ;;  %v3674_v40 = vadd.f32 %v3673_v32, %v3606_v26  ;;  %v3727_v48 = vmul.f32 %v3606_v26, %v3606_v26 }
 0x21c   : > { %3670 = vst [vmem:[%s6666_s20 + $0x30] sm:$0xff] %v4630_v60  ;;  %v3615_v57 = vadd.f32 %v3597_v61, %v3197_v13  ;;  %v3735_v47 = vmul.f32 %v3614_v28, %v3614_v28  ;;  %v3704_v3 = vlaneseq }
 0x21d   : > { %v4627_v31 = vpack.c.bf16 %v3607_v20, %v3606_v26  ;;  %v3687_v54 = vadd.f32 %v3686_v35, %v3607_v20  ;;  %v3728_v27 = vmul.f32 %v3607_v20, %v3607_v20  ;;  %v3675_v59 = vadd.f32 %v3674_v40, %v6655_v63 }
 0x21e   : > { %v4631_v43 = vpack.c.bf16 %v3615_v57, %v3614_v28  ;;  %v3739_v2 = vadd.f32 %v3738_v22, %v3727_v48  ;;  %v3736_v45 = vmul.f32 %v3615_v57, %v3615_v57  ;;  %v3705_v16 = vshrl.u32 %v3704_v3, 7 }
 0x21f   : > { %3667 = vst [vmem:[%s6666_s20 + $0x18] sm:$0xff] %v4627_v31  ;;  %v3688_v49 = vadd.f32 %v3687_v54, %v6657_v38  ;;  %v3752_v50 = vadd.f32 %v3751_v21, %v3728_v27  ;;  %v3676_v29 = vadd.f32 %v3675_v59, %v3610_v18  ;;  %vm3718_vm2 = vcmp.lt.s32.totalorder %v3704_v3, 256 }
 0x220   : > { %3671 = vst [vmem:[%s6666_s20 + $0x38] sm:$0xff] %v4631_v43  ;;  %v3740_v24 = vadd.f32 %v3739_v2, %v3729_v55 }
 0x221   : > { %v3753_v39 = vadd.f32 %v3752_v50, %v3730_v7  ;;  %v3689_v14 = vadd.f32 %v3688_v49, %v3611_v34  ;;  %v3677_v33 = vadd.f32 %v3676_v29, %v3612_v15  ;;  %v5114_v34 = vmov 1966171168  }
 0x222   : > { %v3741_v46 = vadd.f32 %v3740_v24, %v3731_v36  ;;  %v3702_v1 = vunpack.c.l.s4 %v5114_v34 }
 0x223   : > { %v3690_v63 = vadd.f32 %v3689_v14, %v3613_v51  ;;  %v3754_v52 = vadd.f32 %v3753_v39, %v3732_v11  ;;  %v3678_v53 = vadd.f32 %v3677_v33, %v3614_v28 }
 0x224   : > { %v3742_v56 = vadd.f32 %v3741_v46, %v3733_v25  ;;  %v3703_v32 = vunpack.c.0.s8 %v3702_v1 }
 0x225   : > { %v3691_v30 = vadd.f32 %v3690_v63, %v3615_v57  ;;  %v3755_v38 = vadd.f32 %v3754_v52, %v3734_v6  ;;  %v3679_v9 = vrot.slane %v3678_v53, 4 }
 0x226   : > { %v3743_v58 = vadd.f32 %v3742_v56, %v3735_v47  ;;  %v3706_v5 = vsub.s32 %v3703_v32, %v3705_v16 }
 0x227   : > { %v3692_v42 = vrot.slane %v3691_v30, 4  ;;  %v3756_v19 = vadd.f32 %v3755_v38, %v3736_v45  ;;  %v3680_v18 = vadd.f32 %v3679_v9, %v3678_v53 }
 0x228   : > { %v3744_v44 = vrot.slane %v3743_v58, 4 }
 0x229   : > { %v3693_v37 = vadd.f32 %v3692_v42, %v3691_v30  ;;  %v3757_v62 = vrot.slane %v3756_v19, 4  ;;  %v3681_v10 = vrot.slane %v3680_v18, 2 }
 0x22a   : > { %v3745_v0 = vadd.f32 %v3744_v44, %v3743_v58 }
 0x22b   : > { %v3694_v15 = vrot.slane %v3693_v37, 2  ;;  %v3758_v8 = vadd.f32 %v3757_v62, %v3756_v19  ;;  %v3682_v51 = vadd.f32 %v3681_v10, %v3680_v18 }
 0x22c   : > { %v3746_v12 = vrot.slane %v3745_v0, 2 }
 0x22d   : > { %v3695_v13 = vadd.f32 %v3694_v15, %v3693_v37  ;;  %v3759_v17 = vrot.slane %v3758_v8, 2  ;;  %v3683_v23 = vrot.slane %v3682_v51, 1 }
 0x22e   : > { %v3747_v41 = vadd.f32 %v3746_v12, %v3745_v0 }
 0x22f   : > { %v3696_v35 = vrot.slane %v3695_v13, 1  ;;  %v3760_v4 = vadd.f32 %v3759_v17, %v3758_v8  ;;  %v3684_v22 = vadd.f32 %v3683_v23, %v3682_v51 }
 0x230   : > { %v3748_v60 = vrot.slane %v3747_v41, 1 }
 0x231   : > { %v3697_v26 = vadd.f32 %v3696_v35, %v3695_v13  ;;  %v3761_v61 = vrot.slane %v3760_v4, 1 }
 0x232   : > { %v3749_v21 = vadd.f32 %v3748_v60, %v3747_v41 }
 0x233   : > { %v3700_v28 = vcombine.low %v3684_v22, %v3697_v26  ;;  %v3762_v20 = vadd.f32 %v3761_v61, %v3760_v4 }
 0x235   : > { %v3707_v57 = vrot.slane %v3700_v28, %v3706_v5  ;;  %v3765_v40 = vcombine.low %v3749_v21, %v3762_v20 }
 0x237   : > { %v3714_v48 = vrot.slane %v3707_v57, %v3706_v5  ;;  %v3772_v31 = vrot.slane %v3765_v40, %v3706_v5 }
 0x239   : > { %3720 = vst.msk [vmem:[%s214_s24] sm:$0x3] %vm3718_vm2, %v3714_v48  ;;  %v3779_v54 = vrot.slane %v3772_v31, %v3706_v5 }
 0x23b   : > { %3781 = vst.msk [vmem:[%s218_s27] sm:$0x3] %vm3718_vm2, %v3779_v54 }
 0x23c PF: > { %s15_s15 = sadd.s32 1, %s5112_s15  }
 0x23d   : > { %p12_p4 = scmp.ge.s32.totalorder %s15_s15, 4  }
 0x23f   :  { %14 = sbr.rel (!%p12_p4) target bundleno = 1 (0x1), region = 92 }

</bundles_post_ra>
